<compile_context>
chip_gen: v6e
topology: v6e:2x2x1
jax: 0.10.0
libtpu: 0.0.40
codegen_flags: <defaults>
</compile_context>

<pallas_src>
import functools

import numpy as np
import jax
import jax.numpy as jnp
from jax.experimental import pallas as pl
from jax.experimental.pallas import tpu as pltpu

H = 51          # true hidden size of both LSTM cells
GP = 128        # per-gate width, padded to one vreg lane group
NG = 4          # gates, reordered to [i | f | o | g]
GW = NG * GP    # 512 padded gate columns


def _sigmoid(x):
    # sigmoid(x) == 0.5 * (tanh(x / 2) + 1): one EUP op, no exp + divide.
    return 0.5 * (jnp.tanh(0.5 * x) + 1.0)


# ----------------------------------------------------------------------------
# Pallas kernel: full recurrent forward (seq_len + future steps) in one call.
#
# Lane layout invariants (enforced by pack_params, checked eagerly):
#   h1, c1 : real values in lanes 0..50,   zero elsewhere
#   h2, c2 : real values in lanes 51..101, zero elsewhere
# so `h1 + h2` is the compact (B,128) LHS for both halves of the fused dot.
# ----------------------------------------------------------------------------
def net_kernel(x_ref,        # (T, B, 1)   f32
               wih1_ref,     # (1, GW)     layer-1 input weights (gate-padded)
               b1_ref,       # (1, GW)     layer-1 combined bias (b_ih + b_hh)
               wbig_ref,     # (GP, 2*GW)  [w2c | whh1]  (fused co-issued RHS)
               b2_ref,       # (1, GW)     layer-2 combined bias (shifted layout)
               wfb_ref,      # (GP, GW)    folded feedback weight = wlin^T @ wih1
               bfb_ref,      # (1, GW)     folded feedback bias   = blin*wih1 + b1
               wlin_ref,     # (1, GP)     Linear(51->1) weights (shifted to 51..101)
               blin_ref,     # (1, 1)      Linear bias
               out_ref,      # (T + future, B)
               gx1_ref,      # VMEM scratch (T, B, GW): hoisted layer-1 projection
               *, future):
    T, B, _ = x_ref.shape
    total = T + future

    # Small operands hoisted into vregs; the two large matmul weights are read
    # from their VMEM refs at each use (the MXU streams them; no vreg pressure).
    wih1 = wih1_ref[...]
    b1 = b1_ref[...]
    b2 = b2_ref[...]
    bfb = bfb_ref[...]
    wlin = wlin_ref[...]
    blin = blin_ref[...]

    # Hoisted layer-1 input projection (+ bias) for all teacher-forced steps.
    gx1_ref[...] = x_ref[...] * wih1[None] + b1[None]          # (T, B, GW)

    def lstm_update(gates, c):
        # gates: (B, GW); gate blocks are 128-lane aligned -> slicing is free.
        sig = _sigmoid(gates[:, : 3 * GP])                     # one EUP slab
        i = sig[:, 0:GP]
        f = sig[:, GP:2 * GP]
        o = sig[:, 2 * GP:3 * GP]
        g = jnp.tanh(gates[:, 3 * GP:])                        # one EUP slab
        c_new = f * c + i * g
        return o * jnp.tanh(c_new), c_new

    zeros = jnp.zeros((B, GP), jnp.float32)   # pad lanes stay exactly 0 forever
    c1 = zeros
    h2 = zeros
    c2 = zeros

    # ---- prologue: layer-1 at step 0 (recurrent term is exactly zero) ----
    h1, c1 = lstm_update(gx1_ref[0], c1)

    h2_steps = []   # B=8 -> each h2 is exactly one vreg; 11 live vregs is cheap.

    # Steady state (fully unrolled, state stays in vregs):
    #   big = (h1(t) + h2(t-1)) @ [w2c | whh1]
    #     cols [0, GW)   : layer-2 gate pre-activations for step t
    #     cols [GW, 2GW) : layer-1 recurrent contribution for step t+1
    for t in range(total):
        s = h1 + h2                                            # (B, GP)
        big = jnp.dot(s, wbig_ref[...],
                      preferred_element_type=jnp.float32)      # (B, 2*GW)

        h2, c2 = lstm_update(big[:, :GW] + b2, c2)             # layer-2 step t
        h2_steps.append(h2)

        if t + 1 < total:
            if t + 1 < T:
                # teacher-forced input: hoisted projection (already has b1)
                gates1 = gx1_ref[t + 1] + big[:, GW:]
            else:
                # autoregressive input: Linear head folded into wfb/bfb,
                # rides the MXU instead of an XLU reduce + lane broadcast.
                gates1 = (big[:, GW:] + bfb
                          + jnp.dot(h2, wfb_ref[...],
                                    preferred_element_type=jnp.float32))
            h1, c1 = lstm_update(gates1, c1)                   # layer-1 step t+1

    # Deferred Linear(51 -> 1) head over every step: one batched reduce and one
    # slab store instead of (T + future) tiny masked stores.
    h2_all = jnp.stack(h2_steps, axis=0)                       # (total, B, GP)
    out_ref[...] = jnp.sum(h2_all * wlin[None], axis=-1) + blin


# ----------------------------------------------------------------------------
# Parameter packing.
#   Gate order: torch [i|f|g|o] -> [i|f|o|g]; each gate padded to 128 lanes.
#   Layer-1 outputs live at lane offset 0..50 of each gate block, layer-2
#   outputs at 51..101 (the "shifted" layout that makes h1+h2 the fused LHS).
#   All padded rows/columns are exactly zero (checked below), which keeps the
#   padded state lanes exactly zero through the recurrence.
# ----------------------------------------------------------------------------
def _gate_cols(w_t, offset):
    """(in, 4H) torch order [i|f|g|o] -> (in, GW) order [i|f|o|g], each gate's
    H real columns placed at lane offset `offset` inside its 128-lane block."""
    i, f, g, o = (w_t[:, k * H:(k + 1) * H] for k in range(4))
    place = lambda m: jnp.pad(m, ((0, 0), (offset, GP - H - offset)))
    return jnp.concatenate([place(i), place(f), place(o), place(g)], axis=1)


def _pad_rows(w, rows, row_offset=0):
    return jnp.pad(w, ((row_offset, rows - w.shape[0] - row_offset), (0, 0)))


def pack_params(p):
    # ----- layer 1 (outputs in lanes 0..50 of each gate block) -----
    wih1 = _gate_cols(p["w_ih1"].T, 0)                               # (1, GW)
    whh1 = _pad_rows(_gate_cols(p["w_hh1"].T, 0), GP, 0)             # (GP, GW) rows 0..50
    b1 = _gate_cols((p["b_ih1"] + p["b_hh1"])[None, :], 0)           # (1, GW)

    # ----- layer 2 (outputs shifted to lanes 51..101; LHS = h1 + h2) -----
    w2c = (_pad_rows(_gate_cols(p["w_ih2"].T, H), GP, 0)             # rows 0..50  <- h1
           + _pad_rows(_gate_cols(p["w_hh2"].T, H), GP, H))          # rows 51..101 <- h2
    b2 = _gate_cols((p["b_ih2"] + p["b_hh2"])[None, :], H)           # (1, GW)

    # fused RHS for the co-issued dot: [layer-2 gates | layer-1 recurrent]
    wbig = jnp.concatenate([w2c, whh1], axis=1)                      # (GP, 2*GW)

    # ----- Linear head (reads the shifted h2) -----
    wlin_s = jnp.pad(p["w_lin"], ((0, 0), (H, GP - 2 * H)))          # (1, GP) @ 51..101
    blin = p["b_lin"].reshape(1, 1)                                  # (1, 1)

    # ----- folded autoregressive feedback: gx_future = h2 @ wfb + bfb -----
    wfb = wlin_s.T @ wih1                                            # (GP, GW) rows 51..101
    bfb = blin * wih1 + b1                                           # (1, GW)

    packed = (wih1, b1, wbig, b2, wfb, bfb, wlin_s, blin)
    _assert_padding_zero(packed)
    return packed


def _gate_pad_mask(offset):
    m = np.ones((GW,), dtype=bool)
    for g in range(NG):
        m[g * GP + offset: g * GP + offset + H] = False
    return m


def _assert_padding_zero(packed):
    """Zero-padding invariant the recurrence relies on (review correctness note)."""
    wih1, b1, wbig, b2, wfb, bfb, wlin_s, _ = packed
    m0 = _gate_pad_mask(0)     # layer-1 layout pad columns
    mH = _gate_pad_mask(H)     # layer-2 (shifted) layout pad columns
    checks = [
        (wih1[:, m0], "wih1 pad cols"), (b1[:, m0], "b1 pad cols"),
        (bfb[:, m0], "bfb pad cols"), (wfb[:, m0], "wfb pad cols"),
        (b2[:, mH], "b2 pad cols"),
        (wbig[:, np.concatenate([mH, m0])], "wbig pad cols"),
        (wbig[2 * H:, :], "wbig pad rows"),
        (wbig[H:2 * H, GW:], "whh1 half pad rows"),
        (wfb[:H, :], "wfb rows < H"), (wfb[2 * H:, :], "wfb rows >= 2H"),
        (wlin_s[:, :H], "wlin low pad"), (wlin_s[:, 2 * H:], "wlin high pad"),
    ]
    for arr, name in checks:
        assert float(jnp.max(jnp.abs(arr))) == 0.0, f"padding not zero: {name}"


# ----------------------------------------------------------------------------
# Wrapper
# ----------------------------------------------------------------------------
def net_forward(x, packed, future=0):
    """x: (B, T) float32 -> (B, T + future) float32 (same as Net.forward)."""
    B, T = x.shape
    x_tm = jnp.transpose(x).reshape(T, B, 1).astype(jnp.float32)

    vmem = pl.BlockSpec(memory_space=pltpu.MemorySpace.VMEM)
    out = pl.pallas_call(
        functools.partial(net_kernel, future=future),
        out_shape=jax.ShapeDtypeStruct((T + future, B), jnp.float32),
        in_specs=[vmem] * 9,
        out_specs=vmem,
        scratch_shapes=[pltpu.VMEM((T, B, GW), jnp.float32)],  # hoisted layer-1 proj
    )(x_tm, *packed)

    return jnp.transpose(out)  # (B, T + future)


# ----------------------------------------------------------------------------
# Deterministic parameter init (PyTorch default: U(-1/sqrt(H), 1/sqrt(H))),
# kept in raw PyTorch layout; the reference consumes these directly.
# ----------------------------------------------------------------------------
def init_raw_params(key):
    bound = 1.0 / (H ** 0.5)
    keys = jax.random.split(key, 10)
    u = lambda k, shape: jax.random.uniform(k, shape, jnp.float32, -bound, bound)
    return dict(
        w_ih1=u(keys[0], (4 * H, 1)),
        w_hh1=u(keys[1], (4 * H, H)),
        b_ih1=u(keys[2], (4 * H,)),
        b_hh1=u(keys[3], (4 * H,)),
        w_ih2=u(keys[4], (4 * H, H)),
        w_hh2=u(keys[5], (4 * H, H)),
        b_ih2=u(keys[6], (4 * H,)),
        b_hh2=u(keys[7], (4 * H,)),
        w_lin=u(keys[8], (1, H)),
        b_lin=u(keys[9], (1,)),
    )


# ----------------------------------------------------------------------------
# Pure-JAX reference (PyTorch gate order, no padding) for correctness check
# ----------------------------------------------------------------------------
def ref_forward(x, p, future=0):
    B, T = x.shape
    wih1, whh1 = p["w_ih1"].T, p["w_hh1"].T
    b1 = (p["b_ih1"] + p["b_hh1"])[None, :]
    wih2, whh2 = p["w_ih2"].T, p["w_hh2"].T
    b2 = (p["b_ih2"] + p["b_hh2"])[None, :]
    wlin, blin = p["w_lin"], p["b_lin"][None, :]

    def cell(gx, h, c, whh, b):
        g = gx + h @ whh + b
        i = jax.nn.sigmoid(g[:, 0:H])
        f = jax.nn.sigmoid(g[:, H:2 * H])
        gg = jnp.tanh(g[:, 2 * H:3 * H])
        o = jax.nn.sigmoid(g[:, 3 * H:4 * H])
        c_new = f * c + i * gg
        return o * jnp.tanh(c_new), c_new

    h1 = jnp.zeros((B, H)); c1 = jnp.zeros((B, H))
    h2 = jnp.zeros((B, H)); c2 = jnp.zeros((B, H))
    outs, y = [], None
    for t in range(T):
        h1, c1 = cell(x[:, t:t + 1] * wih1, h1, c1, whh1, b1)
        h2, c2 = cell(h1 @ wih2, h2, c2, whh2, b2)
        y = h2 @ wlin.T + blin
        outs.append(y)
    for _ in range(future):
        h1, c1 = cell(y * wih1, h1, c1, whh1, b1)
        h2, c2 = cell(h1 @ wih2, h2, c2, whh2, b2)
        y = h2 @ wlin.T + blin
        outs.append(y)
    return jnp.concatenate(outs, axis=1)  # (B, T + future)


if __name__ == "__main__":
    # B=8 fills all 8 sublanes of every (B,128) state vreg (perf-review item).
    B, T, FUTURE = 8, 8, 3

    key = jax.random.PRNGKey(0)
    k_param, k_x = jax.random.split(key)
    raw = init_raw_params(k_param)
    packed = pack_params(raw)
    x = jax.random.normal(k_x, (B, T), dtype=jnp.float32)

    out = jax.block_until_ready(net_forward(x, packed, future=FUTURE))
    ref = jax.block_until_ready(ref_forward(x, raw, future=FUTURE))

    assert out.shape == (B, T + FUTURE), out.shape
    err = float(jnp.max(jnp.abs(out - ref)))
    assert err < 1e-3, f"max abs err = {err}"

    print("KERNEL_OK")
</pallas_src>

<mosaic_0001>
module attributes {stable_mosaic.version = 11 : i64} {
  func.func @net_kernel(%arg0: memref<8x8x1xf32, #tpu.memory_space<vmem>>, %arg1: memref<1x512xf32, #tpu.memory_space<vmem>>, %arg2: memref<1x512xf32, #tpu.memory_space<vmem>>, %arg3: memref<128x1024xf32, #tpu.memory_space<vmem>>, %arg4: memref<1x512xf32, #tpu.memory_space<vmem>>, %arg5: memref<128x512xf32, #tpu.memory_space<vmem>>, %arg6: memref<1x512xf32, #tpu.memory_space<vmem>>, %arg7: memref<1x128xf32, #tpu.memory_space<vmem>>, %arg8: memref<1x1xf32, #tpu.memory_space<vmem>>, %arg9: memref<11x8xf32, #tpu.memory_space<vmem>>, %arg10: memref<8x8x512xf32, #tpu.memory_space<vmem>>) attributes {dimension_semantics = [], scalar_prefetch = 0 : i64, scratch_operands = 1 : i64, tpu.core_type = #tpu.core_type<tc>} {
    %c0 = arith.constant 0 : index
    %c0_0 = arith.constant 0 : index
    %0 = vector.load %arg1[%c0, %c0_0] : memref<1x512xf32, #tpu.memory_space<vmem>>, vector<1x512xf32>
    %c0_1 = arith.constant 0 : index
    %c0_2 = arith.constant 0 : index
    %1 = vector.load %arg2[%c0_1, %c0_2] : memref<1x512xf32, #tpu.memory_space<vmem>>, vector<1x512xf32>
    %c0_3 = arith.constant 0 : index
    %c0_4 = arith.constant 0 : index
    %2 = vector.load %arg4[%c0_3, %c0_4] : memref<1x512xf32, #tpu.memory_space<vmem>>, vector<1x512xf32>
    %c0_5 = arith.constant 0 : index
    %c0_6 = arith.constant 0 : index
    %3 = vector.load %arg6[%c0_5, %c0_6] : memref<1x512xf32, #tpu.memory_space<vmem>>, vector<1x512xf32>
    %c0_7 = arith.constant 0 : index
    %c0_8 = arith.constant 0 : index
    %4 = vector.load %arg7[%c0_7, %c0_8] : memref<1x128xf32, #tpu.memory_space<vmem>>, vector<1x128xf32>
    %c0_9 = arith.constant 0 : index
    %c0_10 = arith.constant 0 : index
    %5 = vector.load %arg8[%c0_9, %c0_10] : memref<1x1xf32, #tpu.memory_space<vmem>>, vector<1x1xf32>
    %c0_11 = arith.constant 0 : index
    %c0_12 = arith.constant 0 : index
    %c0_13 = arith.constant 0 : index
    %6 = vector.load %arg0[%c0_11, %c0_12, %c0_13] : memref<8x8x1xf32, #tpu.memory_space<vmem>>, vector<8x8x1xf32>
    %7 = vector.shape_cast %0 : vector<1x512xf32> to vector<1x1x512xf32>
    %8 = vector.broadcast %6 : vector<8x8x1xf32> to vector<8x8x512xf32>
    %9 = vector.broadcast %7 : vector<1x1x512xf32> to vector<8x8x512xf32>
    %10 = arith.mulf %8, %9 : vector<8x8x512xf32>
    %11 = vector.shape_cast %1 : vector<1x512xf32> to vector<1x1x512xf32>
    %12 = vector.broadcast %11 : vector<1x1x512xf32> to vector<8x8x512xf32>
    %13 = arith.addf %10, %12 : vector<8x8x512xf32>
    %c0_14 = arith.constant 0 : index
    %c0_15 = arith.constant 0 : index
    %c0_16 = arith.constant 0 : index
    %14 = vector.load %arg10[%c0_14, %c0_15, %c0_16] : memref<8x8x512xf32, #tpu.memory_space<vmem>>, vector<8x8x512xf32>
    tpu.vector_store %arg10[%c0_14, %c0_15, %c0_16], %13 {strides = array<i32>} : memref<8x8x512xf32, #tpu.memory_space<vmem>>, vector<8x8x512xf32>,
    %cst = arith.constant 0.000000e+00 : f32
    %15 = vector.broadcast %cst : f32 to vector<8x128xf32>
    %c0_17 = arith.constant 0 : index
    %c0_18 = arith.constant 0 : index
    %c0_19 = arith.constant 0 : index
    %16 = vector.load %arg10[%c0_17, %c0_18, %c0_19] : memref<8x8x512xf32, #tpu.memory_space<vmem>>, vector<1x8x512xf32>
    %17 = vector.shape_cast %16 : vector<1x8x512xf32> to vector<8x512xf32>
    %18 = vector.extract_strided_slice %17 {offsets = [0, 0], sizes = [8, 384], strides = [1, 1]} : vector<8x512xf32> to vector<8x384xf32>
    %cst_20 = arith.constant 5.000000e-01 : f32
    %19 = vector.broadcast %cst_20 : f32 to vector<8x384xf32>
    %20 = arith.mulf %19, %18 : vector<8x384xf32>
    %21 = math.tanh %20 : vector<8x384xf32>
    %cst_21 = arith.constant 1.000000e+00 : f32
    %22 = vector.broadcast %cst_21 : f32 to vector<8x384xf32>
    %23 = arith.addf %21, %22 : vector<8x384xf32>
    %cst_22 = arith.constant 5.000000e-01 : f32
    %24 = vector.broadcast %cst_22 : f32 to vector<8x384xf32>
    %25 = arith.mulf %24, %23 : vector<8x384xf32>
    %26 = vector.extract_strided_slice %25 {offsets = [0, 0], sizes = [8, 128], strides = [1, 1]} : vector<8x384xf32> to vector<8x128xf32>
    %27 = vector.extract_strided_slice %25 {offsets = [0, 128], sizes = [8, 128], strides = [1, 1]} : vector<8x384xf32> to vector<8x128xf32>
    %28 = vector.extract_strided_slice %25 {offsets = [0, 256], sizes = [8, 128], strides = [1, 1]} : vector<8x384xf32> to vector<8x128xf32>
    %29 = vector.extract_strided_slice %17 {offsets = [0, 384], sizes = [8, 128], strides = [1, 1]} : vector<8x512xf32> to vector<8x128xf32>
    %30 = math.tanh %29 : vector<8x128xf32>
    %31 = arith.mulf %27, %15 : vector<8x128xf32>
    %32 = arith.mulf %26, %30 : vector<8x128xf32>
    %33 = arith.addf %31, %32 : vector<8x128xf32>
    %34 = math.tanh %33 : vector<8x128xf32>
    %35 = arith.mulf %28, %34 : vector<8x128xf32>
    %36 = arith.addf %35, %15 : vector<8x128xf32>
    %c0_23 = arith.constant 0 : index
    %c0_24 = arith.constant 0 : index
    %37 = vector.load %arg3[%c0_23, %c0_24] : memref<128x1024xf32, #tpu.memory_space<vmem>>, vector<128x1024xf32>
    %cst_25 = arith.constant dense<0.000000e+00> : vector<8x1024xf32>
    %38 = tpu.matmul %36, %37, %cst_25 {dimension_numbers = #tpu.dot_dimension_numbers<[1], [0], [0], [1], [0, 0, 1, 1], [], []>} : vector<8x128xf32>, vector<128x1024xf32>, vector<8x1024xf32> -> vector<8x1024xf32>
    %39 = vector.extract_strided_slice %38 {offsets = [0, 0], sizes = [8, 512], strides = [1, 1]} : vector<8x1024xf32> to vector<8x512xf32>
    %40 = vector.broadcast %2 : vector<1x512xf32> to vector<8x512xf32>
    %41 = arith.addf %39, %40 : vector<8x512xf32>
    %42 = vector.extract_strided_slice %41 {offsets = [0, 0], sizes = [8, 384], strides = [1, 1]} : vector<8x512xf32> to vector<8x384xf32>
    %cst_26 = arith.constant 5.000000e-01 : f32
    %43 = vector.broadcast %cst_26 : f32 to vector<8x384xf32>
    %44 = arith.mulf %43, %42 : vector<8x384xf32>
    %45 = math.tanh %44 : vector<8x384xf32>
    %cst_27 = arith.constant 1.000000e+00 : f32
    %46 = vector.broadcast %cst_27 : f32 to vector<8x384xf32>
    %47 = arith.addf %45, %46 : vector<8x384xf32>
    %cst_28 = arith.constant 5.000000e-01 : f32
    %48 = vector.broadcast %cst_28 : f32 to vector<8x384xf32>
    %49 = arith.mulf %48, %47 : vector<8x384xf32>
    %50 = vector.extract_strided_slice %49 {offsets = [0, 0], sizes = [8, 128], strides = [1, 1]} : vector<8x384xf32> to vector<8x128xf32>
    %51 = vector.extract_strided_slice %49 {offsets = [0, 128], sizes = [8, 128], strides = [1, 1]} : vector<8x384xf32> to vector<8x128xf32>
    %52 = vector.extract_strided_slice %49 {offsets = [0, 256], sizes = [8, 128], strides = [1, 1]} : vector<8x384xf32> to vector<8x128xf32>
    %53 = vector.extract_strided_slice %41 {offsets = [0, 384], sizes = [8, 128], strides = [1, 1]} : vector<8x512xf32> to vector<8x128xf32>
    %54 = math.tanh %53 : vector<8x128xf32>
    %55 = arith.mulf %51, %15 : vector<8x128xf32>
    %56 = arith.mulf %50, %54 : vector<8x128xf32>
    %57 = arith.addf %55, %56 : vector<8x128xf32>
    %58 = math.tanh %57 : vector<8x128xf32>
    %59 = arith.mulf %52, %58 : vector<8x128xf32>
    %c1 = arith.constant 1 : index
    %c0_29 = arith.constant 0 : index
    %c0_30 = arith.constant 0 : index
    %60 = vector.load %arg10[%c1, %c0_29, %c0_30] : memref<8x8x512xf32, #tpu.memory_space<vmem>>, vector<1x8x512xf32>
    %61 = vector.shape_cast %60 : vector<1x8x512xf32> to vector<8x512xf32>
    %62 = vector.extract_strided_slice %38 {offsets = [0, 512], sizes = [8, 512], strides = [1, 1]} : vector<8x1024xf32> to vector<8x512xf32>
    %63 = arith.addf %61, %62 : vector<8x512xf32>
    %64 = vector.extract_strided_slice %63 {offsets = [0, 0], sizes = [8, 384], strides = [1, 1]} : vector<8x512xf32> to vector<8x384xf32>
    %cst_31 = arith.constant 5.000000e-01 : f32
    %65 = vector.broadcast %cst_31 : f32 to vector<8x384xf32>
    %66 = arith.mulf %65, %64 : vector<8x384xf32>
    %67 = math.tanh %66 : vector<8x384xf32>
    %cst_32 = arith.constant 1.000000e+00 : f32
    %68 = vector.broadcast %cst_32 : f32 to vector<8x384xf32>
    %69 = arith.addf %67, %68 : vector<8x384xf32>
    %cst_33 = arith.constant 5.000000e-01 : f32
    %70 = vector.broadcast %cst_33 : f32 to vector<8x384xf32>
    %71 = arith.mulf %70, %69 : vector<8x384xf32>
    %72 = vector.extract_strided_slice %71 {offsets = [0, 0], sizes = [8, 128], strides = [1, 1]} : vector<8x384xf32> to vector<8x128xf32>
    %73 = vector.extract_strided_slice %71 {offsets = [0, 128], sizes = [8, 128], strides = [1, 1]} : vector<8x384xf32> to vector<8x128xf32>
    %74 = vector.extract_strided_slice %71 {offsets = [0, 256], sizes = [8, 128], strides = [1, 1]} : vector<8x384xf32> to vector<8x128xf32>
    %75 = vector.extract_strided_slice %63 {offsets = [0, 384], sizes = [8, 128], strides = [1, 1]} : vector<8x512xf32> to vector<8x128xf32>
    %76 = math.tanh %75 : vector<8x128xf32>
    %77 = arith.mulf %73, %33 : vector<8x128xf32>
    %78 = arith.mulf %72, %76 : vector<8x128xf32>
    %79 = arith.addf %77, %78 : vector<8x128xf32>
    %80 = math.tanh %79 : vector<8x128xf32>
    %81 = arith.mulf %74, %80 : vector<8x128xf32>
    %82 = arith.addf %81, %59 : vector<8x128xf32>
    %c0_34 = arith.constant 0 : index
    %c0_35 = arith.constant 0 : index
    %83 = vector.load %arg3[%c0_34, %c0_35] : memref<128x1024xf32, #tpu.memory_space<vmem>>, vector<128x1024xf32>
    %cst_36 = arith.constant dense<0.000000e+00> : vector<8x1024xf32>
    %84 = tpu.matmul %82, %83, %cst_36 {dimension_numbers = #tpu.dot_dimension_numbers<[1], [0], [0], [1], [0, 0, 1, 1], [], []>} : vector<8x128xf32>, vector<128x1024xf32>, vector<8x1024xf32> -> vector<8x1024xf32>
    %85 = vector.extract_strided_slice %84 {offsets = [0, 0], sizes = [8, 512], strides = [1, 1]} : vector<8x1024xf32> to vector<8x512xf32>
    %86 = vector.broadcast %2 : vector<1x512xf32> to vector<8x512xf32>
    %87 = arith.addf %85, %86 : vector<8x512xf32>
    %88 = vector.extract_strided_slice %87 {offsets = [0, 0], sizes = [8, 384], strides = [1, 1]} : vector<8x512xf32> to vector<8x384xf32>
    %cst_37 = arith.constant 5.000000e-01 : f32
    %89 = vector.broadcast %cst_37 : f32 to vector<8x384xf32>
    %90 = arith.mulf %89, %88 : vector<8x384xf32>
    %91 = math.tanh %90 : vector<8x384xf32>
    %cst_38 = arith.constant 1.000000e+00 : f32
    %92 = vector.broadcast %cst_38 : f32 to vector<8x384xf32>
    %93 = arith.addf %91, %92 : vector<8x384xf32>
    %cst_39 = arith.constant 5.000000e-01 : f32
    %94 = vector.broadcast %cst_39 : f32 to vector<8x384xf32>
    %95 = arith.mulf %94, %93 : vector<8x384xf32>
    %96 = vector.extract_strided_slice %95 {offsets = [0, 0], sizes = [8, 128], strides = [1, 1]} : vector<8x384xf32> to vector<8x128xf32>
    %97 = vector.extract_strided_slice %95 {offsets = [0, 128], sizes = [8, 128], strides = [1, 1]} : vector<8x384xf32> to vector<8x128xf32>
    %98 = vector.extract_strided_slice %95 {offsets = [0, 256], sizes = [8, 128], strides = [1, 1]} : vector<8x384xf32> to vector<8x128xf32>
    %99 = vector.extract_strided_slice %87 {offsets = [0, 384], sizes = [8, 128], strides = [1, 1]} : vector<8x512xf32> to vector<8x128xf32>
    %100 = math.tanh %99 : vector<8x128xf32>
    %101 = arith.mulf %97, %57 : vector<8x128xf32>
    %102 = arith.mulf %96, %100 : vector<8x128xf32>
    %103 = arith.addf %101, %102 : vector<8x128xf32>
    %104 = math.tanh %103 : vector<8x128xf32>
    %105 = arith.mulf %98, %104 : vector<8x128xf32>
    %c2 = arith.constant 2 : index
    %c0_40 = arith.constant 0 : index
    %c0_41 = arith.constant 0 : index
    %106 = vector.load %arg10[%c2, %c0_40, %c0_41] : memref<8x8x512xf32, #tpu.memory_space<vmem>>, vector<1x8x512xf32>
    %107 = vector.shape_cast %106 : vector<1x8x512xf32> to vector<8x512xf32>
    %108 = vector.extract_strided_slice %84 {offsets = [0, 512], sizes = [8, 512], strides = [1, 1]} : vector<8x1024xf32> to vector<8x512xf32>
    %109 = arith.addf %107, %108 : vector<8x512xf32>
    %110 = vector.extract_strided_slice %109 {offsets = [0, 0], sizes = [8, 384], strides = [1, 1]} : vector<8x512xf32> to vector<8x384xf32>
    %cst_42 = arith.constant 5.000000e-01 : f32
    %111 = vector.broadcast %cst_42 : f32 to vector<8x384xf32>
    %112 = arith.mulf %111, %110 : vector<8x384xf32>
    %113 = math.tanh %112 : vector<8x384xf32>
    %cst_43 = arith.constant 1.000000e+00 : f32
    %114 = vector.broadcast %cst_43 : f32 to vector<8x384xf32>
    %115 = arith.addf %113, %114 : vector<8x384xf32>
    %cst_44 = arith.constant 5.000000e-01 : f32
    %116 = vector.broadcast %cst_44 : f32 to vector<8x384xf32>
    %117 = arith.mulf %116, %115 : vector<8x384xf32>
    %118 = vector.extract_strided_slice %117 {offsets = [0, 0], sizes = [8, 128], strides = [1, 1]} : vector<8x384xf32> to vector<8x128xf32>
    %119 = vector.extract_strided_slice %117 {offsets = [0, 128], sizes = [8, 128], strides = [1, 1]} : vector<8x384xf32> to vector<8x128xf32>
    %120 = vector.extract_strided_slice %117 {offsets = [0, 256], sizes = [8, 128], strides = [1, 1]} : vector<8x384xf32> to vector<8x128xf32>
    %121 = vector.extract_strided_slice %109 {offsets = [0, 384], sizes = [8, 128], strides = [1, 1]} : vector<8x512xf32> to vector<8x128xf32>
    %122 = math.tanh %121 : vector<8x128xf32>
    %123 = arith.mulf %119, %79 : vector<8x128xf32>
    %124 = arith.mulf %118, %122 : vector<8x128xf32>
    %125 = arith.addf %123, %124 : vector<8x128xf32>
    %126 = math.tanh %125 : vector<8x128xf32>
    %127 = arith.mulf %120, %126 : vector<8x128xf32>
    %128 = arith.addf %127, %105 : vector<8x128xf32>
    %c0_45 = arith.constant 0 : index
    %c0_46 = arith.constant 0 : index
    %129 = vector.load %arg3[%c0_45, %c0_46] : memref<128x1024xf32, #tpu.memory_space<vmem>>, vector<128x1024xf32>
    %cst_47 = arith.constant dense<0.000000e+00> : vector<8x1024xf32>
    %130 = tpu.matmul %128, %129, %cst_47 {dimension_numbers = #tpu.dot_dimension_numbers<[1], [0], [0], [1], [0, 0, 1, 1], [], []>} : vector<8x128xf32>, vector<128x1024xf32>, vector<8x1024xf32> -> vector<8x1024xf32>
    %131 = vector.extract_strided_slice %130 {offsets = [0, 0], sizes = [8, 512], strides = [1, 1]} : vector<8x1024xf32> to vector<8x512xf32>
    %132 = vector.broadcast %2 : vector<1x512xf32> to vector<8x512xf32>
    %133 = arith.addf %131, %132 : vector<8x512xf32>
    %134 = vector.extract_strided_slice %133 {offsets = [0, 0], sizes = [8, 384], strides = [1, 1]} : vector<8x512xf32> to vector<8x384xf32>
    %cst_48 = arith.constant 5.000000e-01 : f32
    %135 = vector.broadcast %cst_48 : f32 to vector<8x384xf32>
    %136 = arith.mulf %135, %134 : vector<8x384xf32>
    %137 = math.tanh %136 : vector<8x384xf32>
    %cst_49 = arith.constant 1.000000e+00 : f32
    %138 = vector.broadcast %cst_49 : f32 to vector<8x384xf32>
    %139 = arith.addf %137, %138 : vector<8x384xf32>
    %cst_50 = arith.constant 5.000000e-01 : f32
    %140 = vector.broadcast %cst_50 : f32 to vector<8x384xf32>
    %141 = arith.mulf %140, %139 : vector<8x384xf32>
    %142 = vector.extract_strided_slice %141 {offsets = [0, 0], sizes = [8, 128], strides = [1, 1]} : vector<8x384xf32> to vector<8x128xf32>
    %143 = vector.extract_strided_slice %141 {offsets = [0, 128], sizes = [8, 128], strides = [1, 1]} : vector<8x384xf32> to vector<8x128xf32>
    %144 = vector.extract_strided_slice %141 {offsets = [0, 256], sizes = [8, 128], strides = [1, 1]} : vector<8x384xf32> to vector<8x128xf32>
    %145 = vector.extract_strided_slice %133 {offsets = [0, 384], sizes = [8, 128], strides = [1, 1]} : vector<8x512xf32> to vector<8x128xf32>
    %146 = math.tanh %145 : vector<8x128xf32>
    %147 = arith.mulf %143, %103 : vector<8x128xf32>
    %148 = arith.mulf %142, %146 : vector<8x128xf32>
    %149 = arith.addf %147, %148 : vector<8x128xf32>
    %150 = math.tanh %149 : vector<8x128xf32>
    %151 = arith.mulf %144, %150 : vector<8x128xf32>
    %c3 = arith.constant 3 : index
    %c0_51 = arith.constant 0 : index
    %c0_52 = arith.constant 0 : index
    %152 = vector.load %arg10[%c3, %c0_51, %c0_52] : memref<8x8x512xf32, #tpu.memory_space<vmem>>, vector<1x8x512xf32>
    %153 = vector.shape_cast %152 : vector<1x8x512xf32> to vector<8x512xf32>
    %154 = vector.extract_strided_slice %130 {offsets = [0, 512], sizes = [8, 512], strides = [1, 1]} : vector<8x1024xf32> to vector<8x512xf32>
    %155 = arith.addf %153, %154 : vector<8x512xf32>
    %156 = vector.extract_strided_slice %155 {offsets = [0, 0], sizes = [8, 384], strides = [1, 1]} : vector<8x512xf32> to vector<8x384xf32>
    %cst_53 = arith.constant 5.000000e-01 : f32
    %157 = vector.broadcast %cst_53 : f32 to vector<8x384xf32>
    %158 = arith.mulf %157, %156 : vector<8x384xf32>
    %159 = math.tanh %158 : vector<8x384xf32>
    %cst_54 = arith.constant 1.000000e+00 : f32
    %160 = vector.broadcast %cst_54 : f32 to vector<8x384xf32>
    %161 = arith.addf %159, %160 : vector<8x384xf32>
    %cst_55 = arith.constant 5.000000e-01 : f32
    %162 = vector.broadcast %cst_55 : f32 to vector<8x384xf32>
    %163 = arith.mulf %162, %161 : vector<8x384xf32>
    %164 = vector.extract_strided_slice %163 {offsets = [0, 0], sizes = [8, 128], strides = [1, 1]} : vector<8x384xf32> to vector<8x128xf32>
    %165 = vector.extract_strided_slice %163 {offsets = [0, 128], sizes = [8, 128], strides = [1, 1]} : vector<8x384xf32> to vector<8x128xf32>
    %166 = vector.extract_strided_slice %163 {offsets = [0, 256], sizes = [8, 128], strides = [1, 1]} : vector<8x384xf32> to vector<8x128xf32>
    %167 = vector.extract_strided_slice %155 {offsets = [0, 384], sizes = [8, 128], strides = [1, 1]} : vector<8x512xf32> to vector<8x128xf32>
    %168 = math.tanh %167 : vector<8x128xf32>
    %169 = arith.mulf %165, %125 : vector<8x128xf32>
    %170 = arith.mulf %164, %168 : vector<8x128xf32>
    %171 = arith.addf %169, %170 : vector<8x128xf32>
    %172 = math.tanh %171 : vector<8x128xf32>
    %173 = arith.mulf %166, %172 : vector<8x128xf32>
    %174 = arith.addf %173, %151 : vector<8x128xf32>
    %c0_56 = arith.constant 0 : index
    %c0_57 = arith.constant 0 : index
    %175 = vector.load %arg3[%c0_56, %c0_57] : memref<128x1024xf32, #tpu.memory_space<vmem>>, vector<128x1024xf32>
    %cst_58 = arith.constant dense<0.000000e+00> : vector<8x1024xf32>
    %176 = tpu.matmul %174, %175, %cst_58 {dimension_numbers = #tpu.dot_dimension_numbers<[1], [0], [0], [1], [0, 0, 1, 1], [], []>} : vector<8x128xf32>, vector<128x1024xf32>, vector<8x1024xf32> -> vector<8x1024xf32>
    %177 = vector.extract_strided_slice %176 {offsets = [0, 0], sizes = [8, 512], strides = [1, 1]} : vector<8x1024xf32> to vector<8x512xf32>
    %178 = vector.broadcast %2 : vector<1x512xf32> to vector<8x512xf32>
    %179 = arith.addf %177, %178 : vector<8x512xf32>
    %180 = vector.extract_strided_slice %179 {offsets = [0, 0], sizes = [8, 384], strides = [1, 1]} : vector<8x512xf32> to vector<8x384xf32>
    %cst_59 = arith.constant 5.000000e-01 : f32
    %181 = vector.broadcast %cst_59 : f32 to vector<8x384xf32>
    %182 = arith.mulf %181, %180 : vector<8x384xf32>
    %183 = math.tanh %182 : vector<8x384xf32>
    %cst_60 = arith.constant 1.000000e+00 : f32
    %184 = vector.broadcast %cst_60 : f32 to vector<8x384xf32>
    %185 = arith.addf %183, %184 : vector<8x384xf32>
    %cst_61 = arith.constant 5.000000e-01 : f32
    %186 = vector.broadcast %cst_61 : f32 to vector<8x384xf32>
    %187 = arith.mulf %186, %185 : vector<8x384xf32>
    %188 = vector.extract_strided_slice %187 {offsets = [0, 0], sizes = [8, 128], strides = [1, 1]} : vector<8x384xf32> to vector<8x128xf32>
    %189 = vector.extract_strided_slice %187 {offsets = [0, 128], sizes = [8, 128], strides = [1, 1]} : vector<8x384xf32> to vector<8x128xf32>
    %190 = vector.extract_strided_slice %187 {offsets = [0, 256], sizes = [8, 128], strides = [1, 1]} : vector<8x384xf32> to vector<8x128xf32>
    %191 = vector.extract_strided_slice %179 {offsets = [0, 384], sizes = [8, 128], strides = [1, 1]} : vector<8x512xf32> to vector<8x128xf32>
    %192 = math.tanh %191 : vector<8x128xf32>
    %193 = arith.mulf %189, %149 : vector<8x128xf32>
    %194 = arith.mulf %188, %192 : vector<8x128xf32>
    %195 = arith.addf %193, %194 : vector<8x128xf32>
    %196 = math.tanh %195 : vector<8x128xf32>
    %197 = arith.mulf %190, %196 : vector<8x128xf32>
    %c4 = arith.constant 4 : index
    %c0_62 = arith.constant 0 : index
    %c0_63 = arith.constant 0 : index
    %198 = vector.load %arg10[%c4, %c0_62, %c0_63] : memref<8x8x512xf32, #tpu.memory_space<vmem>>, vector<1x8x512xf32>
    %199 = vector.shape_cast %198 : vector<1x8x512xf32> to vector<8x512xf32>
    %200 = vector.extract_strided_slice %176 {offsets = [0, 512], sizes = [8, 512], strides = [1, 1]} : vector<8x1024xf32> to vector<8x512xf32>
    %201 = arith.addf %199, %200 : vector<8x512xf32>
    %202 = vector.extract_strided_slice %201 {offsets = [0, 0], sizes = [8, 384], strides = [1, 1]} : vector<8x512xf32> to vector<8x384xf32>
    %cst_64 = arith.constant 5.000000e-01 : f32
    %203 = vector.broadcast %cst_64 : f32 to vector<8x384xf32>
    %204 = arith.mulf %203, %202 : vector<8x384xf32>
    %205 = math.tanh %204 : vector<8x384xf32>
    %cst_65 = arith.constant 1.000000e+00 : f32
    %206 = vector.broadcast %cst_65 : f32 to vector<8x384xf32>
    %207 = arith.addf %205, %206 : vector<8x384xf32>
    %cst_66 = arith.constant 5.000000e-01 : f32
    %208 = vector.broadcast %cst_66 : f32 to vector<8x384xf32>
    %209 = arith.mulf %208, %207 : vector<8x384xf32>
    %210 = vector.extract_strided_slice %209 {offsets = [0, 0], sizes = [8, 128], strides = [1, 1]} : vector<8x384xf32> to vector<8x128xf32>
    %211 = vector.extract_strided_slice %209 {offsets = [0, 128], sizes = [8, 128], strides = [1, 1]} : vector<8x384xf32> to vector<8x128xf32>
    %212 = vector.extract_strided_slice %209 {offsets = [0, 256], sizes = [8, 128], strides = [1, 1]} : vector<8x384xf32> to vector<8x128xf32>
    %213 = vector.extract_strided_slice %201 {offsets = [0, 384], sizes = [8, 128], strides = [1, 1]} : vector<8x512xf32> to vector<8x128xf32>
    %214 = math.tanh %213 : vector<8x128xf32>
    %215 = arith.mulf %211, %171 : vector<8x128xf32>
    %216 = arith.mulf %210, %214 : vector<8x128xf32>
    %217 = arith.addf %215, %216 : vector<8x128xf32>
    %218 = math.tanh %217 : vector<8x128xf32>
    %219 = arith.mulf %212, %218 : vector<8x128xf32>
    %220 = arith.addf %219, %197 : vector<8x128xf32>
    %c0_67 = arith.constant 0 : index
    %c0_68 = arith.constant 0 : index
    %221 = vector.load %arg3[%c0_67, %c0_68] : memref<128x1024xf32, #tpu.memory_space<vmem>>, vector<128x1024xf32>
    %cst_69 = arith.constant dense<0.000000e+00> : vector<8x1024xf32>
    %222 = tpu.matmul %220, %221, %cst_69 {dimension_numbers = #tpu.dot_dimension_numbers<[1], [0], [0], [1], [0, 0, 1, 1], [], []>} : vector<8x128xf32>, vector<128x1024xf32>, vector<8x1024xf32> -> vector<8x1024xf32>
    %223 = vector.extract_strided_slice %222 {offsets = [0, 0], sizes = [8, 512], strides = [1, 1]} : vector<8x1024xf32> to vector<8x512xf32>
    %224 = vector.broadcast %2 : vector<1x512xf32> to vector<8x512xf32>
    %225 = arith.addf %223, %224 : vector<8x512xf32>
    %226 = vector.extract_strided_slice %225 {offsets = [0, 0], sizes = [8, 384], strides = [1, 1]} : vector<8x512xf32> to vector<8x384xf32>
    %cst_70 = arith.constant 5.000000e-01 : f32
    %227 = vector.broadcast %cst_70 : f32 to vector<8x384xf32>
    %228 = arith.mulf %227, %226 : vector<8x384xf32>
    %229 = math.tanh %228 : vector<8x384xf32>
    %cst_71 = arith.constant 1.000000e+00 : f32
    %230 = vector.broadcast %cst_71 : f32 to vector<8x384xf32>
    %231 = arith.addf %229, %230 : vector<8x384xf32>
    %cst_72 = arith.constant 5.000000e-01 : f32
    %232 = vector.broadcast %cst_72 : f32 to vector<8x384xf32>
    %233 = arith.mulf %232, %231 : vector<8x384xf32>
    %234 = vector.extract_strided_slice %233 {offsets = [0, 0], sizes = [8, 128], strides = [1, 1]} : vector<8x384xf32> to vector<8x128xf32>
    %235 = vector.extract_strided_slice %233 {offsets = [0, 128], sizes = [8, 128], strides = [1, 1]} : vector<8x384xf32> to vector<8x128xf32>
    %236 = vector.extract_strided_slice %233 {offsets = [0, 256], sizes = [8, 128], strides = [1, 1]} : vector<8x384xf32> to vector<8x128xf32>
    %237 = vector.extract_strided_slice %225 {offsets = [0, 384], sizes = [8, 128], strides = [1, 1]} : vector<8x512xf32> to vector<8x128xf32>
    %238 = math.tanh %237 : vector<8x128xf32>
    %239 = arith.mulf %235, %195 : vector<8x128xf32>
    %240 = arith.mulf %234, %238 : vector<8x128xf32>
    %241 = arith.addf %239, %240 : vector<8x128xf32>
    %242 = math.tanh %241 : vector<8x128xf32>
    %243 = arith.mulf %236, %242 : vector<8x128xf32>
    %c5 = arith.constant 5 : index
    %c0_73 = arith.constant 0 : index
    %c0_74 = arith.constant 0 : index
    %244 = vector.load %arg10[%c5, %c0_73, %c0_74] : memref<8x8x512xf32, #tpu.memory_space<vmem>>, vector<1x8x512xf32>
    %245 = vector.shape_cast %244 : vector<1x8x512xf32> to vector<8x512xf32>
    %246 = vector.extract_strided_slice %222 {offsets = [0, 512], sizes = [8, 512], strides = [1, 1]} : vector<8x1024xf32> to vector<8x512xf32>
    %247 = arith.addf %245, %246 : vector<8x512xf32>
    %248 = vector.extract_strided_slice %247 {offsets = [0, 0], sizes = [8, 384], strides = [1, 1]} : vector<8x512xf32> to vector<8x384xf32>
    %cst_75 = arith.constant 5.000000e-01 : f32
    %249 = vector.broadcast %cst_75 : f32 to vector<8x384xf32>
    %250 = arith.mulf %249, %248 : vector<8x384xf32>
    %251 = math.tanh %250 : vector<8x384xf32>
    %cst_76 = arith.constant 1.000000e+00 : f32
    %252 = vector.broadcast %cst_76 : f32 to vector<8x384xf32>
    %253 = arith.addf %251, %252 : vector<8x384xf32>
    %cst_77 = arith.constant 5.000000e-01 : f32
    %254 = vector.broadcast %cst_77 : f32 to vector<8x384xf32>
    %255 = arith.mulf %254, %253 : vector<8x384xf32>
    %256 = vector.extract_strided_slice %255 {offsets = [0, 0], sizes = [8, 128], strides = [1, 1]} : vector<8x384xf32> to vector<8x128xf32>
    %257 = vector.extract_strided_slice %255 {offsets = [0, 128], sizes = [8, 128], strides = [1, 1]} : vector<8x384xf32> to vector<8x128xf32>
    %258 = vector.extract_strided_slice %255 {offsets = [0, 256], sizes = [8, 128], strides = [1, 1]} : vector<8x384xf32> to vector<8x128xf32>
    %259 = vector.extract_strided_slice %247 {offsets = [0, 384], sizes = [8, 128], strides = [1, 1]} : vector<8x512xf32> to vector<8x128xf32>
    %260 = math.tanh %259 : vector<8x128xf32>
    %261 = arith.mulf %257, %217 : vector<8x128xf32>
    %262 = arith.mulf %256, %260 : vector<8x128xf32>
    %263 = arith.addf %261, %262 : vector<8x128xf32>
    %264 = math.tanh %263 : vector<8x128xf32>
    %265 = arith.mulf %258, %264 : vector<8x128xf32>
    %266 = arith.addf %265, %243 : vector<8x128xf32>
    %c0_78 = arith.constant 0 : index
    %c0_79 = arith.constant 0 : index
    %267 = vector.load %arg3[%c0_78, %c0_79] : memref<128x1024xf32, #tpu.memory_space<vmem>>, vector<128x1024xf32>
    %cst_80 = arith.constant dense<0.000000e+00> : vector<8x1024xf32>
    %268 = tpu.matmul %266, %267, %cst_80 {dimension_numbers = #tpu.dot_dimension_numbers<[1], [0], [0], [1], [0, 0, 1, 1], [], []>} : vector<8x128xf32>, vector<128x1024xf32>, vector<8x1024xf32> -> vector<8x1024xf32>
    %269 = vector.extract_strided_slice %268 {offsets = [0, 0], sizes = [8, 512], strides = [1, 1]} : vector<8x1024xf32> to vector<8x512xf32>
    %270 = vector.broadcast %2 : vector<1x512xf32> to vector<8x512xf32>
    %271 = arith.addf %269, %270 : vector<8x512xf32>
    %272 = vector.extract_strided_slice %271 {offsets = [0, 0], sizes = [8, 384], strides = [1, 1]} : vector<8x512xf32> to vector<8x384xf32>
    %cst_81 = arith.constant 5.000000e-01 : f32
    %273 = vector.broadcast %cst_81 : f32 to vector<8x384xf32>
    %274 = arith.mulf %273, %272 : vector<8x384xf32>
    %275 = math.tanh %274 : vector<8x384xf32>
    %cst_82 = arith.constant 1.000000e+00 : f32
    %276 = vector.broadcast %cst_82 : f32 to vector<8x384xf32>
    %277 = arith.addf %275, %276 : vector<8x384xf32>
    %cst_83 = arith.constant 5.000000e-01 : f32
    %278 = vector.broadcast %cst_83 : f32 to vector<8x384xf32>
    %279 = arith.mulf %278, %277 : vector<8x384xf32>
    %280 = vector.extract_strided_slice %279 {offsets = [0, 0], sizes = [8, 128], strides = [1, 1]} : vector<8x384xf32> to vector<8x128xf32>
    %281 = vector.extract_strided_slice %279 {offsets = [0, 128], sizes = [8, 128], strides = [1, 1]} : vector<8x384xf32> to vector<8x128xf32>
    %282 = vector.extract_strided_slice %279 {offsets = [0, 256], sizes = [8, 128], strides = [1, 1]} : vector<8x384xf32> to vector<8x128xf32>
    %283 = vector.extract_strided_slice %271 {offsets = [0, 384], sizes = [8, 128], strides = [1, 1]} : vector<8x512xf32> to vector<8x128xf32>
    %284 = math.tanh %283 : vector<8x128xf32>
    %285 = arith.mulf %281, %241 : vector<8x128xf32>
    %286 = arith.mulf %280, %284 : vector<8x128xf32>
    %287 = arith.addf %285, %286 : vector<8x128xf32>
    %288 = math.tanh %287 : vector<8x128xf32>
    %289 = arith.mulf %282, %288 : vector<8x128xf32>
    %c6 = arith.constant 6 : index
    %c0_84 = arith.constant 0 : index
    %c0_85 = arith.constant 0 : index
    %290 = vector.load %arg10[%c6, %c0_84, %c0_85] : memref<8x8x512xf32, #tpu.memory_space<vmem>>, vector<1x8x512xf32>
    %291 = vector.shape_cast %290 : vector<1x8x512xf32> to vector<8x512xf32>
    %292 = vector.extract_strided_slice %268 {offsets = [0, 512], sizes = [8, 512], strides = [1, 1]} : vector<8x1024xf32> to vector<8x512xf32>
    %293 = arith.addf %291, %292 : vector<8x512xf32>
    %294 = vector.extract_strided_slice %293 {offsets = [0, 0], sizes = [8, 384], strides = [1, 1]} : vector<8x512xf32> to vector<8x384xf32>
    %cst_86 = arith.constant 5.000000e-01 : f32
    %295 = vector.broadcast %cst_86 : f32 to vector<8x384xf32>
    %296 = arith.mulf %295, %294 : vector<8x384xf32>
    %297 = math.tanh %296 : vector<8x384xf32>
    %cst_87 = arith.constant 1.000000e+00 : f32
    %298 = vector.broadcast %cst_87 : f32 to vector<8x384xf32>
    %299 = arith.addf %297, %298 : vector<8x384xf32>
    %cst_88 = arith.constant 5.000000e-01 : f32
    %300 = vector.broadcast %cst_88 : f32 to vector<8x384xf32>
    %301 = arith.mulf %300, %299 : vector<8x384xf32>
    %302 = vector.extract_strided_slice %301 {offsets = [0, 0], sizes = [8, 128], strides = [1, 1]} : vector<8x384xf32> to vector<8x128xf32>
    %303 = vector.extract_strided_slice %301 {offsets = [0, 128], sizes = [8, 128], strides = [1, 1]} : vector<8x384xf32> to vector<8x128xf32>
    %304 = vector.extract_strided_slice %301 {offsets = [0, 256], sizes = [8, 128], strides = [1, 1]} : vector<8x384xf32> to vector<8x128xf32>
    %305 = vector.extract_strided_slice %293 {offsets = [0, 384], sizes = [8, 128], strides = [1, 1]} : vector<8x512xf32> to vector<8x128xf32>
    %306 = math.tanh %305 : vector<8x128xf32>
    %307 = arith.mulf %303, %263 : vector<8x128xf32>
    %308 = arith.mulf %302, %306 : vector<8x128xf32>
    %309 = arith.addf %307, %308 : vector<8x128xf32>
    %310 = math.tanh %309 : vector<8x128xf32>
    %311 = arith.mulf %304, %310 : vector<8x128xf32>
    %312 = arith.addf %311, %289 : vector<8x128xf32>
    %c0_89 = arith.constant 0 : index
    %c0_90 = arith.constant 0 : index
    %313 = vector.load %arg3[%c0_89, %c0_90] : memref<128x1024xf32, #tpu.memory_space<vmem>>, vector<128x1024xf32>
    %cst_91 = arith.constant dense<0.000000e+00> : vector<8x1024xf32>
    %314 = tpu.matmul %312, %313, %cst_91 {dimension_numbers = #tpu.dot_dimension_numbers<[1], [0], [0], [1], [0, 0, 1, 1], [], []>} : vector<8x128xf32>, vector<128x1024xf32>, vector<8x1024xf32> -> vector<8x1024xf32>
    %315 = vector.extract_strided_slice %314 {offsets = [0, 0], sizes = [8, 512], strides = [1, 1]} : vector<8x1024xf32> to vector<8x512xf32>
    %316 = vector.broadcast %2 : vector<1x512xf32> to vector<8x512xf32>
    %317 = arith.addf %315, %316 : vector<8x512xf32>
    %318 = vector.extract_strided_slice %317 {offsets = [0, 0], sizes = [8, 384], strides = [1, 1]} : vector<8x512xf32> to vector<8x384xf32>
    %cst_92 = arith.constant 5.000000e-01 : f32
    %319 = vector.broadcast %cst_92 : f32 to vector<8x384xf32>
    %320 = arith.mulf %319, %318 : vector<8x384xf32>
    %321 = math.tanh %320 : vector<8x384xf32>
    %cst_93 = arith.constant 1.000000e+00 : f32
    %322 = vector.broadcast %cst_93 : f32 to vector<8x384xf32>
    %323 = arith.addf %321, %322 : vector<8x384xf32>
    %cst_94 = arith.constant 5.000000e-01 : f32
    %324 = vector.broadcast %cst_94 : f32 to vector<8x384xf32>
    %325 = arith.mulf %324, %323 : vector<8x384xf32>
    %326 = vector.extract_strided_slice %325 {offsets = [0, 0], sizes = [8, 128], strides = [1, 1]} : vector<8x384xf32> to vector<8x128xf32>
    %327 = vector.extract_strided_slice %325 {offsets = [0, 128], sizes = [8, 128], strides = [1, 1]} : vector<8x384xf32> to vector<8x128xf32>
    %328 = vector.extract_strided_slice %325 {offsets = [0, 256], sizes = [8, 128], strides = [1, 1]} : vector<8x384xf32> to vector<8x128xf32>
    %329 = vector.extract_strided_slice %317 {offsets = [0, 384], sizes = [8, 128], strides = [1, 1]} : vector<8x512xf32> to vector<8x128xf32>
    %330 = math.tanh %329 : vector<8x128xf32>
    %331 = arith.mulf %327, %287 : vector<8x128xf32>
    %332 = arith.mulf %326, %330 : vector<8x128xf32>
    %333 = arith.addf %331, %332 : vector<8x128xf32>
    %334 = math.tanh %333 : vector<8x128xf32>
    %335 = arith.mulf %328, %334 : vector<8x128xf32>
    %c7 = arith.constant 7 : index
    %c0_95 = arith.constant 0 : index
    %c0_96 = arith.constant 0 : index
    %336 = vector.load %arg10[%c7, %c0_95, %c0_96] : memref<8x8x512xf32, #tpu.memory_space<vmem>>, vector<1x8x512xf32>
    %337 = vector.shape_cast %336 : vector<1x8x512xf32> to vector<8x512xf32>
    %338 = vector.extract_strided_slice %314 {offsets = [0, 512], sizes = [8, 512], strides = [1, 1]} : vector<8x1024xf32> to vector<8x512xf32>
    %339 = arith.addf %337, %338 : vector<8x512xf32>
    %340 = vector.extract_strided_slice %339 {offsets = [0, 0], sizes = [8, 384], strides = [1, 1]} : vector<8x512xf32> to vector<8x384xf32>
    %cst_97 = arith.constant 5.000000e-01 : f32
    %341 = vector.broadcast %cst_97 : f32 to vector<8x384xf32>
    %342 = arith.mulf %341, %340 : vector<8x384xf32>
    %343 = math.tanh %342 : vector<8x384xf32>
    %cst_98 = arith.constant 1.000000e+00 : f32
    %344 = vector.broadcast %cst_98 : f32 to vector<8x384xf32>
    %345 = arith.addf %343, %344 : vector<8x384xf32>
    %cst_99 = arith.constant 5.000000e-01 : f32
    %346 = vector.broadcast %cst_99 : f32 to vector<8x384xf32>
    %347 = arith.mulf %346, %345 : vector<8x384xf32>
    %348 = vector.extract_strided_slice %347 {offsets = [0, 0], sizes = [8, 128], strides = [1, 1]} : vector<8x384xf32> to vector<8x128xf32>
    %349 = vector.extract_strided_slice %347 {offsets = [0, 128], sizes = [8, 128], strides = [1, 1]} : vector<8x384xf32> to vector<8x128xf32>
    %350 = vector.extract_strided_slice %347 {offsets = [0, 256], sizes = [8, 128], strides = [1, 1]} : vector<8x384xf32> to vector<8x128xf32>
    %351 = vector.extract_strided_slice %339 {offsets = [0, 384], sizes = [8, 128], strides = [1, 1]} : vector<8x512xf32> to vector<8x128xf32>
    %352 = math.tanh %351 : vector<8x128xf32>
    %353 = arith.mulf %349, %309 : vector<8x128xf32>
    %354 = arith.mulf %348, %352 : vector<8x128xf32>
    %355 = arith.addf %353, %354 : vector<8x128xf32>
    %356 = math.tanh %355 : vector<8x128xf32>
    %357 = arith.mulf %350, %356 : vector<8x128xf32>
    %358 = arith.addf %357, %335 : vector<8x128xf32>
    %c0_100 = arith.constant 0 : index
    %c0_101 = arith.constant 0 : index
    %359 = vector.load %arg3[%c0_100, %c0_101] : memref<128x1024xf32, #tpu.memory_space<vmem>>, vector<128x1024xf32>
    %cst_102 = arith.constant dense<0.000000e+00> : vector<8x1024xf32>
    %360 = tpu.matmul %358, %359, %cst_102 {dimension_numbers = #tpu.dot_dimension_numbers<[1], [0], [0], [1], [0, 0, 1, 1], [], []>} : vector<8x128xf32>, vector<128x1024xf32>, vector<8x1024xf32> -> vector<8x1024xf32>
    %361 = vector.extract_strided_slice %360 {offsets = [0, 0], sizes = [8, 512], strides = [1, 1]} : vector<8x1024xf32> to vector<8x512xf32>
    %362 = vector.broadcast %2 : vector<1x512xf32> to vector<8x512xf32>
    %363 = arith.addf %361, %362 : vector<8x512xf32>
    %364 = vector.extract_strided_slice %363 {offsets = [0, 0], sizes = [8, 384], strides = [1, 1]} : vector<8x512xf32> to vector<8x384xf32>
    %cst_103 = arith.constant 5.000000e-01 : f32
    %365 = vector.broadcast %cst_103 : f32 to vector<8x384xf32>
    %366 = arith.mulf %365, %364 : vector<8x384xf32>
    %367 = math.tanh %366 : vector<8x384xf32>
    %cst_104 = arith.constant 1.000000e+00 : f32
    %368 = vector.broadcast %cst_104 : f32 to vector<8x384xf32>
    %369 = arith.addf %367, %368 : vector<8x384xf32>
    %cst_105 = arith.constant 5.000000e-01 : f32
    %370 = vector.broadcast %cst_105 : f32 to vector<8x384xf32>
    %371 = arith.mulf %370, %369 : vector<8x384xf32>
    %372 = vector.extract_strided_slice %371 {offsets = [0, 0], sizes = [8, 128], strides = [1, 1]} : vector<8x384xf32> to vector<8x128xf32>
    %373 = vector.extract_strided_slice %371 {offsets = [0, 128], sizes = [8, 128], strides = [1, 1]} : vector<8x384xf32> to vector<8x128xf32>
    %374 = vector.extract_strided_slice %371 {offsets = [0, 256], sizes = [8, 128], strides = [1, 1]} : vector<8x384xf32> to vector<8x128xf32>
    %375 = vector.extract_strided_slice %363 {offsets = [0, 384], sizes = [8, 128], strides = [1, 1]} : vector<8x512xf32> to vector<8x128xf32>
    %376 = math.tanh %375 : vector<8x128xf32>
    %377 = arith.mulf %373, %333 : vector<8x128xf32>
    %378 = arith.mulf %372, %376 : vector<8x128xf32>
    %379 = arith.addf %377, %378 : vector<8x128xf32>
    %380 = math.tanh %379 : vector<8x128xf32>
    %381 = arith.mulf %374, %380 : vector<8x128xf32>
    %382 = vector.extract_strided_slice %360 {offsets = [0, 512], sizes = [8, 512], strides = [1, 1]} : vector<8x1024xf32> to vector<8x512xf32>
    %383 = vector.broadcast %3 : vector<1x512xf32> to vector<8x512xf32>
    %384 = arith.addf %382, %383 : vector<8x512xf32>
    %c0_106 = arith.constant 0 : index
    %c0_107 = arith.constant 0 : index
    %385 = vector.load %arg5[%c0_106, %c0_107] : memref<128x512xf32, #tpu.memory_space<vmem>>, vector<128x512xf32>
    %cst_108 = arith.constant dense<0.000000e+00> : vector<8x512xf32>
    %386 = tpu.matmul %381, %385, %cst_108 {dimension_numbers = #tpu.dot_dimension_numbers<[1], [0], [0], [1], [0, 0, 1, 1], [], []>} : vector<8x128xf32>, vector<128x512xf32>, vector<8x512xf32> -> vector<8x512xf32>
    %387 = arith.addf %384, %386 : vector<8x512xf32>
    %388 = vector.extract_strided_slice %387 {offsets = [0, 0], sizes = [8, 384], strides = [1, 1]} : vector<8x512xf32> to vector<8x384xf32>
    %cst_109 = arith.constant 5.000000e-01 : f32
    %389 = vector.broadcast %cst_109 : f32 to vector<8x384xf32>
    %390 = arith.mulf %389, %388 : vector<8x384xf32>
    %391 = math.tanh %390 : vector<8x384xf32>
    %cst_110 = arith.constant 1.000000e+00 : f32
    %392 = vector.broadcast %cst_110 : f32 to vector<8x384xf32>
    %393 = arith.addf %391, %392 : vector<8x384xf32>
    %cst_111 = arith.constant 5.000000e-01 : f32
    %394 = vector.broadcast %cst_111 : f32 to vector<8x384xf32>
    %395 = arith.mulf %394, %393 : vector<8x384xf32>
    %396 = vector.extract_strided_slice %395 {offsets = [0, 0], sizes = [8, 128], strides = [1, 1]} : vector<8x384xf32> to vector<8x128xf32>
    %397 = vector.extract_strided_slice %395 {offsets = [0, 128], sizes = [8, 128], strides = [1, 1]} : vector<8x384xf32> to vector<8x128xf32>
    %398 = vector.extract_strided_slice %395 {offsets = [0, 256], sizes = [8, 128], strides = [1, 1]} : vector<8x384xf32> to vector<8x128xf32>
    %399 = vector.extract_strided_slice %387 {offsets = [0, 384], sizes = [8, 128], strides = [1, 1]} : vector<8x512xf32> to vector<8x128xf32>
    %400 = math.tanh %399 : vector<8x128xf32>
    %401 = arith.mulf %397, %355 : vector<8x128xf32>
    %402 = arith.mulf %396, %400 : vector<8x128xf32>
    %403 = arith.addf %401, %402 : vector<8x128xf32>
    %404 = math.tanh %403 : vector<8x128xf32>
    %405 = arith.mulf %398, %404 : vector<8x128xf32>
    %406 = arith.addf %405, %381 : vector<8x128xf32>
    %c0_112 = arith.constant 0 : index
    %c0_113 = arith.constant 0 : index
    %407 = vector.load %arg3[%c0_112, %c0_113] : memref<128x1024xf32, #tpu.memory_space<vmem>>, vector<128x1024xf32>
    %cst_114 = arith.constant dense<0.000000e+00> : vector<8x1024xf32>
    %408 = tpu.matmul %406, %407, %cst_114 {dimension_numbers = #tpu.dot_dimension_numbers<[1], [0], [0], [1], [0, 0, 1, 1], [], []>} : vector<8x128xf32>, vector<128x1024xf32>, vector<8x1024xf32> -> vector<8x1024xf32>
    %409 = vector.extract_strided_slice %408 {offsets = [0, 0], sizes = [8, 512], strides = [1, 1]} : vector<8x1024xf32> to vector<8x512xf32>
    %410 = vector.broadcast %2 : vector<1x512xf32> to vector<8x512xf32>
    %411 = arith.addf %409, %410 : vector<8x512xf32>
    %412 = vector.extract_strided_slice %411 {offsets = [0, 0], sizes = [8, 384], strides = [1, 1]} : vector<8x512xf32> to vector<8x384xf32>
    %cst_115 = arith.constant 5.000000e-01 : f32
    %413 = vector.broadcast %cst_115 : f32 to vector<8x384xf32>
    %414 = arith.mulf %413, %412 : vector<8x384xf32>
    %415 = math.tanh %414 : vector<8x384xf32>
    %cst_116 = arith.constant 1.000000e+00 : f32
    %416 = vector.broadcast %cst_116 : f32 to vector<8x384xf32>
    %417 = arith.addf %415, %416 : vector<8x384xf32>
    %cst_117 = arith.constant 5.000000e-01 : f32
    %418 = vector.broadcast %cst_117 : f32 to vector<8x384xf32>
    %419 = arith.mulf %418, %417 : vector<8x384xf32>
    %420 = vector.extract_strided_slice %419 {offsets = [0, 0], sizes = [8, 128], strides = [1, 1]} : vector<8x384xf32> to vector<8x128xf32>
    %421 = vector.extract_strided_slice %419 {offsets = [0, 128], sizes = [8, 128], strides = [1, 1]} : vector<8x384xf32> to vector<8x128xf32>
    %422 = vector.extract_strided_slice %419 {offsets = [0, 256], sizes = [8, 128], strides = [1, 1]} : vector<8x384xf32> to vector<8x128xf32>
    %423 = vector.extract_strided_slice %411 {offsets = [0, 384], sizes = [8, 128], strides = [1, 1]} : vector<8x512xf32> to vector<8x128xf32>
    %424 = math.tanh %423 : vector<8x128xf32>
    %425 = arith.mulf %421, %379 : vector<8x128xf32>
    %426 = arith.mulf %420, %424 : vector<8x128xf32>
    %427 = arith.addf %425, %426 : vector<8x128xf32>
    %428 = math.tanh %427 : vector<8x128xf32>
    %429 = arith.mulf %422, %428 : vector<8x128xf32>
    %430 = vector.extract_strided_slice %408 {offsets = [0, 512], sizes = [8, 512], strides = [1, 1]} : vector<8x1024xf32> to vector<8x512xf32>
    %431 = vector.broadcast %3 : vector<1x512xf32> to vector<8x512xf32>
    %432 = arith.addf %430, %431 : vector<8x512xf32>
    %c0_118 = arith.constant 0 : index
    %c0_119 = arith.constant 0 : index
    %433 = vector.load %arg5[%c0_118, %c0_119] : memref<128x512xf32, #tpu.memory_space<vmem>>, vector<128x512xf32>
    %cst_120 = arith.constant dense<0.000000e+00> : vector<8x512xf32>
    %434 = tpu.matmul %429, %433, %cst_120 {dimension_numbers = #tpu.dot_dimension_numbers<[1], [0], [0], [1], [0, 0, 1, 1], [], []>} : vector<8x128xf32>, vector<128x512xf32>, vector<8x512xf32> -> vector<8x512xf32>
    %435 = arith.addf %432, %434 : vector<8x512xf32>
    %436 = vector.extract_strided_slice %435 {offsets = [0, 0], sizes = [8, 384], strides = [1, 1]} : vector<8x512xf32> to vector<8x384xf32>
    %cst_121 = arith.constant 5.000000e-01 : f32
    %437 = vector.broadcast %cst_121 : f32 to vector<8x384xf32>
    %438 = arith.mulf %437, %436 : vector<8x384xf32>
    %439 = math.tanh %438 : vector<8x384xf32>
    %cst_122 = arith.constant 1.000000e+00 : f32
    %440 = vector.broadcast %cst_122 : f32 to vector<8x384xf32>
    %441 = arith.addf %439, %440 : vector<8x384xf32>
    %cst_123 = arith.constant 5.000000e-01 : f32
    %442 = vector.broadcast %cst_123 : f32 to vector<8x384xf32>
    %443 = arith.mulf %442, %441 : vector<8x384xf32>
    %444 = vector.extract_strided_slice %443 {offsets = [0, 0], sizes = [8, 128], strides = [1, 1]} : vector<8x384xf32> to vector<8x128xf32>
    %445 = vector.extract_strided_slice %443 {offsets = [0, 128], sizes = [8, 128], strides = [1, 1]} : vector<8x384xf32> to vector<8x128xf32>
    %446 = vector.extract_strided_slice %443 {offsets = [0, 256], sizes = [8, 128], strides = [1, 1]} : vector<8x384xf32> to vector<8x128xf32>
    %447 = vector.extract_strided_slice %435 {offsets = [0, 384], sizes = [8, 128], strides = [1, 1]} : vector<8x512xf32> to vector<8x128xf32>
    %448 = math.tanh %447 : vector<8x128xf32>
    %449 = arith.mulf %445, %403 : vector<8x128xf32>
    %450 = arith.mulf %444, %448 : vector<8x128xf32>
    %451 = arith.addf %449, %450 : vector<8x128xf32>
    %452 = math.tanh %451 : vector<8x128xf32>
    %453 = arith.mulf %446, %452 : vector<8x128xf32>
    %454 = arith.addf %453, %429 : vector<8x128xf32>
    %c0_124 = arith.constant 0 : index
    %c0_125 = arith.constant 0 : index
    %455 = vector.load %arg3[%c0_124, %c0_125] : memref<128x1024xf32, #tpu.memory_space<vmem>>, vector<128x1024xf32>
    %cst_126 = arith.constant dense<0.000000e+00> : vector<8x1024xf32>
    %456 = tpu.matmul %454, %455, %cst_126 {dimension_numbers = #tpu.dot_dimension_numbers<[1], [0], [0], [1], [0, 0, 1, 1], [], []>} : vector<8x128xf32>, vector<128x1024xf32>, vector<8x1024xf32> -> vector<8x1024xf32>
    %457 = vector.extract_strided_slice %456 {offsets = [0, 0], sizes = [8, 512], strides = [1, 1]} : vector<8x1024xf32> to vector<8x512xf32>
    %458 = vector.broadcast %2 : vector<1x512xf32> to vector<8x512xf32>
    %459 = arith.addf %457, %458 : vector<8x512xf32>
    %460 = vector.extract_strided_slice %459 {offsets = [0, 0], sizes = [8, 384], strides = [1, 1]} : vector<8x512xf32> to vector<8x384xf32>
    %cst_127 = arith.constant 5.000000e-01 : f32
    %461 = vector.broadcast %cst_127 : f32 to vector<8x384xf32>
    %462 = arith.mulf %461, %460 : vector<8x384xf32>
    %463 = math.tanh %462 : vector<8x384xf32>
    %cst_128 = arith.constant 1.000000e+00 : f32
    %464 = vector.broadcast %cst_128 : f32 to vector<8x384xf32>
    %465 = arith.addf %463, %464 : vector<8x384xf32>
    %cst_129 = arith.constant 5.000000e-01 : f32
    %466 = vector.broadcast %cst_129 : f32 to vector<8x384xf32>
    %467 = arith.mulf %466, %465 : vector<8x384xf32>
    %468 = vector.extract_strided_slice %467 {offsets = [0, 0], sizes = [8, 128], strides = [1, 1]} : vector<8x384xf32> to vector<8x128xf32>
    %469 = vector.extract_strided_slice %467 {offsets = [0, 128], sizes = [8, 128], strides = [1, 1]} : vector<8x384xf32> to vector<8x128xf32>
    %470 = vector.extract_strided_slice %467 {offsets = [0, 256], sizes = [8, 128], strides = [1, 1]} : vector<8x384xf32> to vector<8x128xf32>
    %471 = vector.extract_strided_slice %459 {offsets = [0, 384], sizes = [8, 128], strides = [1, 1]} : vector<8x512xf32> to vector<8x128xf32>
    %472 = math.tanh %471 : vector<8x128xf32>
    %473 = arith.mulf %469, %427 : vector<8x128xf32>
    %474 = arith.mulf %468, %472 : vector<8x128xf32>
    %475 = arith.addf %473, %474 : vector<8x128xf32>
    %476 = math.tanh %475 : vector<8x128xf32>
    %477 = arith.mulf %470, %476 : vector<8x128xf32>
    %478 = vector.extract_strided_slice %456 {offsets = [0, 512], sizes = [8, 512], strides = [1, 1]} : vector<8x1024xf32> to vector<8x512xf32>
    %479 = vector.broadcast %3 : vector<1x512xf32> to vector<8x512xf32>
    %480 = arith.addf %478, %479 : vector<8x512xf32>
    %c0_130 = arith.constant 0 : index
    %c0_131 = arith.constant 0 : index
    %481 = vector.load %arg5[%c0_130, %c0_131] : memref<128x512xf32, #tpu.memory_space<vmem>>, vector<128x512xf32>
    %cst_132 = arith.constant dense<0.000000e+00> : vector<8x512xf32>
    %482 = tpu.matmul %477, %481, %cst_132 {dimension_numbers = #tpu.dot_dimension_numbers<[1], [0], [0], [1], [0, 0, 1, 1], [], []>} : vector<8x128xf32>, vector<128x512xf32>, vector<8x512xf32> -> vector<8x512xf32>
    %483 = arith.addf %480, %482 : vector<8x512xf32>
    %484 = vector.extract_strided_slice %483 {offsets = [0, 0], sizes = [8, 384], strides = [1, 1]} : vector<8x512xf32> to vector<8x384xf32>
    %cst_133 = arith.constant 5.000000e-01 : f32
    %485 = vector.broadcast %cst_133 : f32 to vector<8x384xf32>
    %486 = arith.mulf %485, %484 : vector<8x384xf32>
    %487 = math.tanh %486 : vector<8x384xf32>
    %cst_134 = arith.constant 1.000000e+00 : f32
    %488 = vector.broadcast %cst_134 : f32 to vector<8x384xf32>
    %489 = arith.addf %487, %488 : vector<8x384xf32>
    %cst_135 = arith.constant 5.000000e-01 : f32
    %490 = vector.broadcast %cst_135 : f32 to vector<8x384xf32>
    %491 = arith.mulf %490, %489 : vector<8x384xf32>
    %492 = vector.extract_strided_slice %491 {offsets = [0, 0], sizes = [8, 128], strides = [1, 1]} : vector<8x384xf32> to vector<8x128xf32>
    %493 = vector.extract_strided_slice %491 {offsets = [0, 128], sizes = [8, 128], strides = [1, 1]} : vector<8x384xf32> to vector<8x128xf32>
    %494 = vector.extract_strided_slice %491 {offsets = [0, 256], sizes = [8, 128], strides = [1, 1]} : vector<8x384xf32> to vector<8x128xf32>
    %495 = vector.extract_strided_slice %483 {offsets = [0, 384], sizes = [8, 128], strides = [1, 1]} : vector<8x512xf32> to vector<8x128xf32>
    %496 = math.tanh %495 : vector<8x128xf32>
    %497 = arith.mulf %493, %451 : vector<8x128xf32>
    %498 = arith.mulf %492, %496 : vector<8x128xf32>
    %499 = arith.addf %497, %498 : vector<8x128xf32>
    %500 = math.tanh %499 : vector<8x128xf32>
    %501 = arith.mulf %494, %500 : vector<8x128xf32>
    %502 = arith.addf %501, %477 : vector<8x128xf32>
    %c0_136 = arith.constant 0 : index
    %c0_137 = arith.constant 0 : index
    %503 = vector.load %arg3[%c0_136, %c0_137] : memref<128x1024xf32, #tpu.memory_space<vmem>>, vector<128x1024xf32>
    %cst_138 = arith.constant dense<0.000000e+00> : vector<8x1024xf32>
    %504 = tpu.matmul %502, %503, %cst_138 {dimension_numbers = #tpu.dot_dimension_numbers<[1], [0], [0], [1], [0, 0, 1, 1], [], []>} : vector<8x128xf32>, vector<128x1024xf32>, vector<8x1024xf32> -> vector<8x1024xf32>
    %505 = vector.extract_strided_slice %504 {offsets = [0, 0], sizes = [8, 512], strides = [1, 1]} : vector<8x1024xf32> to vector<8x512xf32>
    %506 = vector.broadcast %2 : vector<1x512xf32> to vector<8x512xf32>
    %507 = arith.addf %505, %506 : vector<8x512xf32>
    %508 = vector.extract_strided_slice %507 {offsets = [0, 0], sizes = [8, 384], strides = [1, 1]} : vector<8x512xf32> to vector<8x384xf32>
    %cst_139 = arith.constant 5.000000e-01 : f32
    %509 = vector.broadcast %cst_139 : f32 to vector<8x384xf32>
    %510 = arith.mulf %509, %508 : vector<8x384xf32>
    %511 = math.tanh %510 : vector<8x384xf32>
    %cst_140 = arith.constant 1.000000e+00 : f32
    %512 = vector.broadcast %cst_140 : f32 to vector<8x384xf32>
    %513 = arith.addf %511, %512 : vector<8x384xf32>
    %cst_141 = arith.constant 5.000000e-01 : f32
    %514 = vector.broadcast %cst_141 : f32 to vector<8x384xf32>
    %515 = arith.mulf %514, %513 : vector<8x384xf32>
    %516 = vector.extract_strided_slice %515 {offsets = [0, 0], sizes = [8, 128], strides = [1, 1]} : vector<8x384xf32> to vector<8x128xf32>
    %517 = vector.extract_strided_slice %515 {offsets = [0, 128], sizes = [8, 128], strides = [1, 1]} : vector<8x384xf32> to vector<8x128xf32>
    %518 = vector.extract_strided_slice %515 {offsets = [0, 256], sizes = [8, 128], strides = [1, 1]} : vector<8x384xf32> to vector<8x128xf32>
    %519 = vector.extract_strided_slice %507 {offsets = [0, 384], sizes = [8, 128], strides = [1, 1]} : vector<8x512xf32> to vector<8x128xf32>
    %520 = math.tanh %519 : vector<8x128xf32>
    %521 = arith.mulf %517, %475 : vector<8x128xf32>
    %522 = arith.mulf %516, %520 : vector<8x128xf32>
    %523 = arith.addf %521, %522 : vector<8x128xf32>
    %524 = math.tanh %523 : vector<8x128xf32>
    %525 = arith.mulf %518, %524 : vector<8x128xf32>
    %526 = vector.shape_cast %59 : vector<8x128xf32> to vector<1x8x128xf32>
    %527 = vector.shape_cast %105 : vector<8x128xf32> to vector<1x8x128xf32>
    %528 = vector.shape_cast %151 : vector<8x128xf32> to vector<1x8x128xf32>
    %529 = vector.shape_cast %197 : vector<8x128xf32> to vector<1x8x128xf32>
    %530 = vector.shape_cast %243 : vector<8x128xf32> to vector<1x8x128xf32>
    %531 = vector.shape_cast %289 : vector<8x128xf32> to vector<1x8x128xf32>
    %532 = vector.shape_cast %335 : vector<8x128xf32> to vector<1x8x128xf32>
    %533 = vector.shape_cast %381 : vector<8x128xf32> to vector<1x8x128xf32>
    %534 = vector.shape_cast %429 : vector<8x128xf32> to vector<1x8x128xf32>
    %535 = vector.shape_cast %477 : vector<8x128xf32> to vector<1x8x128xf32>
    %536 = vector.shape_cast %525 : vector<8x128xf32> to vector<1x8x128xf32>
    %537 = tpu.concatenate %526, %527, %528, %529, %530, %531, %532, %533, %534, %535, %536 in 0 : vector<1x8x128xf32>, vector<1x8x128xf32>, vector<1x8x128xf32>, vector<1x8x128xf32>, vector<1x8x128xf32>, vector<1x8x128xf32>, vector<1x8x128xf32>, vector<1x8x128xf32>, vector<1x8x128xf32>, vector<1x8x128xf32>, vector<1x8x128xf32> -> vector<11x8x128xf32>
    %538 = vector.shape_cast %4 : vector<1x128xf32> to vector<1x1x128xf32>
    %539 = vector.broadcast %538 : vector<1x1x128xf32> to vector<11x8x128xf32>
    %540 = arith.mulf %537, %539 : vector<11x8x128xf32>
    %cst_142 = arith.constant dense<0.000000e+00> : vector<11x8xf32>
    %541 = vector.multi_reduction <add>, %540, %cst_142 [2] : vector<11x8x128xf32> to vector<11x8xf32>
    %542 = vector.broadcast %5 : vector<1x1xf32> to vector<11x8xf32>
    %543 = arith.addf %541, %542 : vector<11x8xf32>
    %c0_143 = arith.constant 0 : index
    %c0_144 = arith.constant 0 : index
    %544 = vector.load %arg9[%c0_143, %c0_144] : memref<11x8xf32, #tpu.memory_space<vmem>>, vector<11x8xf32>
    tpu.vector_store %arg9[%c0_143, %c0_144], %543 {strides = array<i32>} : memref<11x8xf32, #tpu.memory_space<vmem>>, vector<11x8xf32>,
    return
  }
}

</mosaic_0001>

<bundles_post_ra>
// kernel: tpu_custom_call.1
= control target key start
LH: loop header
LB: loop body
LE: loop exit
PB: predicated region body
PF: predicated region fallthrough
CT: control target
= control target key end

     0   :  { %s8497_s0 = inlined_call_operand.vmem [shape: f32[8,8,1], index: 0, kind: input, shape index: {}]   ;;  %s8498_s1 = inlined_call_operand.vmem [shape: f32[1,512], index: 1, kind: input, shape index: {}]   ;;  %s8499_s2 = inlined_call_operand.vmem [shape: f32[1,512], index: 2, kind: input, shape index: {}]   ;;  %s8500_s3 = inlined_call_operand.hbm [shape: f32[128,1024], index: 3, kind: input, shape index: {}]   ;;  %s8501_s4 = inlined_call_operand.vmem [shape: f32[1,512], index: 4, kind: input, shape index: {}]   ;;  %s8502_s5 = inlined_call_operand.hbm [shape: f32[128,512], index: 5, kind: input, shape index: {}]   ;;  %s8503_s6 = inlined_call_operand.vmem [shape: f32[1,512], index: 6, kind: input, shape index: {}]   ;;  %s8504_s7 = inlined_call_operand.vmem [shape: f32[1,128], index: 7, kind: input, shape index: {}]   ;;  %s8505_s8 = inlined_call_operand.<no memory space> [shape: f32[1,1], index: 8, kind: input, shape index: {}]   ;;  %s8506_s9 = inlined_call_operand.vmem [shape: f32[11,8], index: 9, kind: output, shape index: {}]  }
   0x1   :  { %v14_v0 = vstv %s8505_s8 }
   0x2   :  { %15 = vst [vmem:[#allocation3] sm:$0x1] %v14_v0 }
   0x3   :  { %16 = vsyncpa [#allocation5], 0 }
   0x4   :  { %17 = vsyncpa [#allocation7], 0  ;;  %s5373_s11 = smov [#allocation4]  }
   0x5   :  { %s29_s12 = sshll.u32 %s5373_s11, 4  ;;  %s30_s12 = int_to_ptr.vmem [resolvable:$true] %s29_s12 }
   0x6   :  { %s5337_s13 = scalar_lea.vmem %s30_s12, 16384  ;;  %p5342_p1 = scmp.lt.s32.totalorder %s30_s12, %s30_s12 }
   0x7   :  { %p5338_p0 = scmp.ne.s32.totalorder %s30_s12, %s5337_s13  ;;  %p5343_p2 = scmp.lt.s32.totalorder %s5337_s13, %s5337_s13 }
   0x9   :  { %p5344_p3 = por %p5343_p2, %p5342_p1 }
   0xb   :  { %p5345_p4 = pnand %p5344_p3, %p5338_p0 }
   0xd   :  { %5348 = shalt.err (!%p5345_p4)
}
   0xe   :  { %s5374_s14 = smov 1024   ;;  %s5375_s15 = smov 64  }
   0xf   :  { %35 = dma.hbm_to_vmem [thread:$0]  %s8500_s3, 16384, %s30_s12, [#allocation5], %s5374_s14, %s5374_s14, %s5375_s15  }
  0x10   :  { %s5376_s8 = smov [#allocation6]  }
  0x11   :  { %s43_s18 = sshll.u32 %s5376_s8, 4  ;;  %s44_s18 = int_to_ptr.vmem [resolvable:$true] %s43_s18 }
  0x12   :  { %s5357_s19 = scalar_lea.vmem %s44_s18, 8192  ;;  %p5362_p6 = scmp.lt.s32.totalorder %s44_s18, %s44_s18 }
  0x13   :  { %p5358_p5 = scmp.ne.s32.totalorder %s44_s18, %s5357_s19  ;;  %p5363_p7 = scmp.lt.s32.totalorder %s5357_s19, %s5357_s19 }
  0x15   :  { %p5364_p8 = por %p5363_p7, %p5362_p6 }
  0x17   :  { %p5365_p9 = pnand %p5364_p8, %p5358_p5 }
  0x19   :  { %5368 = shalt.err (!%p5365_p9)
}
  0x1a   :  { %s5377_s20 = smov 512   ;;  %s5378_s21 = smov 32  }
  0x1b   :  { %49 = dma.hbm_to_vmem [thread:$0]  %s8502_s5, 8192, %s44_s18, [#allocation7], %s5377_s20, %s5377_s20, %s5378_s21  }
  0x1c   :  { %5369 = dma.done.wait [#allocation5], 16384  }
  0x1d   :  { %5370 = vsyncadd [#allocation5], 4294950912 }
  0x1e   :  { %5371 = dma.done.wait [#allocation7], 8192  }
  0x1f   :  { %5372 = vsyncadd [#allocation7], 4294959104  ;;  %v5379_v1 = vmov 0   ;;  %v68_v2 = vld [vmem:[%s8497_s0] sm:$0xff]  ;;  %v69_v3 = vld [vmem:[%s8497_s0 + $0x8] sm:$0xff]  ;;  %vm4554_vm0 = vcmask 1041409  }
  0x20   :  { %4592 = vset.pattern.permute.xlu0 %v5379_v1  ;;  %4593 = vset.pattern.permute.xlu1 %v5379_v1  ;;  %v72_v4 = vld [vmem:[%s8497_s0 + $0x20] sm:$0xff]  ;;  %v5449_v5 = vld [vmem:[#allocation4 + $0x3c8] sm:$0xff]  ;;  %v5460_v9 = vld [vmem:[#allocation4 + $0x3d0] sm:$0xff]  ;;  %vm4556_vm1 = vcmask 1042434   ;;  %vm4558_vm2 = vcmask 1043459   ;;  %vm4560_vm3 = vcmask 1044484  }
  0x21   :  { %78 = vperm.xlu0 %4592, %v68_v2   ;;  %v5451_v6 = vld [vmem:[#allocation4 + $0x3d8] sm:$0xff]  ;;  %v74_v7 = vld [vmem:[%s8497_s0 + $0x30] sm:$0xff]  ;;  %405 = vmatprep.subr.mxu0 %v5449_v5  ;;  %v5458_v8 = vld [vmem:[#allocation4 + $0x3c0] sm:$0xff]  ;;  %vm4562_vm4 = vcmask 1045509   ;;  %vm4564_vm5 = vcmask 1046534   ;;  %vm4566_vm6 = vcmask 1047559  }
  0x22   :  { %476 = vmatprep.subr.mxu1 %v5451_v6  ;;  %406 = vmatpush1.msra.mxu0 %v5458_v8  ;;  %v5464_v10 = vld [vmem:[#allocation4 + $0x388] sm:$0xff]  ;;  %v5466_v11 = vld [vmem:[#allocation4 + $0x398] sm:$0xff]  ;;  %v5470_v12 = vld [vmem:[#allocation4 + $0x380] sm:$0xff]  ;;  %vm4572_vm7 = vcmask 64512   ;;  %vm4574_vm8 = vcmask 59392  }
  0x23   :  { %477 = vmatpush1.msra.mxu1 %v5460_v9  ;;  %407 = vmatprep.subr.mxu0 %v5464_v10  ;;  %v5472_v13 = vld [vmem:[#allocation4 + $0x390] sm:$0xff]  ;;  %v5475_v14 = vld [vmem:[#allocation4 + $0x348] sm:$0xff]  ;;  %v5477_v15 = vld [vmem:[#allocation4 + $0x358] sm:$0xff] }
  0x24   :  { %478 = vmatprep.subr.mxu1 %v5466_v11  ;;  %408 = vmatpush1.msra.mxu0 %v5470_v12  ;;  %v5481_v16 = vld [vmem:[#allocation4 + $0x340] sm:$0xff]  ;;  %v5483_v17 = vld [vmem:[#allocation4 + $0x350] sm:$0xff]  ;;  %v5487_v18 = vld [vmem:[#allocation4 + $0x308] sm:$0xff] }
  0x25   :  { %83 = vperm.xlu0 %4592, %v69_v3   ;;  %479 = vmatpush1.msra.mxu1 %v5472_v13  ;;  %v5489_v19 = vld [vmem:[#allocation4 + $0x318] sm:$0xff]  ;;  %v5493_v20 = vld [vmem:[#allocation4 + $0x300] sm:$0xff]  ;;  %v5495_v21 = vld [vmem:[#allocation4 + $0x310] sm:$0xff] }
  0x26   :  { %409 = vmatprep.subr.mxu0 %v5475_v14  ;;  %480 = vmatprep.subr.mxu1 %v5477_v15  ;;  %v5499_v22 = vld [vmem:[#allocation4 + $0x2c8] sm:$0xff]  ;;  %v5501_v23 = vld [vmem:[#allocation4 + $0x2d8] sm:$0xff]  ;;  %v5505_v24 = vld [vmem:[#allocation4 + $0x2c0] sm:$0xff] }
  0x27   :  { %410 = vmatpush1.msra.mxu0 %v5481_v16  ;;  %481 = vmatpush1.msra.mxu1 %v5483_v17  ;;  %v5507_v25 = vld [vmem:[#allocation4 + $0x2d0] sm:$0xff]  ;;  %v5511_v26 = vld [vmem:[#allocation4 + $0x288] sm:$0xff]  ;;  %v5513_v27 = vld [vmem:[#allocation4 + $0x298] sm:$0xff] }
  0x28   :  { %411 = vmatprep.subr.mxu0 %v5487_v18  ;;  %482 = vmatprep.subr.mxu1 %v5489_v19  ;;  %v5517_v28 = vld [vmem:[#allocation4 + $0x280] sm:$0xff]  ;;  %v5519_v29 = vld [vmem:[#allocation4 + $0x290] sm:$0xff]  ;;  %v5523_v30 = vld [vmem:[#allocation4 + $0x248] sm:$0xff] }
  0x29   :  { %98 = vperm.xlu0 %4592, %v72_v4   ;;  %412 = vmatpush1.msra.mxu0 %v5493_v20  ;;  %v5525_v31 = vld [vmem:[#allocation4 + $0x258] sm:$0xff]  ;;  %v5529_v32 = vld [vmem:[#allocation4 + $0x240] sm:$0xff]  ;;  %v5531_v33 = vld [vmem:[#allocation4 + $0x250] sm:$0xff] }
  0x2a   :  { %483 = vmatpush1.msra.mxu1 %v5495_v21  ;;  %413 = vmatprep.subr.mxu0 %v5499_v22  ;;  %v5535_v34 = vld [vmem:[#allocation4 + $0x208] sm:$0xff]  ;;  %v5537_v35 = vld [vmem:[#allocation4 + $0x218] sm:$0xff]  ;;  %v5541_v36 = vld [vmem:[#allocation4 + $0x200] sm:$0xff] }
  0x2b   :  { %484 = vmatprep.subr.mxu1 %v5501_v23  ;;  %414 = vmatpush1.msra.mxu0 %v5505_v24  ;;  %v5543_v37 = vld [vmem:[#allocation4 + $0x210] sm:$0xff]  ;;  %v5547_v38 = vld [vmem:[#allocation4 + $0x1c8] sm:$0xff]  ;;  %v5549_v39 = vld [vmem:[#allocation4 + $0x1d8] sm:$0xff] }
  0x2c   :  { %485 = vmatpush1.msra.mxu1 %v5507_v25  ;;  %415 = vmatprep.subr.mxu0 %v5511_v26  ;;  %v5552_v40 = vld [vmem:[#allocation4 + $0x1c0] sm:$0xff]  ;;  %v5554_v41 = vld [vmem:[#allocation4 + $0x1d0] sm:$0xff]  ;;  %v5556_v42 = vld [vmem:[#allocation4 + $0x188] sm:$0xff] }
  0x2d   :  { %108 = vperm.xlu0 %4592, %v74_v7   ;;  %486 = vmatprep.subr.mxu1 %v5513_v27  ;;  %v5560_v43 = vld [vmem:[#allocation4 + $0x198] sm:$0xff]  ;;  %v5562_v44 = vld [vmem:[#allocation4 + $0x180] sm:$0xff]  ;;  %v5564_v45 = vld [vmem:[#allocation4 + $0x190] sm:$0xff] }
  0x2e   :  { %416 = vmatpush1.msra.mxu0 %v5517_v28  ;;  %487 = vmatpush1.msra.mxu1 %v5519_v29  ;;  %v5568_v46 = vld [vmem:[#allocation4 + $0x148] sm:$0xff]  ;;  %v5570_v47 = vld [vmem:[#allocation4 + $0x158] sm:$0xff]  ;;  %v5574_v48 = vld [vmem:[#allocation4 + $0x140] sm:$0xff] }
  0x2f   :  { %417 = vmatprep.subr.mxu0 %v5523_v30  ;;  %488 = vmatprep.subr.mxu1 %v5525_v31  ;;  %v5576_v49 = vld [vmem:[#allocation4 + $0x150] sm:$0xff]  ;;  %v5580_v50 = vld [vmem:[#allocation4 + $0x108] sm:$0xff]  ;;  %v5582_v51 = vld [vmem:[#allocation4 + $0x118] sm:$0xff] }
  0x30   :  { %418 = vmatpush1.msra.mxu0 %v5529_v32  ;;  %489 = vmatpush1.msra.mxu1 %v5531_v33  ;;  %9151 = vst [vmem:[#allocation10_spill] sm:$0xff] %v5580_v50  ;;  %9152 = vst [vmem:[#allocation11_spill] sm:$0xff] %v5582_v51  ;;  %v5586_v52 = vld [vmem:[#allocation4 + $0x100] sm:$0xff]  ;;  %v5588_v53 = vld [vmem:[#allocation4 + $0x110] sm:$0xff] }
  0x31   :  { %419 = vmatprep.subr.mxu0 %v5535_v34  ;;  %490 = vmatprep.subr.mxu1 %v5537_v35  ;;  %9153 = vst [vmem:[#allocation12_spill] sm:$0xff] %v5586_v52  ;;  %9154 = vst [vmem:[#allocation13_spill] sm:$0xff] %v5588_v53  ;;  %v5592_v54 = vld [vmem:[#allocation4 + $0xc8] sm:$0xff]  ;;  %v5594_v55 = vld [vmem:[#allocation4 + $0xd8] sm:$0xff] }
  0x32   :  { %420 = vmatpush1.msra.mxu0 %v5541_v36  ;;  %491 = vmatpush1.msra.mxu1 %v5543_v37  ;;  %9155 = vst [vmem:[#allocation14_spill] sm:$0xff] %v5592_v54  ;;  %9156 = vst [vmem:[#allocation15_spill] sm:$0xff] %v5594_v55  ;;  %v5598_v56 = vld [vmem:[#allocation4 + $0xc0] sm:$0xff]  ;;  %v5600_v57 = vld [vmem:[#allocation4 + $0xd0] sm:$0xff] }
  0x33   :  { %421 = vmatprep.subr.mxu0 %v5547_v38  ;;  %492 = vmatprep.subr.mxu1 %v5549_v39  ;;  %9157 = vst [vmem:[#allocation16_spill] sm:$0xff] %v5598_v56  ;;  %9158 = vst [vmem:[#allocation17_spill] sm:$0xff] %v5600_v57  ;;  %v5604_v58 = vld [vmem:[#allocation4 + $0x88] sm:$0xff]  ;;  %v5606_v59 = vld [vmem:[#allocation4 + $0x98] sm:$0xff] }
  0x34   :  { %422 = vmatpush1.msra.mxu0 %v5552_v40  ;;  %493 = vmatpush1.msra.mxu1 %v5554_v41  ;;  %9159 = vst [vmem:[#allocation18_spill] sm:$0xff] %v5604_v58  ;;  %9160 = vst [vmem:[#allocation19_spill] sm:$0xff] %v5606_v59  ;;  %v5610_v60 = vld [vmem:[#allocation4 + $0x80] sm:$0xff]  ;;  %v5612_v61 = vld [vmem:[#allocation4 + $0x90] sm:$0xff] }
  0x35   :  { %423 = vmatprep.subr.mxu0 %v5556_v42  ;;  %494 = vmatprep.subr.mxu1 %v5560_v43  ;;  %9161 = vst [vmem:[#allocation20_spill] sm:$0xff] %v5610_v60  ;;  %9162 = vst [vmem:[#allocation21_spill] sm:$0xff] %v5612_v61  ;;  %v5616_v62 = vld [vmem:[#allocation4 + $0x48] sm:$0xff]  ;;  %v5618_v63 = vld [vmem:[#allocation4 + $0x58] sm:$0xff] }
  0x36   :  { %424 = vmatpush1.msra.mxu0 %v5562_v44  ;;  %495 = vmatpush1.msra.mxu1 %v5564_v45  ;;  %9163 = vst [vmem:[#allocation22_spill] sm:$0xff] %v5616_v62  ;;  %9164 = vst [vmem:[#allocation23_spill] sm:$0xff] %v5618_v63  ;;  %v5622_v0 = vld [vmem:[#allocation4 + $0x40] sm:$0xff]  ;;  %v5624_v1 = vld [vmem:[#allocation4 + $0x50] sm:$0xff] }
  0x37   :  { %425 = vmatprep.subr.mxu0 %v5568_v46  ;;  %496 = vmatprep.subr.mxu1 %v5570_v47  ;;  %9165 = vst [vmem:[#allocation24_spill] sm:$0xff] %v5622_v0  ;;  %9166 = vst [vmem:[#allocation25_spill] sm:$0xff] %v5624_v1  ;;  %v5628_v2 = vld [vmem:[#allocation4 + $0x8] sm:$0xff]  ;;  %v5630_v3 = vld [vmem:[#allocation4 + $0x18] sm:$0xff] }
  0x38   :  { %426 = vmatpush1.msra.mxu0 %v5574_v48  ;;  %497 = vmatpush1.msra.mxu1 %v5576_v49  ;;  %9167 = vst [vmem:[#allocation26_spill] sm:$0xff] %v5628_v2  ;;  %9168 = vst [vmem:[#allocation27_spill] sm:$0xff] %v5630_v3  ;;  %v5634_v4 = vld [vmem:[#allocation4] sm:$0xff]  ;;  %v5636_v7 = vld [vmem:[#allocation4 + $0x10] sm:$0xff] }
  0x39   :  { %427 = vmatprep.subr.mxu0 %v5580_v50  ;;  %498 = vmatprep.subr.mxu1 %v5582_v51  ;;  %9169 = vst [vmem:[#allocation28_spill] sm:$0xff] %v5634_v4  ;;  %9170 = vst [vmem:[#allocation29_spill] sm:$0xff] %v5636_v7 }
  0x3a   :  { %428 = vmatpush1.msra.mxu0 %v5586_v52  ;;  %499 = vmatpush1.msra.mxu1 %v5588_v53 }
  0x3b   :  { %429 = vmatprep.subr.mxu0 %v5592_v54  ;;  %500 = vmatprep.subr.mxu1 %v5594_v55 }
  0x3c   :  { %430 = vmatpush1.msra.mxu0 %v5598_v56  ;;  %501 = vmatpush1.msra.mxu1 %v5600_v57 }
  0x3d   :  { %431 = vmatprep.subr.mxu0 %v5604_v58  ;;  %502 = vmatprep.subr.mxu1 %v5606_v59 }
  0x3e   :  { %432 = vmatpush1.msra.mxu0 %v5610_v60  ;;  %503 = vmatpush1.msra.mxu1 %v5612_v61  ;;  %v5642_v61 = vld [vmem:[#allocation4 + $0x3e8] sm:$0xff]  ;;  %v5644_v60 = vld [vmem:[#allocation4 + $0x3f8] sm:$0xff] }
  0x3f   :  { %433 = vmatprep.subr.mxu0 %v5616_v62  ;;  %504 = vmatprep.subr.mxu1 %v5618_v63  ;;  %9171 = vst [vmem:[#allocation30_spill] sm:$0xff] %v5642_v61  ;;  %9172 = vst [vmem:[#allocation31_spill] sm:$0xff] %v5644_v60  ;;  %v8523_v63 = vmov 0.0  }
  0x40   :  { %434 = vmatpush1.msra.mxu0 %v5622_v0  ;;  %505 = vmatpush1.msra.mxu1 %v5624_v1 }
  0x41   :  { %435 = vmatprep.subr.mxu0 %v5628_v2  ;;  %506 = vmatprep.subr.mxu1 %v5630_v3  ;;  %v8527_v2 = vlaneseq }
  0x42   :  { %436 = vmatpush1.msra.mxu0 %v5634_v4  ;;  %507 = vmatpush1.msra.mxu1 %v5636_v7  ;;  %v62_v7 = vld [vmem:[%s8498_s1] sm:$0xf] }
  0x43   :  { %469 = vmatprep.mubr.f32.mxu0 %v8523_v63  ;;  %540 = vmatprep.mubr.f32.mxu1 %v8523_v63  ;;  %v5653_v3 = vshrl.u32 %v8527_v2, 7 }
  0x44   :  { %547 = vmatprep.subr.mxu0 %v5642_v61  ;;  %618 = vmatprep.subr.mxu1 %v5644_v60  ;;  %v63_v60 = vld [vmem:[%s8499_s2] sm:$0xf] }
  0x45   :  { %9173 = vst [vmem:[#allocation32_spill] sm:$0xff] %v5653_v3  ;;  %v5656_v1 = vsub.s32 0, %v5653_v3  ;;  %v5659_v4 = vsub.s32 1, %v5653_v3  ;;  %v5665_v63 = vsub.s32 3, %v5653_v3  ;;  %v5688_v55 = vsub.s32 2, %v5653_v3 }
  0x47   :  { %9174 = vst [vmem:[#allocation33_spill] sm:$0xff] %v5656_v1  ;;  %9175 = vst [vmem:[#allocation34_spill] sm:$0xff] %v5659_v4  ;;  %v5671_v2 = vrot.slane %v62_v7, %v5656_v1  ;;  %v5674_v61 = vrot.slane %v62_v7, %v5659_v4  ;;  %v5677_v0 = vrot.slane %v62_v7, %v5665_v63 }
  0x48   :  { %9176 = vst [vmem:[#allocation35_spill] sm:$0xff] %v5665_v63  ;;  %v5680_v62 = vrot.slane %v63_v60, %v5656_v1  ;;  %v5683_v59 = vrot.slane %v63_v60, %v5659_v4  ;;  %9182 = vst [vmem:[#allocation41_spill] sm:$0xff] %v5688_v55  ;;  %v5692_v53 = vrot.slane %v63_v60, %v5665_v63 }
  0x49   :  { %9177 = vst [vmem:[#allocation36_spill] sm:$0xff] %v5671_v2  ;;  %9178 = vst [vmem:[#allocation37_spill] sm:$0xff] %v5674_v61  ;;  %v5697_v50 = vrot.slane %v62_v7, %v5688_v55 }
  0x4a   :  { %9179 = vst [vmem:[#allocation38_spill] sm:$0xff] %v5677_v0  ;;  %9180 = vst [vmem:[#allocation39_spill] sm:$0xff] %v5680_v62 }
  0x4b   :  { %9181 = vst [vmem:[#allocation40_spill] sm:$0xff] %v5683_v59  ;;  %9183 = vst [vmem:[#allocation42_spill] sm:$0xff] %v5697_v50 }
  0x9c   :  { %v79_v58 = vpop.permute.xlu0 %78 }
  0x9d   :  { %v137_v57 = vmul.f32 %v5671_v2, %v79_v58  ;;  %v138_v56 = vmul.f32 %v5674_v61, %v79_v58  ;;  %v140_v54 = vmul.f32 %v5677_v0, %v79_v58  ;;  %v139_v3 = vmul.f32 %v5697_v50, %v79_v58 }
  0x9e   :  { %v5702_v0 = vrot.slane %v63_v60, %v5688_v55 }
  0x9f   :  { %v190_v52 = vadd.f32 %v5680_v62, %v137_v57  ;;  %v191_v1 = vadd.f32 %v5683_v59, %v138_v56  ;;  %v193_v2 = vadd.f32 %v5692_v53, %v140_v54 }
  0xa0   :  { %v192_v61 = vadd.f32 %v5702_v0, %v139_v3 }
  0xa1   :  { %v258_v51 = vmul.f32 0.5, %v190_v52  ;;  %v259_v4 = vmul.f32 0.5, %v191_v1 }
  0xa2   :  { %v260_v57 = vmul.f32 0.5, %v192_v61  ;;  %v5710_v61 = vld [vmem:[#allocation4 + $0x3e0] sm:$0xff] }
  0xa3   :  { %4594 = vtanh.f32 %v258_v51 }
  0xa4   :  { %4596 = vtanh.f32 %v259_v4 }
  0xa5   :  { %4598 = vtanh.f32 %v193_v2 }
  0xa6   :  { %4600 = vtanh.f32 %v260_v57  ;;  %v5714_v57 = vld [vmem:[#allocation4 + $0x3a8] sm:$0xff] }
  0xb0   :  { %v4595_v62 = vpop.eup %4594 }
  0xb1   :  { %v4597_v56 = vpop.eup %4596  ;;  %v264_v52 = vadd.f32 1.0, %v4595_v62  ;;  %v5712_v62 = vld [vmem:[#allocation4 + $0x3f0] sm:$0xff] }
  0xb2   :  { %v265_v1 = vadd.f32 1.0, %v4597_v56  ;;  %v4599_v59 = vpop.eup %4598  ;;  %v5716_v56 = vld [vmem:[#allocation4 + $0x3b8] sm:$0xff] }
  0xb3   :  { %v267_v7 = vmul.f32 0.5, %v264_v52  ;;  %v4601_v58 = vpop.eup %4600  ;;  %v5728_v52 = vld [vmem:[#allocation4 + $0x378] sm:$0xff] }
  0xb4   :  { %v268_v63 = vmul.f32 0.5, %v265_v1  ;;  %v266_v60 = vadd.f32 1.0, %v4601_v58  ;;  %9187 = vst [vmem:[#allocation46_spill] sm:$0xff] %v5728_v52  ;;  %v5732_v1 = vld [vmem:[#allocation4 + $0x360] sm:$0xff] }
  0xb5   :  { %v272_v54 = vmul.f32 %v4599_v59, %v267_v7  ;;  %v5720_v59 = vld [vmem:[#allocation4 + $0x3a0] sm:$0xff]  ;;  %9188 = vst [vmem:[#allocation47_spill] sm:$0xff] %v5732_v1  ;;  %v5734_v7 = vld [vmem:[#allocation4 + $0x370] sm:$0xff] }
  0xb6   :  { %v271_v51 = vmul.f32 0.0, %v268_v63  ;;  %v269_v2 = vmul.f32 0.5, %v266_v60  ;;  %9184 = vst [vmem:[#allocation43_spill] sm:$0xff] %v5720_v59  ;;  %v5722_v63 = vld [vmem:[#allocation4 + $0x3b0] sm:$0xff]  ;;  %9189 = vst [vmem:[#allocation48_spill] sm:$0xff] %v5734_v7  ;;  %v5744_v58 = vld [vmem:[#allocation4 + $0x320] sm:$0xff] }
  0xb7   :  { %9185 = vst [vmem:[#allocation44_spill] sm:$0xff] %v5722_v63  ;;  %9192 = vst [vmem:[#allocation51_spill] sm:$0xff] %v5744_v58  ;;  %v5746_v60 = vld [vmem:[#allocation4 + $0x330] sm:$0xff] }
  0xb8   :  { %v5705_v4 = vadd.f32 %v272_v54, %v271_v51  ;;  %v5738_v54 = vld [vmem:[#allocation4 + $0x328] sm:$0xff]  ;;  %v5740_v51 = vld [vmem:[#allocation4 + $0x338] sm:$0xff]  ;;  %9193 = vst [vmem:[#allocation52_spill] sm:$0xff] %v5746_v60 }
  0xb9   :  { %9190 = vst [vmem:[#allocation49_spill] sm:$0xff] %v5738_v54  ;;  %9191 = vst [vmem:[#allocation50_spill] sm:$0xff] %v5740_v51 }
  0xba   :  { %4602 = vtanh.f32 %v5705_v4 }
  0xc7   :  { %v4603_v50 = vpop.eup %4602 }
  0xc8   :  { %v5708_v3 = vmul.f32 %v4603_v50, %v269_v2  ;;  %v5726_v50 = vld [vmem:[#allocation4 + $0x368] sm:$0xff] }
  0xc9   :  { %9186 = vst [vmem:[#allocation45_spill] sm:$0xff] %v5726_v50  ;;  %v5750_v2 = vld [vmem:[#allocation4 + $0x2e8] sm:$0xff] }
  0xca   :  { %470 = vmatmul.mubr.f32.vlgmr.msra.gmra.mxu0 %v5708_v3  ;;  %541 = vmatmul.mubr.f32.vlgmr.msra.gmra.mxu1 %v5708_v3  ;;  %9194 = vst [vmem:[#allocation53_spill] sm:$0xff] %v5750_v2 }
  0xcb   :  { %548 = vmatpush1.msra.mxu0 %v5710_v61  ;;  %619 = vmatpush1.msra.mxu1 %v5712_v62 }
  0xcc   :  { %549 = vmatprep.subr.mxu0 %v5714_v57  ;;  %620 = vmatprep.subr.mxu1 %v5716_v56 }
  0xcd   :  { %550 = vmatpush1.msra.mxu0 %v5720_v59  ;;  %621 = vmatpush1.msra.mxu1 %v5722_v63  ;;  %v5752_v59 = vld [vmem:[#allocation4 + $0x2f8] sm:$0xff]  ;;  %v5756_v63 = vld [vmem:[#allocation4 + $0x2e0] sm:$0xff] }
  0xce   :  { %551 = vmatprep.subr.mxu0 %v5726_v50  ;;  %622 = vmatprep.subr.mxu1 %v5728_v52  ;;  %9195 = vst [vmem:[#allocation54_spill] sm:$0xff] %v5752_v59  ;;  %9196 = vst [vmem:[#allocation55_spill] sm:$0xff] %v5756_v63  ;;  %v5758_v50 = vld [vmem:[#allocation4 + $0x2f0] sm:$0xff]  ;;  %v5762_v52 = vld [vmem:[#allocation4 + $0x2a8] sm:$0xff] }
  0xcf   :  { %552 = vmatpush1.msra.mxu0 %v5732_v1  ;;  %623 = vmatpush1.msra.mxu1 %v5734_v7  ;;  %9197 = vst [vmem:[#allocation56_spill] sm:$0xff] %v5758_v50  ;;  %9198 = vst [vmem:[#allocation57_spill] sm:$0xff] %v5762_v52  ;;  %v5764_v1 = vld [vmem:[#allocation4 + $0x2b8] sm:$0xff]  ;;  %v5768_v7 = vld [vmem:[#allocation4 + $0x2a0] sm:$0xff] }
  0xd0   :  { %553 = vmatprep.subr.mxu0 %v5738_v54  ;;  %624 = vmatprep.subr.mxu1 %v5740_v51  ;;  %9199 = vst [vmem:[#allocation58_spill] sm:$0xff] %v5764_v1  ;;  %9200 = vst [vmem:[#allocation59_spill] sm:$0xff] %v5768_v7  ;;  %v5770_v54 = vld [vmem:[#allocation4 + $0x2b0] sm:$0xff]  ;;  %v5774_v51 = vld [vmem:[#allocation4 + $0x268] sm:$0xff] }
  0xd1   :  { %554 = vmatpush1.msra.mxu0 %v5744_v58  ;;  %625 = vmatpush1.msra.mxu1 %v5746_v60  ;;  %9201 = vst [vmem:[#allocation60_spill] sm:$0xff] %v5770_v54  ;;  %9202 = vst [vmem:[#allocation61_spill] sm:$0xff] %v5774_v51  ;;  %v5776_v58 = vld [vmem:[#allocation4 + $0x278] sm:$0xff]  ;;  %v5780_v60 = vld [vmem:[#allocation4 + $0x260] sm:$0xff] }
  0xd2   :  { %555 = vmatprep.subr.mxu0 %v5750_v2  ;;  %626 = vmatprep.subr.mxu1 %v5752_v59  ;;  %9203 = vst [vmem:[#allocation62_spill] sm:$0xff] %v5776_v58  ;;  %9204 = vst [vmem:[#allocation63_spill] sm:$0xff] %v5780_v60  ;;  %v5782_v2 = vld [vmem:[#allocation4 + $0x270] sm:$0xff]  ;;  %v5786_v59 = vld [vmem:[#allocation4 + $0x228] sm:$0xff] }
  0xd3   :  { %556 = vmatpush1.msra.mxu0 %v5756_v63  ;;  %627 = vmatpush1.msra.mxu1 %v5758_v50  ;;  %9205 = vst [vmem:[#allocation64_spill] sm:$0xff] %v5782_v2  ;;  %9206 = vst [vmem:[#allocation65_spill] sm:$0xff] %v5786_v59  ;;  %v5788_v63 = vld [vmem:[#allocation4 + $0x238] sm:$0xff]  ;;  %v5792_v50 = vld [vmem:[#allocation4 + $0x220] sm:$0xff] }
  0xd4   :  { %557 = vmatprep.subr.mxu0 %v5762_v52  ;;  %628 = vmatprep.subr.mxu1 %v5764_v1  ;;  %9207 = vst [vmem:[#allocation66_spill] sm:$0xff] %v5788_v63  ;;  %9208 = vst [vmem:[#allocation67_spill] sm:$0xff] %v5792_v50  ;;  %v5794_v52 = vld [vmem:[#allocation4 + $0x230] sm:$0xff]  ;;  %v5798_v1 = vld [vmem:[#allocation4 + $0x1e8] sm:$0xff] }
  0xd5   :  { %558 = vmatpush1.msra.mxu0 %v5768_v7  ;;  %629 = vmatpush1.msra.mxu1 %v5770_v54  ;;  %9209 = vst [vmem:[#allocation68_spill] sm:$0xff] %v5794_v52  ;;  %9210 = vst [vmem:[#allocation69_spill] sm:$0xff] %v5798_v1  ;;  %v5800_v7 = vld [vmem:[#allocation4 + $0x1f8] sm:$0xff]  ;;  %v5804_v54 = vld [vmem:[#allocation4 + $0x1e0] sm:$0xff] }
  0xd6   :  { %559 = vmatprep.subr.mxu0 %v5774_v51  ;;  %630 = vmatprep.subr.mxu1 %v5776_v58  ;;  %9211 = vst [vmem:[#allocation70_spill] sm:$0xff] %v5800_v7  ;;  %9212 = vst [vmem:[#allocation71_spill] sm:$0xff] %v5804_v54  ;;  %v5806_v51 = vld [vmem:[#allocation4 + $0x1f0] sm:$0xff]  ;;  %v5810_v58 = vld [vmem:[#allocation4 + $0x1a8] sm:$0xff] }
  0xd7   :  { %560 = vmatpush1.msra.mxu0 %v5780_v60  ;;  %631 = vmatpush1.msra.mxu1 %v5782_v2  ;;  %9213 = vst [vmem:[#allocation72_spill] sm:$0xff] %v5806_v51  ;;  %9214 = vst [vmem:[#allocation73_spill] sm:$0xff] %v5810_v58  ;;  %v5812_v60 = vld [vmem:[#allocation4 + $0x1b8] sm:$0xff]  ;;  %v5816_v2 = vld [vmem:[#allocation4 + $0x1a0] sm:$0xff] }
  0xd8   :  { %561 = vmatprep.subr.mxu0 %v5786_v59  ;;  %632 = vmatprep.subr.mxu1 %v5788_v63  ;;  %9215 = vst [vmem:[#allocation74_spill] sm:$0xff] %v5812_v60  ;;  %9216 = vst [vmem:[#allocation75_spill] sm:$0xff] %v5816_v2  ;;  %v5818_v59 = vld [vmem:[#allocation4 + $0x1b0] sm:$0xff]  ;;  %v5822_v63 = vld [vmem:[#allocation4 + $0x168] sm:$0xff] }
  0xd9   :  { %562 = vmatpush1.msra.mxu0 %v5792_v50  ;;  %633 = vmatpush1.msra.mxu1 %v5794_v52  ;;  %9217 = vst [vmem:[#allocation76_spill] sm:$0xff] %v5818_v59  ;;  %9218 = vst [vmem:[#allocation77_spill] sm:$0xff] %v5822_v63  ;;  %v5824_v50 = vld [vmem:[#allocation4 + $0x178] sm:$0xff]  ;;  %v5828_v52 = vld [vmem:[#allocation4 + $0x160] sm:$0xff] }
  0xda   :  { %563 = vmatprep.subr.mxu0 %v5798_v1  ;;  %634 = vmatprep.subr.mxu1 %v5800_v7  ;;  %9219 = vst [vmem:[#allocation78_spill] sm:$0xff] %v5824_v50  ;;  %9220 = vst [vmem:[#allocation79_spill] sm:$0xff] %v5828_v52  ;;  %v5830_v1 = vld [vmem:[#allocation4 + $0x170] sm:$0xff]  ;;  %v5834_v7 = vld [vmem:[#allocation4 + $0x128] sm:$0xff] }
  0xdb   :  { %564 = vmatpush1.msra.mxu0 %v5804_v54  ;;  %635 = vmatpush1.msra.mxu1 %v5806_v51  ;;  %9221 = vst [vmem:[#allocation80_spill] sm:$0xff] %v5830_v1  ;;  %9222 = vst [vmem:[#allocation81_spill] sm:$0xff] %v5834_v7  ;;  %v5836_v54 = vld [vmem:[#allocation4 + $0x138] sm:$0xff]  ;;  %v5840_v51 = vld [vmem:[#allocation4 + $0x120] sm:$0xff] }
  0xdc   :  { %565 = vmatprep.subr.mxu0 %v5810_v58  ;;  %636 = vmatprep.subr.mxu1 %v5812_v60  ;;  %9223 = vst [vmem:[#allocation82_spill] sm:$0xff] %v5836_v54  ;;  %9224 = vst [vmem:[#allocation83_spill] sm:$0xff] %v5840_v51  ;;  %v5842_v58 = vld [vmem:[#allocation4 + $0x130] sm:$0xff]  ;;  %v5846_v60 = vld [vmem:[#allocation4 + $0xe8] sm:$0xff] }
  0xdd   :  { %566 = vmatpush1.msra.mxu0 %v5816_v2  ;;  %637 = vmatpush1.msra.mxu1 %v5818_v59  ;;  %9225 = vst [vmem:[#allocation84_spill] sm:$0xff] %v5842_v58  ;;  %9226 = vst [vmem:[#allocation85_spill] sm:$0xff] %v5846_v60  ;;  %v5848_v2 = vld [vmem:[#allocation4 + $0xf8] sm:$0xff]  ;;  %v5852_v59 = vld [vmem:[#allocation4 + $0xe0] sm:$0xff] }
  0xde   :  { %567 = vmatprep.subr.mxu0 %v5822_v63  ;;  %638 = vmatprep.subr.mxu1 %v5824_v50  ;;  %9227 = vst [vmem:[#allocation86_spill] sm:$0xff] %v5848_v2  ;;  %9228 = vst [vmem:[#allocation87_spill] sm:$0xff] %v5852_v59  ;;  %v5854_v63 = vld [vmem:[#allocation4 + $0xf0] sm:$0xff]  ;;  %v5858_v50 = vld [vmem:[#allocation4 + $0xa8] sm:$0xff] }
  0xdf   :  { %568 = vmatpush1.msra.mxu0 %v5828_v52  ;;  %639 = vmatpush1.msra.mxu1 %v5830_v1  ;;  %9229 = vst [vmem:[#allocation88_spill] sm:$0xff] %v5854_v63  ;;  %v5860_v52 = vld [vmem:[#allocation4 + $0xb8] sm:$0xff]  ;;  %v5864_v1 = vld [vmem:[#allocation4 + $0xa0] sm:$0xff] }
  0xe0   :  { %569 = vmatprep.subr.mxu0 %v5834_v7  ;;  %640 = vmatprep.subr.mxu1 %v5836_v54  ;;  %9230 = vst [vmem:[#allocation89_spill] sm:$0xff] %v5860_v52  ;;  %v5866_v7 = vld [vmem:[#allocation4 + $0xb0] sm:$0xff]  ;;  %v5870_v54 = vld [vmem:[#allocation4 + $0x68] sm:$0xff] }
  0xe1   :  { %570 = vmatpush1.msra.mxu0 %v5840_v51  ;;  %641 = vmatpush1.msra.mxu1 %v5842_v58  ;;  %9231 = vst [vmem:[#allocation90_spill] sm:$0xff] %v5866_v7  ;;  %v5872_v51 = vld [vmem:[#allocation4 + $0x78] sm:$0xff]  ;;  %v5876_v58 = vld [vmem:[#allocation4 + $0x60] sm:$0xff] }
  0xe2   :  { %571 = vmatprep.subr.mxu0 %v5846_v60  ;;  %642 = vmatprep.subr.mxu1 %v5848_v2  ;;  %9232 = vst [vmem:[#allocation91_spill] sm:$0xff] %v5872_v51  ;;  %v5878_v60 = vld [vmem:[#allocation4 + $0x70] sm:$0xff]  ;;  %v5882_v2 = vld [vmem:[#allocation4 + $0x28] sm:$0xff] }
  0xe3   :  { %572 = vmatpush1.msra.mxu0 %v5852_v59  ;;  %643 = vmatpush1.msra.mxu1 %v5854_v63  ;;  %9233 = vst [vmem:[#allocation92_spill] sm:$0xff] %v5878_v60  ;;  %v5884_v59 = vld [vmem:[#allocation4 + $0x38] sm:$0xff]  ;;  %v5888_v63 = vld [vmem:[#allocation4 + $0x20] sm:$0xff] }
  0xe4   :  { %573 = vmatprep.subr.mxu0 %v5858_v50  ;;  %644 = vmatprep.subr.mxu1 %v5860_v52  ;;  %9234 = vst [vmem:[#allocation93_spill] sm:$0xff] %v5884_v59  ;;  %9235 = vst [vmem:[#allocation94_spill] sm:$0xff] %v5888_v63  ;;  %v5892_v52 = vld [vmem:[#allocation4 + $0x30] sm:$0xff] }
  0xe5   :  { %574 = vmatpush1.msra.mxu0 %v5864_v1  ;;  %645 = vmatpush1.msra.mxu1 %v5866_v7  ;;  %9236 = vst [vmem:[#allocation95_spill] sm:$0xff] %v5892_v52  ;;  %v9237_v7 = vmov 0.0  }
  0xe6   :  { %575 = vmatprep.subr.mxu0 %v5870_v54  ;;  %646 = vmatprep.subr.mxu1 %v5872_v51 }
  0xe7   :  { %576 = vmatpush1.msra.mxu0 %v5876_v58  ;;  %647 = vmatpush1.msra.mxu1 %v5878_v60 }
  0xe8   :  { %577 = vmatprep.subr.mxu0 %v5882_v2  ;;  %648 = vmatprep.subr.mxu1 %v5884_v59 }
  0xe9   :  { %578 = vmatpush1.msra.mxu0 %v5888_v63  ;;  %611 = vmatprep.mubr.f32.mxu0 %v9237_v7 }
  0xea   :  { %649 = vmatpush1.msra.mxu1 %v5892_v52  ;;  %682 = vmatprep.mubr.f32.mxu1 %v9237_v7 }
  0xeb   :  { %612 = vmatmul.mubr.f32.vlgmr.msra.gmra.mxu0 %v5708_v3  ;;  %683 = vmatmul.mubr.f32.vlgmr.msra.gmra.mxu1 %v5708_v3 }
  0xec   :  { %760 = vmatprep.subr.mxu0 %v5449_v5  ;;  %831 = vmatprep.subr.mxu1 %v5451_v6  ;;  %v9238_v5 = vld [vmem:[#allocation10_spill] sm:$0xff]  ;;  %v9239_v6 = vld [vmem:[#allocation11_spill] sm:$0xff] }
  0xed   :  { %761 = vmatpush1.msra.mxu0 %v5458_v8  ;;  %832 = vmatpush1.msra.mxu1 %v5460_v9  ;;  %v9240_v8 = vld [vmem:[#allocation12_spill] sm:$0xff]  ;;  %v9241_v9 = vld [vmem:[#allocation13_spill] sm:$0xff] }
  0xee   :  { %762 = vmatprep.subr.mxu0 %v5464_v10  ;;  %833 = vmatprep.subr.mxu1 %v5466_v11  ;;  %v9242_v10 = vld [vmem:[#allocation14_spill] sm:$0xff]  ;;  %v9243_v11 = vld [vmem:[#allocation15_spill] sm:$0xff] }
  0xef   :  { %763 = vmatpush1.msra.mxu0 %v5470_v12  ;;  %834 = vmatpush1.msra.mxu1 %v5472_v13  ;;  %v9244_v12 = vld [vmem:[#allocation16_spill] sm:$0xff]  ;;  %v9245_v13 = vld [vmem:[#allocation17_spill] sm:$0xff] }
  0xf0   :  { %764 = vmatprep.subr.mxu0 %v5475_v14  ;;  %835 = vmatprep.subr.mxu1 %v5477_v15  ;;  %v9246_v14 = vld [vmem:[#allocation18_spill] sm:$0xff]  ;;  %v9247_v15 = vld [vmem:[#allocation19_spill] sm:$0xff] }
  0xf1   :  { %765 = vmatpush1.msra.mxu0 %v5481_v16  ;;  %836 = vmatpush1.msra.mxu1 %v5483_v17  ;;  %v9248_v16 = vld [vmem:[#allocation20_spill] sm:$0xff]  ;;  %v9249_v17 = vld [vmem:[#allocation21_spill] sm:$0xff] }
  0xf2   :  { %766 = vmatprep.subr.mxu0 %v5487_v18  ;;  %837 = vmatprep.subr.mxu1 %v5489_v19  ;;  %v9250_v18 = vld [vmem:[#allocation22_spill] sm:$0xff]  ;;  %v9251_v19 = vld [vmem:[#allocation23_spill] sm:$0xff] }
  0xf3   :  { %767 = vmatpush1.msra.mxu0 %v5493_v20  ;;  %838 = vmatpush1.msra.mxu1 %v5495_v21  ;;  %v9252_v20 = vld [vmem:[#allocation24_spill] sm:$0xff]  ;;  %v9253_v21 = vld [vmem:[#allocation25_spill] sm:$0xff] }
  0xf4   :  { %768 = vmatprep.subr.mxu0 %v5499_v22  ;;  %839 = vmatprep.subr.mxu1 %v5501_v23  ;;  %v9254_v22 = vld [vmem:[#allocation26_spill] sm:$0xff]  ;;  %v9255_v23 = vld [vmem:[#allocation27_spill] sm:$0xff] }
  0xf5   :  { %769 = vmatpush1.msra.mxu0 %v5505_v24  ;;  %840 = vmatpush1.msra.mxu1 %v5507_v25  ;;  %v9256_v24 = vld [vmem:[#allocation28_spill] sm:$0xff]  ;;  %v9257_v25 = vld [vmem:[#allocation29_spill] sm:$0xff] }
  0xf6   :  { %770 = vmatprep.subr.mxu0 %v5511_v26  ;;  %841 = vmatprep.subr.mxu1 %v5513_v27  ;;  %v9258_v26 = vld [vmem:[#allocation30_spill] sm:$0xff]  ;;  %v9259_v27 = vld [vmem:[#allocation31_spill] sm:$0xff] }
  0xf7   :  { %771 = vmatpush1.msra.mxu0 %v5517_v28  ;;  %842 = vmatpush1.msra.mxu1 %v5519_v29  ;;  %v70_v28 = vld [vmem:[%s8497_s0 + $0x10] sm:$0xff]  ;;  %v71_v29 = vld [vmem:[%s8497_s0 + $0x18] sm:$0xff] }
  0xf8   :  { %772 = vmatprep.subr.mxu0 %v5523_v30  ;;  %843 = vmatprep.subr.mxu1 %v5525_v31  ;;  %v73_v30 = vld [vmem:[%s8497_s0 + $0x28] sm:$0xff]  ;;  %v64_v31 = vld [vmem:[%s8501_s4] sm:$0xf] }
  0xf9   :  { %773 = vmatpush1.msra.mxu0 %v5529_v32  ;;  %844 = vmatpush1.msra.mxu1 %v5531_v33  ;;  %v75_v32 = vld [vmem:[%s8497_s0 + $0x38] sm:$0xff] }
  0xfa   :  { %774 = vmatprep.subr.mxu0 %v5535_v34  ;;  %845 = vmatprep.subr.mxu1 %v5537_v35  ;;  %v9260_v33 = vld [vmem:[#allocation33_spill] sm:$0xff] }
  0xfb   :  { %775 = vmatpush1.msra.mxu0 %v5541_v36  ;;  %846 = vmatpush1.msra.mxu1 %v5543_v37  ;;  %v5986_v3 = vrot.slane %v64_v31, %v9260_v33 }
  0xfc   :  { %776 = vmatprep.subr.mxu0 %v5547_v38  ;;  %847 = vmatprep.subr.mxu1 %v5549_v39 }
  0xfd   :  { %777 = vmatpush1.msra.mxu0 %v5552_v40  ;;  %848 = vmatpush1.msra.mxu1 %v5554_v41  ;;  %9261 = vst [vmem:[#allocation10_spill] sm:$0xff] %v5986_v3 }
  0xfe   :  { %778 = vmatprep.subr.mxu0 %v5556_v42  ;;  %849 = vmatprep.subr.mxu1 %v5560_v43 }
  0xff   :  { %779 = vmatpush1.msra.mxu0 %v5562_v44  ;;  %850 = vmatpush1.msra.mxu1 %v5564_v45 }
 0x100   :  { %780 = vmatprep.subr.mxu0 %v5568_v46  ;;  %851 = vmatprep.subr.mxu1 %v5570_v47 }
 0x101   :  { %781 = vmatpush1.msra.mxu0 %v5574_v48  ;;  %852 = vmatpush1.msra.mxu1 %v5576_v49 }
 0x102   :  { %782 = vmatprep.subr.mxu0 %v9238_v5  ;;  %853 = vmatprep.subr.mxu1 %v9239_v6 }
 0x103   :  { %783 = vmatpush1.msra.mxu0 %v9240_v8  ;;  %854 = vmatpush1.msra.mxu1 %v9241_v9 }
 0x104   :  { %784 = vmatprep.subr.mxu0 %v9242_v10  ;;  %855 = vmatprep.subr.mxu1 %v9243_v11 }
 0x105   :  { %785 = vmatpush1.msra.mxu0 %v9244_v12  ;;  %856 = vmatpush1.msra.mxu1 %v9245_v13 }
 0x106   :  { %786 = vmatprep.subr.mxu0 %v9246_v14  ;;  %857 = vmatprep.subr.mxu1 %v9247_v15 }
 0x107   :  { %787 = vmatpush1.msra.mxu0 %v9248_v16  ;;  %858 = vmatpush1.msra.mxu1 %v9249_v17 }
 0x108   :  { %788 = vmatprep.subr.mxu0 %v9250_v18  ;;  %859 = vmatprep.subr.mxu1 %v9251_v19 }
 0x109   :  { %789 = vmatpush1.msra.mxu0 %v9252_v20  ;;  %860 = vmatpush1.msra.mxu1 %v9253_v21 }
 0x10a   :  { %790 = vmatprep.subr.mxu0 %v9254_v22  ;;  %861 = vmatprep.subr.mxu1 %v9255_v23  ;;  %v9264_v23 = vld [vmem:[#allocation35_spill] sm:$0xff] }
 0x10b   :  { %791 = vmatpush1.msra.mxu0 %v9256_v24  ;;  %862 = vmatpush1.msra.mxu1 %v9257_v25  ;;  %v5993_v22 = vrot.slane %v64_v31, %v9264_v23 }
 0x10c   :  { %824 = vmatprep.mubr.f32.mxu0 %v9237_v7  ;;  %895 = vmatprep.mubr.f32.mxu1 %v9237_v7 }
 0x10d   :  { %902 = vmatprep.subr.mxu0 %v9258_v26  ;;  %973 = vmatprep.subr.mxu1 %v9259_v27  ;;  %9265 = vst [vmem:[#allocation12_spill] sm:$0xff] %v5993_v22 }
 0x10e   :  { %88 = vperm.xlu1 %4593, %v70_v28   ;;  %v9262_v28 = vld [vmem:[#allocation34_spill] sm:$0xff] }
 0x10f   :  { %v5989_v27 = vrot.slane %v64_v31, %v9262_v28  ;;  %v5998_v28 = vrot.slane %v64_v31, %v5688_v55 }
 0x111   :  { %9263 = vst [vmem:[#allocation11_spill] sm:$0xff] %v5989_v27  ;;  %9266 = vst [vmem:[#allocation13_spill] sm:$0xff] %v5998_v28 }
 0x112   :  { %93 = vperm.xlu1 %4593, %v71_v29  }
 0x116   :  { %103 = vperm.xlu1 %4593, %v73_v30  }
 0x11a   :  { %113 = vperm.xlu1 %4593, %v75_v32  }
 0x18a   :  { %v471_v29 = vpop.f32.mrf.mxu0  ;;  %v542_v26 = vpop.f32.mrf.mxu1 }
 0x18b   :  { %v710_v25 = vadd.f32 %v5986_v3, %v471_v29  ;;  %v712_v33 = vadd.f32 %v5998_v28, %v542_v26 }
 0x18c   :  { %v473_v24 = vpop.f32.mrf.mxu0  ;;  %v544_v20 = vpop.f32.mrf.mxu1 }
 0x18d   :  { %v714_v30 = vmul.f32 0.5, %v710_v25  ;;  %v711_v21 = vadd.f32 %v5989_v27, %v473_v24  ;;  %v713_v32 = vadd.f32 %v5993_v22, %v544_v20  ;;  %v716_v29 = vmul.f32 0.5, %v712_v33  ;;  %v9268_v20 = vld [vmem:[#allocation36_spill] sm:$0xff]  ;;  %v9270_v33 = vld [vmem:[#allocation39_spill] sm:$0xff]  ;;  %v9272_v22 = vld [vmem:[#allocation38_spill] sm:$0xff] }
 0x18f   :  { %4604 = vtanh.f32 %v714_v30  ;;  %v715_v19 = vmul.f32 0.5, %v711_v21  ;;  %v84_v30 = vpop.permute.xlu0 %83 }
 0x190   :  { %v141_v31 = vmul.f32 %v9268_v20, %v84_v30  ;;  %v144_v15 = vmul.f32 %v9272_v22, %v84_v30 }
 0x191   :  { %4606 = vtanh.f32 %v715_v19 }
 0x192   :  { %4608 = vtanh.f32 %v713_v32  ;;  %v9269_v32 = vld [vmem:[#allocation37_spill] sm:$0xff]  ;;  %v194_v55 = vadd.f32 %v9270_v33, %v141_v31 }
 0x193   :  { %4610 = vtanh.f32 %v716_v29  ;;  %v142_v26 = vmul.f32 %v9269_v32, %v84_v30  ;;  %v9273_v32 = vld [vmem:[#allocation42_spill] sm:$0xff] }
 0x194   :  { %v143_v14 = vmul.f32 %v9273_v32, %v84_v30 }
 0x19c   :  { %v4605_v3 = vpop.eup %4604 }
 0x19d   :  { %v720_v18 = vadd.f32 1.0, %v4605_v3 }
 0x19e   :  { %v4607_v23 = vpop.eup %4606 }
 0x19f   :  { %v723_v17 = vmul.f32 0.5, %v720_v18  ;;  %v721_v25 = vadd.f32 1.0, %v4607_v23  ;;  %v4609_v27 = vpop.eup %4608  ;;  %v9271_v23 = vld [vmem:[#allocation40_spill] sm:$0xff] }
 0x1a0   :  { %v4611_v18 = vpop.eup %4610 }
 0x1a1   :  { %v724_v24 = vmul.f32 0.5, %v721_v25  ;;  %v728_v19 = vmul.f32 %v4609_v27, %v723_v17  ;;  %v195_v25 = vadd.f32 %v9271_v23, %v142_v26 }
 0x1a3   :  { %v727_v21 = vmul.f32 0.0, %v724_v24 }
 0x1a5   :  { %v6001_v16 = vadd.f32 %v728_v19, %v727_v21  ;;  %v722_v21 = vadd.f32 1.0, %v4611_v18 }
 0x1a7   :  { %9267 = vst [vmem:[#allocation14_spill] sm:$0xff] %v6001_v16  ;;  %4612 = vtanh.f32 %v6001_v16  ;;  %v197_v16 = vadd.f32 %v5692_v53, %v144_v15  ;;  %v725_v33 = vmul.f32 0.5, %v722_v21 }
 0x1ab   :  { %v613_v3 = vpop.f32.mrf.mxu0  ;;  %v684_v28 = vpop.f32.mrf.mxu1 }
 0x1ac   :  { %v737_v29 = vadd.f32 %v613_v3, %v194_v55  ;;  %v6014_v55 = vld [vmem:[%s8504_s7] ss:$0 sm:$0xff]  ;;  %v196_v3 = vadd.f32 %v5702_v0, %v143_v14 }
 0x1ad   :  { %v615_v24 = vpop.f32.mrf.mxu0  ;;  %v686_v19 = vpop.f32.mrf.mxu1 }
 0x1ae   :  { %v741_v17 = vmul.f32 0.5, %v737_v29  ;;  %v738_v27 = vadd.f32 %v615_v24, %v195_v25  ;;  %v740_v31 = vadd.f32 %v686_v19, %v197_v16  ;;  %v739_v29 = vadd.f32 %v684_v28, %v196_v3 }
 0x1b0   :  { %4614 = vtanh.f32 %v741_v17  ;;  %v742_v20 = vmul.f32 0.5, %v738_v27  ;;  %v743_v15 = vmul.f32 0.5, %v739_v29  ;;  %v9275_v29 = vld [vmem:[#allocation44_spill] sm:$0xff] }
 0x1b2   :  { %4616 = vtanh.f32 %v742_v20 }
 0x1b3   :  { %4618 = vtanh.f32 %v740_v31 }
 0x1b4   :  { %v4613_v13 = vpop.eup %4612  ;;  %4620 = vtanh.f32 %v743_v15  ;;  %v9276_v15 = vld [vmem:[#allocation45_spill] sm:$0xff] }
 0x1b5   :  { %v731_v26 = vmul.f32 %v4613_v13, %v725_v33 }
 0x1b7   :  { %v4444_v18 = vmul.f32 %v6014_v55, %v731_v26 }
 0x1b9   :  { %4455 = vadd.xlane.f32.xlu0 %v4444_v18 }
 0x1bd   :  { %v4615_v25 = vpop.eup %4614 }
 0x1be   :  { %v747_v30 = vadd.f32 1.0, %v4615_v25  ;;  %v9278_v25 = vld [vmem:[#allocation47_spill] sm:$0xff] }
 0x1bf   :  { %v4617_v20 = vpop.eup %4616 }
 0x1c0   :  { %v750_v16 = vmul.f32 0.5, %v747_v30  ;;  %v748_v24 = vadd.f32 1.0, %v4617_v20  ;;  %v4619_v27 = vpop.eup %4618  ;;  %v9279_v30 = vld [vmem:[#allocation48_spill] sm:$0xff]  ;;  %v9280_v20 = vld [vmem:[#allocation49_spill] sm:$0xff] }
 0x1c1   :  { %v4621_v14 = vpop.eup %4620 }
 0x1c2   :  { %v751_v17 = vmul.f32 0.5, %v748_v24  ;;  %v755_v19 = vmul.f32 %v4619_v27, %v750_v16  ;;  %v749_v33 = vadd.f32 1.0, %v4621_v14  ;;  %v9281_v16 = vld [vmem:[#allocation50_spill] sm:$0xff]  ;;  %v9282_v24 = vld [vmem:[#allocation51_spill] sm:$0xff]  ;;  %v9284_v27 = vld [vmem:[#allocation53_spill] sm:$0xff] }
 0x1c3   :  { %v9287_v14 = vld [vmem:[#allocation56_spill] sm:$0xff] }
 0x1c4   :  { %v754_v21 = vmul.f32 %v751_v17, %v5705_v4  ;;  %v752_v28 = vmul.f32 0.5, %v749_v33  ;;  %v9274_v4 = vld [vmem:[#allocation43_spill] sm:$0xff]  ;;  %v9283_v17 = vld [vmem:[#allocation52_spill] sm:$0xff]  ;;  %v9288_v33 = vld [vmem:[#allocation57_spill] sm:$0xff] }
 0x1c6   :  { %v6019_v13 = vadd.f32 %v755_v19, %v754_v21  ;;  %v9285_v21 = vld [vmem:[#allocation54_spill] sm:$0xff]  ;;  %v9286_v19 = vld [vmem:[#allocation55_spill] sm:$0xff] }
 0x1c8   :  { %4622 = vtanh.f32 %v6019_v13 }
 0x1d5   :  { %v4623_v31 = vpop.eup %4622 }
 0x1d6   :  { %v758_v3 = vmul.f32 %v4623_v31, %v752_v28  ;;  %v9289_v28 = vld [vmem:[#allocation58_spill] sm:$0xff]  ;;  %v9290_v31 = vld [vmem:[#allocation59_spill] sm:$0xff] }
 0x1d8   :  { %v6022_v18 = vadd.f32 %v758_v3, %v731_v26  ;;  %v9277_v26 = vld [vmem:[#allocation46_spill] sm:$0xff]  ;;  %v9291_v3 = vld [vmem:[#allocation60_spill] sm:$0xff] }
 0x1da   :  { %825 = vmatmul.mubr.f32.vlgmr.msra.gmra.mxu0 %v6022_v18  ;;  %896 = vmatmul.mubr.f32.vlgmr.msra.gmra.mxu1 %v6022_v18 }
 0x1db   :  { %903 = vmatpush1.msra.mxu0 %v5710_v61  ;;  %974 = vmatpush1.msra.mxu1 %v5712_v62 }
 0x1dc   :  { %904 = vmatprep.subr.mxu0 %v5714_v57  ;;  %975 = vmatprep.subr.mxu1 %v5716_v56 }
 0x1dd   :  { %905 = vmatpush1.msra.mxu0 %v9274_v4  ;;  %976 = vmatpush1.msra.mxu1 %v9275_v29 }
 0x1de   :  { %906 = vmatprep.subr.mxu0 %v9276_v15  ;;  %977 = vmatprep.subr.mxu1 %v9277_v26 }
 0x1df   :  { %907 = vmatpush1.msra.mxu0 %v9278_v25  ;;  %978 = vmatpush1.msra.mxu1 %v9279_v30 }
 0x1e0   :  { %908 = vmatprep.subr.mxu0 %v9280_v20  ;;  %979 = vmatprep.subr.mxu1 %v9281_v16  ;;  %v9292_v16 = vld [vmem:[#allocation61_spill] sm:$0xff] }
 0x1e1   :  { %909 = vmatpush1.msra.mxu0 %v9282_v24  ;;  %980 = vmatpush1.msra.mxu1 %v9283_v17  ;;  %v9293_v24 = vld [vmem:[#allocation62_spill] sm:$0xff]  ;;  %v9294_v17 = vld [vmem:[#allocation63_spill] sm:$0xff] }
 0x1e2   :  { %910 = vmatprep.subr.mxu0 %v9284_v27  ;;  %981 = vmatprep.subr.mxu1 %v9285_v21  ;;  %v9295_v27 = vld [vmem:[#allocation64_spill] sm:$0xff]  ;;  %v9296_v21 = vld [vmem:[#allocation65_spill] sm:$0xff] }
 0x1e3   :  { %911 = vmatpush1.msra.mxu0 %v9286_v19  ;;  %982 = vmatpush1.msra.mxu1 %v9287_v14  ;;  %v9297_v19 = vld [vmem:[#allocation66_spill] sm:$0xff]  ;;  %v9298_v14 = vld [vmem:[#allocation67_spill] sm:$0xff] }
 0x1e4   :  { %912 = vmatprep.subr.mxu0 %v9288_v33  ;;  %983 = vmatprep.subr.mxu1 %v9289_v28  ;;  %v9299_v33 = vld [vmem:[#allocation68_spill] sm:$0xff]  ;;  %v9300_v28 = vld [vmem:[#allocation69_spill] sm:$0xff] }
 0x1e5   :  { %913 = vmatpush1.msra.mxu0 %v9290_v31  ;;  %984 = vmatpush1.msra.mxu1 %v9291_v3  ;;  %v9301_v31 = vld [vmem:[#allocation70_spill] sm:$0xff]  ;;  %v9302_v3 = vld [vmem:[#allocation71_spill] sm:$0xff] }
 0x1e6   :  { %914 = vmatprep.subr.mxu0 %v9292_v16  ;;  %985 = vmatprep.subr.mxu1 %v9293_v24  ;;  %v9303_v16 = vld [vmem:[#allocation72_spill] sm:$0xff]  ;;  %v9304_v24 = vld [vmem:[#allocation73_spill] sm:$0xff] }
 0x1e7   :  { %915 = vmatpush1.msra.mxu0 %v9294_v17  ;;  %986 = vmatpush1.msra.mxu1 %v9295_v27  ;;  %v9305_v17 = vld [vmem:[#allocation74_spill] sm:$0xff]  ;;  %v9306_v27 = vld [vmem:[#allocation75_spill] sm:$0xff] }
 0x1e8   :  { %916 = vmatprep.subr.mxu0 %v9296_v21  ;;  %987 = vmatprep.subr.mxu1 %v9297_v19  ;;  %v9307_v21 = vld [vmem:[#allocation76_spill] sm:$0xff]  ;;  %v9308_v19 = vld [vmem:[#allocation77_spill] sm:$0xff] }
 0x1e9   :  { %917 = vmatpush1.msra.mxu0 %v9298_v14  ;;  %988 = vmatpush1.msra.mxu1 %v9299_v33  ;;  %v9309_v14 = vld [vmem:[#allocation78_spill] sm:$0xff]  ;;  %v9310_v33 = vld [vmem:[#allocation79_spill] sm:$0xff] }
 0x1ea   :  { %918 = vmatprep.subr.mxu0 %v9300_v28  ;;  %989 = vmatprep.subr.mxu1 %v9301_v31  ;;  %v9311_v28 = vld [vmem:[#allocation80_spill] sm:$0xff]  ;;  %v9312_v31 = vld [vmem:[#allocation81_spill] sm:$0xff] }
 0x1eb   :  { %919 = vmatpush1.msra.mxu0 %v9302_v3  ;;  %990 = vmatpush1.msra.mxu1 %v9303_v16  ;;  %v9313_v3 = vld [vmem:[#allocation82_spill] sm:$0xff]  ;;  %v9314_v16 = vld [vmem:[#allocation83_spill] sm:$0xff] }
 0x1ec   :  { %920 = vmatprep.subr.mxu0 %v9304_v24  ;;  %991 = vmatprep.subr.mxu1 %v9305_v17  ;;  %v9315_v24 = vld [vmem:[#allocation84_spill] sm:$0xff]  ;;  %v9316_v17 = vld [vmem:[#allocation85_spill] sm:$0xff] }
 0x1ed   :  { %921 = vmatpush1.msra.mxu0 %v9306_v27  ;;  %992 = vmatpush1.msra.mxu1 %v9307_v21  ;;  %v9317_v27 = vld [vmem:[#allocation86_spill] sm:$0xff]  ;;  %v9318_v21 = vld [vmem:[#allocation87_spill] sm:$0xff] }
 0x1ee   :  { %922 = vmatprep.subr.mxu0 %v9308_v19  ;;  %993 = vmatprep.subr.mxu1 %v9309_v14  ;;  %v9319_v19 = vld [vmem:[#allocation88_spill] sm:$0xff] }
 0x1ef   :  { %923 = vmatpush1.msra.mxu0 %v9310_v33  ;;  %994 = vmatpush1.msra.mxu1 %v9311_v28  ;;  %v9320_v33 = vld [vmem:[#allocation89_spill] sm:$0xff] }
 0x1f0   :  { %924 = vmatprep.subr.mxu0 %v9312_v31  ;;  %995 = vmatprep.subr.mxu1 %v9313_v3  ;;  %v9321_v31 = vld [vmem:[#allocation90_spill] sm:$0xff] }
 0x1f1   :  { %925 = vmatpush1.msra.mxu0 %v9314_v16  ;;  %996 = vmatpush1.msra.mxu1 %v9315_v24 }
 0x1f2   :  { %926 = vmatprep.subr.mxu0 %v9316_v17  ;;  %997 = vmatprep.subr.mxu1 %v9317_v27 }
 0x1f3   :  { %927 = vmatpush1.msra.mxu0 %v9318_v21  ;;  %998 = vmatpush1.msra.mxu1 %v9319_v19 }
 0x1f4   :  { %928 = vmatprep.subr.mxu0 %v5858_v50  ;;  %999 = vmatprep.subr.mxu1 %v9320_v33 }
 0x1f5   :  { %929 = vmatpush1.msra.mxu0 %v5864_v1  ;;  %1000 = vmatpush1.msra.mxu1 %v9321_v31 }
 0x1f6   :  { %930 = vmatprep.subr.mxu0 %v5870_v54  ;;  %1001 = vmatprep.subr.mxu1 %v5872_v51  ;;  %v6092_v51 = vld [vmem:[#allocation4 + $0x3c8] sm:$0xff] }
 0x1f7   :  { %931 = vmatpush1.msra.mxu0 %v5876_v58  ;;  %1002 = vmatpush1.msra.mxu1 %v5878_v60  ;;  %9322 = vst [vmem:[#allocation15_spill] sm:$0xff] %v6092_v51  ;;  %v6095_v60 = vld [vmem:[#allocation4 + $0x3d8] sm:$0xff] }
 0x1f8   :  { %932 = vmatprep.subr.mxu0 %v5882_v2  ;;  %1003 = vmatprep.subr.mxu1 %v5884_v59  ;;  %9323 = vst [vmem:[#allocation16_spill] sm:$0xff] %v6095_v60  ;;  %v6098_v59 = vld [vmem:[#allocation4 + $0x3c0] sm:$0xff] }
 0x1f9   :  { %933 = vmatpush1.msra.mxu0 %v5888_v63  ;;  %966 = vmatprep.mubr.f32.mxu0 %v9237_v7  ;;  %9324 = vst [vmem:[#allocation42_spill] sm:$0xff] %v6098_v59  ;;  %v6101_v63 = vld [vmem:[#allocation4 + $0x3d0] sm:$0xff] }
 0x1fa   :  { %1004 = vmatpush1.msra.mxu1 %v5892_v52  ;;  %1037 = vmatprep.mubr.f32.mxu1 %v9237_v7  ;;  %9325 = vst [vmem:[#allocation43_spill] sm:$0xff] %v6101_v63  ;;  %v6104_v52 = vld [vmem:[#allocation4 + $0x388] sm:$0xff] }
 0x1fb   :  { %967 = vmatmul.mubr.f32.vlgmr.msra.gmra.mxu0 %v6022_v18  ;;  %1038 = vmatmul.mubr.f32.vlgmr.msra.gmra.mxu1 %v6022_v18  ;;  %9326 = vst [vmem:[#allocation44_spill] sm:$0xff] %v6104_v52  ;;  %v6107_v18 = vld [vmem:[#allocation4 + $0x398] sm:$0xff] }
 0x1fc   :  { %1094 = vmatprep.subr.mxu0 %v6092_v51  ;;  %1165 = vmatprep.subr.mxu1 %v6095_v60  ;;  %9327 = vst [vmem:[#allocation45_spill] sm:$0xff] %v6107_v18  ;;  %v6110_v51 = vld [vmem:[#allocation4 + $0x380] sm:$0xff]  ;;  %v6113_v60 = vld [vmem:[#allocation4 + $0x390] sm:$0xff] }
 0x1fd   :  { %1095 = vmatpush1.msra.mxu0 %v6098_v59  ;;  %1166 = vmatpush1.msra.mxu1 %v6101_v63  ;;  %9328 = vst [vmem:[#allocation46_spill] sm:$0xff] %v6110_v51  ;;  %9329 = vst [vmem:[#allocation47_spill] sm:$0xff] %v6113_v60  ;;  %v6116_v59 = vld [vmem:[#allocation4 + $0x348] sm:$0xff]  ;;  %v6119_v63 = vld [vmem:[#allocation4 + $0x358] sm:$0xff] }
 0x1fe   :  { %1096 = vmatprep.subr.mxu0 %v6104_v52  ;;  %1167 = vmatprep.subr.mxu1 %v6107_v18  ;;  %9330 = vst [vmem:[#allocation48_spill] sm:$0xff] %v6116_v59  ;;  %9331 = vst [vmem:[#allocation49_spill] sm:$0xff] %v6119_v63  ;;  %v6122_v52 = vld [vmem:[#allocation4 + $0x340] sm:$0xff]  ;;  %v6125_v18 = vld [vmem:[#allocation4 + $0x350] sm:$0xff] }
 0x1ff   :  { %1097 = vmatpush1.msra.mxu0 %v6110_v51  ;;  %1168 = vmatpush1.msra.mxu1 %v6113_v60  ;;  %9332 = vst [vmem:[#allocation78_spill] sm:$0xff] %v6122_v52  ;;  %9333 = vst [vmem:[#allocation80_spill] sm:$0xff] %v6125_v18  ;;  %v6128_v51 = vld [vmem:[#allocation4 + $0x308] sm:$0xff]  ;;  %v6131_v60 = vld [vmem:[#allocation4 + $0x318] sm:$0xff] }
 0x200   :  { %1098 = vmatprep.subr.mxu0 %v6116_v59  ;;  %1169 = vmatprep.subr.mxu1 %v6119_v63  ;;  %9334 = vst [vmem:[#allocation82_spill] sm:$0xff] %v6128_v51  ;;  %9335 = vst [vmem:[#allocation83_spill] sm:$0xff] %v6131_v60  ;;  %v6134_v59 = vld [vmem:[#allocation4 + $0x300] sm:$0xff]  ;;  %v6137_v63 = vld [vmem:[#allocation4 + $0x310] sm:$0xff] }
 0x201   :  { %1099 = vmatpush1.msra.mxu0 %v6122_v52  ;;  %1170 = vmatpush1.msra.mxu1 %v6125_v18  ;;  %9336 = vst [vmem:[#allocation84_spill] sm:$0xff] %v6134_v59  ;;  %9337 = vst [vmem:[#allocation85_spill] sm:$0xff] %v6137_v63  ;;  %v6140_v52 = vld [vmem:[#allocation4 + $0x2c8] sm:$0xff]  ;;  %v6143_v18 = vld [vmem:[#allocation4 + $0x2d8] sm:$0xff] }
 0x202   :  { %1100 = vmatprep.subr.mxu0 %v6128_v51  ;;  %1171 = vmatprep.subr.mxu1 %v6131_v60  ;;  %9338 = vst [vmem:[#allocation86_spill] sm:$0xff] %v6140_v52  ;;  %9339 = vst [vmem:[#allocation87_spill] sm:$0xff] %v6143_v18  ;;  %v6146_v51 = vld [vmem:[#allocation4 + $0x2c0] sm:$0xff]  ;;  %v6149_v60 = vld [vmem:[#allocation4 + $0x2d0] sm:$0xff] }
 0x203   :  { %1101 = vmatpush1.msra.mxu0 %v6134_v59  ;;  %1172 = vmatpush1.msra.mxu1 %v6137_v63  ;;  %9340 = vst [vmem:[#allocation88_spill] sm:$0xff] %v6146_v51  ;;  %9341 = vst [vmem:[#allocation89_spill] sm:$0xff] %v6149_v60  ;;  %v6152_v59 = vld [vmem:[#allocation4 + $0x288] sm:$0xff]  ;;  %v6155_v63 = vld [vmem:[#allocation4 + $0x298] sm:$0xff] }
 0x204   :  { %1102 = vmatprep.subr.mxu0 %v6140_v52  ;;  %1173 = vmatprep.subr.mxu1 %v6143_v18  ;;  %9342 = vst [vmem:[#allocation90_spill] sm:$0xff] %v6152_v59  ;;  %9343 = vst [vmem:[#allocation96_spill] sm:$0xff] %v6155_v63  ;;  %v6158_v52 = vld [vmem:[#allocation4 + $0x280] sm:$0xff]  ;;  %v6161_v18 = vld [vmem:[#allocation4 + $0x290] sm:$0xff] }
 0x205   :  { %1103 = vmatpush1.msra.mxu0 %v6146_v51  ;;  %1174 = vmatpush1.msra.mxu1 %v6149_v60  ;;  %v6164_v51 = vld [vmem:[#allocation4 + $0x248] sm:$0xff]  ;;  %v6167_v60 = vld [vmem:[#allocation4 + $0x258] sm:$0xff] }
 0x206   :  { %1104 = vmatprep.subr.mxu0 %v6152_v59  ;;  %1175 = vmatprep.subr.mxu1 %v6155_v63  ;;  %v6170_v59 = vld [vmem:[#allocation4 + $0x240] sm:$0xff]  ;;  %v6173_v63 = vld [vmem:[#allocation4 + $0x250] sm:$0xff] }
 0x207   :  { %1105 = vmatpush1.msra.mxu0 %v6158_v52  ;;  %1176 = vmatpush1.msra.mxu1 %v6161_v18 }
 0x208   :  { %1106 = vmatprep.subr.mxu0 %v6164_v51  ;;  %1177 = vmatprep.subr.mxu1 %v6167_v60 }
 0x209   :  { %1107 = vmatpush1.msra.mxu0 %v6170_v59  ;;  %1178 = vmatpush1.msra.mxu1 %v6173_v63 }
 0x20a   :  { %1108 = vmatprep.subr.mxu0 %v5535_v34  ;;  %1179 = vmatprep.subr.mxu1 %v5537_v35  ;;  %v9344_v34 = vld [vmem:[#allocation17_spill] sm:$0xff]  ;;  %v9345_v35 = vld [vmem:[#allocation18_spill] sm:$0xff] }
 0x20b   :  { %1109 = vmatpush1.msra.mxu0 %v5541_v36  ;;  %1180 = vmatpush1.msra.mxu1 %v5543_v37  ;;  %v9346_v36 = vld [vmem:[#allocation19_spill] sm:$0xff]  ;;  %v9347_v37 = vld [vmem:[#allocation20_spill] sm:$0xff] }
 0x20c   :  { %1110 = vmatprep.subr.mxu0 %v5547_v38  ;;  %1181 = vmatprep.subr.mxu1 %v5549_v39  ;;  %v9348_v38 = vld [vmem:[#allocation21_spill] sm:$0xff]  ;;  %v9349_v39 = vld [vmem:[#allocation22_spill] sm:$0xff] }
 0x20d   :  { %1111 = vmatpush1.msra.mxu0 %v5552_v40  ;;  %1182 = vmatpush1.msra.mxu1 %v5554_v41  ;;  %v9350_v40 = vld [vmem:[#allocation23_spill] sm:$0xff]  ;;  %v9351_v41 = vld [vmem:[#allocation24_spill] sm:$0xff] }
 0x20e   :  { %1112 = vmatprep.subr.mxu0 %v5556_v42  ;;  %1183 = vmatprep.subr.mxu1 %v5560_v43  ;;  %v9352_v42 = vld [vmem:[#allocation25_spill] sm:$0xff]  ;;  %v9353_v43 = vld [vmem:[#allocation26_spill] sm:$0xff] }
 0x20f   :  { %1113 = vmatpush1.msra.mxu0 %v5562_v44  ;;  %1184 = vmatpush1.msra.mxu1 %v5564_v45  ;;  %v9354_v44 = vld [vmem:[#allocation27_spill] sm:$0xff]  ;;  %v9355_v45 = vld [vmem:[#allocation28_spill] sm:$0xff] }
 0x210   :  { %1114 = vmatprep.subr.mxu0 %v5568_v46  ;;  %1185 = vmatprep.subr.mxu1 %v5570_v47  ;;  %v9356_v46 = vld [vmem:[#allocation29_spill] sm:$0xff]  ;;  %v9357_v47 = vld [vmem:[#allocation30_spill] sm:$0xff] }
 0x211   :  { %1115 = vmatpush1.msra.mxu0 %v5574_v48  ;;  %1186 = vmatpush1.msra.mxu1 %v5576_v49  ;;  %v9358_v48 = vld [vmem:[#allocation31_spill] sm:$0xff] }
 0x212   :  { %1116 = vmatprep.subr.mxu0 %v9238_v5  ;;  %1187 = vmatprep.subr.mxu1 %v9239_v6  ;;  %v9359_v6 = vld [vmem:[#allocation10_spill] sm:$0xff] }
 0x213   :  { %1117 = vmatpush1.msra.mxu0 %v9240_v8  ;;  %1188 = vmatpush1.msra.mxu1 %v9241_v9 }
 0x214   :  { %1118 = vmatprep.subr.mxu0 %v9242_v10  ;;  %1189 = vmatprep.subr.mxu1 %v9243_v11  ;;  %v9360_v11 = vld [vmem:[#allocation11_spill] sm:$0xff] }
 0x215   :  { %1119 = vmatpush1.msra.mxu0 %v9244_v12  ;;  %1190 = vmatpush1.msra.mxu1 %v9344_v34 }
 0x216   :  { %1120 = vmatprep.subr.mxu0 %v9345_v35  ;;  %1191 = vmatprep.subr.mxu1 %v9346_v36  ;;  %v9361_v36 = vld [vmem:[#allocation12_spill] sm:$0xff] }
 0x217   :  { %1121 = vmatpush1.msra.mxu0 %v9347_v37  ;;  %1192 = vmatpush1.msra.mxu1 %v9348_v38  ;;  %v9362_v38 = vld [vmem:[#allocation13_spill] sm:$0xff] }
 0x218   :  { %1122 = vmatprep.subr.mxu0 %v9349_v39  ;;  %1193 = vmatprep.subr.mxu1 %v9350_v40 }
 0x219   :  { %1123 = vmatpush1.msra.mxu0 %v9351_v41  ;;  %1194 = vmatpush1.msra.mxu1 %v9352_v42 }
 0x21a   :  { %1124 = vmatprep.subr.mxu0 %v9353_v43  ;;  %1195 = vmatprep.subr.mxu1 %v9354_v44 }
 0x21b   :  { %1125 = vmatpush1.msra.mxu0 %v9355_v45  ;;  %1196 = vmatpush1.msra.mxu1 %v9356_v46 }
 0x21c   :  { %1158 = vmatprep.mubr.f32.mxu0 %v9237_v7  ;;  %1229 = vmatprep.mubr.f32.mxu1 %v9237_v7 }
 0x21d   :  { %1236 = vmatprep.subr.mxu0 %v9357_v47  ;;  %1307 = vmatprep.subr.mxu1 %v9358_v48  ;;  %v9363_v48 = vld [vmem:[#allocation14_spill] sm:$0xff] }
 0x29a   :  { %v826_v49 = vpop.f32.mrf.mxu0  ;;  %v897_v5 = vpop.f32.mrf.mxu1 }
 0x29b   :  { %v1044_v8 = vadd.f32 %v826_v49, %v9359_v6  ;;  %v1046_v39 = vadd.f32 %v897_v5, %v9362_v38  ;;  %v9367_v5 = vld [vmem:[#allocation39_spill] sm:$0xff] }
 0x29c   :  { %v828_v9 = vpop.f32.mrf.mxu0  ;;  %v899_v34 = vpop.f32.mrf.mxu1 }
 0x29d   :  { %v1048_v10 = vmul.f32 0.5, %v1044_v8  ;;  %v1045_v12 = vadd.f32 %v828_v9, %v9360_v11  ;;  %v1047_v37 = vadd.f32 %v899_v34, %v9361_v36  ;;  %v1050_v40 = vmul.f32 0.5, %v1046_v39  ;;  %v89_v9 = vpop.permute.xlu1 %88  ;;  %v9366_v34 = vld [vmem:[#allocation37_spill] sm:$0xff] }
 0x29f   :  { %4624 = vtanh.f32 %v1048_v10  ;;  %v1049_v35 = vmul.f32 0.5, %v1045_v12  ;;  %v9364_v10 = vld [vmem:[#allocation36_spill] sm:$0xff] }
 0x2a0   :  { %v145_v12 = vmul.f32 %v9364_v10, %v89_v9 }
 0x2a1   :  { %4626 = vtanh.f32 %v1049_v35 }
 0x2a2   :  { %4628 = vtanh.f32 %v1047_v37  ;;  %v146_v37 = vmul.f32 %v9366_v34, %v89_v9  ;;  %v198_v39 = vadd.f32 %v9367_v5, %v145_v12  ;;  %v147_v34 = vmul.f32 %v9273_v32, %v89_v9 }
 0x2a3   :  { %4630 = vtanh.f32 %v1050_v40  ;;  %v148_v40 = vmul.f32 %v9272_v22, %v89_v9 }
 0x2a4   :  { %v200_v22 = vadd.f32 %v5702_v0, %v147_v34 }
 0x2ac   :  { %v4625_v41 = vpop.eup %4624 }
 0x2ad   :  { %v1054_v42 = vadd.f32 1.0, %v4625_v41  ;;  %v199_v41 = vadd.f32 %v9271_v23, %v146_v37 }
 0x2ae   :  { %v4627_v43 = vpop.eup %4626 }
 0x2af   :  { %v1057_v44 = vmul.f32 0.5, %v1054_v42  ;;  %v1055_v45 = vadd.f32 1.0, %v4627_v43  ;;  %v4629_v47 = vpop.eup %4628 }
 0x2b1   :  { %v1058_v46 = vmul.f32 0.5, %v1055_v45  ;;  %v1062_v8 = vmul.f32 %v4629_v47, %v1057_v44  ;;  %v4631_v45 = vpop.eup %4630 }
 0x2b3   :  { %v1061_v49 = vmul.f32 %v1058_v46, %v9363_v48 }
 0x2b5   :  { %v6222_v35 = vadd.f32 %v1062_v8, %v1061_v49  ;;  %v201_v49 = vadd.f32 %v5692_v53, %v148_v40  ;;  %v1056_v8 = vadd.f32 1.0, %v4631_v45 }
 0x2b7   :  { %9365 = vst [vmem:[#allocation17_spill] sm:$0xff] %v6222_v35  ;;  %4632 = vtanh.f32 %v6222_v35  ;;  %v1059_v37 = vmul.f32 0.5, %v1056_v8 }
 0x2bb   :  { %v968_v42 = vpop.f32.mrf.mxu0  ;;  %v1039_v43 = vpop.f32.mrf.mxu1 }
 0x2bc   :  { %v1071_v46 = vadd.f32 %v968_v42, %v198_v39  ;;  %v1073_v42 = vadd.f32 %v1039_v43, %v200_v22 }
 0x2bd   :  { %v970_v44 = vpop.f32.mrf.mxu0  ;;  %v1041_v10 = vpop.f32.mrf.mxu1 }
 0x2be   :  { %v1075_v47 = vmul.f32 0.5, %v1071_v46  ;;  %v1072_v48 = vadd.f32 %v970_v44, %v199_v41  ;;  %v1074_v12 = vadd.f32 %v1041_v10, %v201_v49  ;;  %v1077_v41 = vmul.f32 0.5, %v1073_v42  ;;  %v9383_v42 = vld [vmem:[#allocation65_spill] sm:$0xff] }
 0x2c0   :  { %4634 = vtanh.f32 %v1075_v47  ;;  %v1076_v35 = vmul.f32 0.5, %v1072_v48 }
 0x2c2   :  { %4636 = vtanh.f32 %v1076_v35 }
 0x2c3   :  { %4638 = vtanh.f32 %v1074_v12 }
 0x2c4   :  { %v4633_v23 = vpop.eup %4632  ;;  %4640 = vtanh.f32 %v1077_v41  ;;  %v9384_v41 = vld [vmem:[#allocation66_spill] sm:$0xff] }
 0x2c5   :  { %v1065_v5 = vmul.f32 %v4633_v23, %v1059_v37  ;;  %v9381_v37 = vld [vmem:[#allocation63_spill] sm:$0xff] }
 0x2c7   :  { %v4445_v39 = vmul.f32 %v6014_v55, %v1065_v5 }
 0x2c9   :  { %4457 = vadd.xlane.f32.xlu1 %v4445_v39  ;;  %v9382_v39 = vld [vmem:[#allocation64_spill] sm:$0xff] }
 0x2cd   :  { %v4635_v40 = vpop.eup %4634 }
 0x2ce   :  { %v1081_v45 = vadd.f32 1.0, %v4635_v40  ;;  %v9385_v40 = vld [vmem:[#allocation67_spill] sm:$0xff] }
 0x2cf   :  { %v4637_v46 = vpop.eup %4636 }
 0x2d0   :  { %v1084_v44 = vmul.f32 0.5, %v1081_v45  ;;  %v1082_v9 = vadd.f32 1.0, %v4637_v46  ;;  %v4639_v35 = vpop.eup %4638  ;;  %v9386_v45 = vld [vmem:[#allocation68_spill] sm:$0xff]  ;;  %v9387_v46 = vld [vmem:[#allocation69_spill] sm:$0xff] }
 0x2d1   :  { %v4641_v23 = vpop.eup %4640 }
 0x2d2   :  { %v1085_v47 = vmul.f32 0.5, %v1082_v9  ;;  %v1089_v48 = vmul.f32 %v4639_v35, %v1084_v44  ;;  %v1083_v34 = vadd.f32 1.0, %v4641_v23  ;;  %v9388_v44 = vld [vmem:[#allocation70_spill] sm:$0xff]  ;;  %v9389_v9 = vld [vmem:[#allocation71_spill] sm:$0xff]  ;;  %v9391_v35 = vld [vmem:[#allocation73_spill] sm:$0xff] }
 0x2d3   :  { %v9394_v23 = vld [vmem:[#allocation76_spill] sm:$0xff] }
 0x2d4   :  { %v1088_v10 = vmul.f32 %v1085_v47, %v6019_v13  ;;  %v1086_v22 = vmul.f32 0.5, %v1083_v34  ;;  %v9372_v13 = vld [vmem:[#allocation54_spill] sm:$0xff]  ;;  %v9390_v47 = vld [vmem:[#allocation72_spill] sm:$0xff]  ;;  %v9395_v34 = vld [vmem:[#allocation77_spill] sm:$0xff] }
 0x2d6   :  { %v6234_v49 = vadd.f32 %v1089_v48, %v1088_v10  ;;  %v9392_v10 = vld [vmem:[#allocation74_spill] sm:$0xff]  ;;  %v9393_v48 = vld [vmem:[#allocation75_spill] sm:$0xff] }
 0x2d8   :  { %4642 = vtanh.f32 %v6234_v49 }
 0x2e5   :  { %v4643_v43 = vpop.eup %4642 }
 0x2e6   :  { %v1092_v8 = vmul.f32 %v4643_v43, %v1086_v22  ;;  %v9396_v22 = vld [vmem:[#allocation79_spill] sm:$0xff]  ;;  %v9397_v43 = vld [vmem:[#allocation81_spill] sm:$0xff] }
 0x2e8   :  { %v6237_v12 = vadd.f32 %v1092_v8, %v1065_v5  ;;  %v9380_v5 = vld [vmem:[#allocation62_spill] sm:$0xff]  ;;  %v9414_v8 = vld [vmem:[#allocation80_spill] sm:$0xff] }
 0x2ea   :  { %1159 = vmatmul.mubr.f32.vlgmr.msra.gmra.mxu0 %v6237_v12  ;;  %1230 = vmatmul.mubr.f32.vlgmr.msra.gmra.mxu1 %v6237_v12 }
 0x2eb   :  { %1237 = vmatpush1.msra.mxu0 %v5710_v61  ;;  %1308 = vmatpush1.msra.mxu1 %v5712_v62  ;;  %v9368_v61 = vld [vmem:[#allocation50_spill] sm:$0xff]  ;;  %v9369_v62 = vld [vmem:[#allocation51_spill] sm:$0xff] }
 0x2ec   :  { %1238 = vmatprep.subr.mxu0 %v5714_v57  ;;  %1309 = vmatprep.subr.mxu1 %v5716_v56  ;;  %v9370_v57 = vld [vmem:[#allocation52_spill] sm:$0xff]  ;;  %v9371_v56 = vld [vmem:[#allocation53_spill] sm:$0xff] }
 0x2ed   :  { %1239 = vmatpush1.msra.mxu0 %v9274_v4  ;;  %1310 = vmatpush1.msra.mxu1 %v9275_v29  ;;  %v9373_v4 = vld [vmem:[#allocation55_spill] sm:$0xff]  ;;  %v9374_v29 = vld [vmem:[#allocation56_spill] sm:$0xff] }
 0x2ee   :  { %1240 = vmatprep.subr.mxu0 %v9276_v15  ;;  %1311 = vmatprep.subr.mxu1 %v9277_v26  ;;  %v9375_v15 = vld [vmem:[#allocation57_spill] sm:$0xff]  ;;  %v9376_v26 = vld [vmem:[#allocation58_spill] sm:$0xff] }
 0x2ef   :  { %1241 = vmatpush1.msra.mxu0 %v9278_v25  ;;  %1312 = vmatpush1.msra.mxu1 %v9279_v30  ;;  %v9377_v25 = vld [vmem:[#allocation59_spill] sm:$0xff]  ;;  %v9378_v30 = vld [vmem:[#allocation60_spill] sm:$0xff] }
 0x2f0   :  { %1242 = vmatprep.subr.mxu0 %v9280_v20  ;;  %1313 = vmatprep.subr.mxu1 %v9368_v61  ;;  %v9379_v20 = vld [vmem:[#allocation61_spill] sm:$0xff]  ;;  %v9416_v61 = vld [vmem:[#allocation83_spill] sm:$0xff] }
 0x2f1   :  { %1243 = vmatpush1.msra.mxu0 %v9369_v62  ;;  %1314 = vmatpush1.msra.mxu1 %v9370_v57  ;;  %v9417_v62 = vld [vmem:[#allocation84_spill] sm:$0xff]  ;;  %v9418_v57 = vld [vmem:[#allocation85_spill] sm:$0xff] }
 0x2f2   :  { %1244 = vmatprep.subr.mxu0 %v9371_v56  ;;  %1315 = vmatprep.subr.mxu1 %v9372_v13  ;;  %v9419_v56 = vld [vmem:[#allocation86_spill] sm:$0xff]  ;;  %v9420_v13 = vld [vmem:[#allocation87_spill] sm:$0xff] }
 0x2f3   :  { %1245 = vmatpush1.msra.mxu0 %v9373_v4  ;;  %1316 = vmatpush1.msra.mxu1 %v9374_v29  ;;  %v9421_v4 = vld [vmem:[#allocation88_spill] sm:$0xff]  ;;  %v9422_v29 = vld [vmem:[#allocation89_spill] sm:$0xff] }
 0x2f4   :  { %1246 = vmatprep.subr.mxu0 %v9375_v15  ;;  %1317 = vmatprep.subr.mxu1 %v9376_v26  ;;  %v9423_v15 = vld [vmem:[#allocation90_spill] sm:$0xff]  ;;  %v9424_v26 = vld [vmem:[#allocation96_spill] sm:$0xff] }
 0x2f5   :  { %1247 = vmatpush1.msra.mxu0 %v9377_v25  ;;  %1318 = vmatpush1.msra.mxu1 %v9378_v30  ;;  %v6335_v25 = vld [vmem:[#allocation4 + $0x208] sm:$0xff]  ;;  %v6338_v30 = vld [vmem:[#allocation4 + $0x218] sm:$0xff] }
 0x2f6   :  { %1248 = vmatprep.subr.mxu0 %v9379_v20  ;;  %1319 = vmatprep.subr.mxu1 %v9380_v5  ;;  %v6341_v20 = vld [vmem:[#allocation4 + $0x200] sm:$0xff]  ;;  %v6344_v5 = vld [vmem:[#allocation4 + $0x210] sm:$0xff] }
 0x2f7   :  { %1249 = vmatpush1.msra.mxu0 %v9381_v37  ;;  %1320 = vmatpush1.msra.mxu1 %v9382_v39  ;;  %v6347_v37 = vld [vmem:[#allocation4 + $0x1c8] sm:$0xff]  ;;  %v6350_v39 = vld [vmem:[#allocation4 + $0x1d8] sm:$0xff] }
 0x2f8   :  { %1250 = vmatprep.subr.mxu0 %v9383_v42  ;;  %1321 = vmatprep.subr.mxu1 %v9384_v41  ;;  %v6353_v42 = vld [vmem:[#allocation4 + $0x1c0] sm:$0xff]  ;;  %v6356_v41 = vld [vmem:[#allocation4 + $0x1d0] sm:$0xff] }
 0x2f9   :  { %1251 = vmatpush1.msra.mxu0 %v9385_v40  ;;  %1322 = vmatpush1.msra.mxu1 %v9386_v45  ;;  %v6359_v40 = vld [vmem:[#allocation4 + $0x188] sm:$0xff]  ;;  %v6362_v45 = vld [vmem:[#allocation4 + $0x198] sm:$0xff] }
 0x2fa   :  { %1252 = vmatprep.subr.mxu0 %v9387_v46  ;;  %1323 = vmatprep.subr.mxu1 %v9388_v44  ;;  %9425 = vst [vmem:[#allocation18_spill] sm:$0xff] %v6359_v40  ;;  %9426 = vst [vmem:[#allocation19_spill] sm:$0xff] %v6362_v45  ;;  %v6365_v46 = vld [vmem:[#allocation4 + $0x180] sm:$0xff]  ;;  %v6368_v44 = vld [vmem:[#allocation4 + $0x190] sm:$0xff] }
 0x2fb   :  { %1253 = vmatpush1.msra.mxu0 %v9389_v9  ;;  %1324 = vmatpush1.msra.mxu1 %v9390_v47  ;;  %9427 = vst [vmem:[#allocation20_spill] sm:$0xff] %v6365_v46  ;;  %9428 = vst [vmem:[#allocation21_spill] sm:$0xff] %v6368_v44  ;;  %v6371_v9 = vld [vmem:[#allocation4 + $0x148] sm:$0xff]  ;;  %v6374_v47 = vld [vmem:[#allocation4 + $0x158] sm:$0xff] }
 0x2fc   :  { %1254 = vmatprep.subr.mxu0 %v9391_v35  ;;  %1325 = vmatprep.subr.mxu1 %v9392_v10  ;;  %9429 = vst [vmem:[#allocation22_spill] sm:$0xff] %v6371_v9  ;;  %9430 = vst [vmem:[#allocation23_spill] sm:$0xff] %v6374_v47  ;;  %v6377_v35 = vld [vmem:[#allocation4 + $0x140] sm:$0xff]  ;;  %v6380_v10 = vld [vmem:[#allocation4 + $0x150] sm:$0xff] }
 0x2fd   :  { %1255 = vmatpush1.msra.mxu0 %v9393_v48  ;;  %1326 = vmatpush1.msra.mxu1 %v9394_v23  ;;  %9431 = vst [vmem:[#allocation24_spill] sm:$0xff] %v6377_v35  ;;  %9432 = vst [vmem:[#allocation25_spill] sm:$0xff] %v6380_v10  ;;  %v6383_v48 = vld [vmem:[#allocation4 + $0x108] sm:$0xff]  ;;  %v6386_v23 = vld [vmem:[#allocation4 + $0x118] sm:$0xff] }
 0x2fe   :  { %1256 = vmatprep.subr.mxu0 %v9395_v34  ;;  %1327 = vmatprep.subr.mxu1 %v9309_v14  ;;  %v9409_v14 = vld [vmem:[#allocation46_spill] sm:$0xff]  ;;  %9433 = vst [vmem:[#allocation26_spill] sm:$0xff] %v6383_v48  ;;  %9434 = vst [vmem:[#allocation27_spill] sm:$0xff] %v6386_v23 }
 0x2ff   :  { %1257 = vmatpush1.msra.mxu0 %v9396_v22  ;;  %1328 = vmatpush1.msra.mxu1 %v9311_v28  ;;  %v9411_v28 = vld [vmem:[#allocation48_spill] sm:$0xff]  ;;  %v6389_v34 = vld [vmem:[#allocation4 + $0x100] sm:$0xff] }
 0x300   :  { %1258 = vmatprep.subr.mxu0 %v9397_v43  ;;  %1329 = vmatprep.subr.mxu1 %v9313_v3  ;;  %v9413_v3 = vld [vmem:[#allocation78_spill] sm:$0xff]  ;;  %9435 = vst [vmem:[#allocation28_spill] sm:$0xff] %v6389_v34  ;;  %v6392_v22 = vld [vmem:[#allocation4 + $0x110] sm:$0xff]  ;;  %v6395_v43 = vld [vmem:[#allocation4 + $0xc8] sm:$0xff] }
 0x301   :  { %1259 = vmatpush1.msra.mxu0 %v9314_v16  ;;  %1330 = vmatpush1.msra.mxu1 %v9315_v24  ;;  %v9398_v16 = vld [vmem:[#allocation91_spill] sm:$0xff]  ;;  %v9399_v24 = vld [vmem:[#allocation92_spill] sm:$0xff]  ;;  %9436 = vst [vmem:[#allocation29_spill] sm:$0xff] %v6392_v22  ;;  %9437 = vst [vmem:[#allocation30_spill] sm:$0xff] %v6395_v43 }
 0x302   :  { %1260 = vmatprep.subr.mxu0 %v9316_v17  ;;  %1331 = vmatprep.subr.mxu1 %v9317_v27  ;;  %v9400_v17 = vld [vmem:[#allocation93_spill] sm:$0xff]  ;;  %v9401_v27 = vld [vmem:[#allocation94_spill] sm:$0xff] }
 0x303   :  { %1261 = vmatpush1.msra.mxu0 %v9318_v21  ;;  %1332 = vmatpush1.msra.mxu1 %v9319_v19  ;;  %v9407_v21 = vld [vmem:[#allocation44_spill] sm:$0xff]  ;;  %v9408_v19 = vld [vmem:[#allocation45_spill] sm:$0xff] }
 0x304   :  { %1262 = vmatprep.subr.mxu0 %v5858_v50  ;;  %1333 = vmatprep.subr.mxu1 %v9320_v33  ;;  %v9402_v50 = vld [vmem:[#allocation95_spill] sm:$0xff] }
 0x305   :  { %1263 = vmatpush1.msra.mxu0 %v5864_v1  ;;  %1334 = vmatpush1.msra.mxu1 %v9321_v31  ;;  %v9403_v1 = vld [vmem:[#allocation15_spill] sm:$0xff]  ;;  %v9412_v31 = vld [vmem:[#allocation49_spill] sm:$0xff] }
 0x306   :  { %1264 = vmatprep.subr.mxu0 %v5870_v54  ;;  %1335 = vmatprep.subr.mxu1 %v9398_v16  ;;  %v9404_v54 = vld [vmem:[#allocation16_spill] sm:$0xff]  ;;  %v9410_v33 = vld [vmem:[#allocation47_spill] sm:$0xff]  ;;  %v6398_v16 = vld [vmem:[#allocation4 + $0xd8] sm:$0xff] }
 0x307   :  { %1265 = vmatpush1.msra.mxu0 %v5876_v58  ;;  %1336 = vmatpush1.msra.mxu1 %v9399_v24  ;;  %v9405_v58 = vld [vmem:[#allocation42_spill] sm:$0xff]  ;;  %9438 = vst [vmem:[#allocation31_spill] sm:$0xff] %v6398_v16 }
 0x308   :  { %1266 = vmatprep.subr.mxu0 %v5882_v2  ;;  %1337 = vmatprep.subr.mxu1 %v9400_v17  ;;  %v9406_v2 = vld [vmem:[#allocation43_spill] sm:$0xff]  ;;  %v6401_v24 = vld [vmem:[#allocation4 + $0xc0] sm:$0xff]  ;;  %v6404_v17 = vld [vmem:[#allocation4 + $0xd0] sm:$0xff] }
 0x309   :  { %1267 = vmatpush1.msra.mxu0 %v9401_v27  ;;  %1300 = vmatprep.mubr.f32.mxu0 %v9237_v7  ;;  %9439 = vst [vmem:[#allocation14_spill] sm:$0xff] %v6401_v24  ;;  %9440 = vst [vmem:[#allocation50_spill] sm:$0xff] %v6404_v17  ;;  %v6407_v27 = vld [vmem:[#allocation4 + $0x88] sm:$0xff] }
 0x30a   :  { %1338 = vmatpush1.msra.mxu1 %v9402_v50  ;;  %1371 = vmatprep.mubr.f32.mxu1 %v9237_v7  ;;  %9441 = vst [vmem:[#allocation51_spill] sm:$0xff] %v6407_v27  ;;  %v6410_v50 = vld [vmem:[#allocation4 + $0x98] sm:$0xff] }
 0x30b   :  { %1301 = vmatmul.mubr.f32.vlgmr.msra.gmra.mxu0 %v6237_v12  ;;  %1372 = vmatmul.mubr.f32.vlgmr.msra.gmra.mxu1 %v6237_v12  ;;  %v9415_v12 = vld [vmem:[#allocation82_spill] sm:$0xff]  ;;  %9442 = vst [vmem:[#allocation52_spill] sm:$0xff] %v6410_v50 }
 0x30c   :  { %1428 = vmatprep.subr.mxu0 %v9403_v1  ;;  %1499 = vmatprep.subr.mxu1 %v9404_v54 }
 0x30d   :  { %1429 = vmatpush1.msra.mxu0 %v9405_v58  ;;  %1500 = vmatpush1.msra.mxu1 %v9406_v2 }
 0x30e   :  { %1430 = vmatprep.subr.mxu0 %v9407_v21  ;;  %1501 = vmatprep.subr.mxu1 %v9408_v19 }
 0x30f   :  { %1431 = vmatpush1.msra.mxu0 %v9409_v14  ;;  %1502 = vmatpush1.msra.mxu1 %v9410_v33 }
 0x310   :  { %1432 = vmatprep.subr.mxu0 %v9411_v28  ;;  %1503 = vmatprep.subr.mxu1 %v9412_v31 }
 0x311   :  { %1433 = vmatpush1.msra.mxu0 %v9413_v3  ;;  %1504 = vmatpush1.msra.mxu1 %v9414_v8 }
 0x312   :  { %1434 = vmatprep.subr.mxu0 %v9415_v12  ;;  %1505 = vmatprep.subr.mxu1 %v9416_v61 }
 0x313   :  { %1435 = vmatpush1.msra.mxu0 %v9417_v62  ;;  %1506 = vmatpush1.msra.mxu1 %v9418_v57 }
 0x314   :  { %1436 = vmatprep.subr.mxu0 %v9419_v56  ;;  %1507 = vmatprep.subr.mxu1 %v9420_v13 }
 0x315   :  { %1437 = vmatpush1.msra.mxu0 %v9421_v4  ;;  %1508 = vmatpush1.msra.mxu1 %v9422_v29 }
 0x316   :  { %1438 = vmatprep.subr.mxu0 %v9423_v15  ;;  %1509 = vmatprep.subr.mxu1 %v9424_v26 }
 0x317   :  { %1439 = vmatpush1.msra.mxu0 %v6158_v52  ;;  %1510 = vmatpush1.msra.mxu1 %v6161_v18 }
 0x318   :  { %1440 = vmatprep.subr.mxu0 %v6164_v51  ;;  %1511 = vmatprep.subr.mxu1 %v6167_v60 }
 0x319   :  { %1441 = vmatpush1.msra.mxu0 %v6170_v59  ;;  %1512 = vmatpush1.msra.mxu1 %v6173_v63 }
 0x31a   :  { %1442 = vmatprep.subr.mxu0 %v6335_v25  ;;  %1513 = vmatprep.subr.mxu1 %v6338_v30 }
 0x31b   :  { %1443 = vmatpush1.msra.mxu0 %v6341_v20  ;;  %1514 = vmatpush1.msra.mxu1 %v6344_v5 }
 0x31c   :  { %1444 = vmatprep.subr.mxu0 %v6347_v37  ;;  %1515 = vmatprep.subr.mxu1 %v6350_v39 }
 0x31d   :  { %1445 = vmatpush1.msra.mxu0 %v6353_v42  ;;  %1516 = vmatpush1.msra.mxu1 %v6356_v41 }
 0x31e   :  { %1446 = vmatprep.subr.mxu0 %v6359_v40  ;;  %1517 = vmatprep.subr.mxu1 %v6362_v45  ;;  %v9461_v45 = vld [vmem:[#allocation38_spill] sm:$0xff] }
 0x31f   :  { %1447 = vmatpush1.msra.mxu0 %v6365_v46  ;;  %1518 = vmatpush1.msra.mxu1 %v6368_v44  ;;  %v9455_v46 = vld [vmem:[#allocation17_spill] sm:$0xff] }
 0x320   :  { %1448 = vmatprep.subr.mxu0 %v6371_v9  ;;  %1519 = vmatprep.subr.mxu1 %v6374_v47 }
 0x321   :  { %1449 = vmatpush1.msra.mxu0 %v6377_v35  ;;  %1520 = vmatpush1.msra.mxu1 %v6380_v10 }
 0x322   :  { %1450 = vmatprep.subr.mxu0 %v6383_v48  ;;  %1521 = vmatprep.subr.mxu1 %v6386_v23 }
 0x323   :  { %1451 = vmatpush1.msra.mxu0 %v6389_v34  ;;  %1522 = vmatpush1.msra.mxu1 %v6392_v22 }
 0x324   :  { %1452 = vmatprep.subr.mxu0 %v6395_v43  ;;  %1523 = vmatprep.subr.mxu1 %v6398_v16  ;;  %v6413_v43 = vld [vmem:[#allocation4 + $0x80] sm:$0xff]  ;;  %v6416_v16 = vld [vmem:[#allocation4 + $0x90] sm:$0xff] }
 0x325   :  { %1453 = vmatpush1.msra.mxu0 %v6401_v24  ;;  %1524 = vmatpush1.msra.mxu1 %v6404_v17  ;;  %9443 = vst [vmem:[#allocation53_spill] sm:$0xff] %v6413_v43  ;;  %9444 = vst [vmem:[#allocation54_spill] sm:$0xff] %v6416_v16  ;;  %v6419_v24 = vld [vmem:[#allocation4 + $0x48] sm:$0xff]  ;;  %v6422_v17 = vld [vmem:[#allocation4 + $0x58] sm:$0xff] }
 0x326   :  { %1454 = vmatprep.subr.mxu0 %v6407_v27  ;;  %1525 = vmatprep.subr.mxu1 %v6410_v50  ;;  %9445 = vst [vmem:[#allocation55_spill] sm:$0xff] %v6419_v24  ;;  %9446 = vst [vmem:[#allocation56_spill] sm:$0xff] %v6422_v17  ;;  %v6425_v27 = vld [vmem:[#allocation4 + $0x40] sm:$0xff]  ;;  %v6428_v50 = vld [vmem:[#allocation4 + $0x50] sm:$0xff] }
 0x327   :  { %1455 = vmatpush1.msra.mxu0 %v6413_v43  ;;  %1526 = vmatpush1.msra.mxu1 %v6416_v16  ;;  %9447 = vst [vmem:[#allocation57_spill] sm:$0xff] %v6425_v27  ;;  %9448 = vst [vmem:[#allocation58_spill] sm:$0xff] %v6428_v50  ;;  %v6431_v43 = vld [vmem:[#allocation4 + $0x8] sm:$0xff]  ;;  %v6434_v16 = vld [vmem:[#allocation4 + $0x18] sm:$0xff] }
 0x328   :  { %1456 = vmatprep.subr.mxu0 %v6419_v24  ;;  %1527 = vmatprep.subr.mxu1 %v6422_v17  ;;  %9449 = vst [vmem:[#allocation59_spill] sm:$0xff] %v6431_v43  ;;  %9450 = vst [vmem:[#allocation60_spill] sm:$0xff] %v6434_v16  ;;  %v6437_v24 = vld [vmem:[#allocation4] sm:$0xff]  ;;  %v6440_v17 = vld [vmem:[#allocation4 + $0x10] sm:$0xff] }
 0x329   :  { %1457 = vmatpush1.msra.mxu0 %v6425_v27  ;;  %1528 = vmatpush1.msra.mxu1 %v6428_v50  ;;  %9451 = vst [vmem:[#allocation61_spill] sm:$0xff] %v6437_v24  ;;  %9452 = vst [vmem:[#allocation62_spill] sm:$0xff] %v6440_v17  ;;  %v6445_v50 = vld [vmem:[#allocation4 + $0x3e8] sm:$0xff] }
 0x32a   :  { %1458 = vmatprep.subr.mxu0 %v6431_v43  ;;  %1529 = vmatprep.subr.mxu1 %v6434_v16  ;;  %9453 = vst [vmem:[#allocation63_spill] sm:$0xff] %v6445_v50  ;;  %v6448_v43 = vld [vmem:[#allocation4 + $0x3f8] sm:$0xff] }
 0x32b   :  { %1459 = vmatpush1.msra.mxu0 %v6437_v24  ;;  %1530 = vmatpush1.msra.mxu1 %v6440_v17  ;;  %9454 = vst [vmem:[#allocation64_spill] sm:$0xff] %v6448_v43 }
 0x32c   :  { %1492 = vmatprep.mubr.f32.mxu0 %v9237_v7  ;;  %1563 = vmatprep.mubr.f32.mxu1 %v9237_v7 }
 0x32d   :  { %1570 = vmatprep.subr.mxu0 %v6445_v50  ;;  %1641 = vmatprep.subr.mxu1 %v6448_v43 }
 0x3aa   :  { %v1160_v16 = vpop.f32.mrf.mxu0  ;;  %v1231_v27 = vpop.f32.mrf.mxu1 }
 0x3ab   :  { %v1378_v24 = vadd.f32 %v1160_v16, %v9359_v6  ;;  %v1380_v50 = vadd.f32 %v1231_v27, %v9362_v38 }
 0x3ac   :  { %v1162_v22 = vpop.f32.mrf.mxu0  ;;  %v1233_v23 = vpop.f32.mrf.mxu1 }
 0x3ad   :  { %v1382_v34 = vmul.f32 0.5, %v1378_v24  ;;  %v1379_v17 = vadd.f32 %v1162_v22, %v9360_v11  ;;  %v1381_v10 = vadd.f32 %v1233_v23, %v9361_v36  ;;  %v1384_v35 = vmul.f32 0.5, %v1380_v50  ;;  %v9459_v50 = vld [vmem:[#allocation39_spill] sm:$0xff] }
 0x3af   :  { %4644 = vtanh.f32 %v1382_v34  ;;  %v1383_v48 = vmul.f32 0.5, %v1379_v17  ;;  %v94_v34 = vpop.permute.xlu1 %93 }
 0x3b1   :  { %4646 = vtanh.f32 %v1383_v48  ;;  %v9457_v48 = vld [vmem:[#allocation36_spill] sm:$0xff] }
 0x3b2   :  { %4648 = vtanh.f32 %v1381_v10  ;;  %v149_v23 = vmul.f32 %v9457_v48, %v94_v34  ;;  %v9458_v10 = vld [vmem:[#allocation37_spill] sm:$0xff] }
 0x3b3   :  { %4650 = vtanh.f32 %v1384_v35  ;;  %v150_v27 = vmul.f32 %v9458_v10, %v94_v34  ;;  %v151_v10 = vmul.f32 %v9273_v32, %v94_v34 }
 0x3bc   :  { %v4645_v47 = vpop.eup %4644 }
 0x3bd   :  { %v1388_v43 = vadd.f32 1.0, %v4645_v47  ;;  %v202_v47 = vadd.f32 %v9459_v50, %v149_v23 }
 0x3be   :  { %v4647_v9 = vpop.eup %4646 }
 0x3bf   :  { %v1391_v44 = vmul.f32 0.5, %v1388_v43  ;;  %v1389_v16 = vadd.f32 1.0, %v4647_v9  ;;  %v4649_v24 = vpop.eup %4648 }
 0x3c0   :  { %v4651_v35 = vpop.eup %4650 }
 0x3c1   :  { %v1392_v6 = vmul.f32 0.5, %v1389_v16  ;;  %v1396_v11 = vmul.f32 %v4649_v24, %v1391_v44  ;;  %v9460_v16 = vld [vmem:[#allocation40_spill] sm:$0xff]  ;;  %v1390_v24 = vadd.f32 1.0, %v4651_v35 }
 0x3c2   :  { %v203_v36 = vadd.f32 %v9460_v16, %v150_v27  ;;  %v204_v27 = vadd.f32 %v5702_v0, %v151_v10 }
 0x3c3   :  { %v1395_v22 = vmul.f32 %v1392_v6, %v9455_v46  ;;  %v152_v6 = vmul.f32 %v9461_v45, %v94_v34  ;;  %v1393_v50 = vmul.f32 0.5, %v1390_v24 }
 0x3c5   :  { %v6456_v17 = vadd.f32 %v1396_v11, %v1395_v22 }
 0x3c7   :  { %9456 = vst [vmem:[#allocation65_spill] sm:$0xff] %v6456_v17  ;;  %4652 = vtanh.f32 %v6456_v17  ;;  %v205_v17 = vadd.f32 %v5692_v53, %v152_v6 }
 0x3cb   :  { %v1302_v38 = vpop.f32.mrf.mxu0  ;;  %v1373_v43 = vpop.f32.mrf.mxu1 }
 0x3cc   :  { %v1405_v9 = vadd.f32 %v1302_v38, %v202_v47 }
 0x3cd   :  { %v1304_v46 = vpop.f32.mrf.mxu0  ;;  %v1375_v22 = vpop.f32.mrf.mxu1 }
 0x3ce   :  { %v1409_v44 = vmul.f32 0.5, %v1405_v9  ;;  %v1406_v11 = vadd.f32 %v1304_v46, %v203_v36  ;;  %v1408_v23 = vadd.f32 %v1375_v22, %v205_v17  ;;  %v1407_v9 = vadd.f32 %v1373_v43, %v204_v27  ;;  %v6476_v27 = vld [vmem:[#allocation4 + $0x3e0] sm:$0xff] }
 0x3d0   :  { %4654 = vtanh.f32 %v1409_v44  ;;  %v1410_v48 = vmul.f32 0.5, %v1406_v11  ;;  %v1411_v36 = vmul.f32 0.5, %v1407_v9  ;;  %v6485_v9 = vld [vmem:[#allocation4 + $0x3b8] sm:$0xff] }
 0x3d2   :  { %4656 = vtanh.f32 %v1410_v48 }
 0x3d3   :  { %4658 = vtanh.f32 %v1408_v23 }
 0x3d4   :  { %v4653_v40 = vpop.eup %4652  ;;  %4660 = vtanh.f32 %v1411_v36  ;;  %v6491_v36 = vld [vmem:[#allocation4 + $0x3b0] sm:$0xff] }
 0x3d5   :  { %v1399_v38 = vmul.f32 %v4653_v40, %v1393_v50 }
 0x3d7   :  { %v4446_v47 = vmul.f32 %v6014_v55, %v1399_v38 }
 0x3d9   :  { %4459 = vadd.xlane.f32.xlu0 %v4446_v47  ;;  %v6482_v47 = vld [vmem:[#allocation4 + $0x3a8] sm:$0xff] }
 0x3dd   :  { %v4655_v35 = vpop.eup %4654 }
 0x3de   :  { %v1415_v46 = vadd.f32 1.0, %v4655_v35  ;;  %v6494_v35 = vld [vmem:[#allocation4 + $0x368] sm:$0xff] }
 0x3df   :  { %v4657_v44 = vpop.eup %4656 }
 0x3e0   :  { %v1418_v11 = vmul.f32 0.5, %v1415_v46  ;;  %v1416_v6 = vadd.f32 1.0, %v4657_v44  ;;  %v4659_v48 = vpop.eup %4658  ;;  %v6497_v46 = vld [vmem:[#allocation4 + $0x378] sm:$0xff]  ;;  %v6500_v44 = vld [vmem:[#allocation4 + $0x360] sm:$0xff] }
 0x3e1   :  { %v4661_v10 = vpop.eup %4660 }
 0x3e2   :  { %v1419_v34 = vmul.f32 0.5, %v1416_v6  ;;  %v1423_v24 = vmul.f32 %v4659_v48, %v1418_v11  ;;  %v1417_v55 = vadd.f32 1.0, %v4661_v10  ;;  %v6503_v11 = vld [vmem:[#allocation4 + $0x370] sm:$0xff]  ;;  %v6506_v6 = vld [vmem:[#allocation4 + $0x328] sm:$0xff]  ;;  %v6512_v48 = vld [vmem:[#allocation4 + $0x320] sm:$0xff] }
 0x3e3   :  { %v6521_v10 = vld [vmem:[#allocation4 + $0x2f8] sm:$0xff] }
 0x3e4   :  { %v1422_v17 = vmul.f32 %v1419_v34, %v6234_v49  ;;  %v1420_v50 = vmul.f32 0.5, %v1417_v55  ;;  %v6479_v49 = vld [vmem:[#allocation4 + $0x3f0] sm:$0xff]  ;;  %v6509_v34 = vld [vmem:[#allocation4 + $0x338] sm:$0xff]  ;;  %9463 = vst [vmem:[#allocation67_spill] sm:$0xff] %v6521_v10  ;;  %v6524_v55 = vld [vmem:[#allocation4 + $0x2e0] sm:$0xff] }
 0x3e5   :  { %9464 = vst [vmem:[#allocation68_spill] sm:$0xff] %v6524_v55 }
 0x3e6   :  { %v6469_v40 = vadd.f32 %v1423_v24, %v1422_v17  ;;  %v6515_v17 = vld [vmem:[#allocation4 + $0x330] sm:$0xff]  ;;  %v6518_v24 = vld [vmem:[#allocation4 + $0x2e8] sm:$0xff] }
 0x3e7   :  { %9462 = vst [vmem:[#allocation66_spill] sm:$0xff] %v6518_v24 }
 0x3e8   :  { %4662 = vtanh.f32 %v6469_v40 }
 0x3f5   :  { %v4663_v43 = vpop.eup %4662 }
 0x3f6   :  { %v1426_v22 = vmul.f32 %v4663_v43, %v1420_v50  ;;  %v6527_v50 = vld [vmem:[#allocation4 + $0x2f0] sm:$0xff]  ;;  %v6530_v43 = vld [vmem:[#allocation4 + $0x2a8] sm:$0xff] }
 0x3f7   :  { %9465 = vst [vmem:[#allocation69_spill] sm:$0xff] %v6527_v50  ;;  %9466 = vst [vmem:[#allocation70_spill] sm:$0xff] %v6530_v43 }
 0x3f8   :  { %v6472_v23 = vadd.f32 %v1426_v22, %v1399_v38  ;;  %v6488_v38 = vld [vmem:[#allocation4 + $0x3a0] sm:$0xff]  ;;  %v6533_v22 = vld [vmem:[#allocation4 + $0x2b8] sm:$0xff] }
 0x3f9   :  { %9467 = vst [vmem:[#allocation71_spill] sm:$0xff] %v6533_v22 }
 0x3fa   :  { %1493 = vmatmul.mubr.f32.vlgmr.msra.gmra.mxu0 %v6472_v23  ;;  %1564 = vmatmul.mubr.f32.vlgmr.msra.gmra.mxu1 %v6472_v23 }
 0x3fb   :  { %1571 = vmatpush1.msra.mxu0 %v6476_v27  ;;  %1642 = vmatpush1.msra.mxu1 %v6479_v49 }
 0x3fc   :  { %1572 = vmatprep.subr.mxu0 %v6482_v47  ;;  %1643 = vmatprep.subr.mxu1 %v6485_v9 }
 0x3fd   :  { %1573 = vmatpush1.msra.mxu0 %v6488_v38  ;;  %1644 = vmatpush1.msra.mxu1 %v6491_v36 }
 0x3fe   :  { %1574 = vmatprep.subr.mxu0 %v6494_v35  ;;  %1645 = vmatprep.subr.mxu1 %v6497_v46 }
 0x3ff   :  { %1575 = vmatpush1.msra.mxu0 %v6500_v44  ;;  %1646 = vmatpush1.msra.mxu1 %v6503_v11 }
 0x400   :  { %1576 = vmatprep.subr.mxu0 %v6506_v6  ;;  %1647 = vmatprep.subr.mxu1 %v6509_v34 }
 0x401   :  { %1577 = vmatpush1.msra.mxu0 %v6512_v48  ;;  %1648 = vmatpush1.msra.mxu1 %v6515_v17 }
 0x402   :  { %1578 = vmatprep.subr.mxu0 %v6518_v24  ;;  %1649 = vmatprep.subr.mxu1 %v6521_v10  ;;  %v6536_v24 = vld [vmem:[#allocation4 + $0x2a0] sm:$0xff]  ;;  %v6539_v10 = vld [vmem:[#allocation4 + $0x2b0] sm:$0xff] }
 0x403   :  { %1579 = vmatpush1.msra.mxu0 %v6524_v55  ;;  %1650 = vmatpush1.msra.mxu1 %v6527_v50  ;;  %9468 = vst [vmem:[#allocation72_spill] sm:$0xff] %v6536_v24  ;;  %9469 = vst [vmem:[#allocation73_spill] sm:$0xff] %v6539_v10  ;;  %v6542_v55 = vld [vmem:[#allocation4 + $0x268] sm:$0xff]  ;;  %v6545_v50 = vld [vmem:[#allocation4 + $0x278] sm:$0xff] }
 0x404   :  { %1580 = vmatprep.subr.mxu0 %v6530_v43  ;;  %1651 = vmatprep.subr.mxu1 %v6533_v22  ;;  %9470 = vst [vmem:[#allocation74_spill] sm:$0xff] %v6542_v55  ;;  %9471 = vst [vmem:[#allocation75_spill] sm:$0xff] %v6545_v50  ;;  %v6548_v43 = vld [vmem:[#allocation4 + $0x260] sm:$0xff]  ;;  %v6551_v22 = vld [vmem:[#allocation4 + $0x270] sm:$0xff] }
 0x405   :  { %1581 = vmatpush1.msra.mxu0 %v6536_v24  ;;  %1652 = vmatpush1.msra.mxu1 %v6539_v10  ;;  %9472 = vst [vmem:[#allocation76_spill] sm:$0xff] %v6548_v43  ;;  %9473 = vst [vmem:[#allocation77_spill] sm:$0xff] %v6551_v22  ;;  %v6554_v24 = vld [vmem:[#allocation4 + $0x228] sm:$0xff]  ;;  %v6557_v10 = vld [vmem:[#allocation4 + $0x238] sm:$0xff] }
 0x406   :  { %1582 = vmatprep.subr.mxu0 %v6542_v55  ;;  %1653 = vmatprep.subr.mxu1 %v6545_v50  ;;  %9474 = vst [vmem:[#allocation79_spill] sm:$0xff] %v6554_v24  ;;  %9475 = vst [vmem:[#allocation81_spill] sm:$0xff] %v6557_v10  ;;  %v6560_v55 = vld [vmem:[#allocation4 + $0x220] sm:$0xff]  ;;  %v6563_v50 = vld [vmem:[#allocation4 + $0x230] sm:$0xff] }
 0x407   :  { %1583 = vmatpush1.msra.mxu0 %v6548_v43  ;;  %1654 = vmatpush1.msra.mxu1 %v6551_v22  ;;  %9476 = vst [vmem:[#allocation91_spill] sm:$0xff] %v6560_v55  ;;  %9477 = vst [vmem:[#allocation92_spill] sm:$0xff] %v6563_v50  ;;  %v6566_v43 = vld [vmem:[#allocation4 + $0x1e8] sm:$0xff]  ;;  %v6569_v22 = vld [vmem:[#allocation4 + $0x1f8] sm:$0xff] }
 0x408   :  { %1584 = vmatprep.subr.mxu0 %v6554_v24  ;;  %1655 = vmatprep.subr.mxu1 %v6557_v10  ;;  %9478 = vst [vmem:[#allocation93_spill] sm:$0xff] %v6566_v43  ;;  %9479 = vst [vmem:[#allocation94_spill] sm:$0xff] %v6569_v22  ;;  %v6572_v24 = vld [vmem:[#allocation4 + $0x1e0] sm:$0xff]  ;;  %v6575_v10 = vld [vmem:[#allocation4 + $0x1f0] sm:$0xff] }
 0x409   :  { %1585 = vmatpush1.msra.mxu0 %v6560_v55  ;;  %1656 = vmatpush1.msra.mxu1 %v6563_v50  ;;  %9480 = vst [vmem:[#allocation95_spill] sm:$0xff] %v6572_v24  ;;  %9481 = vst [vmem:[#allocation15_spill] sm:$0xff] %v6575_v10  ;;  %v6578_v55 = vld [vmem:[#allocation4 + $0x1a8] sm:$0xff]  ;;  %v6581_v50 = vld [vmem:[#allocation4 + $0x1b8] sm:$0xff] }
 0x40a   :  { %1586 = vmatprep.subr.mxu0 %v6566_v43  ;;  %1657 = vmatprep.subr.mxu1 %v6569_v22  ;;  %9482 = vst [vmem:[#allocation16_spill] sm:$0xff] %v6578_v55  ;;  %9483 = vst [vmem:[#allocation42_spill] sm:$0xff] %v6581_v50  ;;  %v6584_v43 = vld [vmem:[#allocation4 + $0x1a0] sm:$0xff]  ;;  %v6587_v22 = vld [vmem:[#allocation4 + $0x1b0] sm:$0xff] }
 0x40b   :  { %1587 = vmatpush1.msra.mxu0 %v6572_v24  ;;  %1658 = vmatpush1.msra.mxu1 %v6575_v10  ;;  %9484 = vst [vmem:[#allocation43_spill] sm:$0xff] %v6584_v43  ;;  %9485 = vst [vmem:[#allocation44_spill] sm:$0xff] %v6587_v22  ;;  %v6590_v24 = vld [vmem:[#allocation4 + $0x168] sm:$0xff]  ;;  %v6593_v10 = vld [vmem:[#allocation4 + $0x178] sm:$0xff] }
 0x40c   :  { %1588 = vmatprep.subr.mxu0 %v6578_v55  ;;  %1659 = vmatprep.subr.mxu1 %v6581_v50  ;;  %9486 = vst [vmem:[#allocation45_spill] sm:$0xff] %v6590_v24  ;;  %9487 = vst [vmem:[#allocation46_spill] sm:$0xff] %v6593_v10  ;;  %v6596_v55 = vld [vmem:[#allocation4 + $0x160] sm:$0xff]  ;;  %v6599_v50 = vld [vmem:[#allocation4 + $0x170] sm:$0xff] }
 0x40d   :  { %1589 = vmatpush1.msra.mxu0 %v6584_v43  ;;  %1660 = vmatpush1.msra.mxu1 %v6587_v22  ;;  %9488 = vst [vmem:[#allocation47_spill] sm:$0xff] %v6596_v55  ;;  %9489 = vst [vmem:[#allocation48_spill] sm:$0xff] %v6599_v50  ;;  %v6602_v43 = vld [vmem:[#allocation4 + $0x128] sm:$0xff]  ;;  %v6605_v22 = vld [vmem:[#allocation4 + $0x138] sm:$0xff] }
 0x40e   :  { %1590 = vmatprep.subr.mxu0 %v6590_v24  ;;  %1661 = vmatprep.subr.mxu1 %v6593_v10  ;;  %9490 = vst [vmem:[#allocation49_spill] sm:$0xff] %v6602_v43  ;;  %9491 = vst [vmem:[#allocation78_spill] sm:$0xff] %v6605_v22  ;;  %v6608_v24 = vld [vmem:[#allocation4 + $0x120] sm:$0xff]  ;;  %v6611_v10 = vld [vmem:[#allocation4 + $0x130] sm:$0xff] }
 0x40f   :  { %1591 = vmatpush1.msra.mxu0 %v6596_v55  ;;  %1662 = vmatpush1.msra.mxu1 %v6599_v50  ;;  %9492 = vst [vmem:[#allocation80_spill] sm:$0xff] %v6608_v24  ;;  %9493 = vst [vmem:[#allocation82_spill] sm:$0xff] %v6611_v10  ;;  %v6614_v55 = vld [vmem:[#allocation4 + $0xe8] sm:$0xff]  ;;  %v6617_v50 = vld [vmem:[#allocation4 + $0xf8] sm:$0xff] }
 0x410   :  { %1592 = vmatprep.subr.mxu0 %v6602_v43  ;;  %1663 = vmatprep.subr.mxu1 %v6605_v22  ;;  %9494 = vst [vmem:[#allocation83_spill] sm:$0xff] %v6614_v55  ;;  %9495 = vst [vmem:[#allocation84_spill] sm:$0xff] %v6617_v50  ;;  %v6620_v43 = vld [vmem:[#allocation4 + $0xe0] sm:$0xff]  ;;  %v6623_v22 = vld [vmem:[#allocation4 + $0xf0] sm:$0xff] }
 0x411   :  { %1593 = vmatpush1.msra.mxu0 %v6608_v24  ;;  %1664 = vmatpush1.msra.mxu1 %v6611_v10  ;;  %9496 = vst [vmem:[#allocation85_spill] sm:$0xff] %v6620_v43  ;;  %9497 = vst [vmem:[#allocation86_spill] sm:$0xff] %v6623_v22  ;;  %v6626_v24 = vld [vmem:[#allocation4 + $0xa8] sm:$0xff]  ;;  %v6629_v10 = vld [vmem:[#allocation4 + $0xb8] sm:$0xff] }
 0x412   :  { %1594 = vmatprep.subr.mxu0 %v6614_v55  ;;  %1665 = vmatprep.subr.mxu1 %v6617_v50  ;;  %9498 = vst [vmem:[#allocation87_spill] sm:$0xff] %v6626_v24  ;;  %9499 = vst [vmem:[#allocation88_spill] sm:$0xff] %v6629_v10  ;;  %v6632_v55 = vld [vmem:[#allocation4 + $0xa0] sm:$0xff]  ;;  %v6635_v50 = vld [vmem:[#allocation4 + $0xb0] sm:$0xff] }
 0x413   :  { %1595 = vmatpush1.msra.mxu0 %v6620_v43  ;;  %1666 = vmatpush1.msra.mxu1 %v6623_v22  ;;  %9500 = vst [vmem:[#allocation89_spill] sm:$0xff] %v6632_v55  ;;  %9501 = vst [vmem:[#allocation90_spill] sm:$0xff] %v6635_v50  ;;  %v6638_v43 = vld [vmem:[#allocation4 + $0x68] sm:$0xff]  ;;  %v6641_v22 = vld [vmem:[#allocation4 + $0x78] sm:$0xff] }
 0x414   :  { %1596 = vmatprep.subr.mxu0 %v6626_v24  ;;  %1667 = vmatprep.subr.mxu1 %v6629_v10  ;;  %9502 = vst [vmem:[#allocation96_spill] sm:$0xff] %v6638_v43  ;;  %9503 = vst [vmem:[#allocation17_spill] sm:$0xff] %v6641_v22  ;;  %v6644_v24 = vld [vmem:[#allocation4 + $0x60] sm:$0xff]  ;;  %v6647_v10 = vld [vmem:[#allocation4 + $0x70] sm:$0xff] }
 0x415   :  { %1597 = vmatpush1.msra.mxu0 %v6632_v55  ;;  %1668 = vmatpush1.msra.mxu1 %v6635_v50  ;;  %9504 = vst [vmem:[#allocation40_spill] sm:$0xff] %v6647_v10  ;;  %v6650_v55 = vld [vmem:[#allocation4 + $0x28] sm:$0xff]  ;;  %v6653_v50 = vld [vmem:[#allocation4 + $0x38] sm:$0xff] }
 0x416   :  { %1598 = vmatprep.subr.mxu0 %v6638_v43  ;;  %1669 = vmatprep.subr.mxu1 %v6641_v22  ;;  %9505 = vst [vmem:[#allocation38_spill] sm:$0xff] %v6653_v50  ;;  %v6656_v43 = vld [vmem:[#allocation4 + $0x20] sm:$0xff]  ;;  %v6660_v22 = vld [vmem:[#allocation4 + $0x30] sm:$0xff] }
 0x417   :  { %1599 = vmatpush1.msra.mxu0 %v6644_v24  ;;  %1670 = vmatpush1.msra.mxu1 %v6647_v10  ;;  %9506 = vst [vmem:[#allocation97_spill] sm:$0xff] %v6656_v43  ;;  %9507 = vst [vmem:[#allocation98_spill] sm:$0xff] %v6660_v22 }
 0x418   :  { %1600 = vmatprep.subr.mxu0 %v6650_v55  ;;  %1671 = vmatprep.subr.mxu1 %v6653_v50 }
 0x419   :  { %1601 = vmatpush1.msra.mxu0 %v6656_v43  ;;  %1634 = vmatprep.mubr.f32.mxu0 %v9237_v7 }
 0x41a   :  { %1672 = vmatpush1.msra.mxu1 %v6660_v22  ;;  %1705 = vmatprep.mubr.f32.mxu1 %v9237_v7 }
 0x41b   :  { %1635 = vmatmul.mubr.f32.vlgmr.msra.gmra.mxu0 %v6472_v23  ;;  %1706 = vmatmul.mubr.f32.vlgmr.msra.gmra.mxu1 %v6472_v23  ;;  %v9536_v23 = vld [vmem:[#allocation63_spill] sm:$0xff] }
 0x41c   :  { %1762 = vmatprep.subr.mxu0 %v9403_v1  ;;  %1833 = vmatprep.subr.mxu1 %v9404_v54  ;;  %v9514_v1 = vld [vmem:[#allocation24_spill] sm:$0xff]  ;;  %v9515_v54 = vld [vmem:[#allocation25_spill] sm:$0xff] }
 0x41d   :  { %1763 = vmatpush1.msra.mxu0 %v9405_v58  ;;  %1834 = vmatpush1.msra.mxu1 %v9406_v2  ;;  %v9516_v58 = vld [vmem:[#allocation26_spill] sm:$0xff]  ;;  %v9517_v2 = vld [vmem:[#allocation27_spill] sm:$0xff] }
 0x41e   :  { %1764 = vmatprep.subr.mxu0 %v9407_v21  ;;  %1835 = vmatprep.subr.mxu1 %v9408_v19  ;;  %v9518_v21 = vld [vmem:[#allocation28_spill] sm:$0xff]  ;;  %v9519_v19 = vld [vmem:[#allocation29_spill] sm:$0xff] }
 0x41f   :  { %1765 = vmatpush1.msra.mxu0 %v9409_v14  ;;  %1836 = vmatpush1.msra.mxu1 %v9410_v33  ;;  %v9520_v14 = vld [vmem:[#allocation30_spill] sm:$0xff]  ;;  %v9521_v33 = vld [vmem:[#allocation31_spill] sm:$0xff] }
 0x420   :  { %1766 = vmatprep.subr.mxu0 %v9411_v28  ;;  %1837 = vmatprep.subr.mxu1 %v9412_v31  ;;  %v9522_v28 = vld [vmem:[#allocation14_spill] sm:$0xff] }
 0x421   :  { %1767 = vmatpush1.msra.mxu0 %v9413_v3  ;;  %1838 = vmatpush1.msra.mxu1 %v9414_v8  ;;  %v9523_v31 = vld [vmem:[#allocation50_spill] sm:$0xff]  ;;  %v9524_v3 = vld [vmem:[#allocation51_spill] sm:$0xff]  ;;  %v9525_v8 = vld [vmem:[#allocation52_spill] sm:$0xff] }
 0x422   :  { %1768 = vmatprep.subr.mxu0 %v9415_v12  ;;  %1839 = vmatprep.subr.mxu1 %v9416_v61  ;;  %v9526_v12 = vld [vmem:[#allocation53_spill] sm:$0xff]  ;;  %v9527_v61 = vld [vmem:[#allocation54_spill] sm:$0xff] }
 0x423   :  { %1769 = vmatpush1.msra.mxu0 %v9417_v62  ;;  %1840 = vmatpush1.msra.mxu1 %v9418_v57  ;;  %v9528_v62 = vld [vmem:[#allocation55_spill] sm:$0xff]  ;;  %v9529_v57 = vld [vmem:[#allocation56_spill] sm:$0xff] }
 0x424   :  { %1770 = vmatprep.subr.mxu0 %v9419_v56  ;;  %1841 = vmatprep.subr.mxu1 %v9420_v13  ;;  %v9530_v56 = vld [vmem:[#allocation57_spill] sm:$0xff]  ;;  %v9531_v13 = vld [vmem:[#allocation58_spill] sm:$0xff] }
 0x425   :  { %1771 = vmatpush1.msra.mxu0 %v9421_v4  ;;  %1842 = vmatpush1.msra.mxu1 %v9422_v29  ;;  %v9532_v4 = vld [vmem:[#allocation59_spill] sm:$0xff]  ;;  %v9533_v29 = vld [vmem:[#allocation60_spill] sm:$0xff] }
 0x426   :  { %1772 = vmatprep.subr.mxu0 %v9423_v15  ;;  %1843 = vmatprep.subr.mxu1 %v9424_v26  ;;  %v9534_v15 = vld [vmem:[#allocation61_spill] sm:$0xff]  ;;  %v9535_v26 = vld [vmem:[#allocation62_spill] sm:$0xff] }
 0x427   :  { %1773 = vmatpush1.msra.mxu0 %v6158_v52  ;;  %1844 = vmatpush1.msra.mxu1 %v6161_v18  ;;  %v9508_v52 = vld [vmem:[#allocation18_spill] sm:$0xff]  ;;  %v9513_v18 = vld [vmem:[#allocation23_spill] sm:$0xff] }
 0x428   :  { %1774 = vmatprep.subr.mxu0 %v6164_v51  ;;  %1845 = vmatprep.subr.mxu1 %v6167_v60  ;;  %v9511_v51 = vld [vmem:[#allocation21_spill] sm:$0xff]  ;;  %v9512_v60 = vld [vmem:[#allocation22_spill] sm:$0xff] }
 0x429   :  { %1775 = vmatpush1.msra.mxu0 %v6170_v59  ;;  %1846 = vmatpush1.msra.mxu1 %v6173_v63  ;;  %v9509_v59 = vld [vmem:[#allocation19_spill] sm:$0xff]  ;;  %v9510_v63 = vld [vmem:[#allocation20_spill] sm:$0xff] }
 0x42a   :  { %1776 = vmatprep.subr.mxu0 %v6335_v25  ;;  %1847 = vmatprep.subr.mxu1 %v6338_v30 }
 0x42b   :  { %1777 = vmatpush1.msra.mxu0 %v6341_v20  ;;  %1848 = vmatpush1.msra.mxu1 %v6344_v5 }
 0x42c   :  { %1778 = vmatprep.subr.mxu0 %v6347_v37  ;;  %1849 = vmatprep.subr.mxu1 %v6350_v39 }
 0x42d   :  { %1779 = vmatpush1.msra.mxu0 %v6353_v42  ;;  %1850 = vmatpush1.msra.mxu1 %v6356_v41 }
 0x42e   :  { %1780 = vmatprep.subr.mxu0 %v9508_v52  ;;  %1851 = vmatprep.subr.mxu1 %v9509_v59 }
 0x42f   :  { %1781 = vmatpush1.msra.mxu0 %v9510_v63  ;;  %1852 = vmatpush1.msra.mxu1 %v9511_v51 }
 0x430   :  { %1782 = vmatprep.subr.mxu0 %v9512_v60  ;;  %1853 = vmatprep.subr.mxu1 %v9513_v18 }
 0x431   :  { %1783 = vmatpush1.msra.mxu0 %v9514_v1  ;;  %1854 = vmatpush1.msra.mxu1 %v9515_v54 }
 0x432   :  { %1784 = vmatprep.subr.mxu0 %v9516_v58  ;;  %1855 = vmatprep.subr.mxu1 %v9517_v2  ;;  %v99_v2 = vpop.permute.xlu0 %98 }
 0x433   :  { %1785 = vmatpush1.msra.mxu0 %v9518_v21  ;;  %1856 = vmatpush1.msra.mxu1 %v9519_v19 }
 0x434   :  { %1786 = vmatprep.subr.mxu0 %v9520_v14  ;;  %1857 = vmatprep.subr.mxu1 %v9521_v33 }
 0x435   :  { %1787 = vmatpush1.msra.mxu0 %v9522_v28  ;;  %1858 = vmatpush1.msra.mxu1 %v9523_v31  ;;  %v9541_v28 = vld [vmem:[#allocation13_spill] sm:$0xff] }
 0x436   :  { %1788 = vmatprep.subr.mxu0 %v9524_v3  ;;  %1859 = vmatprep.subr.mxu1 %v9525_v8  ;;  %v9539_v8 = vld [vmem:[#allocation11_spill] sm:$0xff] }
 0x437   :  { %1789 = vmatpush1.msra.mxu0 %v9526_v12  ;;  %1860 = vmatpush1.msra.mxu1 %v9527_v61  ;;  %v9538_v61 = vld [vmem:[#allocation10_spill] sm:$0xff] }
 0x438   :  { %1790 = vmatprep.subr.mxu0 %v9528_v62  ;;  %1861 = vmatprep.subr.mxu1 %v9529_v57  ;;  %v9537_v62 = vld [vmem:[#allocation64_spill] sm:$0xff] }
 0x439   :  { %1791 = vmatpush1.msra.mxu0 %v9530_v56  ;;  %1862 = vmatpush1.msra.mxu1 %v9531_v13 }
 0x43a   :  { %1792 = vmatprep.subr.mxu0 %v9532_v4  ;;  %1863 = vmatprep.subr.mxu1 %v9533_v29 }
 0x43b   :  { %1793 = vmatpush1.msra.mxu0 %v9534_v15  ;;  %1864 = vmatpush1.msra.mxu1 %v9535_v26  ;;  %v9540_v26 = vld [vmem:[#allocation12_spill] sm:$0xff] }
 0x43c   :  { %1826 = vmatprep.mubr.f32.mxu0 %v9237_v7  ;;  %1897 = vmatprep.mubr.f32.mxu1 %v9237_v7 }
 0x43d   :  { %1904 = vmatprep.subr.mxu0 %v9536_v23  ;;  %1975 = vmatprep.subr.mxu1 %v9537_v62 }
 0x4ba   :  { %v1494_v57 = vpop.f32.mrf.mxu0  ;;  %v1565_v56 = vpop.f32.mrf.mxu1 }
 0x4bb   :  { %v1712_v13 = vadd.f32 %v1494_v57, %v9538_v61  ;;  %v1714_v33 = vadd.f32 %v1565_v56, %v9541_v28  ;;  %v9546_v56 = vld [vmem:[#allocation39_spill] sm:$0xff] }
 0x4bc   :  { %v1496_v12 = vpop.f32.mrf.mxu0  ;;  %v1567_v3 = vpop.f32.mrf.mxu1 }
 0x4bd   :  { %v1716_v4 = vmul.f32 0.5, %v1712_v13  ;;  %v1713_v29 = vadd.f32 %v1496_v12, %v9539_v8  ;;  %v1715_v31 = vadd.f32 %v1567_v3, %v9540_v26  ;;  %v1718_v23 = vmul.f32 0.5, %v1714_v33  ;;  %v9542_v12 = vld [vmem:[#allocation65_spill] sm:$0xff] }
 0x4be   :  { %v156_v26 = vmul.f32 %v9461_v45, %v99_v2 }
 0x4bf   :  { %4664 = vtanh.f32 %v1716_v4  ;;  %v1717_v15 = vmul.f32 0.5, %v1713_v29 }
 0x4c1   :  { %4666 = vtanh.f32 %v1717_v15  ;;  %v9544_v15 = vld [vmem:[#allocation36_spill] sm:$0xff] }
 0x4c2   :  { %4668 = vtanh.f32 %v1715_v31  ;;  %v153_v3 = vmul.f32 %v9544_v15, %v99_v2  ;;  %v9545_v31 = vld [vmem:[#allocation37_spill] sm:$0xff]  ;;  %v209_v15 = vadd.f32 %v5692_v53, %v156_v26 }
 0x4c3   :  { %4670 = vtanh.f32 %v1718_v23  ;;  %v154_v33 = vmul.f32 %v9545_v31, %v99_v2  ;;  %v155_v31 = vmul.f32 %v9273_v32, %v99_v2 }
 0x4cc   :  { %v4665_v14 = vpop.eup %4664 }
 0x4cd   :  { %v1722_v62 = vadd.f32 1.0, %v4665_v14  ;;  %v206_v14 = vadd.f32 %v9546_v56, %v153_v3 }
 0x4ce   :  { %v4667_v19 = vpop.eup %4666 }
 0x4cf   :  { %v1725_v21 = vmul.f32 0.5, %v1722_v62  ;;  %v1723_v57 = vadd.f32 1.0, %v4667_v19  ;;  %v4669_v13 = vpop.eup %4668 }
 0x4d0   :  { %v4671_v23 = vpop.eup %4670 }
 0x4d1   :  { %v1726_v61 = vmul.f32 0.5, %v1723_v57  ;;  %v1730_v4 = vmul.f32 %v4669_v13, %v1725_v21  ;;  %v207_v57 = vadd.f32 %v9460_v16, %v154_v33  ;;  %v1724_v13 = vadd.f32 1.0, %v4671_v23 }
 0x4d2   :  { %v208_v33 = vadd.f32 %v5702_v0, %v155_v31 }
 0x4d3   :  { %v1729_v8 = vmul.f32 %v1726_v61, %v9542_v12  ;;  %v1727_v56 = vmul.f32 0.5, %v1724_v13 }
 0x4d5   :  { %v6739_v29 = vadd.f32 %v1730_v4, %v1729_v8 }
 0x4d7   :  { %9543 = vst [vmem:[#allocation18_spill] sm:$0xff] %v6739_v29  ;;  %4672 = vtanh.f32 %v6739_v29 }
 0x4db   :  { %v1636_v28 = vpop.f32.mrf.mxu0  ;;  %v1707_v62 = vpop.f32.mrf.mxu1 }
 0x4dc   :  { %v1739_v19 = vadd.f32 %v1636_v28, %v206_v14  ;;  %v6753_v14 = vld [vmem:[%s8504_s7] ss:$0 sm:$0xff] }
 0x4dd   :  { %v1638_v61 = vpop.f32.mrf.mxu0  ;;  %v1709_v12 = vpop.f32.mrf.mxu1 }
 0x4de   :  { %v1743_v21 = vmul.f32 0.5, %v1739_v19  ;;  %v1740_v8 = vadd.f32 %v1638_v61, %v207_v57  ;;  %v1742_v3 = vadd.f32 %v1709_v12, %v209_v15  ;;  %v1741_v19 = vadd.f32 %v1707_v62, %v208_v33 }
 0x4e0   :  { %4674 = vtanh.f32 %v1743_v21  ;;  %v1744_v4 = vmul.f32 0.5, %v1740_v8  ;;  %v1745_v26 = vmul.f32 0.5, %v1741_v19  ;;  %v9549_v19 = vld [vmem:[#allocation68_spill] sm:$0xff] }
 0x4e2   :  { %4676 = vtanh.f32 %v1744_v4 }
 0x4e3   :  { %4678 = vtanh.f32 %v1742_v3 }
 0x4e4   :  { %v4673_v29 = vpop.eup %4672  ;;  %4680 = vtanh.f32 %v1745_v26  ;;  %v9550_v26 = vld [vmem:[#allocation69_spill] sm:$0xff] }
 0x4e5   :  { %v1733_v28 = vmul.f32 %v4673_v29, %v1727_v56 }
 0x4e7   :  { %v4447_v23 = vmul.f32 %v6753_v14, %v1733_v28 }
 0x4e9   :  { %4461 = vadd.xlane.f32.xlu0 %v4447_v23 }
 0x4ed   :  { %v4675_v57 = vpop.eup %4674 }
 0x4ee   :  { %v1749_v2 = vadd.f32 1.0, %v4675_v57  ;;  %v9551_v57 = vld [vmem:[#allocation70_spill] sm:$0xff] }
 0x4ef   :  { %v4677_v61 = vpop.eup %4676 }
 0x4f0   :  { %v1752_v15 = vmul.f32 0.5, %v1749_v2  ;;  %v1750_v21 = vadd.f32 1.0, %v4677_v61  ;;  %v4679_v56 = vpop.eup %4678  ;;  %v9552_v2 = vld [vmem:[#allocation71_spill] sm:$0xff]  ;;  %v9553_v61 = vld [vmem:[#allocation72_spill] sm:$0xff] }
 0x4f1   :  { %v4681_v12 = vpop.eup %4680 }
 0x4f2   :  { %v1753_v29 = vmul.f32 0.5, %v1750_v21  ;;  %v1757_v8 = vmul.f32 %v4679_v56, %v1752_v15  ;;  %v1751_v4 = vadd.f32 1.0, %v4681_v12  ;;  %v9554_v15 = vld [vmem:[#allocation73_spill] sm:$0xff]  ;;  %v9555_v21 = vld [vmem:[#allocation74_spill] sm:$0xff]  ;;  %v9557_v56 = vld [vmem:[#allocation76_spill] sm:$0xff] }
 0x4f3   :  { %v9560_v12 = vld [vmem:[#allocation81_spill] sm:$0xff] }
 0x4f4   :  { %v1756_v31 = vmul.f32 %v1753_v29, %v6469_v40  ;;  %v1754_v62 = vmul.f32 0.5, %v1751_v4  ;;  %v9547_v40 = vld [vmem:[#allocation66_spill] sm:$0xff]  ;;  %v9556_v29 = vld [vmem:[#allocation75_spill] sm:$0xff] }
 0x4f5   :  { %v9561_v4 = vld [vmem:[#allocation91_spill] sm:$0xff] }
 0x4f6   :  { %v6757_v13 = vadd.f32 %v1757_v8, %v1756_v31  ;;  %v9558_v31 = vld [vmem:[#allocation77_spill] sm:$0xff]  ;;  %v9559_v8 = vld [vmem:[#allocation79_spill] sm:$0xff] }
 0x4f8   :  { %4682 = vtanh.f32 %v6757_v13 }
 0x505   :  { %v4683_v3 = vpop.eup %4682 }
 0x506   :  { %v1760_v33 = vmul.f32 %v4683_v3, %v1754_v62  ;;  %v9562_v62 = vld [vmem:[#allocation92_spill] sm:$0xff]  ;;  %v9563_v3 = vld [vmem:[#allocation93_spill] sm:$0xff] }
 0x508   :  { %v6760_v23 = vadd.f32 %v1760_v33, %v1733_v28  ;;  %v9548_v28 = vld [vmem:[#allocation67_spill] sm:$0xff]  ;;  %v9564_v33 = vld [vmem:[#allocation94_spill] sm:$0xff] }
 0x50a   :  { %1827 = vmatmul.mubr.f32.vlgmr.msra.gmra.mxu0 %v6760_v23  ;;  %1898 = vmatmul.mubr.f32.vlgmr.msra.gmra.mxu1 %v6760_v23 }
 0x50b   :  { %1905 = vmatpush1.msra.mxu0 %v6476_v27  ;;  %1976 = vmatpush1.msra.mxu1 %v6479_v49 }
 0x50c   :  { %1906 = vmatprep.subr.mxu0 %v6482_v47  ;;  %1977 = vmatprep.subr.mxu1 %v6485_v9 }
 0x50d   :  { %1907 = vmatpush1.msra.mxu0 %v6488_v38  ;;  %1978 = vmatpush1.msra.mxu1 %v6491_v36 }
 0x50e   :  { %1908 = vmatprep.subr.mxu0 %v6494_v35  ;;  %1979 = vmatprep.subr.mxu1 %v6497_v46 }
 0x50f   :  { %1909 = vmatpush1.msra.mxu0 %v6500_v44  ;;  %1980 = vmatpush1.msra.mxu1 %v6503_v11 }
 0x510   :  { %1910 = vmatprep.subr.mxu0 %v6506_v6  ;;  %1981 = vmatprep.subr.mxu1 %v6509_v34 }
 0x511   :  { %1911 = vmatpush1.msra.mxu0 %v6512_v48  ;;  %1982 = vmatpush1.msra.mxu1 %v6515_v17 }
 0x512   :  { %1912 = vmatprep.subr.mxu0 %v9547_v40  ;;  %1983 = vmatprep.subr.mxu1 %v9548_v28 }
 0x513   :  { %1913 = vmatpush1.msra.mxu0 %v9549_v19  ;;  %1984 = vmatpush1.msra.mxu1 %v9550_v26 }
 0x514   :  { %1914 = vmatprep.subr.mxu0 %v9551_v57  ;;  %1985 = vmatprep.subr.mxu1 %v9552_v2 }
 0x515   :  { %1915 = vmatpush1.msra.mxu0 %v9553_v61  ;;  %1986 = vmatpush1.msra.mxu1 %v9554_v15  ;;  %v9565_v15 = vld [vmem:[#allocation95_spill] sm:$0xff] }
 0x516   :  { %1916 = vmatprep.subr.mxu0 %v9555_v21  ;;  %1987 = vmatprep.subr.mxu1 %v9556_v29  ;;  %v9566_v21 = vld [vmem:[#allocation15_spill] sm:$0xff]  ;;  %v9567_v29 = vld [vmem:[#allocation16_spill] sm:$0xff] }
 0x517   :  { %1917 = vmatpush1.msra.mxu0 %v9557_v56  ;;  %1988 = vmatpush1.msra.mxu1 %v9558_v31  ;;  %v9568_v56 = vld [vmem:[#allocation42_spill] sm:$0xff]  ;;  %v9569_v31 = vld [vmem:[#allocation43_spill] sm:$0xff] }
 0x518   :  { %1918 = vmatprep.subr.mxu0 %v9559_v8  ;;  %1989 = vmatprep.subr.mxu1 %v9560_v12  ;;  %v9570_v8 = vld [vmem:[#allocation44_spill] sm:$0xff]  ;;  %v9571_v12 = vld [vmem:[#allocation45_spill] sm:$0xff] }
 0x519   :  { %1919 = vmatpush1.msra.mxu0 %v9561_v4  ;;  %1990 = vmatpush1.msra.mxu1 %v9562_v62  ;;  %v9572_v4 = vld [vmem:[#allocation46_spill] sm:$0xff]  ;;  %v9573_v62 = vld [vmem:[#allocation47_spill] sm:$0xff] }
 0x51a   :  { %1920 = vmatprep.subr.mxu0 %v9563_v3  ;;  %1991 = vmatprep.subr.mxu1 %v9564_v33  ;;  %v9574_v3 = vld [vmem:[#allocation48_spill] sm:$0xff]  ;;  %v9575_v33 = vld [vmem:[#allocation49_spill] sm:$0xff] }
 0x51b   :  { %1921 = vmatpush1.msra.mxu0 %v9565_v15  ;;  %1992 = vmatpush1.msra.mxu1 %v9566_v21  ;;  %v9576_v15 = vld [vmem:[#allocation78_spill] sm:$0xff]  ;;  %v9577_v21 = vld [vmem:[#allocation80_spill] sm:$0xff] }
 0x51c   :  { %1922 = vmatprep.subr.mxu0 %v9567_v29  ;;  %1993 = vmatprep.subr.mxu1 %v9568_v56  ;;  %v9578_v29 = vld [vmem:[#allocation82_spill] sm:$0xff]  ;;  %v9579_v56 = vld [vmem:[#allocation83_spill] sm:$0xff] }
 0x51d   :  { %1923 = vmatpush1.msra.mxu0 %v9569_v31  ;;  %1994 = vmatpush1.msra.mxu1 %v9570_v8  ;;  %v9580_v31 = vld [vmem:[#allocation84_spill] sm:$0xff]  ;;  %v9581_v8 = vld [vmem:[#allocation85_spill] sm:$0xff] }
 0x51e   :  { %1924 = vmatprep.subr.mxu0 %v9571_v12  ;;  %1995 = vmatprep.subr.mxu1 %v9572_v4  ;;  %v9582_v12 = vld [vmem:[#allocation86_spill] sm:$0xff]  ;;  %v9583_v4 = vld [vmem:[#allocation87_spill] sm:$0xff] }
 0x51f   :  { %1925 = vmatpush1.msra.mxu0 %v9573_v62  ;;  %1996 = vmatpush1.msra.mxu1 %v9574_v3  ;;  %v9584_v62 = vld [vmem:[#allocation88_spill] sm:$0xff]  ;;  %v9585_v3 = vld [vmem:[#allocation89_spill] sm:$0xff] }
 0x520   :  { %1926 = vmatprep.subr.mxu0 %v9575_v33  ;;  %1997 = vmatprep.subr.mxu1 %v9576_v15  ;;  %v9586_v33 = vld [vmem:[#allocation90_spill] sm:$0xff]  ;;  %v9587_v15 = vld [vmem:[#allocation96_spill] sm:$0xff] }
 0x521   :  { %1927 = vmatpush1.msra.mxu0 %v9577_v21  ;;  %1998 = vmatpush1.msra.mxu1 %v9578_v29  ;;  %v9588_v21 = vld [vmem:[#allocation17_spill] sm:$0xff] }
 0x522   :  { %1928 = vmatprep.subr.mxu0 %v9579_v56  ;;  %1999 = vmatprep.subr.mxu1 %v9580_v31 }
 0x523   :  { %1929 = vmatpush1.msra.mxu0 %v9581_v8  ;;  %2000 = vmatpush1.msra.mxu1 %v9582_v12 }
 0x524   :  { %1930 = vmatprep.subr.mxu0 %v9583_v4  ;;  %2001 = vmatprep.subr.mxu1 %v9584_v62 }
 0x525   :  { %1931 = vmatpush1.msra.mxu0 %v9585_v3  ;;  %2002 = vmatpush1.msra.mxu1 %v9586_v33 }
 0x526   :  { %1932 = vmatprep.subr.mxu0 %v9587_v15  ;;  %2003 = vmatprep.subr.mxu1 %v9588_v21  ;;  %v6830_v21 = vld [vmem:[#allocation4 + $0x3c8] sm:$0xff] }
 0x527   :  { %1933 = vmatpush1.msra.mxu0 %v6644_v24  ;;  %2004 = vmatpush1.msra.mxu1 %v6647_v10  ;;  %9589 = vst [vmem:[#allocation19_spill] sm:$0xff] %v6830_v21  ;;  %v6833_v10 = vld [vmem:[#allocation4 + $0x3d8] sm:$0xff] }
 0x528   :  { %1934 = vmatprep.subr.mxu0 %v6650_v55  ;;  %2005 = vmatprep.subr.mxu1 %v6653_v50  ;;  %9590 = vst [vmem:[#allocation20_spill] sm:$0xff] %v6833_v10  ;;  %v6836_v50 = vld [vmem:[#allocation4 + $0x3c0] sm:$0xff] }
 0x529   :  { %1935 = vmatpush1.msra.mxu0 %v6656_v43  ;;  %1968 = vmatprep.mubr.f32.mxu0 %v9237_v7  ;;  %9591 = vst [vmem:[#allocation21_spill] sm:$0xff] %v6836_v50  ;;  %v6839_v43 = vld [vmem:[#allocation4 + $0x3d0] sm:$0xff] }
 0x52a   :  { %2006 = vmatpush1.msra.mxu1 %v6660_v22  ;;  %2039 = vmatprep.mubr.f32.mxu1 %v9237_v7  ;;  %9592 = vst [vmem:[#allocation22_spill] sm:$0xff] %v6839_v43  ;;  %v6842_v22 = vld [vmem:[#allocation4 + $0x388] sm:$0xff] }
 0x52b   :  { %1969 = vmatmul.mubr.f32.vlgmr.msra.gmra.mxu0 %v6760_v23  ;;  %2040 = vmatmul.mubr.f32.vlgmr.msra.gmra.mxu1 %v6760_v23  ;;  %9593 = vst [vmem:[#allocation23_spill] sm:$0xff] %v6842_v22  ;;  %v6845_v23 = vld [vmem:[#allocation4 + $0x398] sm:$0xff] }
 0x52c   :  { %2096 = vmatprep.subr.mxu0 %v6830_v21  ;;  %2167 = vmatprep.subr.mxu1 %v6833_v10  ;;  %9594 = vst [vmem:[#allocation24_spill] sm:$0xff] %v6845_v23  ;;  %v6848_v21 = vld [vmem:[#allocation4 + $0x380] sm:$0xff]  ;;  %v6851_v10 = vld [vmem:[#allocation4 + $0x390] sm:$0xff] }
 0x52d   :  { %2097 = vmatpush1.msra.mxu0 %v6836_v50  ;;  %2168 = vmatpush1.msra.mxu1 %v6839_v43  ;;  %9595 = vst [vmem:[#allocation25_spill] sm:$0xff] %v6848_v21  ;;  %9596 = vst [vmem:[#allocation26_spill] sm:$0xff] %v6851_v10  ;;  %v6854_v50 = vld [vmem:[#allocation4 + $0x348] sm:$0xff]  ;;  %v6857_v43 = vld [vmem:[#allocation4 + $0x358] sm:$0xff] }
 0x52e   :  { %2098 = vmatprep.subr.mxu0 %v6842_v22  ;;  %2169 = vmatprep.subr.mxu1 %v6845_v23  ;;  %9597 = vst [vmem:[#allocation65_spill] sm:$0xff] %v6854_v50  ;;  %9598 = vst [vmem:[#allocation66_spill] sm:$0xff] %v6857_v43  ;;  %v6860_v22 = vld [vmem:[#allocation4 + $0x340] sm:$0xff]  ;;  %v6863_v23 = vld [vmem:[#allocation4 + $0x350] sm:$0xff] }
 0x52f   :  { %2099 = vmatpush1.msra.mxu0 %v6848_v21  ;;  %2170 = vmatpush1.msra.mxu1 %v6851_v10  ;;  %9599 = vst [vmem:[#allocation67_spill] sm:$0xff] %v6860_v22  ;;  %9600 = vst [vmem:[#allocation68_spill] sm:$0xff] %v6863_v23  ;;  %v6866_v21 = vld [vmem:[#allocation4 + $0x308] sm:$0xff]  ;;  %v6869_v10 = vld [vmem:[#allocation4 + $0x318] sm:$0xff] }
 0x530   :  { %2100 = vmatprep.subr.mxu0 %v6854_v50  ;;  %2171 = vmatprep.subr.mxu1 %v6857_v43  ;;  %9601 = vst [vmem:[#allocation69_spill] sm:$0xff] %v6866_v21  ;;  %9602 = vst [vmem:[#allocation70_spill] sm:$0xff] %v6869_v10  ;;  %v6872_v50 = vld [vmem:[#allocation4 + $0x300] sm:$0xff]  ;;  %v6875_v43 = vld [vmem:[#allocation4 + $0x310] sm:$0xff] }
 0x531   :  { %2101 = vmatpush1.msra.mxu0 %v6860_v22  ;;  %2172 = vmatpush1.msra.mxu1 %v6863_v23  ;;  %9603 = vst [vmem:[#allocation71_spill] sm:$0xff] %v6872_v50  ;;  %9604 = vst [vmem:[#allocation72_spill] sm:$0xff] %v6875_v43  ;;  %v6878_v22 = vld [vmem:[#allocation4 + $0x2c8] sm:$0xff]  ;;  %v6881_v23 = vld [vmem:[#allocation4 + $0x2d8] sm:$0xff] }
 0x532   :  { %2102 = vmatprep.subr.mxu0 %v6866_v21  ;;  %2173 = vmatprep.subr.mxu1 %v6869_v10  ;;  %9605 = vst [vmem:[#allocation82_spill] sm:$0xff] %v6878_v22  ;;  %9606 = vst [vmem:[#allocation83_spill] sm:$0xff] %v6881_v23  ;;  %v6884_v21 = vld [vmem:[#allocation4 + $0x2c0] sm:$0xff]  ;;  %v6887_v10 = vld [vmem:[#allocation4 + $0x2d0] sm:$0xff] }
 0x533   :  { %2103 = vmatpush1.msra.mxu0 %v6872_v50  ;;  %2174 = vmatpush1.msra.mxu1 %v6875_v43  ;;  %9607 = vst [vmem:[#allocation84_spill] sm:$0xff] %v6884_v21  ;;  %9608 = vst [vmem:[#allocation85_spill] sm:$0xff] %v6887_v10  ;;  %v6890_v50 = vld [vmem:[#allocation4 + $0x288] sm:$0xff]  ;;  %v6893_v43 = vld [vmem:[#allocation4 + $0x298] sm:$0xff] }
 0x534   :  { %2104 = vmatprep.subr.mxu0 %v6878_v22  ;;  %2175 = vmatprep.subr.mxu1 %v6881_v23  ;;  %9609 = vst [vmem:[#allocation86_spill] sm:$0xff] %v6890_v50  ;;  %9610 = vst [vmem:[#allocation87_spill] sm:$0xff] %v6893_v43  ;;  %v6896_v22 = vld [vmem:[#allocation4 + $0x280] sm:$0xff]  ;;  %v6899_v23 = vld [vmem:[#allocation4 + $0x290] sm:$0xff] }
 0x535   :  { %2105 = vmatpush1.msra.mxu0 %v6884_v21  ;;  %2176 = vmatpush1.msra.mxu1 %v6887_v10  ;;  %v6902_v21 = vld [vmem:[#allocation4 + $0x248] sm:$0xff]  ;;  %v6905_v10 = vld [vmem:[#allocation4 + $0x258] sm:$0xff] }
 0x536   :  { %2106 = vmatprep.subr.mxu0 %v6890_v50  ;;  %2177 = vmatprep.subr.mxu1 %v6893_v43  ;;  %9611 = vst [vmem:[#allocation88_spill] sm:$0xff] %v6905_v10  ;;  %v6908_v50 = vld [vmem:[#allocation4 + $0x240] sm:$0xff]  ;;  %v6911_v43 = vld [vmem:[#allocation4 + $0x250] sm:$0xff] }
 0x537   :  { %2107 = vmatpush1.msra.mxu0 %v6896_v22  ;;  %2178 = vmatpush1.msra.mxu1 %v6899_v23  ;;  %9612 = vst [vmem:[#allocation89_spill] sm:$0xff] %v6908_v50  ;;  %9613 = vst [vmem:[#allocation90_spill] sm:$0xff] %v6911_v43 }
 0x538   :  { %2108 = vmatprep.subr.mxu0 %v6902_v21  ;;  %2179 = vmatprep.subr.mxu1 %v6905_v10  ;;  %v9639_v10 = vld [vmem:[#allocation18_spill] sm:$0xff] }
 0x539   :  { %2109 = vmatpush1.msra.mxu0 %v6908_v50  ;;  %2180 = vmatpush1.msra.mxu1 %v6911_v43 }
 0x53a   :  { %2110 = vmatprep.subr.mxu0 %v6335_v25  ;;  %2181 = vmatprep.subr.mxu1 %v6338_v30  ;;  %v9614_v25 = vld [vmem:[#allocation27_spill] sm:$0xff]  ;;  %v9615_v30 = vld [vmem:[#allocation28_spill] sm:$0xff] }
 0x53b   :  { %2111 = vmatpush1.msra.mxu0 %v6341_v20  ;;  %2182 = vmatpush1.msra.mxu1 %v6344_v5  ;;  %v9616_v20 = vld [vmem:[#allocation29_spill] sm:$0xff]  ;;  %v9617_v5 = vld [vmem:[#allocation30_spill] sm:$0xff] }
 0x53c   :  { %2112 = vmatprep.subr.mxu0 %v6347_v37  ;;  %2183 = vmatprep.subr.mxu1 %v6350_v39  ;;  %v9618_v37 = vld [vmem:[#allocation31_spill] sm:$0xff]  ;;  %v9619_v39 = vld [vmem:[#allocation14_spill] sm:$0xff] }
 0x53d   :  { %2113 = vmatpush1.msra.mxu0 %v6353_v42  ;;  %2184 = vmatpush1.msra.mxu1 %v6356_v41  ;;  %v9620_v42 = vld [vmem:[#allocation50_spill] sm:$0xff]  ;;  %v9621_v41 = vld [vmem:[#allocation51_spill] sm:$0xff] }
 0x53e   :  { %2114 = vmatprep.subr.mxu0 %v9508_v52  ;;  %2185 = vmatprep.subr.mxu1 %v9509_v59  ;;  %v9622_v52 = vld [vmem:[#allocation52_spill] sm:$0xff]  ;;  %v9623_v59 = vld [vmem:[#allocation53_spill] sm:$0xff] }
 0x53f   :  { %2115 = vmatpush1.msra.mxu0 %v9510_v63  ;;  %2186 = vmatpush1.msra.mxu1 %v9511_v51  ;;  %v9624_v63 = vld [vmem:[#allocation54_spill] sm:$0xff]  ;;  %v9625_v51 = vld [vmem:[#allocation55_spill] sm:$0xff] }
 0x540   :  { %2116 = vmatprep.subr.mxu0 %v9512_v60  ;;  %2187 = vmatprep.subr.mxu1 %v9513_v18  ;;  %v9626_v60 = vld [vmem:[#allocation56_spill] sm:$0xff]  ;;  %v9627_v18 = vld [vmem:[#allocation57_spill] sm:$0xff] }
 0x541   :  { %2117 = vmatpush1.msra.mxu0 %v9514_v1  ;;  %2188 = vmatpush1.msra.mxu1 %v9515_v54  ;;  %v9628_v1 = vld [vmem:[#allocation58_spill] sm:$0xff]  ;;  %v9629_v54 = vld [vmem:[#allocation59_spill] sm:$0xff] }
 0x542   :  { %2118 = vmatprep.subr.mxu0 %v9516_v58  ;;  %2189 = vmatprep.subr.mxu1 %v9614_v25  ;;  %v9630_v58 = vld [vmem:[#allocation60_spill] sm:$0xff]  ;;  %v9631_v25 = vld [vmem:[#allocation61_spill] sm:$0xff] }
 0x543   :  { %2119 = vmatpush1.msra.mxu0 %v9615_v30  ;;  %2190 = vmatpush1.msra.mxu1 %v9616_v20  ;;  %v9632_v30 = vld [vmem:[#allocation62_spill] sm:$0xff]  ;;  %v9633_v20 = vld [vmem:[#allocation63_spill] sm:$0xff] }
 0x544   :  { %2120 = vmatprep.subr.mxu0 %v9617_v5  ;;  %2191 = vmatprep.subr.mxu1 %v9618_v37  ;;  %v9634_v5 = vld [vmem:[#allocation64_spill] sm:$0xff] }
 0x545   :  { %2121 = vmatpush1.msra.mxu0 %v9619_v39  ;;  %2192 = vmatpush1.msra.mxu1 %v9620_v42  ;;  %v9635_v42 = vld [vmem:[#allocation10_spill] sm:$0xff] }
 0x546   :  { %2122 = vmatprep.subr.mxu0 %v9621_v41  ;;  %2193 = vmatprep.subr.mxu1 %v9622_v52 }
 0x547   :  { %2123 = vmatpush1.msra.mxu0 %v9623_v59  ;;  %2194 = vmatpush1.msra.mxu1 %v9624_v63  ;;  %v9636_v63 = vld [vmem:[#allocation11_spill] sm:$0xff] }
 0x548   :  { %2124 = vmatprep.subr.mxu0 %v9625_v51  ;;  %2195 = vmatprep.subr.mxu1 %v9626_v60 }
 0x549   :  { %2125 = vmatpush1.msra.mxu0 %v9627_v18  ;;  %2196 = vmatpush1.msra.mxu1 %v9628_v1  ;;  %v9637_v1 = vld [vmem:[#allocation12_spill] sm:$0xff] }
 0x54a   :  { %2126 = vmatprep.subr.mxu0 %v9629_v54  ;;  %2197 = vmatprep.subr.mxu1 %v9630_v58  ;;  %v9638_v58 = vld [vmem:[#allocation13_spill] sm:$0xff] }
 0x54b   :  { %2127 = vmatpush1.msra.mxu0 %v9631_v25  ;;  %2198 = vmatpush1.msra.mxu1 %v9632_v30 }
 0x54c   :  { %2160 = vmatprep.mubr.f32.mxu0 %v9237_v7  ;;  %2231 = vmatprep.mubr.f32.mxu1 %v9237_v7 }
 0x54d   :  { %2238 = vmatprep.subr.mxu0 %v9633_v20  ;;  %2309 = vmatprep.subr.mxu1 %v9634_v5 }
 0x5ca   :  { %v1828_v37 = vpop.f32.mrf.mxu0  ;;  %v1899_v39 = vpop.f32.mrf.mxu1 }
 0x5cb   :  { %v2046_v41 = vadd.f32 %v1828_v37, %v9635_v42  ;;  %v2048_v25 = vadd.f32 %v1899_v39, %v9638_v58  ;;  %v9642_v39 = vld [vmem:[#allocation37_spill] sm:$0xff] }
 0x5cc   :  { %v1830_v52 = vpop.f32.mrf.mxu0  ;;  %v1901_v60 = vpop.f32.mrf.mxu1 }
 0x5cd   :  { %v2050_v59 = vmul.f32 0.5, %v2046_v41  ;;  %v2047_v51 = vadd.f32 %v1830_v52, %v9636_v63  ;;  %v2049_v54 = vadd.f32 %v1901_v60, %v9637_v1  ;;  %v2052_v30 = vmul.f32 0.5, %v2048_v25  ;;  %v9643_v25 = vld [vmem:[#allocation39_spill] sm:$0xff] }
 0x5cf   :  { %4684 = vtanh.f32 %v2050_v59  ;;  %v2051_v18 = vmul.f32 0.5, %v2047_v51  ;;  %v104_v59 = vpop.permute.xlu1 %103 }
 0x5d1   :  { %4686 = vtanh.f32 %v2051_v18  ;;  %v9641_v18 = vld [vmem:[#allocation36_spill] sm:$0xff] }
 0x5d2   :  { %4688 = vtanh.f32 %v2049_v54  ;;  %v157_v60 = vmul.f32 %v9641_v18, %v104_v59  ;;  %v158_v54 = vmul.f32 %v9642_v39, %v104_v59  ;;  %v159_v39 = vmul.f32 %v9273_v32, %v104_v59 }
 0x5d3   :  { %4690 = vtanh.f32 %v2052_v30 }
 0x5dc   :  { %v4685_v20 = vpop.eup %4684 }
 0x5dd   :  { %v2056_v5 = vadd.f32 1.0, %v4685_v20  ;;  %v210_v20 = vadd.f32 %v9643_v25, %v157_v60 }
 0x5de   :  { %v4687_v43 = vpop.eup %4686 }
 0x5df   :  { %v2059_v50 = vmul.f32 0.5, %v2056_v5  ;;  %v2057_v37 = vadd.f32 1.0, %v4687_v43  ;;  %v4689_v41 = vpop.eup %4688 }
 0x5e0   :  { %v4691_v30 = vpop.eup %4690 }
 0x5e1   :  { %v2060_v42 = vmul.f32 0.5, %v2057_v37  ;;  %v2064_v63 = vmul.f32 %v4689_v41, %v2059_v50  ;;  %v211_v37 = vadd.f32 %v9460_v16, %v158_v54  ;;  %v2058_v41 = vadd.f32 1.0, %v4691_v30 }
 0x5e2   :  { %v212_v54 = vadd.f32 %v5702_v0, %v159_v39 }
 0x5e3   :  { %v2063_v52 = vmul.f32 %v2060_v42, %v9639_v10  ;;  %v160_v10 = vmul.f32 %v9461_v45, %v104_v59  ;;  %v2061_v25 = vmul.f32 0.5, %v2058_v41 }
 0x5e5   :  { %v6959_v51 = vadd.f32 %v2064_v63, %v2063_v52 }
 0x5e7   :  { %9640 = vst [vmem:[#allocation96_spill] sm:$0xff] %v6959_v51  ;;  %4692 = vtanh.f32 %v6959_v51  ;;  %v213_v51 = vadd.f32 %v5692_v53, %v160_v10 }
 0x5eb   :  { %v1970_v58 = vpop.f32.mrf.mxu0  ;;  %v2041_v5 = vpop.f32.mrf.mxu1 }
 0x5ec   :  { %v2073_v43 = vadd.f32 %v1970_v58, %v210_v20 }
 0x5ed   :  { %v1972_v50 = vpop.f32.mrf.mxu0  ;;  %v2043_v52 = vpop.f32.mrf.mxu1 }
 0x5ee   :  { %v2077_v42 = vmul.f32 0.5, %v2073_v43  ;;  %v2074_v63 = vadd.f32 %v1972_v50, %v211_v37  ;;  %v2076_v60 = vadd.f32 %v2043_v52, %v213_v51  ;;  %v2075_v43 = vadd.f32 %v2041_v5, %v212_v54 }
 0x5f0   :  { %4694 = vtanh.f32 %v2077_v42  ;;  %v2078_v18 = vmul.f32 0.5, %v2074_v63  ;;  %v2079_v30 = vmul.f32 0.5, %v2075_v43  ;;  %v9668_v43 = vld [vmem:[#allocation17_spill] sm:$0xff] }
 0x5f2   :  { %4696 = vtanh.f32 %v2078_v18 }
 0x5f3   :  { %4698 = vtanh.f32 %v2076_v60 }
 0x5f4   :  { %v4693_v1 = vpop.eup %4692  ;;  %4700 = vtanh.f32 %v2079_v30  ;;  %v9681_v30 = vld [vmem:[#allocation65_spill] sm:$0xff] }
 0x5f5   :  { %v2067_v58 = vmul.f32 %v4693_v1, %v2061_v25 }
 0x5f7   :  { %v4448_v20 = vmul.f32 %v6753_v14, %v2067_v58 }
 0x5f9   :  { %4463 = vadd.xlane.f32.xlu1 %v4448_v20  ;;  %v9667_v20 = vld [vmem:[#allocation80_spill] sm:$0xff] }
 0x5fd   :  { %v4695_v37 = vpop.eup %4694 }
 0x5fe   :  { %v2083_v50 = vadd.f32 1.0, %v4695_v37  ;;  %v9682_v37 = vld [vmem:[#allocation66_spill] sm:$0xff] }
 0x5ff   :  { %v4697_v42 = vpop.eup %4696 }
 0x600   :  { %v2086_v63 = vmul.f32 0.5, %v2083_v50  ;;  %v2084_v10 = vadd.f32 1.0, %v4697_v42  ;;  %v4699_v18 = vpop.eup %4698  ;;  %v9683_v50 = vld [vmem:[#allocation67_spill] sm:$0xff]  ;;  %v9684_v42 = vld [vmem:[#allocation68_spill] sm:$0xff] }
 0x601   :  { %v4701_v39 = vpop.eup %4700 }
 0x602   :  { %v2087_v59 = vmul.f32 0.5, %v2084_v10  ;;  %v2091_v41 = vmul.f32 %v4699_v18, %v2086_v63  ;;  %v2085_v25 = vadd.f32 1.0, %v4701_v39  ;;  %v9685_v63 = vld [vmem:[#allocation69_spill] sm:$0xff]  ;;  %v9686_v10 = vld [vmem:[#allocation70_spill] sm:$0xff]  ;;  %v9688_v18 = vld [vmem:[#allocation72_spill] sm:$0xff] }
 0x603   :  { %v9691_v39 = vld [vmem:[#allocation84_spill] sm:$0xff] }
 0x604   :  { %v2090_v51 = vmul.f32 %v2087_v59, %v6757_v13  ;;  %v2088_v5 = vmul.f32 0.5, %v2085_v25  ;;  %v9658_v13 = vld [vmem:[#allocation42_spill] sm:$0xff]  ;;  %v9687_v59 = vld [vmem:[#allocation71_spill] sm:$0xff]  ;;  %v9692_v25 = vld [vmem:[#allocation85_spill] sm:$0xff] }
 0x606   :  { %v6972_v1 = vadd.f32 %v2091_v41, %v2090_v51  ;;  %v9689_v51 = vld [vmem:[#allocation82_spill] sm:$0xff]  ;;  %v9690_v41 = vld [vmem:[#allocation83_spill] sm:$0xff] }
 0x608   :  { %4702 = vtanh.f32 %v6972_v1 }
 0x615   :  { %v4703_v52 = vpop.eup %4702 }
 0x616   :  { %v2094_v60 = vmul.f32 %v4703_v52, %v2088_v5  ;;  %v9693_v5 = vld [vmem:[#allocation86_spill] sm:$0xff]  ;;  %v9694_v52 = vld [vmem:[#allocation87_spill] sm:$0xff] }
 0x618   :  { %v6975_v54 = vadd.f32 %v2094_v60, %v2067_v58  ;;  %v9666_v58 = vld [vmem:[#allocation78_spill] sm:$0xff]  ;;  %v9695_v60 = vld [vmem:[#allocation88_spill] sm:$0xff] }
 0x61a   :  { %2161 = vmatmul.mubr.f32.vlgmr.msra.gmra.mxu0 %v6975_v54  ;;  %2232 = vmatmul.mubr.f32.vlgmr.msra.gmra.mxu1 %v6975_v54 }
 0x61b   :  { %2239 = vmatpush1.msra.mxu0 %v6476_v27  ;;  %2310 = vmatpush1.msra.mxu1 %v6479_v49  ;;  %v9644_v27 = vld [vmem:[#allocation73_spill] sm:$0xff]  ;;  %v9645_v49 = vld [vmem:[#allocation74_spill] sm:$0xff] }
 0x61c   :  { %2240 = vmatprep.subr.mxu0 %v6482_v47  ;;  %2311 = vmatprep.subr.mxu1 %v6485_v9  ;;  %v9646_v47 = vld [vmem:[#allocation75_spill] sm:$0xff]  ;;  %v9647_v9 = vld [vmem:[#allocation76_spill] sm:$0xff] }
 0x61d   :  { %2241 = vmatpush1.msra.mxu0 %v6488_v38  ;;  %2312 = vmatpush1.msra.mxu1 %v6491_v36  ;;  %v9648_v38 = vld [vmem:[#allocation77_spill] sm:$0xff]  ;;  %v9649_v36 = vld [vmem:[#allocation79_spill] sm:$0xff] }
 0x61e   :  { %2242 = vmatprep.subr.mxu0 %v6494_v35  ;;  %2313 = vmatprep.subr.mxu1 %v6497_v46  ;;  %v9650_v35 = vld [vmem:[#allocation81_spill] sm:$0xff]  ;;  %v9651_v46 = vld [vmem:[#allocation91_spill] sm:$0xff] }
 0x61f   :  { %2243 = vmatpush1.msra.mxu0 %v6500_v44  ;;  %2314 = vmatpush1.msra.mxu1 %v6503_v11  ;;  %v9652_v44 = vld [vmem:[#allocation92_spill] sm:$0xff]  ;;  %v9653_v11 = vld [vmem:[#allocation93_spill] sm:$0xff] }
 0x620   :  { %2244 = vmatprep.subr.mxu0 %v6506_v6  ;;  %2315 = vmatprep.subr.mxu1 %v6509_v34  ;;  %v9654_v6 = vld [vmem:[#allocation94_spill] sm:$0xff]  ;;  %v9655_v34 = vld [vmem:[#allocation95_spill] sm:$0xff] }
 0x621   :  { %2245 = vmatpush1.msra.mxu0 %v6512_v48  ;;  %2316 = vmatpush1.msra.mxu1 %v6515_v17  ;;  %v9656_v48 = vld [vmem:[#allocation15_spill] sm:$0xff]  ;;  %v9657_v17 = vld [vmem:[#allocation16_spill] sm:$0xff] }
 0x622   :  { %2246 = vmatprep.subr.mxu0 %v9547_v40  ;;  %2317 = vmatprep.subr.mxu1 %v9548_v28  ;;  %v9659_v40 = vld [vmem:[#allocation43_spill] sm:$0xff]  ;;  %v9660_v28 = vld [vmem:[#allocation44_spill] sm:$0xff] }
 0x623   :  { %2247 = vmatpush1.msra.mxu0 %v9549_v19  ;;  %2318 = vmatpush1.msra.mxu1 %v9550_v26  ;;  %v9661_v19 = vld [vmem:[#allocation45_spill] sm:$0xff]  ;;  %v9662_v26 = vld [vmem:[#allocation46_spill] sm:$0xff] }
 0x624   :  { %2248 = vmatprep.subr.mxu0 %v9551_v57  ;;  %2319 = vmatprep.subr.mxu1 %v9552_v2  ;;  %v9663_v57 = vld [vmem:[#allocation47_spill] sm:$0xff]  ;;  %v9664_v2 = vld [vmem:[#allocation48_spill] sm:$0xff] }
 0x625   :  { %2249 = vmatpush1.msra.mxu0 %v9553_v61  ;;  %2320 = vmatpush1.msra.mxu1 %v9644_v27  ;;  %v9665_v61 = vld [vmem:[#allocation49_spill] sm:$0xff]  ;;  %v9697_v27 = vld [vmem:[#allocation90_spill] sm:$0xff] }
 0x626   :  { %2250 = vmatprep.subr.mxu0 %v9645_v49  ;;  %2321 = vmatprep.subr.mxu1 %v9646_v47  ;;  %v7073_v49 = vld [vmem:[#allocation4 + $0x208] sm:$0xff]  ;;  %v7076_v47 = vld [vmem:[#allocation4 + $0x218] sm:$0xff] }
 0x627   :  { %2251 = vmatpush1.msra.mxu0 %v9647_v9  ;;  %2322 = vmatpush1.msra.mxu1 %v9648_v38  ;;  %v7079_v9 = vld [vmem:[#allocation4 + $0x200] sm:$0xff]  ;;  %v7082_v38 = vld [vmem:[#allocation4 + $0x210] sm:$0xff] }
 0x628   :  { %2252 = vmatprep.subr.mxu0 %v9649_v36  ;;  %2323 = vmatprep.subr.mxu1 %v9650_v35  ;;  %v7085_v36 = vld [vmem:[#allocation4 + $0x1c8] sm:$0xff]  ;;  %v7088_v35 = vld [vmem:[#allocation4 + $0x1d8] sm:$0xff] }
 0x629   :  { %2253 = vmatpush1.msra.mxu0 %v9651_v46  ;;  %2324 = vmatpush1.msra.mxu1 %v9652_v44  ;;  %v7091_v46 = vld [vmem:[#allocation4 + $0x1c0] sm:$0xff]  ;;  %v7094_v44 = vld [vmem:[#allocation4 + $0x1d0] sm:$0xff] }
 0x62a   :  { %2254 = vmatprep.subr.mxu0 %v9653_v11  ;;  %2325 = vmatprep.subr.mxu1 %v9654_v6  ;;  %v7097_v11 = vld [vmem:[#allocation4 + $0x188] sm:$0xff]  ;;  %v7100_v6 = vld [vmem:[#allocation4 + $0x198] sm:$0xff] }
 0x62b   :  { %2255 = vmatpush1.msra.mxu0 %v9655_v34  ;;  %2326 = vmatpush1.msra.mxu1 %v9656_v48  ;;  %9698 = vst [vmem:[#allocation27_spill] sm:$0xff] %v7097_v11  ;;  %9699 = vst [vmem:[#allocation28_spill] sm:$0xff] %v7100_v6  ;;  %v7103_v34 = vld [vmem:[#allocation4 + $0x180] sm:$0xff]  ;;  %v7106_v48 = vld [vmem:[#allocation4 + $0x190] sm:$0xff] }
 0x62c   :  { %2256 = vmatprep.subr.mxu0 %v9657_v17  ;;  %2327 = vmatprep.subr.mxu1 %v9658_v13  ;;  %9700 = vst [vmem:[#allocation29_spill] sm:$0xff] %v7103_v34  ;;  %9701 = vst [vmem:[#allocation30_spill] sm:$0xff] %v7106_v48  ;;  %v7109_v17 = vld [vmem:[#allocation4 + $0x148] sm:$0xff]  ;;  %v7112_v13 = vld [vmem:[#allocation4 + $0x158] sm:$0xff] }
 0x62d   :  { %2257 = vmatpush1.msra.mxu0 %v9659_v40  ;;  %2328 = vmatpush1.msra.mxu1 %v9660_v28  ;;  %9702 = vst [vmem:[#allocation31_spill] sm:$0xff] %v7109_v17  ;;  %9703 = vst [vmem:[#allocation14_spill] sm:$0xff] %v7112_v13  ;;  %v7115_v40 = vld [vmem:[#allocation4 + $0x140] sm:$0xff]  ;;  %v7118_v28 = vld [vmem:[#allocation4 + $0x150] sm:$0xff] }
 0x62e   :  { %2258 = vmatprep.subr.mxu0 %v9661_v19  ;;  %2329 = vmatprep.subr.mxu1 %v9662_v26  ;;  %9704 = vst [vmem:[#allocation50_spill] sm:$0xff] %v7115_v40  ;;  %9705 = vst [vmem:[#allocation51_spill] sm:$0xff] %v7118_v28  ;;  %v7121_v19 = vld [vmem:[#allocation4 + $0x108] sm:$0xff]  ;;  %v7124_v26 = vld [vmem:[#allocation4 + $0x118] sm:$0xff] }
 0x62f   :  { %2259 = vmatpush1.msra.mxu0 %v9663_v57  ;;  %2330 = vmatpush1.msra.mxu1 %v9664_v2  ;;  %9706 = vst [vmem:[#allocation52_spill] sm:$0xff] %v7121_v19  ;;  %9707 = vst [vmem:[#allocation53_spill] sm:$0xff] %v7124_v26  ;;  %v7127_v57 = vld [vmem:[#allocation4 + $0x100] sm:$0xff]  ;;  %v7130_v2 = vld [vmem:[#allocation4 + $0x110] sm:$0xff] }
 0x630   :  { %2260 = vmatprep.subr.mxu0 %v9665_v61  ;;  %2331 = vmatprep.subr.mxu1 %v9666_v58  ;;  %9708 = vst [vmem:[#allocation54_spill] sm:$0xff] %v7127_v57  ;;  %9709 = vst [vmem:[#allocation55_spill] sm:$0xff] %v7130_v2  ;;  %v7133_v61 = vld [vmem:[#allocation4 + $0xc8] sm:$0xff]  ;;  %v7136_v58 = vld [vmem:[#allocation4 + $0xd8] sm:$0xff] }
 0x631   :  { %2261 = vmatpush1.msra.mxu0 %v9667_v20  ;;  %2332 = vmatpush1.msra.mxu1 %v9578_v29  ;;  %v9669_v29 = vld [vmem:[#allocation40_spill] sm:$0xff]  ;;  %9710 = vst [vmem:[#allocation56_spill] sm:$0xff] %v7133_v61  ;;  %9711 = vst [vmem:[#allocation57_spill] sm:$0xff] %v7136_v58  ;;  %v7139_v20 = vld [vmem:[#allocation4 + $0xc0] sm:$0xff] }
 0x632   :  { %2262 = vmatprep.subr.mxu0 %v9579_v56  ;;  %2333 = vmatprep.subr.mxu1 %v9580_v31  ;;  %v9670_v56 = vld [vmem:[#allocation38_spill] sm:$0xff]  ;;  %v9671_v31 = vld [vmem:[#allocation97_spill] sm:$0xff]  ;;  %9712 = vst [vmem:[#allocation58_spill] sm:$0xff] %v7139_v20 }
 0x633   :  { %2263 = vmatpush1.msra.mxu0 %v9581_v8  ;;  %2334 = vmatpush1.msra.mxu1 %v9582_v12  ;;  %v9672_v8 = vld [vmem:[#allocation98_spill] sm:$0xff]  ;;  %v9675_v12 = vld [vmem:[#allocation21_spill] sm:$0xff] }
 0x634   :  { %2264 = vmatprep.subr.mxu0 %v9583_v4  ;;  %2335 = vmatprep.subr.mxu1 %v9584_v62  ;;  %v9677_v4 = vld [vmem:[#allocation23_spill] sm:$0xff]  ;;  %v9678_v62 = vld [vmem:[#allocation24_spill] sm:$0xff] }
 0x635   :  { %2265 = vmatpush1.msra.mxu0 %v9585_v3  ;;  %2336 = vmatpush1.msra.mxu1 %v9586_v33  ;;  %v9679_v3 = vld [vmem:[#allocation25_spill] sm:$0xff]  ;;  %v9680_v33 = vld [vmem:[#allocation26_spill] sm:$0xff] }
 0x636   :  { %2266 = vmatprep.subr.mxu0 %v9587_v15  ;;  %2337 = vmatprep.subr.mxu1 %v9668_v43  ;;  %v9673_v15 = vld [vmem:[#allocation19_spill] sm:$0xff]  ;;  %v7142_v43 = vld [vmem:[#allocation4 + $0xd0] sm:$0xff] }
 0x637   :  { %2267 = vmatpush1.msra.mxu0 %v6644_v24  ;;  %2338 = vmatpush1.msra.mxu1 %v9669_v29  ;;  %v9674_v24 = vld [vmem:[#allocation20_spill] sm:$0xff]  ;;  %9713 = vst [vmem:[#allocation59_spill] sm:$0xff] %v7142_v43  ;;  %v7145_v29 = vld [vmem:[#allocation4 + $0x88] sm:$0xff] }
 0x638   :  { %2268 = vmatprep.subr.mxu0 %v6650_v55  ;;  %2339 = vmatprep.subr.mxu1 %v9670_v56  ;;  %v9676_v55 = vld [vmem:[#allocation22_spill] sm:$0xff]  ;;  %9714 = vst [vmem:[#allocation60_spill] sm:$0xff] %v7145_v29  ;;  %v7148_v56 = vld [vmem:[#allocation4 + $0x98] sm:$0xff] }
 0x639   :  { %2269 = vmatpush1.msra.mxu0 %v9671_v31  ;;  %2302 = vmatprep.mubr.f32.mxu0 %v9237_v7  ;;  %9715 = vst [vmem:[#allocation61_spill] sm:$0xff] %v7148_v56  ;;  %v7151_v31 = vld [vmem:[#allocation4 + $0x80] sm:$0xff] }
 0x63a   :  { %2340 = vmatpush1.msra.mxu1 %v9672_v8  ;;  %2373 = vmatprep.mubr.f32.mxu1 %v9237_v7  ;;  %9716 = vst [vmem:[#allocation62_spill] sm:$0xff] %v7151_v31  ;;  %v7154_v8 = vld [vmem:[#allocation4 + $0x90] sm:$0xff] }
 0x63b   :  { %2303 = vmatmul.mubr.f32.vlgmr.msra.gmra.mxu0 %v6975_v54  ;;  %2374 = vmatmul.mubr.f32.vlgmr.msra.gmra.mxu1 %v6975_v54  ;;  %v9696_v54 = vld [vmem:[#allocation89_spill] sm:$0xff]  ;;  %9717 = vst [vmem:[#allocation63_spill] sm:$0xff] %v7154_v8 }
 0x63c   :  { %2430 = vmatprep.subr.mxu0 %v9673_v15  ;;  %2501 = vmatprep.subr.mxu1 %v9674_v24 }
 0x63d   :  { %2431 = vmatpush1.msra.mxu0 %v9675_v12  ;;  %2502 = vmatpush1.msra.mxu1 %v9676_v55 }
 0x63e   :  { %2432 = vmatprep.subr.mxu0 %v9677_v4  ;;  %2503 = vmatprep.subr.mxu1 %v9678_v62 }
 0x63f   :  { %2433 = vmatpush1.msra.mxu0 %v9679_v3  ;;  %2504 = vmatpush1.msra.mxu1 %v9680_v33 }
 0x640   :  { %2434 = vmatprep.subr.mxu0 %v9681_v30  ;;  %2505 = vmatprep.subr.mxu1 %v9682_v37 }
 0x641   :  { %2435 = vmatpush1.msra.mxu0 %v9683_v50  ;;  %2506 = vmatpush1.msra.mxu1 %v9684_v42 }
 0x642   :  { %2436 = vmatprep.subr.mxu0 %v9685_v63  ;;  %2507 = vmatprep.subr.mxu1 %v9686_v10 }
 0x643   :  { %2437 = vmatpush1.msra.mxu0 %v9687_v59  ;;  %2508 = vmatpush1.msra.mxu1 %v9688_v18 }
 0x644   :  { %2438 = vmatprep.subr.mxu0 %v9689_v51  ;;  %2509 = vmatprep.subr.mxu1 %v9690_v41 }
 0x645   :  { %2439 = vmatpush1.msra.mxu0 %v9691_v39  ;;  %2510 = vmatpush1.msra.mxu1 %v9692_v25 }
 0x646   :  { %2440 = vmatprep.subr.mxu0 %v9693_v5  ;;  %2511 = vmatprep.subr.mxu1 %v9694_v52 }
 0x647   :  { %2441 = vmatpush1.msra.mxu0 %v6896_v22  ;;  %2512 = vmatpush1.msra.mxu1 %v6899_v23 }
 0x648   :  { %2442 = vmatprep.subr.mxu0 %v6902_v21  ;;  %2513 = vmatprep.subr.mxu1 %v9695_v60 }
 0x649   :  { %2443 = vmatpush1.msra.mxu0 %v9696_v54  ;;  %2514 = vmatpush1.msra.mxu1 %v9697_v27 }
 0x64a   :  { %2444 = vmatprep.subr.mxu0 %v7073_v49  ;;  %2515 = vmatprep.subr.mxu1 %v7076_v47 }
 0x64b   :  { %2445 = vmatpush1.msra.mxu0 %v7079_v9  ;;  %2516 = vmatpush1.msra.mxu1 %v7082_v38 }
 0x64c   :  { %2446 = vmatprep.subr.mxu0 %v7085_v36  ;;  %2517 = vmatprep.subr.mxu1 %v7088_v35 }
 0x64d   :  { %2447 = vmatpush1.msra.mxu0 %v7091_v46  ;;  %2518 = vmatpush1.msra.mxu1 %v7094_v44 }
 0x64e   :  { %2448 = vmatprep.subr.mxu0 %v7097_v11  ;;  %2519 = vmatprep.subr.mxu1 %v7100_v6  ;;  %v109_v11 = vpop.permute.xlu0 %108 }
 0x64f   :  { %2449 = vmatpush1.msra.mxu0 %v7103_v34  ;;  %2520 = vmatpush1.msra.mxu1 %v7106_v48 }
 0x650   :  { %2450 = vmatprep.subr.mxu0 %v7109_v17  ;;  %2521 = vmatprep.subr.mxu1 %v7112_v13 }
 0x651   :  { %2451 = vmatpush1.msra.mxu0 %v7115_v40  ;;  %2522 = vmatpush1.msra.mxu1 %v7118_v28  ;;  %v9730_v28 = vld [vmem:[#allocation12_spill] sm:$0xff] }
 0x652   :  { %2452 = vmatprep.subr.mxu0 %v7121_v19  ;;  %2523 = vmatprep.subr.mxu1 %v7124_v26 }
 0x653   :  { %2453 = vmatpush1.msra.mxu0 %v7127_v57  ;;  %2524 = vmatpush1.msra.mxu1 %v7130_v2  ;;  %v9729_v57 = vld [vmem:[#allocation11_spill] sm:$0xff] }
 0x654   :  { %2454 = vmatprep.subr.mxu0 %v7133_v61  ;;  %2525 = vmatprep.subr.mxu1 %v7136_v58  ;;  %v9728_v58 = vld [vmem:[#allocation10_spill] sm:$0xff] }
 0x655   :  { %2455 = vmatpush1.msra.mxu0 %v7139_v20  ;;  %2526 = vmatpush1.msra.mxu1 %v7142_v43  ;;  %v7157_v20 = vld [vmem:[#allocation4 + $0x48] sm:$0xff]  ;;  %v7160_v43 = vld [vmem:[#allocation4 + $0x58] sm:$0xff] }
 0x656   :  { %2456 = vmatprep.subr.mxu0 %v7145_v29  ;;  %2527 = vmatprep.subr.mxu1 %v7148_v56  ;;  %9718 = vst [vmem:[#allocation64_spill] sm:$0xff] %v7157_v20  ;;  %9719 = vst [vmem:[#allocation18_spill] sm:$0xff] %v7160_v43  ;;  %v7163_v29 = vld [vmem:[#allocation4 + $0x40] sm:$0xff]  ;;  %v7166_v56 = vld [vmem:[#allocation4 + $0x50] sm:$0xff] }
 0x657   :  { %2457 = vmatpush1.msra.mxu0 %v7151_v31  ;;  %2528 = vmatpush1.msra.mxu1 %v7154_v8  ;;  %9720 = vst [vmem:[#allocation73_spill] sm:$0xff] %v7163_v29  ;;  %9721 = vst [vmem:[#allocation74_spill] sm:$0xff] %v7166_v56  ;;  %v7169_v31 = vld [vmem:[#allocation4 + $0x8] sm:$0xff]  ;;  %v7172_v8 = vld [vmem:[#allocation4 + $0x18] sm:$0xff] }
 0x658   :  { %2458 = vmatprep.subr.mxu0 %v7157_v20  ;;  %2529 = vmatprep.subr.mxu1 %v7160_v43  ;;  %9722 = vst [vmem:[#allocation75_spill] sm:$0xff] %v7169_v31  ;;  %9723 = vst [vmem:[#allocation76_spill] sm:$0xff] %v7172_v8  ;;  %v7175_v20 = vld [vmem:[#allocation4] sm:$0xff]  ;;  %v7178_v43 = vld [vmem:[#allocation4 + $0x10] sm:$0xff] }
 0x659   :  { %2459 = vmatpush1.msra.mxu0 %v7163_v29  ;;  %2530 = vmatpush1.msra.mxu1 %v7166_v56  ;;  %9724 = vst [vmem:[#allocation77_spill] sm:$0xff] %v7175_v20  ;;  %9725 = vst [vmem:[#allocation79_spill] sm:$0xff] %v7178_v43  ;;  %v7183_v56 = vld [vmem:[#allocation4 + $0x3e8] sm:$0xff] }
 0x65a   :  { %2460 = vmatprep.subr.mxu0 %v7169_v31  ;;  %2531 = vmatprep.subr.mxu1 %v7172_v8  ;;  %9726 = vst [vmem:[#allocation81_spill] sm:$0xff] %v7183_v56  ;;  %v7186_v31 = vld [vmem:[#allocation4 + $0x3f8] sm:$0xff] }
 0x65b   :  { %2461 = vmatpush1.msra.mxu0 %v7175_v20  ;;  %2532 = vmatpush1.msra.mxu1 %v7178_v43  ;;  %9727 = vst [vmem:[#allocation91_spill] sm:$0xff] %v7186_v31 }
 0x65c   :  { %2494 = vmatprep.mubr.f32.mxu0 %v9237_v7  ;;  %2565 = vmatprep.mubr.f32.mxu1 %v9237_v7 }
 0x65d   :  { %2572 = vmatprep.subr.mxu0 %v7183_v56  ;;  %2643 = vmatprep.subr.mxu1 %v7186_v31  ;;  %v9731_v56 = vld [vmem:[#allocation13_spill] sm:$0xff] }
 0x6da   :  { %v2162_v8 = vpop.f32.mrf.mxu0  ;;  %v2233_v29 = vpop.f32.mrf.mxu1 }
 0x6db   :  { %v2380_v20 = vadd.f32 %v2162_v8, %v9728_v58  ;;  %v2382_v13 = vadd.f32 %v2233_v29, %v9731_v56  ;;  %v9736_v29 = vld [vmem:[#allocation39_spill] sm:$0xff] }
 0x6dc   :  { %v2164_v61 = vpop.f32.mrf.mxu0  ;;  %v2235_v26 = vpop.f32.mrf.mxu1 }
 0x6dd   :  { %v2384_v2 = vmul.f32 0.5, %v2380_v20  ;;  %v2381_v43 = vadd.f32 %v2164_v61, %v9729_v57  ;;  %v2383_v40 = vadd.f32 %v2235_v26, %v9730_v28  ;;  %v2386_v17 = vmul.f32 0.5, %v2382_v13  ;;  %v9732_v61 = vld [vmem:[#allocation96_spill] sm:$0xff] }
 0x6de   :  { %v164_v28 = vmul.f32 %v9461_v45, %v109_v11 }
 0x6df   :  { %4704 = vtanh.f32 %v2384_v2  ;;  %v2385_v19 = vmul.f32 0.5, %v2381_v43 }
 0x6e1   :  { %4706 = vtanh.f32 %v2385_v19  ;;  %v9734_v19 = vld [vmem:[#allocation36_spill] sm:$0xff] }
 0x6e2   :  { %4708 = vtanh.f32 %v2383_v40  ;;  %v161_v26 = vmul.f32 %v9734_v19, %v109_v11  ;;  %v9735_v40 = vld [vmem:[#allocation37_spill] sm:$0xff]  ;;  %v217_v19 = vadd.f32 %v5692_v53, %v164_v28 }
 0x6e3   :  { %4710 = vtanh.f32 %v2386_v17  ;;  %v162_v13 = vmul.f32 %v9735_v40, %v109_v11  ;;  %v163_v40 = vmul.f32 %v9273_v32, %v109_v11 }
 0x6ec   :  { %v4705_v48 = vpop.eup %4704 }
 0x6ed   :  { %v2390_v31 = vadd.f32 1.0, %v4705_v48  ;;  %v214_v48 = vadd.f32 %v9736_v29, %v161_v26 }
 0x6ee   :  { %v4707_v34 = vpop.eup %4706 }
 0x6ef   :  { %v2393_v6 = vmul.f32 0.5, %v2390_v31  ;;  %v2391_v8 = vadd.f32 1.0, %v4707_v34  ;;  %v4709_v20 = vpop.eup %4708 }
 0x6f0   :  { %v4711_v17 = vpop.eup %4710 }
 0x6f1   :  { %v2394_v58 = vmul.f32 0.5, %v2391_v8  ;;  %v2398_v2 = vmul.f32 %v4709_v20, %v2393_v6  ;;  %v215_v8 = vadd.f32 %v9460_v16, %v162_v13  ;;  %v2392_v20 = vadd.f32 1.0, %v4711_v17 }
 0x6f2   :  { %v216_v13 = vadd.f32 %v5702_v0, %v163_v40 }
 0x6f3   :  { %v2397_v57 = vmul.f32 %v2394_v58, %v9732_v61  ;;  %v2395_v29 = vmul.f32 0.5, %v2392_v20 }
 0x6f5   :  { %v7194_v43 = vadd.f32 %v2398_v2, %v2397_v57 }
 0x6f7   :  { %9733 = vst [vmem:[#allocation92_spill] sm:$0xff] %v7194_v43  ;;  %4712 = vtanh.f32 %v7194_v43 }
 0x6fb   :  { %v2304_v56 = vpop.f32.mrf.mxu0  ;;  %v2375_v31 = vpop.f32.mrf.mxu1 }
 0x6fc   :  { %v2407_v34 = vadd.f32 %v2304_v56, %v214_v48 }
 0x6fd   :  { %v2306_v58 = vpop.f32.mrf.mxu0  ;;  %v2377_v61 = vpop.f32.mrf.mxu1 }
 0x6fe   :  { %v2411_v6 = vmul.f32 0.5, %v2407_v34  ;;  %v2408_v57 = vadd.f32 %v2306_v58, %v215_v8  ;;  %v2410_v26 = vadd.f32 %v2377_v61, %v217_v19  ;;  %v2409_v34 = vadd.f32 %v2375_v31, %v216_v13  ;;  %v7214_v13 = vld [vmem:[#allocation4 + $0x3e0] sm:$0xff] }
 0x700   :  { %4714 = vtanh.f32 %v2411_v6  ;;  %v2412_v2 = vmul.f32 0.5, %v2408_v57  ;;  %v2413_v17 = vmul.f32 0.5, %v2409_v34  ;;  %v7223_v34 = vld [vmem:[#allocation4 + $0x3b8] sm:$0xff] }
 0x702   :  { %4716 = vtanh.f32 %v2412_v2 }
 0x703   :  { %4718 = vtanh.f32 %v2410_v26 }
 0x704   :  { %v4713_v43 = vpop.eup %4712  ;;  %4720 = vtanh.f32 %v2413_v17  ;;  %v7229_v17 = vld [vmem:[#allocation4 + $0x3b0] sm:$0xff] }
 0x705   :  { %v2401_v56 = vmul.f32 %v4713_v43, %v2395_v29 }
 0x707   :  { %v4449_v48 = vmul.f32 %v6753_v14, %v2401_v56 }
 0x709   :  { %4465 = vadd.xlane.f32.xlu0 %v4449_v48  ;;  %v7220_v48 = vld [vmem:[#allocation4 + $0x3a8] sm:$0xff] }
 0x70d   :  { %v4715_v8 = vpop.eup %4714 }
 0x70e   :  { %v2417_v58 = vadd.f32 1.0, %v4715_v8  ;;  %v7232_v8 = vld [vmem:[#allocation4 + $0x368] sm:$0xff] }
 0x70f   :  { %v4717_v6 = vpop.eup %4716 }
 0x710   :  { %v2420_v57 = vmul.f32 0.5, %v2417_v58  ;;  %v2418_v28 = vadd.f32 1.0, %v4717_v6  ;;  %v4719_v2 = vpop.eup %4718  ;;  %v7235_v58 = vld [vmem:[#allocation4 + $0x378] sm:$0xff]  ;;  %v7238_v6 = vld [vmem:[#allocation4 + $0x360] sm:$0xff] }
 0x711   :  { %v4721_v40 = vpop.eup %4720 }
 0x712   :  { %v2421_v11 = vmul.f32 0.5, %v2418_v28  ;;  %v2425_v20 = vmul.f32 %v4719_v2, %v2420_v57  ;;  %v2419_v14 = vadd.f32 1.0, %v4721_v40  ;;  %v7241_v57 = vld [vmem:[#allocation4 + $0x370] sm:$0xff]  ;;  %v7244_v28 = vld [vmem:[#allocation4 + $0x328] sm:$0xff]  ;;  %v7250_v2 = vld [vmem:[#allocation4 + $0x320] sm:$0xff] }
 0x713   :  { %v7259_v40 = vld [vmem:[#allocation4 + $0x2f8] sm:$0xff] }
 0x714   :  { %v2424_v19 = vmul.f32 %v2421_v11, %v6972_v1  ;;  %v2422_v29 = vmul.f32 0.5, %v2419_v14  ;;  %v7217_v1 = vld [vmem:[#allocation4 + $0x3f0] sm:$0xff]  ;;  %v7247_v11 = vld [vmem:[#allocation4 + $0x338] sm:$0xff]  ;;  %9738 = vst [vmem:[#allocation94_spill] sm:$0xff] %v7259_v40  ;;  %v7262_v14 = vld [vmem:[#allocation4 + $0x2e0] sm:$0xff] }
 0x715   :  { %9739 = vst [vmem:[#allocation95_spill] sm:$0xff] %v7262_v14 }
 0x716   :  { %v7207_v43 = vadd.f32 %v2425_v20, %v2424_v19  ;;  %v7253_v19 = vld [vmem:[#allocation4 + $0x330] sm:$0xff]  ;;  %v7256_v20 = vld [vmem:[#allocation4 + $0x2e8] sm:$0xff] }
 0x717   :  { %9737 = vst [vmem:[#allocation93_spill] sm:$0xff] %v7256_v20 }
 0x718   :  { %4722 = vtanh.f32 %v7207_v43 }
 0x725   :  { %v4723_v31 = vpop.eup %4722 }
 0x726   :  { %v2428_v61 = vmul.f32 %v4723_v31, %v2422_v29  ;;  %v7265_v29 = vld [vmem:[#allocation4 + $0x2f0] sm:$0xff]  ;;  %v7268_v31 = vld [vmem:[#allocation4 + $0x2a8] sm:$0xff] }
 0x727   :  { %9740 = vst [vmem:[#allocation15_spill] sm:$0xff] %v7265_v29  ;;  %9741 = vst [vmem:[#allocation16_spill] sm:$0xff] %v7268_v31 }
 0x728   :  { %v7210_v26 = vadd.f32 %v2428_v61, %v2401_v56  ;;  %v7226_v56 = vld [vmem:[#allocation4 + $0x3a0] sm:$0xff]  ;;  %v7271_v61 = vld [vmem:[#allocation4 + $0x2b8] sm:$0xff] }
 0x729   :  { %9742 = vst [vmem:[#allocation42_spill] sm:$0xff] %v7271_v61 }
 0x72a   :  { %2495 = vmatmul.mubr.f32.vlgmr.msra.gmra.mxu0 %v7210_v26  ;;  %2566 = vmatmul.mubr.f32.vlgmr.msra.gmra.mxu1 %v7210_v26 }
 0x72b   :  { %2573 = vmatpush1.msra.mxu0 %v7214_v13  ;;  %2644 = vmatpush1.msra.mxu1 %v7217_v1 }
 0x72c   :  { %2574 = vmatprep.subr.mxu0 %v7220_v48  ;;  %2645 = vmatprep.subr.mxu1 %v7223_v34 }
 0x72d   :  { %2575 = vmatpush1.msra.mxu0 %v7226_v56  ;;  %2646 = vmatpush1.msra.mxu1 %v7229_v17 }
 0x72e   :  { %2576 = vmatprep.subr.mxu0 %v7232_v8  ;;  %2647 = vmatprep.subr.mxu1 %v7235_v58 }
 0x72f   :  { %2577 = vmatpush1.msra.mxu0 %v7238_v6  ;;  %2648 = vmatpush1.msra.mxu1 %v7241_v57 }
 0x730   :  { %2578 = vmatprep.subr.mxu0 %v7244_v28  ;;  %2649 = vmatprep.subr.mxu1 %v7247_v11 }
 0x731   :  { %2579 = vmatpush1.msra.mxu0 %v7250_v2  ;;  %2650 = vmatpush1.msra.mxu1 %v7253_v19 }
 0x732   :  { %2580 = vmatprep.subr.mxu0 %v7256_v20  ;;  %2651 = vmatprep.subr.mxu1 %v7259_v40  ;;  %v7274_v20 = vld [vmem:[#allocation4 + $0x2a0] sm:$0xff]  ;;  %v7277_v40 = vld [vmem:[#allocation4 + $0x2b0] sm:$0xff] }
 0x733   :  { %2581 = vmatpush1.msra.mxu0 %v7262_v14  ;;  %2652 = vmatpush1.msra.mxu1 %v7265_v29  ;;  %9743 = vst [vmem:[#allocation43_spill] sm:$0xff] %v7274_v20  ;;  %9744 = vst [vmem:[#allocation44_spill] sm:$0xff] %v7277_v40  ;;  %v7280_v14 = vld [vmem:[#allocation4 + $0x268] sm:$0xff]  ;;  %v7283_v29 = vld [vmem:[#allocation4 + $0x278] sm:$0xff] }
 0x734   :  { %2582 = vmatprep.subr.mxu0 %v7268_v31  ;;  %2653 = vmatprep.subr.mxu1 %v7271_v61  ;;  %9745 = vst [vmem:[#allocation45_spill] sm:$0xff] %v7280_v14  ;;  %9746 = vst [vmem:[#allocation46_spill] sm:$0xff] %v7283_v29  ;;  %v7286_v31 = vld [vmem:[#allocation4 + $0x260] sm:$0xff]  ;;  %v7289_v61 = vld [vmem:[#allocation4 + $0x270] sm:$0xff] }
 0x735   :  { %2583 = vmatpush1.msra.mxu0 %v7274_v20  ;;  %2654 = vmatpush1.msra.mxu1 %v7277_v40  ;;  %9747 = vst [vmem:[#allocation47_spill] sm:$0xff] %v7286_v31  ;;  %9748 = vst [vmem:[#allocation48_spill] sm:$0xff] %v7289_v61  ;;  %v7292_v20 = vld [vmem:[#allocation4 + $0x228] sm:$0xff]  ;;  %v7295_v40 = vld [vmem:[#allocation4 + $0x238] sm:$0xff] }
 0x736   :  { %2584 = vmatprep.subr.mxu0 %v7280_v14  ;;  %2655 = vmatprep.subr.mxu1 %v7283_v29  ;;  %9749 = vst [vmem:[#allocation49_spill] sm:$0xff] %v7292_v20  ;;  %9750 = vst [vmem:[#allocation78_spill] sm:$0xff] %v7295_v40  ;;  %v7298_v14 = vld [vmem:[#allocation4 + $0x220] sm:$0xff]  ;;  %v7301_v29 = vld [vmem:[#allocation4 + $0x230] sm:$0xff] }
 0x737   :  { %2585 = vmatpush1.msra.mxu0 %v7286_v31  ;;  %2656 = vmatpush1.msra.mxu1 %v7289_v61  ;;  %9751 = vst [vmem:[#allocation80_spill] sm:$0xff] %v7298_v14  ;;  %9752 = vst [vmem:[#allocation17_spill] sm:$0xff] %v7301_v29  ;;  %v7304_v31 = vld [vmem:[#allocation4 + $0x1e8] sm:$0xff]  ;;  %v7307_v61 = vld [vmem:[#allocation4 + $0x1f8] sm:$0xff] }
 0x738   :  { %2586 = vmatprep.subr.mxu0 %v7292_v20  ;;  %2657 = vmatprep.subr.mxu1 %v7295_v40  ;;  %9753 = vst [vmem:[#allocation40_spill] sm:$0xff] %v7304_v31  ;;  %9754 = vst [vmem:[#allocation38_spill] sm:$0xff] %v7307_v61  ;;  %v7310_v20 = vld [vmem:[#allocation4 + $0x1e0] sm:$0xff]  ;;  %v7313_v40 = vld [vmem:[#allocation4 + $0x1f0] sm:$0xff] }
 0x739   :  { %2587 = vmatpush1.msra.mxu0 %v7298_v14  ;;  %2658 = vmatpush1.msra.mxu1 %v7301_v29  ;;  %9755 = vst [vmem:[#allocation97_spill] sm:$0xff] %v7310_v20  ;;  %9756 = vst [vmem:[#allocation98_spill] sm:$0xff] %v7313_v40  ;;  %v7316_v14 = vld [vmem:[#allocation4 + $0x1a8] sm:$0xff]  ;;  %v7319_v29 = vld [vmem:[#allocation4 + $0x1b8] sm:$0xff] }
 0x73a   :  { %2588 = vmatprep.subr.mxu0 %v7304_v31  ;;  %2659 = vmatprep.subr.mxu1 %v7307_v61  ;;  %9757 = vst [vmem:[#allocation19_spill] sm:$0xff] %v7316_v14  ;;  %9758 = vst [vmem:[#allocation20_spill] sm:$0xff] %v7319_v29  ;;  %v7322_v31 = vld [vmem:[#allocation4 + $0x1a0] sm:$0xff]  ;;  %v7325_v61 = vld [vmem:[#allocation4 + $0x1b0] sm:$0xff] }
 0x73b   :  { %2589 = vmatpush1.msra.mxu0 %v7310_v20  ;;  %2660 = vmatpush1.msra.mxu1 %v7313_v40  ;;  %9759 = vst [vmem:[#allocation21_spill] sm:$0xff] %v7322_v31  ;;  %9760 = vst [vmem:[#allocation22_spill] sm:$0xff] %v7325_v61  ;;  %v7328_v20 = vld [vmem:[#allocation4 + $0x168] sm:$0xff]  ;;  %v7331_v40 = vld [vmem:[#allocation4 + $0x178] sm:$0xff] }
 0x73c   :  { %2590 = vmatprep.subr.mxu0 %v7316_v14  ;;  %2661 = vmatprep.subr.mxu1 %v7319_v29  ;;  %9761 = vst [vmem:[#allocation23_spill] sm:$0xff] %v7328_v20  ;;  %9762 = vst [vmem:[#allocation24_spill] sm:$0xff] %v7331_v40  ;;  %v7334_v14 = vld [vmem:[#allocation4 + $0x160] sm:$0xff]  ;;  %v7337_v29 = vld [vmem:[#allocation4 + $0x170] sm:$0xff] }
 0x73d   :  { %2591 = vmatpush1.msra.mxu0 %v7322_v31  ;;  %2662 = vmatpush1.msra.mxu1 %v7325_v61  ;;  %9763 = vst [vmem:[#allocation25_spill] sm:$0xff] %v7334_v14  ;;  %9764 = vst [vmem:[#allocation26_spill] sm:$0xff] %v7337_v29  ;;  %v7340_v31 = vld [vmem:[#allocation4 + $0x128] sm:$0xff]  ;;  %v7343_v61 = vld [vmem:[#allocation4 + $0x138] sm:$0xff] }
 0x73e   :  { %2592 = vmatprep.subr.mxu0 %v7328_v20  ;;  %2663 = vmatprep.subr.mxu1 %v7331_v40  ;;  %9765 = vst [vmem:[#allocation65_spill] sm:$0xff] %v7340_v31  ;;  %9766 = vst [vmem:[#allocation66_spill] sm:$0xff] %v7343_v61  ;;  %v7346_v20 = vld [vmem:[#allocation4 + $0x120] sm:$0xff]  ;;  %v7349_v40 = vld [vmem:[#allocation4 + $0x130] sm:$0xff] }
 0x73f   :  { %2593 = vmatpush1.msra.mxu0 %v7334_v14  ;;  %2664 = vmatpush1.msra.mxu1 %v7337_v29  ;;  %9767 = vst [vmem:[#allocation67_spill] sm:$0xff] %v7346_v20  ;;  %9768 = vst [vmem:[#allocation68_spill] sm:$0xff] %v7349_v40  ;;  %v7352_v14 = vld [vmem:[#allocation4 + $0xe8] sm:$0xff]  ;;  %v7355_v29 = vld [vmem:[#allocation4 + $0xf8] sm:$0xff] }
 0x740   :  { %2594 = vmatprep.subr.mxu0 %v7340_v31  ;;  %2665 = vmatprep.subr.mxu1 %v7343_v61  ;;  %9769 = vst [vmem:[#allocation69_spill] sm:$0xff] %v7352_v14  ;;  %9770 = vst [vmem:[#allocation70_spill] sm:$0xff] %v7355_v29  ;;  %v7358_v31 = vld [vmem:[#allocation4 + $0xe0] sm:$0xff]  ;;  %v7361_v61 = vld [vmem:[#allocation4 + $0xf0] sm:$0xff] }
 0x741   :  { %2595 = vmatpush1.msra.mxu0 %v7346_v20  ;;  %2666 = vmatpush1.msra.mxu1 %v7349_v40  ;;  %9771 = vst [vmem:[#allocation71_spill] sm:$0xff] %v7358_v31  ;;  %9772 = vst [vmem:[#allocation72_spill] sm:$0xff] %v7361_v61  ;;  %v7364_v20 = vld [vmem:[#allocation4 + $0xa8] sm:$0xff]  ;;  %v7367_v40 = vld [vmem:[#allocation4 + $0xb8] sm:$0xff] }
 0x742   :  { %2596 = vmatprep.subr.mxu0 %v7352_v14  ;;  %2667 = vmatprep.subr.mxu1 %v7355_v29  ;;  %9773 = vst [vmem:[#allocation82_spill] sm:$0xff] %v7364_v20  ;;  %9774 = vst [vmem:[#allocation83_spill] sm:$0xff] %v7367_v40  ;;  %v7370_v14 = vld [vmem:[#allocation4 + $0xa0] sm:$0xff]  ;;  %v7373_v29 = vld [vmem:[#allocation4 + $0xb0] sm:$0xff] }
 0x743   :  { %2597 = vmatpush1.msra.mxu0 %v7358_v31  ;;  %2668 = vmatpush1.msra.mxu1 %v7361_v61  ;;  %9775 = vst [vmem:[#allocation84_spill] sm:$0xff] %v7370_v14  ;;  %9776 = vst [vmem:[#allocation85_spill] sm:$0xff] %v7373_v29  ;;  %v7376_v31 = vld [vmem:[#allocation4 + $0x68] sm:$0xff]  ;;  %v7379_v61 = vld [vmem:[#allocation4 + $0x78] sm:$0xff] }
 0x744   :  { %2598 = vmatprep.subr.mxu0 %v7364_v20  ;;  %2669 = vmatprep.subr.mxu1 %v7367_v40  ;;  %9777 = vst [vmem:[#allocation86_spill] sm:$0xff] %v7376_v31  ;;  %9778 = vst [vmem:[#allocation87_spill] sm:$0xff] %v7379_v61  ;;  %v7382_v20 = vld [vmem:[#allocation4 + $0x60] sm:$0xff]  ;;  %v7385_v40 = vld [vmem:[#allocation4 + $0x70] sm:$0xff] }
 0x745   :  { %2599 = vmatpush1.msra.mxu0 %v7370_v14  ;;  %2670 = vmatpush1.msra.mxu1 %v7373_v29  ;;  %v7388_v14 = vld [vmem:[#allocation4 + $0x28] sm:$0xff]  ;;  %v7391_v29 = vld [vmem:[#allocation4 + $0x38] sm:$0xff] }
 0x746   :  { %2600 = vmatprep.subr.mxu0 %v7376_v31  ;;  %2671 = vmatprep.subr.mxu1 %v7379_v61  ;;  %v7394_v31 = vld [vmem:[#allocation4 + $0x20] sm:$0xff]  ;;  %v7398_v61 = vld [vmem:[#allocation4 + $0x30] sm:$0xff] }
 0x747   :  { %2601 = vmatpush1.msra.mxu0 %v7382_v20  ;;  %2672 = vmatpush1.msra.mxu1 %v7385_v40 }
 0x748   :  { %2602 = vmatprep.subr.mxu0 %v7388_v14  ;;  %2673 = vmatprep.subr.mxu1 %v7391_v29 }
 0x749   :  { %2603 = vmatpush1.msra.mxu0 %v7394_v31  ;;  %2636 = vmatprep.mubr.f32.mxu0 %v9237_v7 }
 0x74a   :  { %2674 = vmatpush1.msra.mxu1 %v7398_v61  ;;  %2707 = vmatprep.mubr.f32.mxu1 %v9237_v7 }
 0x74b   :  { %2637 = vmatmul.mubr.f32.vlgmr.msra.gmra.mxu0 %v7210_v26  ;;  %2708 = vmatmul.mubr.f32.vlgmr.msra.gmra.mxu1 %v7210_v26  ;;  %v9810_v26 = vld [vmem:[#allocation11_spill] sm:$0xff] }
 0x74c   :  { %2764 = vmatprep.subr.mxu0 %v9673_v15  ;;  %2835 = vmatprep.subr.mxu1 %v9674_v24  ;;  %v9782_v15 = vld [vmem:[#allocation30_spill] sm:$0xff]  ;;  %v9783_v24 = vld [vmem:[#allocation31_spill] sm:$0xff] }
 0x74d   :  { %2765 = vmatpush1.msra.mxu0 %v9675_v12  ;;  %2836 = vmatpush1.msra.mxu1 %v9676_v55  ;;  %v9784_v12 = vld [vmem:[#allocation14_spill] sm:$0xff] }
 0x74e   :  { %2766 = vmatprep.subr.mxu0 %v9677_v4  ;;  %2837 = vmatprep.subr.mxu1 %v9678_v62  ;;  %v9785_v55 = vld [vmem:[#allocation50_spill] sm:$0xff]  ;;  %v9786_v4 = vld [vmem:[#allocation51_spill] sm:$0xff]  ;;  %v9787_v62 = vld [vmem:[#allocation52_spill] sm:$0xff] }
 0x74f   :  { %2767 = vmatpush1.msra.mxu0 %v9679_v3  ;;  %2838 = vmatpush1.msra.mxu1 %v9680_v33  ;;  %v9788_v3 = vld [vmem:[#allocation53_spill] sm:$0xff]  ;;  %v9789_v33 = vld [vmem:[#allocation54_spill] sm:$0xff] }
 0x750   :  { %2768 = vmatprep.subr.mxu0 %v9681_v30  ;;  %2839 = vmatprep.subr.mxu1 %v9682_v37  ;;  %v9790_v30 = vld [vmem:[#allocation55_spill] sm:$0xff]  ;;  %v9791_v37 = vld [vmem:[#allocation56_spill] sm:$0xff] }
 0x751   :  { %2769 = vmatpush1.msra.mxu0 %v9683_v50  ;;  %2840 = vmatpush1.msra.mxu1 %v9684_v42  ;;  %v9792_v50 = vld [vmem:[#allocation57_spill] sm:$0xff]  ;;  %v9793_v42 = vld [vmem:[#allocation58_spill] sm:$0xff] }
 0x752   :  { %2770 = vmatprep.subr.mxu0 %v9685_v63  ;;  %2841 = vmatprep.subr.mxu1 %v9686_v10  ;;  %v9794_v63 = vld [vmem:[#allocation59_spill] sm:$0xff]  ;;  %v9795_v10 = vld [vmem:[#allocation60_spill] sm:$0xff] }
 0x753   :  { %2771 = vmatpush1.msra.mxu0 %v9687_v59  ;;  %2842 = vmatpush1.msra.mxu1 %v9688_v18  ;;  %v9796_v59 = vld [vmem:[#allocation61_spill] sm:$0xff]  ;;  %v9797_v18 = vld [vmem:[#allocation62_spill] sm:$0xff] }
 0x754   :  { %2772 = vmatprep.subr.mxu0 %v9689_v51  ;;  %2843 = vmatprep.subr.mxu1 %v9690_v41  ;;  %v9798_v51 = vld [vmem:[#allocation63_spill] sm:$0xff]  ;;  %v9799_v41 = vld [vmem:[#allocation64_spill] sm:$0xff] }
 0x755   :  { %2773 = vmatpush1.msra.mxu0 %v9691_v39  ;;  %2844 = vmatpush1.msra.mxu1 %v9692_v25  ;;  %v9800_v39 = vld [vmem:[#allocation18_spill] sm:$0xff]  ;;  %v9801_v25 = vld [vmem:[#allocation73_spill] sm:$0xff] }
 0x756   :  { %2774 = vmatprep.subr.mxu0 %v9693_v5  ;;  %2845 = vmatprep.subr.mxu1 %v9694_v52  ;;  %v9802_v5 = vld [vmem:[#allocation74_spill] sm:$0xff]  ;;  %v9803_v52 = vld [vmem:[#allocation75_spill] sm:$0xff] }
 0x757   :  { %2775 = vmatpush1.msra.mxu0 %v6896_v22  ;;  %2846 = vmatpush1.msra.mxu1 %v6899_v23  ;;  %v9779_v22 = vld [vmem:[#allocation27_spill] sm:$0xff]  ;;  %v9781_v23 = vld [vmem:[#allocation29_spill] sm:$0xff] }
 0x758   :  { %2776 = vmatprep.subr.mxu0 %v6902_v21  ;;  %2847 = vmatprep.subr.mxu1 %v9695_v60  ;;  %v9780_v21 = vld [vmem:[#allocation28_spill] sm:$0xff] }
 0x759   :  { %2777 = vmatpush1.msra.mxu0 %v9696_v54  ;;  %2848 = vmatpush1.msra.mxu1 %v9697_v27  ;;  %v9804_v60 = vld [vmem:[#allocation76_spill] sm:$0xff]  ;;  %v9805_v54 = vld [vmem:[#allocation77_spill] sm:$0xff]  ;;  %v9806_v27 = vld [vmem:[#allocation79_spill] sm:$0xff] }
 0x75a   :  { %2778 = vmatprep.subr.mxu0 %v7073_v49  ;;  %2849 = vmatprep.subr.mxu1 %v7076_v47  ;;  %v9807_v49 = vld [vmem:[#allocation81_spill] sm:$0xff]  ;;  %v9808_v47 = vld [vmem:[#allocation91_spill] sm:$0xff] }
 0x75b   :  { %2779 = vmatpush1.msra.mxu0 %v7079_v9  ;;  %2850 = vmatpush1.msra.mxu1 %v7082_v38 }
 0x75c   :  { %2780 = vmatprep.subr.mxu0 %v7085_v36  ;;  %2851 = vmatprep.subr.mxu1 %v7088_v35  ;;  %v9809_v36 = vld [vmem:[#allocation10_spill] sm:$0xff] }
 0x75d   :  { %2781 = vmatpush1.msra.mxu0 %v7091_v46  ;;  %2852 = vmatpush1.msra.mxu1 %v7094_v44 }
 0x75e   :  { %2782 = vmatprep.subr.mxu0 %v9779_v22  ;;  %2853 = vmatprep.subr.mxu1 %v9780_v21 }
 0x75f   :  { %2783 = vmatpush1.msra.mxu0 %v9781_v23  ;;  %2854 = vmatpush1.msra.mxu1 %v9782_v15  ;;  %v9811_v15 = vld [vmem:[#allocation12_spill] sm:$0xff] }
 0x760   :  { %2784 = vmatprep.subr.mxu0 %v9783_v24  ;;  %2855 = vmatprep.subr.mxu1 %v9784_v12  ;;  %v9812_v12 = vld [vmem:[#allocation13_spill] sm:$0xff] }
 0x761   :  { %2785 = vmatpush1.msra.mxu0 %v9785_v55  ;;  %2856 = vmatpush1.msra.mxu1 %v9786_v4 }
 0x762   :  { %2786 = vmatprep.subr.mxu0 %v9787_v62  ;;  %2857 = vmatprep.subr.mxu1 %v9788_v3 }
 0x763   :  { %2787 = vmatpush1.msra.mxu0 %v9789_v33  ;;  %2858 = vmatpush1.msra.mxu1 %v9790_v30 }
 0x764   :  { %2788 = vmatprep.subr.mxu0 %v9791_v37  ;;  %2859 = vmatprep.subr.mxu1 %v9792_v50 }
 0x765   :  { %2789 = vmatpush1.msra.mxu0 %v9793_v42  ;;  %2860 = vmatpush1.msra.mxu1 %v9794_v63  ;;  %v114_v63 = vpop.permute.xlu1 %113 }
 0x766   :  { %2790 = vmatprep.subr.mxu0 %v9795_v10  ;;  %2861 = vmatprep.subr.mxu1 %v9796_v59  ;;  %v9813_v10 = vld [vmem:[#allocation92_spill] sm:$0xff] }
 0x767   :  { %2791 = vmatpush1.msra.mxu0 %v9797_v18  ;;  %2862 = vmatpush1.msra.mxu1 %v9798_v51 }
 0x768   :  { %2792 = vmatprep.subr.mxu0 %v9799_v41  ;;  %2863 = vmatprep.subr.mxu1 %v9800_v39  ;;  %v9814_v41 = vld [vmem:[#allocation36_spill] sm:$0xff] }
 0x769   :  { %2793 = vmatpush1.msra.mxu0 %v9801_v25  ;;  %2864 = vmatpush1.msra.mxu1 %v9802_v5  ;;  %v165_v39 = vmul.f32 %v9814_v41, %v114_v63  ;;  %v9815_v25 = vld [vmem:[#allocation37_spill] sm:$0xff] }
 0x76a   :  { %2794 = vmatprep.subr.mxu0 %v9803_v52  ;;  %2865 = vmatprep.subr.mxu1 %v9804_v60  ;;  %v166_v5 = vmul.f32 %v9815_v25, %v114_v63  ;;  %v9816_v52 = vld [vmem:[#allocation39_spill] sm:$0xff] }
 0x76b   :  { %2795 = vmatpush1.msra.mxu0 %v9805_v54  ;;  %2866 = vmatpush1.msra.mxu1 %v9806_v27  ;;  %v218_v60 = vadd.f32 %v9816_v52, %v165_v39 }
 0x76c   :  { %2828 = vmatprep.mubr.f32.mxu0 %v9237_v7  ;;  %2899 = vmatprep.mubr.f32.mxu1 %v9237_v7 }
 0x76d   :  { %2906 = vmatprep.subr.mxu0 %v9807_v49  ;;  %2977 = vmatprep.subr.mxu1 %v9808_v47 }
 0x7ea   :  { %v2496_v9 = vpop.f32.mrf.mxu0  ;;  %v2567_v38 = vpop.f32.mrf.mxu1 }
 0x7eb   :  { %v2714_v35 = vadd.f32 %v2496_v9, %v9809_v36  ;;  %v2716_v55 = vadd.f32 %v2567_v38, %v9812_v12  ;;  %v219_v9 = vadd.f32 %v9460_v16, %v166_v5  ;;  %v168_v38 = vmul.f32 %v9461_v45, %v114_v63  ;;  %v7491_v45 = vld [vmem:[%s8504_s7] ss:$0 sm:$0xff] }
 0x7ec   :  { %v2498_v46 = vpop.f32.mrf.mxu0  ;;  %v2569_v21 = vpop.f32.mrf.mxu1 }
 0x7ed   :  { %v2718_v44 = vmul.f32 0.5, %v2714_v35  ;;  %v2715_v22 = vadd.f32 %v2498_v46, %v9810_v26  ;;  %v2717_v24 = vadd.f32 %v2569_v21, %v9811_v15  ;;  %v2720_v4 = vmul.f32 0.5, %v2716_v55 }
 0x7ee   :  { %v167_v55 = vmul.f32 %v9273_v32, %v114_v63 }
 0x7ef   :  { %4724 = vtanh.f32 %v2718_v44  ;;  %v2719_v23 = vmul.f32 0.5, %v2715_v22 }
 0x7f0   :  { %v220_v16 = vadd.f32 %v5702_v0, %v167_v55  ;;  %v9843_v55 = vld [vmem:[#allocation25_spill] sm:$0xff] }
 0x7f1   :  { %4726 = vtanh.f32 %v2719_v23 }
 0x7f2   :  { %4728 = vtanh.f32 %v2717_v24  ;;  %v221_v24 = vadd.f32 %v5692_v53, %v168_v38  ;;  %v9835_v38 = vld [vmem:[#allocation97_spill] sm:$0xff] }
 0x7f3   :  { %4730 = vtanh.f32 %v2720_v4 }
 0x7fc   :  { %v4725_v62 = vpop.eup %4724 }
 0x7fd   :  { %v2724_v3 = vadd.f32 1.0, %v4725_v62 }
 0x7fe   :  { %v4727_v33 = vpop.eup %4726 }
 0x7ff   :  { %v2727_v30 = vmul.f32 0.5, %v2724_v3  ;;  %v2725_v37 = vadd.f32 1.0, %v4727_v33  ;;  %v4729_v42 = vpop.eup %4728 }
 0x800   :  { %v4731_v49 = vpop.eup %4730 }
 0x801   :  { %v2728_v50 = vmul.f32 0.5, %v2725_v37  ;;  %v2732_v18 = vmul.f32 %v4729_v42, %v2727_v30  ;;  %v2726_v22 = vadd.f32 1.0, %v4731_v49  ;;  %v9832_v49 = vld [vmem:[#allocation17_spill] sm:$0xff] }
 0x803   :  { %v2731_v59 = vmul.f32 %v2728_v50, %v9813_v10  ;;  %v2729_v62 = vmul.f32 0.5, %v2726_v22  ;;  %v9839_v22 = vld [vmem:[#allocation21_spill] sm:$0xff] }
 0x805   :  { %v7477_v51 = vadd.f32 %v2732_v18, %v2731_v59 }
 0x807   :  { %4732 = vtanh.f32 %v7477_v51 }
 0x80b   :  { %v2638_v54 = vpop.f32.mrf.mxu0  ;;  %v2709_v27 = vpop.f32.mrf.mxu1 }
 0x80c   :  { %v2741_v47 = vadd.f32 %v2638_v54, %v218_v60  ;;  %v2743_v37 = vadd.f32 %v2709_v27, %v220_v16  ;;  %v9848_v16 = vld [vmem:[#allocation68_spill] sm:$0xff] }
 0x80d   :  { %v2640_v35 = vpop.f32.mrf.mxu0  ;;  %v2711_v21 = vpop.f32.mrf.mxu1 }
 0x80e   :  { %v2745_v46 = vmul.f32 0.5, %v2741_v47  ;;  %v2742_v44 = vadd.f32 %v2640_v35, %v219_v9  ;;  %v2744_v4 = vadd.f32 %v2711_v21, %v221_v24  ;;  %v2747_v53 = vmul.f32 0.5, %v2743_v37  ;;  %v9833_v47 = vld [vmem:[#allocation40_spill] sm:$0xff]  ;;  %v9834_v9 = vld [vmem:[#allocation38_spill] sm:$0xff] }
 0x80f   :  { %v9836_v35 = vld [vmem:[#allocation98_spill] sm:$0xff]  ;;  %v9842_v24 = vld [vmem:[#allocation24_spill] sm:$0xff] }
 0x810   :  { %4734 = vtanh.f32 %v2745_v46  ;;  %v2746_v23 = vmul.f32 0.5, %v2742_v44  ;;  %v9837_v46 = vld [vmem:[#allocation19_spill] sm:$0xff]  ;;  %v9838_v44 = vld [vmem:[#allocation20_spill] sm:$0xff]  ;;  %v9840_v21 = vld [vmem:[#allocation22_spill] sm:$0xff] }
 0x811   :  { %v9850_v37 = vld [vmem:[#allocation70_spill] sm:$0xff] }
 0x812   :  { %4736 = vtanh.f32 %v2746_v23  ;;  %v9841_v23 = vld [vmem:[#allocation23_spill] sm:$0xff] }
 0x813   :  { %4738 = vtanh.f32 %v2744_v4  ;;  %v9844_v4 = vld [vmem:[#allocation26_spill] sm:$0xff] }
 0x814   :  { %v4733_v3 = vpop.eup %4732  ;;  %4740 = vtanh.f32 %v2747_v53  ;;  %v9851_v53 = vld [vmem:[#allocation71_spill] sm:$0xff] }
 0x815   :  { %v2735_v33 = vmul.f32 %v4733_v3, %v2729_v62  ;;  %v9845_v62 = vld [vmem:[#allocation65_spill] sm:$0xff]  ;;  %v9846_v3 = vld [vmem:[#allocation66_spill] sm:$0xff] }
 0x817   :  { %v4450_v30 = vmul.f32 %v7491_v45, %v2735_v33 }
 0x819   :  { %4467 = vadd.xlane.f32.xlu1 %v4450_v30  ;;  %v9849_v30 = vld [vmem:[#allocation69_spill] sm:$0xff] }
 0x81d   :  { %v4735_v50 = vpop.eup %4734 }
 0x81e   :  { %v2751_v32 = vadd.f32 1.0, %v4735_v50  ;;  %v9852_v50 = vld [vmem:[#allocation72_spill] sm:$0xff] }
 0x81f   :  { %v4737_v42 = vpop.eup %4736 }
 0x820   :  { %v2754_v63 = vmul.f32 0.5, %v2751_v32  ;;  %v2752_v10 = vadd.f32 1.0, %v4737_v42  ;;  %v4739_v18 = vpop.eup %4738  ;;  %v9853_v32 = vld [vmem:[#allocation82_spill] sm:$0xff]  ;;  %v9854_v42 = vld [vmem:[#allocation83_spill] sm:$0xff] }
 0x821   :  { %v4741_v25 = vpop.eup %4740 }
 0x822   :  { %v2755_v59 = vmul.f32 0.5, %v2752_v10  ;;  %v2759_v41 = vmul.f32 %v4739_v18, %v2754_v63  ;;  %v2753_v5 = vadd.f32 1.0, %v4741_v25  ;;  %v9855_v63 = vld [vmem:[#allocation84_spill] sm:$0xff]  ;;  %v9856_v10 = vld [vmem:[#allocation85_spill] sm:$0xff]  ;;  %v9858_v18 = vld [vmem:[#allocation87_spill] sm:$0xff] }
 0x823   :  { %v7594_v25 = vld [vmem:[#allocation6 + $0x1a8] sm:$0xff] }
 0x824   :  { %v2758_v0 = vmul.f32 %v2755_v59, %v7207_v43  ;;  %v2756_v52 = vmul.f32 0.5, %v2753_v5  ;;  %v9817_v43 = vld [vmem:[#allocation93_spill] sm:$0xff]  ;;  %v9857_v59 = vld [vmem:[#allocation86_spill] sm:$0xff] }
 0x825   :  { %v7596_v5 = vld [vmem:[#allocation6 + $0x1b8] sm:$0xff] }
 0x826   :  { %v7495_v39 = vadd.f32 %v2759_v41, %v2758_v0  ;;  %v7588_v0 = vld [vmem:[#allocation6 + $0x1c0] sm:$0xff]  ;;  %v7590_v41 = vld [vmem:[#allocation6 + $0x1d0] sm:$0xff] }
 0x828   :  { %4742 = vtanh.f32 %v7495_v39 }
 0x835   :  { %v4743_v60 = vpop.eup %4742 }
 0x836   :  { %v2762_v54 = vmul.f32 %v4743_v60, %v2756_v52  ;;  %v7600_v52 = vld [vmem:[#allocation6 + $0x1a0] sm:$0xff]  ;;  %v7602_v60 = vld [vmem:[#allocation6 + $0x1b0] sm:$0xff] }
 0x838   :  { %v7498_v27 = vadd.f32 %v2762_v54, %v2735_v33  ;;  %v9847_v33 = vld [vmem:[#allocation67_spill] sm:$0xff] }
 0x839   :  { %v7606_v54 = vld [vmem:[#allocation6 + $0x188] sm:$0xff] }
 0x83a   :  { %2829 = vmatmul.mubr.f32.vlgmr.msra.gmra.mxu0 %v7498_v27  ;;  %2900 = vmatmul.mubr.f32.vlgmr.msra.gmra.mxu1 %v7498_v27 }
 0x83b   :  { %2907 = vmatpush1.msra.mxu0 %v7214_v13  ;;  %2978 = vmatpush1.msra.mxu1 %v7217_v1  ;;  %v9818_v13 = vld [vmem:[#allocation94_spill] sm:$0xff]  ;;  %v9819_v1 = vld [vmem:[#allocation95_spill] sm:$0xff] }
 0x83c   :  { %2908 = vmatprep.subr.mxu0 %v7220_v48  ;;  %2979 = vmatprep.subr.mxu1 %v7223_v34  ;;  %v9820_v48 = vld [vmem:[#allocation15_spill] sm:$0xff]  ;;  %v9821_v34 = vld [vmem:[#allocation16_spill] sm:$0xff] }
 0x83d   :  { %2909 = vmatpush1.msra.mxu0 %v7226_v56  ;;  %2980 = vmatpush1.msra.mxu1 %v7229_v17  ;;  %v9822_v56 = vld [vmem:[#allocation42_spill] sm:$0xff]  ;;  %v9823_v17 = vld [vmem:[#allocation43_spill] sm:$0xff] }
 0x83e   :  { %2910 = vmatprep.subr.mxu0 %v7232_v8  ;;  %2981 = vmatprep.subr.mxu1 %v7235_v58  ;;  %v9824_v8 = vld [vmem:[#allocation44_spill] sm:$0xff]  ;;  %v9825_v58 = vld [vmem:[#allocation45_spill] sm:$0xff] }
 0x83f   :  { %2911 = vmatpush1.msra.mxu0 %v7238_v6  ;;  %2982 = vmatpush1.msra.mxu1 %v7241_v57  ;;  %v9826_v6 = vld [vmem:[#allocation46_spill] sm:$0xff]  ;;  %v9827_v57 = vld [vmem:[#allocation47_spill] sm:$0xff] }
 0x840   :  { %2912 = vmatprep.subr.mxu0 %v7244_v28  ;;  %2983 = vmatprep.subr.mxu1 %v7247_v11  ;;  %v9828_v28 = vld [vmem:[#allocation48_spill] sm:$0xff]  ;;  %v9829_v11 = vld [vmem:[#allocation49_spill] sm:$0xff] }
 0x841   :  { %2913 = vmatpush1.msra.mxu0 %v7250_v2  ;;  %2984 = vmatpush1.msra.mxu1 %v7253_v19  ;;  %v9830_v2 = vld [vmem:[#allocation78_spill] sm:$0xff]  ;;  %v9831_v19 = vld [vmem:[#allocation80_spill] sm:$0xff] }
 0x842   :  { %2914 = vmatprep.subr.mxu0 %v9817_v43  ;;  %2985 = vmatprep.subr.mxu1 %v9818_v13  ;;  %v7612_v43 = vld [vmem:[#allocation6 + $0x180] sm:$0xff]  ;;  %v7614_v13 = vld [vmem:[#allocation6 + $0x190] sm:$0xff] }
 0x843   :  { %2915 = vmatpush1.msra.mxu0 %v9819_v1  ;;  %2986 = vmatpush1.msra.mxu1 %v9820_v48  ;;  %v7618_v1 = vld [vmem:[#allocation6 + $0x168] sm:$0xff]  ;;  %v7620_v48 = vld [vmem:[#allocation6 + $0x178] sm:$0xff] }
 0x844   :  { %2916 = vmatprep.subr.mxu0 %v9821_v34  ;;  %2987 = vmatprep.subr.mxu1 %v9822_v56  ;;  %v7624_v34 = vld [vmem:[#allocation6 + $0x160] sm:$0xff]  ;;  %v7626_v56 = vld [vmem:[#allocation6 + $0x170] sm:$0xff] }
 0x845   :  { %2917 = vmatpush1.msra.mxu0 %v9823_v17  ;;  %2988 = vmatpush1.msra.mxu1 %v9824_v8  ;;  %v7630_v17 = vld [vmem:[#allocation6 + $0x148] sm:$0xff]  ;;  %v7632_v8 = vld [vmem:[#allocation6 + $0x158] sm:$0xff] }
 0x846   :  { %2918 = vmatprep.subr.mxu0 %v9825_v58  ;;  %2989 = vmatprep.subr.mxu1 %v9826_v6  ;;  %v7636_v58 = vld [vmem:[#allocation6 + $0x140] sm:$0xff]  ;;  %v7638_v6 = vld [vmem:[#allocation6 + $0x150] sm:$0xff] }
 0x847   :  { %2919 = vmatpush1.msra.mxu0 %v9827_v57  ;;  %2990 = vmatpush1.msra.mxu1 %v9828_v28  ;;  %v7642_v57 = vld [vmem:[#allocation6 + $0x128] sm:$0xff]  ;;  %v7644_v28 = vld [vmem:[#allocation6 + $0x138] sm:$0xff] }
 0x848   :  { %2920 = vmatprep.subr.mxu0 %v9829_v11  ;;  %2991 = vmatprep.subr.mxu1 %v9830_v2  ;;  %v7648_v11 = vld [vmem:[#allocation6 + $0x120] sm:$0xff]  ;;  %v7650_v2 = vld [vmem:[#allocation6 + $0x130] sm:$0xff] }
 0x849   :  { %2921 = vmatpush1.msra.mxu0 %v9831_v19  ;;  %2992 = vmatpush1.msra.mxu1 %v9832_v49  ;;  %v7654_v19 = vld [vmem:[#allocation6 + $0x108] sm:$0xff]  ;;  %v7656_v49 = vld [vmem:[#allocation6 + $0x118] sm:$0xff] }
 0x84a   :  { %2922 = vmatprep.subr.mxu0 %v9833_v47  ;;  %2993 = vmatprep.subr.mxu1 %v9834_v9  ;;  %v7658_v47 = vld [vmem:[#allocation6 + $0x100] sm:$0xff]  ;;  %v7662_v9 = vld [vmem:[#allocation6 + $0x110] sm:$0xff] }
 0x84b   :  { %2923 = vmatpush1.msra.mxu0 %v9835_v38  ;;  %2994 = vmatpush1.msra.mxu1 %v9836_v35  ;;  %v7664_v38 = vld [vmem:[#allocation6 + $0xe8] sm:$0xff]  ;;  %v7666_v35 = vld [vmem:[#allocation6 + $0xf8] sm:$0xff] }
 0x84c   :  { %2924 = vmatprep.subr.mxu0 %v9837_v46  ;;  %2995 = vmatprep.subr.mxu1 %v9838_v44  ;;  %v7670_v46 = vld [vmem:[#allocation6 + $0xe0] sm:$0xff]  ;;  %v7672_v44 = vld [vmem:[#allocation6 + $0xf0] sm:$0xff] }
 0x84d   :  { %2925 = vmatpush1.msra.mxu0 %v9839_v22  ;;  %2996 = vmatpush1.msra.mxu1 %v9840_v21  ;;  %v7678_v22 = vld [vmem:[#allocation6 + $0xc8] sm:$0xff]  ;;  %v7680_v21 = vld [vmem:[#allocation6 + $0xd8] sm:$0xff] }
 0x84e   :  { %2926 = vmatprep.subr.mxu0 %v9841_v23  ;;  %2997 = vmatprep.subr.mxu1 %v9842_v24  ;;  %v7684_v23 = vld [vmem:[#allocation6 + $0xc0] sm:$0xff]  ;;  %v7686_v24 = vld [vmem:[#allocation6 + $0xd0] sm:$0xff] }
 0x84f   :  { %2927 = vmatpush1.msra.mxu0 %v9843_v55  ;;  %2998 = vmatpush1.msra.mxu1 %v9844_v4  ;;  %9859 = vst [vmem:[#allocation88_spill] sm:$0xff] %v7686_v24  ;;  %v7690_v55 = vld [vmem:[#allocation6 + $0xa8] sm:$0xff]  ;;  %v7692_v4 = vld [vmem:[#allocation6 + $0xb8] sm:$0xff] }
 0x850   :  { %2928 = vmatprep.subr.mxu0 %v9845_v62  ;;  %2999 = vmatprep.subr.mxu1 %v9846_v3  ;;  %9860 = vst [vmem:[#allocation89_spill] sm:$0xff] %v7690_v55  ;;  %9861 = vst [vmem:[#allocation90_spill] sm:$0xff] %v7692_v4  ;;  %v7696_v62 = vld [vmem:[#allocation6 + $0xa0] sm:$0xff]  ;;  %v7698_v3 = vld [vmem:[#allocation6 + $0xb0] sm:$0xff] }
 0x851   :  { %2929 = vmatpush1.msra.mxu0 %v9847_v33  ;;  %3000 = vmatpush1.msra.mxu1 %v9848_v16  ;;  %9862 = vst [vmem:[#allocation96_spill] sm:$0xff] %v7696_v62  ;;  %9863 = vst [vmem:[#allocation27_spill] sm:$0xff] %v7698_v3  ;;  %v7700_v33 = vld [vmem:[#allocation6 + $0x88] sm:$0xff]  ;;  %v7704_v16 = vld [vmem:[#allocation6 + $0x98] sm:$0xff] }
 0x852   :  { %2930 = vmatprep.subr.mxu0 %v9849_v30  ;;  %3001 = vmatprep.subr.mxu1 %v9850_v37  ;;  %9864 = vst [vmem:[#allocation28_spill] sm:$0xff] %v7700_v33  ;;  %9865 = vst [vmem:[#allocation29_spill] sm:$0xff] %v7704_v16  ;;  %v7706_v30 = vld [vmem:[#allocation6 + $0x80] sm:$0xff]  ;;  %v7708_v37 = vld [vmem:[#allocation6 + $0x90] sm:$0xff] }
 0x853   :  { %2931 = vmatpush1.msra.mxu0 %v9851_v53  ;;  %3002 = vmatpush1.msra.mxu1 %v9852_v50  ;;  %9866 = vst [vmem:[#allocation30_spill] sm:$0xff] %v7706_v30  ;;  %9867 = vst [vmem:[#allocation31_spill] sm:$0xff] %v7708_v37  ;;  %v7712_v53 = vld [vmem:[#allocation6 + $0x68] sm:$0xff]  ;;  %v7714_v50 = vld [vmem:[#allocation6 + $0x78] sm:$0xff] }
 0x854   :  { %2932 = vmatprep.subr.mxu0 %v9853_v32  ;;  %3003 = vmatprep.subr.mxu1 %v9854_v42  ;;  %9868 = vst [vmem:[#allocation14_spill] sm:$0xff] %v7712_v53  ;;  %9869 = vst [vmem:[#allocation50_spill] sm:$0xff] %v7714_v50  ;;  %v7716_v32 = vld [vmem:[#allocation6 + $0x60] sm:$0xff]  ;;  %v7720_v42 = vld [vmem:[#allocation6 + $0x70] sm:$0xff] }
 0x855   :  { %2933 = vmatpush1.msra.mxu0 %v9855_v63  ;;  %3004 = vmatpush1.msra.mxu1 %v9856_v10  ;;  %9870 = vst [vmem:[#allocation51_spill] sm:$0xff] %v7716_v32  ;;  %9871 = vst [vmem:[#allocation52_spill] sm:$0xff] %v7720_v42  ;;  %v7722_v63 = vld [vmem:[#allocation6 + $0x48] sm:$0xff]  ;;  %v7724_v10 = vld [vmem:[#allocation6 + $0x58] sm:$0xff] }
 0x856   :  { %2934 = vmatprep.subr.mxu0 %v9857_v59  ;;  %3005 = vmatprep.subr.mxu1 %v9858_v18  ;;  %9872 = vst [vmem:[#allocation53_spill] sm:$0xff] %v7722_v63  ;;  %9873 = vst [vmem:[#allocation54_spill] sm:$0xff] %v7724_v10  ;;  %v7728_v59 = vld [vmem:[#allocation6 + $0x40] sm:$0xff]  ;;  %v7730_v18 = vld [vmem:[#allocation6 + $0x50] sm:$0xff] }
 0x857   :  { %2935 = vmatpush1.msra.mxu0 %v7382_v20  ;;  %3006 = vmatpush1.msra.mxu1 %v7385_v40  ;;  %v7570_v20 = vld [vmem:[#allocation6 + $0x1e8] sm:$0xff]  ;;  %v7572_v40 = vld [vmem:[#allocation6 + $0x1f8] sm:$0xff]  ;;  %9874 = vst [vmem:[#allocation55_spill] sm:$0xff] %v7728_v59  ;;  %9875 = vst [vmem:[#allocation56_spill] sm:$0xff] %v7730_v18 }
 0x858   :  { %2936 = vmatprep.subr.mxu0 %v7388_v14  ;;  %3007 = vmatprep.subr.mxu1 %v7391_v29  ;;  %v7576_v14 = vld [vmem:[#allocation6 + $0x1e0] sm:$0xff]  ;;  %v7578_v29 = vld [vmem:[#allocation6 + $0x1f0] sm:$0xff] }
 0x859   :  { %2937 = vmatpush1.msra.mxu0 %v7394_v31  ;;  %2970 = vmatprep.mubr.f32.mxu0 %v9237_v7  ;;  %v7582_v31 = vld [vmem:[#allocation6 + $0x1c8] sm:$0xff] }
 0x85a   :  { %3008 = vmatpush1.msra.mxu1 %v7398_v61  ;;  %3041 = vmatprep.mubr.f32.mxu1 %v9237_v7  ;;  %v7584_v61 = vld [vmem:[#allocation6 + $0x1d8] sm:$0xff] }
 0x85b   :  { %2971 = vmatmul.mubr.f32.vlgmr.msra.gmra.mxu0 %v7498_v27  ;;  %3042 = vmatmul.mubr.f32.vlgmr.msra.gmra.mxu1 %v7498_v27  ;;  %v7608_v27 = vld [vmem:[#allocation6 + $0x198] sm:$0xff] }
 0x85c   :  { %3223 = vmatprep.mubr.f32.mxu0 %v9237_v7  ;;  %3294 = vmatprep.mubr.f32.mxu1 %v9237_v7 }
 0x85d   :  { %3159 = vmatprep.subr.mxu0 %v7570_v20  ;;  %3230 = vmatprep.subr.mxu1 %v7572_v40 }
 0x85e   :  { %3160 = vmatpush1.msra.mxu0 %v7576_v14  ;;  %3231 = vmatpush1.msra.mxu1 %v7578_v29 }
 0x85f   :  { %3161 = vmatprep.subr.mxu0 %v7582_v31  ;;  %3232 = vmatprep.subr.mxu1 %v7584_v61 }
 0x860   :  { %3162 = vmatpush1.msra.mxu0 %v7588_v0  ;;  %3233 = vmatpush1.msra.mxu1 %v7590_v41 }
 0x861   :  { %3163 = vmatprep.subr.mxu0 %v7594_v25  ;;  %3234 = vmatprep.subr.mxu1 %v7596_v5 }
 0x862   :  { %3164 = vmatpush1.msra.mxu0 %v7600_v52  ;;  %3235 = vmatpush1.msra.mxu1 %v7602_v60 }
 0x863   :  { %3165 = vmatprep.subr.mxu0 %v7606_v54  ;;  %3236 = vmatprep.subr.mxu1 %v7608_v27 }
 0x864   :  { %3166 = vmatpush1.msra.mxu0 %v7612_v43  ;;  %3237 = vmatpush1.msra.mxu1 %v7614_v13 }
 0x865   :  { %3167 = vmatprep.subr.mxu0 %v7618_v1  ;;  %3238 = vmatprep.subr.mxu1 %v7620_v48 }
 0x866   :  { %3168 = vmatpush1.msra.mxu0 %v7624_v34  ;;  %3239 = vmatpush1.msra.mxu1 %v7626_v56 }
 0x867   :  { %3169 = vmatprep.subr.mxu0 %v7630_v17  ;;  %3240 = vmatprep.subr.mxu1 %v7632_v8 }
 0x868   :  { %3170 = vmatpush1.msra.mxu0 %v7636_v58  ;;  %3241 = vmatpush1.msra.mxu1 %v7638_v6 }
 0x869   :  { %3171 = vmatprep.subr.mxu0 %v7642_v57  ;;  %3242 = vmatprep.subr.mxu1 %v7644_v28 }
 0x86a   :  { %3172 = vmatpush1.msra.mxu0 %v7648_v11  ;;  %3243 = vmatpush1.msra.mxu1 %v7650_v2 }
 0x86b   :  { %3173 = vmatprep.subr.mxu0 %v7654_v19  ;;  %3244 = vmatprep.subr.mxu1 %v7656_v49 }
 0x86c   :  { %3174 = vmatpush1.msra.mxu0 %v7658_v47  ;;  %3245 = vmatpush1.msra.mxu1 %v7662_v9 }
 0x86d   :  { %3175 = vmatprep.subr.mxu0 %v7664_v38  ;;  %3246 = vmatprep.subr.mxu1 %v7666_v35 }
 0x86e   :  { %3176 = vmatpush1.msra.mxu0 %v7670_v46  ;;  %3247 = vmatpush1.msra.mxu1 %v7672_v44 }
 0x86f   :  { %3177 = vmatprep.subr.mxu0 %v7678_v22  ;;  %3248 = vmatprep.subr.mxu1 %v7680_v21 }
 0x870   :  { %3178 = vmatpush1.msra.mxu0 %v7684_v23  ;;  %3249 = vmatpush1.msra.mxu1 %v7686_v24 }
 0x871   :  { %3179 = vmatprep.subr.mxu0 %v7690_v55  ;;  %3250 = vmatprep.subr.mxu1 %v7692_v4  ;;  %v9956_v55 = vld [vmem:[#allocation41_spill] sm:$0xff] }
 0x872   :  { %3180 = vmatpush1.msra.mxu0 %v7696_v62  ;;  %3251 = vmatpush1.msra.mxu1 %v7698_v3 }
 0x873   :  { %3181 = vmatprep.subr.mxu0 %v7700_v33  ;;  %3252 = vmatprep.subr.mxu1 %v7704_v16  ;;  %v7740_v16 = vld [vmem:[#allocation6 + $0x20] sm:$0xff] }
 0x874   :  { %3182 = vmatpush1.msra.mxu0 %v7706_v30  ;;  %3253 = vmatpush1.msra.mxu1 %v7708_v37  ;;  %v7734_v30 = vld [vmem:[#allocation6 + $0x28] sm:$0xff]  ;;  %v7736_v37 = vld [vmem:[#allocation6 + $0x38] sm:$0xff]  ;;  %9878 = vst [vmem:[#allocation59_spill] sm:$0xff] %v7740_v16 }
 0x875   :  { %3183 = vmatprep.subr.mxu0 %v7712_v53  ;;  %3254 = vmatprep.subr.mxu1 %v7714_v50  ;;  %9876 = vst [vmem:[#allocation57_spill] sm:$0xff] %v7734_v30  ;;  %9877 = vst [vmem:[#allocation58_spill] sm:$0xff] %v7736_v37  ;;  %v7742_v53 = vld [vmem:[#allocation6 + $0x30] sm:$0xff]  ;;  %v7746_v50 = vld [vmem:[#allocation6 + $0x8] sm:$0xff] }
 0x876   :  { %3184 = vmatpush1.msra.mxu0 %v7716_v32  ;;  %3255 = vmatpush1.msra.mxu1 %v7720_v42  ;;  %9879 = vst [vmem:[#allocation60_spill] sm:$0xff] %v7742_v53  ;;  %9880 = vst [vmem:[#allocation61_spill] sm:$0xff] %v7746_v50  ;;  %v7748_v32 = vld [vmem:[#allocation6 + $0x18] sm:$0xff]  ;;  %v7752_v42 = vld [vmem:[#allocation6] sm:$0xff] }
 0x877   :  { %3185 = vmatprep.subr.mxu0 %v7722_v63  ;;  %3256 = vmatprep.subr.mxu1 %v7724_v10  ;;  %9881 = vst [vmem:[#allocation62_spill] sm:$0xff] %v7748_v32  ;;  %9882 = vst [vmem:[#allocation63_spill] sm:$0xff] %v7752_v42  ;;  %v7754_v63 = vld [vmem:[#allocation6 + $0x10] sm:$0xff] }
 0x878   :  { %3186 = vmatpush1.msra.mxu0 %v7728_v59  ;;  %3257 = vmatpush1.msra.mxu1 %v7730_v18  ;;  %9883 = vst [vmem:[#allocation64_spill] sm:$0xff] %v7754_v63  ;;  %v7762_v18 = vld [vmem:[#allocation4 + $0x3c8] sm:$0xff] }
 0x879   :  { %3187 = vmatprep.subr.mxu0 %v7734_v30  ;;  %3258 = vmatprep.subr.mxu1 %v7736_v37  ;;  %9884 = vst [vmem:[#allocation18_spill] sm:$0xff] %v7762_v18  ;;  %v7765_v37 = vld [vmem:[#allocation4 + $0x3d8] sm:$0xff] }
 0x87a   :  { %3188 = vmatpush1.msra.mxu0 %v7740_v16  ;;  %3259 = vmatpush1.msra.mxu1 %v7742_v53  ;;  %9885 = vst [vmem:[#allocation73_spill] sm:$0xff] %v7765_v37 }
 0x87b   :  { %3189 = vmatprep.subr.mxu0 %v7746_v50  ;;  %3260 = vmatprep.subr.mxu1 %v7748_v32 }
 0x87c   :  { %3190 = vmatpush1.msra.mxu0 %v7752_v42  ;;  %3261 = vmatpush1.msra.mxu1 %v7754_v63 }
 0x87d   :  { %3324 = vmatprep.subr.mxu0 %v7762_v18  ;;  %3395 = vmatprep.subr.mxu1 %v7765_v37 }
 0x8fa   :  { %v2830_v30 = vpop.f32.mrf.mxu0  ;;  %v2901_v16 = vpop.f32.mrf.mxu1 }
 0x8fb   :  { %v3048_v53 = vadd.f32 %v2830_v30, %v9809_v36  ;;  %v3050_v18 = vadd.f32 %v2901_v16, %v9812_v12 }
 0x8fc   :  { %v2832_v59 = vpop.f32.mrf.mxu0  ;;  %v2903_v10 = vpop.f32.mrf.mxu1 }
 0x8fd   :  { %v3052_v50 = vmul.f32 0.5, %v3048_v53  ;;  %v3049_v32 = vadd.f32 %v2832_v59, %v9810_v26  ;;  %v3051_v63 = vadd.f32 %v2903_v10, %v9811_v15  ;;  %v3054_v33 = vmul.f32 0.5, %v3050_v18  ;;  %v7806_v18 = vld [vmem:[#allocation4 + $0x340] sm:$0xff] }
 0x8fe   :  { %9895 = vst [vmem:[#allocation37_spill] sm:$0xff] %v7806_v18 }
 0x8ff   :  { %4744 = vtanh.f32 %v3052_v50  ;;  %v3053_v42 = vmul.f32 0.5, %v3049_v32 }
 0x901   :  { %4746 = vtanh.f32 %v3053_v42 }
 0x902   :  { %4748 = vtanh.f32 %v3051_v63 }
 0x903   :  { %4750 = vtanh.f32 %v3054_v33  ;;  %v7800_v33 = vld [vmem:[#allocation4 + $0x348] sm:$0xff] }
 0x904   :  { %9893 = vst [vmem:[#allocation92_spill] sm:$0xff] %v7800_v33 }
 0x90c   :  { %v4745_v3 = vpop.eup %4744 }
 0x90d   :  { %v3058_v37 = vadd.f32 1.0, %v4745_v3  ;;  %v7782_v3 = vld [vmem:[#allocation4 + $0x3c0] sm:$0xff] }
 0x90e   :  { %v4747_v62 = vpop.eup %4746  ;;  %9887 = vst [vmem:[#allocation75_spill] sm:$0xff] %v7782_v3 }
 0x90f   :  { %v3061_v4 = vmul.f32 0.5, %v3058_v37  ;;  %v3059_v30 = vadd.f32 1.0, %v4747_v62  ;;  %v4749_v53 = vpop.eup %4748  ;;  %v7803_v37 = vld [vmem:[#allocation4 + $0x358] sm:$0xff] }
 0x910   :  { %v4751_v32 = vpop.eup %4750  ;;  %9894 = vst [vmem:[#allocation36_spill] sm:$0xff] %v7803_v37 }
 0x911   :  { %v3062_v36 = vmul.f32 0.5, %v3059_v30  ;;  %v3066_v26 = vmul.f32 %v4749_v53, %v3061_v4  ;;  %v3060_v42 = vadd.f32 1.0, %v4751_v32  ;;  %v7794_v4 = vld [vmem:[#allocation4 + $0x380] sm:$0xff]  ;;  %v7809_v30 = vld [vmem:[#allocation4 + $0x350] sm:$0xff]  ;;  %v7812_v53 = vld [vmem:[#allocation4 + $0x308] sm:$0xff] }
 0x912   :  { %9891 = vst [vmem:[#allocation81_spill] sm:$0xff] %v7794_v4  ;;  %9896 = vst [vmem:[#allocation39_spill] sm:$0xff] %v7809_v30  ;;  %v7818_v32 = vld [vmem:[#allocation4 + $0x300] sm:$0xff] }
 0x913   :  { %v3065_v59 = vmul.f32 %v3062_v36, %v7477_v51  ;;  %v3063_v63 = vmul.f32 0.5, %v3060_v42  ;;  %v7785_v36 = vld [vmem:[#allocation4 + $0x3d0] sm:$0xff]  ;;  %v7791_v51 = vld [vmem:[#allocation4 + $0x398] sm:$0xff]  ;;  %9897 = vst [vmem:[#allocation93_spill] sm:$0xff] %v7812_v53  ;;  %9899 = vst [vmem:[#allocation95_spill] sm:$0xff] %v7818_v32 }
 0x914   :  { %9888 = vst [vmem:[#allocation76_spill] sm:$0xff] %v7785_v36  ;;  %9890 = vst [vmem:[#allocation79_spill] sm:$0xff] %v7791_v51  ;;  %v7821_v42 = vld [vmem:[#allocation4 + $0x310] sm:$0xff] }
 0x915   :  { %v7773_v50 = vadd.f32 %v3066_v26, %v3065_v59  ;;  %v7788_v26 = vld [vmem:[#allocation4 + $0x388] sm:$0xff]  ;;  %v7815_v59 = vld [vmem:[#allocation4 + $0x318] sm:$0xff]  ;;  %9900 = vst [vmem:[#allocation15_spill] sm:$0xff] %v7821_v42 }
 0x916   :  { %9889 = vst [vmem:[#allocation77_spill] sm:$0xff] %v7788_v26  ;;  %9898 = vst [vmem:[#allocation94_spill] sm:$0xff] %v7815_v59 }
 0x917   :  { %9886 = vst [vmem:[#allocation74_spill] sm:$0xff] %v7773_v50  ;;  %4752 = vtanh.f32 %v7773_v50 }
 0x924   :  { %v4753_v16 = vpop.eup %4752 }
 0x925   :  { %v7776_v10 = vmul.f32 %v4753_v16, %v3063_v63  ;;  %v7824_v63 = vld [vmem:[#allocation4 + $0x2c8] sm:$0xff]  ;;  %v7827_v16 = vld [vmem:[#allocation4 + $0x2d8] sm:$0xff] }
 0x926   :  { %9901 = vst [vmem:[#allocation16_spill] sm:$0xff] %v7824_v63  ;;  %9902 = vst [vmem:[#allocation42_spill] sm:$0xff] %v7827_v16 }
 0x927   :  { %3224 = vmatmul.mubr.f32.vlgmr.msra.gmra.mxu0 %v7776_v10  ;;  %3295 = vmatmul.mubr.f32.vlgmr.msra.gmra.mxu1 %v7776_v10  ;;  %v4451_v62 = vmul.f32 %v7491_v45, %v7776_v10  ;;  %v7797_v45 = vld [vmem:[#allocation4 + $0x390] sm:$0xff] }
 0x928   :  { %3325 = vmatpush1.msra.mxu0 %v7782_v3  ;;  %3396 = vmatpush1.msra.mxu1 %v7785_v36  ;;  %9892 = vst [vmem:[#allocation91_spill] sm:$0xff] %v7797_v45 }
 0x929   :  { %4469 = vadd.xlane.f32.xlu0 %v4451_v62  ;;  %3326 = vmatprep.subr.mxu0 %v7788_v26  ;;  %v7830_v62 = vld [vmem:[#allocation4 + $0x2c0] sm:$0xff] }
 0x92a   :  { %3397 = vmatprep.subr.mxu1 %v7791_v51  ;;  %3327 = vmatpush1.msra.mxu0 %v7794_v4  ;;  %9903 = vst [vmem:[#allocation43_spill] sm:$0xff] %v7830_v62  ;;  %v9955_v51 = vld [vmem:[#allocation35_spill] sm:$0xff] }
 0x92b   :  { %3398 = vmatpush1.msra.mxu1 %v7797_v45  ;;  %3328 = vmatprep.subr.mxu0 %v7800_v33 }
 0x92c   :  { %3399 = vmatprep.subr.mxu1 %v7803_v37  ;;  %3329 = vmatpush1.msra.mxu0 %v7806_v18 }
 0x92d   :  { %3400 = vmatpush1.msra.mxu1 %v7809_v30  ;;  %3330 = vmatprep.subr.mxu0 %v7812_v53  ;;  %v9951_v53 = vld [vmem:[#allocation33_spill] sm:$0xff]  ;;  %v9953_v30 = vld [vmem:[#allocation34_spill] sm:$0xff] }
 0x92e   :  { %3401 = vmatprep.subr.mxu1 %v7815_v59  ;;  %3331 = vmatpush1.msra.mxu0 %v7818_v32  ;;  %v7833_v59 = vld [vmem:[#allocation4 + $0x2d0] sm:$0xff]  ;;  %v7836_v32 = vld [vmem:[#allocation4 + $0x288] sm:$0xff] }
 0x92f   :  { %3402 = vmatpush1.msra.mxu1 %v7821_v42  ;;  %3332 = vmatprep.subr.mxu0 %v7824_v63  ;;  %9904 = vst [vmem:[#allocation44_spill] sm:$0xff] %v7833_v59  ;;  %9905 = vst [vmem:[#allocation45_spill] sm:$0xff] %v7836_v32  ;;  %v7839_v42 = vld [vmem:[#allocation4 + $0x298] sm:$0xff]  ;;  %v7842_v63 = vld [vmem:[#allocation4 + $0x280] sm:$0xff] }
 0x930   :  { %3403 = vmatprep.subr.mxu1 %v7827_v16  ;;  %3333 = vmatpush1.msra.mxu0 %v7830_v62  ;;  %9906 = vst [vmem:[#allocation46_spill] sm:$0xff] %v7839_v42  ;;  %9907 = vst [vmem:[#allocation47_spill] sm:$0xff] %v7842_v63  ;;  %v7845_v16 = vld [vmem:[#allocation4 + $0x290] sm:$0xff]  ;;  %v7848_v62 = vld [vmem:[#allocation4 + $0x248] sm:$0xff] }
 0x931   :  { %3404 = vmatpush1.msra.mxu1 %v7833_v59  ;;  %3334 = vmatprep.subr.mxu0 %v7836_v32  ;;  %9908 = vst [vmem:[#allocation48_spill] sm:$0xff] %v7845_v16  ;;  %9909 = vst [vmem:[#allocation49_spill] sm:$0xff] %v7848_v62  ;;  %v7851_v59 = vld [vmem:[#allocation4 + $0x258] sm:$0xff]  ;;  %v7854_v32 = vld [vmem:[#allocation4 + $0x240] sm:$0xff] }
 0x932   :  { %3405 = vmatprep.subr.mxu1 %v7839_v42  ;;  %3335 = vmatpush1.msra.mxu0 %v7842_v63  ;;  %9910 = vst [vmem:[#allocation78_spill] sm:$0xff] %v7851_v59  ;;  %9911 = vst [vmem:[#allocation80_spill] sm:$0xff] %v7854_v32  ;;  %v7857_v42 = vld [vmem:[#allocation4 + $0x250] sm:$0xff]  ;;  %v7860_v63 = vld [vmem:[#allocation4 + $0x208] sm:$0xff] }
 0x933   :  { %3406 = vmatpush1.msra.mxu1 %v7845_v16  ;;  %3336 = vmatprep.subr.mxu0 %v7848_v62  ;;  %9912 = vst [vmem:[#allocation17_spill] sm:$0xff] %v7857_v42  ;;  %9913 = vst [vmem:[#allocation40_spill] sm:$0xff] %v7860_v63  ;;  %v7863_v16 = vld [vmem:[#allocation4 + $0x218] sm:$0xff]  ;;  %v7866_v62 = vld [vmem:[#allocation4 + $0x200] sm:$0xff] }
 0x934   :  { %3407 = vmatprep.subr.mxu1 %v7851_v59  ;;  %3337 = vmatpush1.msra.mxu0 %v7854_v32  ;;  %9914 = vst [vmem:[#allocation38_spill] sm:$0xff] %v7863_v16  ;;  %9915 = vst [vmem:[#allocation97_spill] sm:$0xff] %v7866_v62  ;;  %v7869_v59 = vld [vmem:[#allocation4 + $0x210] sm:$0xff]  ;;  %v7872_v32 = vld [vmem:[#allocation4 + $0x1c8] sm:$0xff] }
 0x935   :  { %3408 = vmatpush1.msra.mxu1 %v7857_v42  ;;  %3338 = vmatprep.subr.mxu0 %v7860_v63  ;;  %9916 = vst [vmem:[#allocation98_spill] sm:$0xff] %v7869_v59  ;;  %9917 = vst [vmem:[#allocation19_spill] sm:$0xff] %v7872_v32  ;;  %v7875_v42 = vld [vmem:[#allocation4 + $0x1d8] sm:$0xff]  ;;  %v7878_v63 = vld [vmem:[#allocation4 + $0x1c0] sm:$0xff] }
 0x936   :  { %3409 = vmatprep.subr.mxu1 %v7863_v16  ;;  %3339 = vmatpush1.msra.mxu0 %v7866_v62  ;;  %9918 = vst [vmem:[#allocation20_spill] sm:$0xff] %v7875_v42  ;;  %9919 = vst [vmem:[#allocation21_spill] sm:$0xff] %v7878_v63  ;;  %v7881_v16 = vld [vmem:[#allocation4 + $0x1d0] sm:$0xff]  ;;  %v7884_v62 = vld [vmem:[#allocation4 + $0x188] sm:$0xff] }
 0x937   :  { %3410 = vmatpush1.msra.mxu1 %v7869_v59  ;;  %3340 = vmatprep.subr.mxu0 %v7872_v32  ;;  %9920 = vst [vmem:[#allocation22_spill] sm:$0xff] %v7881_v16  ;;  %9921 = vst [vmem:[#allocation23_spill] sm:$0xff] %v7884_v62  ;;  %v7887_v59 = vld [vmem:[#allocation4 + $0x198] sm:$0xff]  ;;  %v7890_v32 = vld [vmem:[#allocation4 + $0x180] sm:$0xff] }
 0x938   :  { %3411 = vmatprep.subr.mxu1 %v7875_v42  ;;  %3341 = vmatpush1.msra.mxu0 %v7878_v63  ;;  %9922 = vst [vmem:[#allocation24_spill] sm:$0xff] %v7887_v59  ;;  %9923 = vst [vmem:[#allocation25_spill] sm:$0xff] %v7890_v32  ;;  %v7893_v42 = vld [vmem:[#allocation4 + $0x190] sm:$0xff]  ;;  %v7896_v63 = vld [vmem:[#allocation4 + $0x148] sm:$0xff] }
 0x939   :  { %3412 = vmatpush1.msra.mxu1 %v7881_v16  ;;  %3342 = vmatprep.subr.mxu0 %v7884_v62  ;;  %9924 = vst [vmem:[#allocation26_spill] sm:$0xff] %v7893_v42  ;;  %9925 = vst [vmem:[#allocation65_spill] sm:$0xff] %v7896_v63  ;;  %v7899_v16 = vld [vmem:[#allocation4 + $0x158] sm:$0xff]  ;;  %v7902_v62 = vld [vmem:[#allocation4 + $0x140] sm:$0xff] }
 0x93a   :  { %3413 = vmatprep.subr.mxu1 %v7887_v59  ;;  %3343 = vmatpush1.msra.mxu0 %v7890_v32  ;;  %9926 = vst [vmem:[#allocation66_spill] sm:$0xff] %v7899_v16  ;;  %9927 = vst [vmem:[#allocation67_spill] sm:$0xff] %v7902_v62  ;;  %v7905_v59 = vld [vmem:[#allocation4 + $0x150] sm:$0xff]  ;;  %v7908_v32 = vld [vmem:[#allocation4 + $0x108] sm:$0xff] }
 0x93b   :  { %3414 = vmatpush1.msra.mxu1 %v7893_v42  ;;  %3344 = vmatprep.subr.mxu0 %v7896_v63  ;;  %9928 = vst [vmem:[#allocation68_spill] sm:$0xff] %v7905_v59  ;;  %9929 = vst [vmem:[#allocation69_spill] sm:$0xff] %v7908_v32  ;;  %v7911_v42 = vld [vmem:[#allocation4 + $0x118] sm:$0xff]  ;;  %v7914_v63 = vld [vmem:[#allocation4 + $0x100] sm:$0xff] }
 0x93c   :  { %3415 = vmatprep.subr.mxu1 %v7899_v16  ;;  %3345 = vmatpush1.msra.mxu0 %v7902_v62  ;;  %9930 = vst [vmem:[#allocation70_spill] sm:$0xff] %v7911_v42  ;;  %9931 = vst [vmem:[#allocation71_spill] sm:$0xff] %v7914_v63  ;;  %v7917_v16 = vld [vmem:[#allocation4 + $0x110] sm:$0xff]  ;;  %v7920_v62 = vld [vmem:[#allocation4 + $0xc8] sm:$0xff] }
 0x93d   :  { %3416 = vmatpush1.msra.mxu1 %v7905_v59  ;;  %3346 = vmatprep.subr.mxu0 %v7908_v32  ;;  %9932 = vst [vmem:[#allocation72_spill] sm:$0xff] %v7917_v16  ;;  %9933 = vst [vmem:[#allocation82_spill] sm:$0xff] %v7920_v62  ;;  %v7923_v59 = vld [vmem:[#allocation4 + $0xd8] sm:$0xff]  ;;  %v7926_v32 = vld [vmem:[#allocation4 + $0xc0] sm:$0xff] }
 0x93e   :  { %3417 = vmatprep.subr.mxu1 %v7911_v42  ;;  %3347 = vmatpush1.msra.mxu0 %v7914_v63  ;;  %9934 = vst [vmem:[#allocation83_spill] sm:$0xff] %v7923_v59  ;;  %9935 = vst [vmem:[#allocation84_spill] sm:$0xff] %v7926_v32  ;;  %v7929_v42 = vld [vmem:[#allocation4 + $0xd0] sm:$0xff]  ;;  %v7932_v63 = vld [vmem:[#allocation4 + $0x88] sm:$0xff] }
 0x93f   :  { %3418 = vmatpush1.msra.mxu1 %v7917_v16  ;;  %3348 = vmatprep.subr.mxu0 %v7920_v62  ;;  %9936 = vst [vmem:[#allocation85_spill] sm:$0xff] %v7929_v42  ;;  %9937 = vst [vmem:[#allocation86_spill] sm:$0xff] %v7932_v63  ;;  %v7935_v16 = vld [vmem:[#allocation4 + $0x98] sm:$0xff]  ;;  %v7938_v62 = vld [vmem:[#allocation4 + $0x80] sm:$0xff] }
 0x940   :  { %3419 = vmatprep.subr.mxu1 %v7923_v59  ;;  %3349 = vmatpush1.msra.mxu0 %v7926_v32  ;;  %9938 = vst [vmem:[#allocation87_spill] sm:$0xff] %v7935_v16  ;;  %9939 = vst [vmem:[#allocation99_spill] sm:$0xff] %v7938_v62  ;;  %v7941_v59 = vld [vmem:[#allocation4 + $0x90] sm:$0xff]  ;;  %v7944_v32 = vld [vmem:[#allocation4 + $0x48] sm:$0xff] }
 0x941   :  { %3420 = vmatpush1.msra.mxu1 %v7929_v42  ;;  %3350 = vmatprep.subr.mxu0 %v7932_v63  ;;  %9940 = vst [vmem:[#allocation100_spill] sm:$0xff] %v7941_v59  ;;  %9941 = vst [vmem:[#allocation101_spill] sm:$0xff] %v7944_v32  ;;  %v7947_v42 = vld [vmem:[#allocation4 + $0x58] sm:$0xff]  ;;  %v7950_v63 = vld [vmem:[#allocation4 + $0x40] sm:$0xff] }
 0x942   :  { %3421 = vmatprep.subr.mxu1 %v7935_v16  ;;  %3351 = vmatpush1.msra.mxu0 %v7938_v62  ;;  %9942 = vst [vmem:[#allocation102_spill] sm:$0xff] %v7947_v42  ;;  %9943 = vst [vmem:[#allocation103_spill] sm:$0xff] %v7950_v63  ;;  %v7953_v16 = vld [vmem:[#allocation4 + $0x50] sm:$0xff]  ;;  %v7956_v62 = vld [vmem:[#allocation4 + $0x8] sm:$0xff] }
 0x943   :  { %3422 = vmatpush1.msra.mxu1 %v7941_v59  ;;  %3352 = vmatprep.subr.mxu0 %v7944_v32  ;;  %9944 = vst [vmem:[#allocation104_spill] sm:$0xff] %v7953_v16  ;;  %9945 = vst [vmem:[#allocation105_spill] sm:$0xff] %v7956_v62  ;;  %v7959_v59 = vld [vmem:[#allocation4 + $0x18] sm:$0xff]  ;;  %v7962_v32 = vld [vmem:[#allocation4] sm:$0xff] }
 0x944   :  { %3423 = vmatprep.subr.mxu1 %v7947_v42  ;;  %3353 = vmatpush1.msra.mxu0 %v7950_v63  ;;  %9946 = vst [vmem:[#allocation106_spill] sm:$0xff] %v7959_v59  ;;  %9947 = vst [vmem:[#allocation107_spill] sm:$0xff] %v7962_v32  ;;  %v7965_v42 = vld [vmem:[#allocation4 + $0x10] sm:$0xff]  ;;  %v3043_v63 = vpop.f32.mrf.mxu1 }
 0x945   :  { %3424 = vmatpush1.msra.mxu1 %v7953_v16  ;;  %3354 = vmatprep.subr.mxu0 %v7956_v62  ;;  %9948 = vst [vmem:[#allocation108_spill] sm:$0xff] %v7965_v42  ;;  %v7970_v16 = vld [vmem:[#allocation4 + $0x3e8] sm:$0xff]  ;;  %v7973_v62 = vld [vmem:[#allocation4 + $0x3f8] sm:$0xff] }
 0x946   :  { %3425 = vmatprep.subr.mxu1 %v7959_v59  ;;  %3355 = vmatpush1.msra.mxu0 %v7962_v32  ;;  %9949 = vst [vmem:[#allocation109_spill] sm:$0xff] %v7970_v16  ;;  %9950 = vst [vmem:[#allocation110_spill] sm:$0xff] %v7973_v62  ;;  %v65_v32 = vld [vmem:[%s8503_s6] sm:$0xf]  ;;  %v2972_v59 = vpop.f32.mrf.mxu0  ;;  %v3045_v33 = vpop.f32.mrf.mxu1 }
 0x947   :  { %3426 = vmatpush1.msra.mxu1 %v7965_v42  ;;  %3388 = vmatprep.mubr.f32.mxu0 %v9237_v7  ;;  %v7980_v42 = vrot.slane %v65_v32, %v9951_v53  ;;  %v7983_v18 = vrot.slane %v65_v32, %v9953_v30  ;;  %v7988_v26 = vrot.slane %v65_v32, %v9955_v51 }
 0x948   :  { %3459 = vmatprep.mubr.f32.mxu1 %v9237_v7  ;;  %3466 = vmatprep.subr.mxu0 %v7970_v16  ;;  %v2974_v37 = vpop.f32.mrf.mxu0  ;;  %v7992_v24 = vrot.slane %v65_v32, %v9956_v55 }
 0x949   :  { %3537 = vmatprep.subr.mxu1 %v7973_v62  ;;  %9952 = vst [vmem:[#allocation33_spill] sm:$0xff] %v7980_v42  ;;  %9954 = vst [vmem:[#allocation34_spill] sm:$0xff] %v7983_v18  ;;  %v3091_v16 = vadd.f32 %v7980_v42, %v2972_v59  ;;  %v3092_v62 = vadd.f32 %v7983_v18, %v2974_v37  ;;  %v3094_v15 = vadd.f32 %v7988_v26, %v3045_v33 }
 0x94a   :  { %v3093_v42 = vadd.f32 %v7992_v24, %v3043_v63 }
 0x9e7   :  { %v3225_v45 = vpop.f32.mrf.mxu0  ;;  %v3296_v4 = vpop.f32.mrf.mxu1 }
 0x9e8   :  { %v3301_v36 = vadd.f32 %v3225_v45, %v3091_v16  ;;  %v3303_v37 = vadd.f32 %v3296_v4, %v3093_v42 }
 0x9e9   :  { %v3227_v3 = vpop.f32.mrf.mxu0  ;;  %v3298_v53 = vpop.f32.mrf.mxu1 }
 0x9ea   :  { %v3305_v50 = vmul.f32 0.5, %v3301_v36  ;;  %v3302_v12 = vadd.f32 %v3227_v3, %v3092_v62  ;;  %v3304_v59 = vadd.f32 %v3298_v53, %v3094_v15  ;;  %v3307_v51 = vmul.f32 0.5, %v3303_v37  ;;  %v8004_v53 = vld [vmem:[#allocation4 + $0x3e0] sm:$0xff]  ;;  %v8019_v37 = vld [vmem:[#allocation4 + $0x3b0] sm:$0xff] }
 0x9ec   :  { %4754 = vtanh.f32 %v3305_v50  ;;  %v3306_v30 = vmul.f32 0.5, %v3302_v12 }
 0x9ee   :  { %4756 = vtanh.f32 %v3306_v30  ;;  %v8010_v30 = vld [vmem:[#allocation4 + $0x3a8] sm:$0xff] }
 0x9ef   :  { %4758 = vtanh.f32 %v3304_v59  ;;  %v8013_v59 = vld [vmem:[#allocation4 + $0x3b8] sm:$0xff] }
 0x9f0   :  { %4760 = vtanh.f32 %v3307_v51  ;;  %v8022_v51 = vld [vmem:[#allocation4 + $0x368] sm:$0xff] }
 0x9f9   :  { %v4755_v18 = vpop.eup %4754 }
 0x9fa   :  { %v3311_v45 = vadd.f32 1.0, %v4755_v18 }
 0x9fb   :  { %v4757_v16 = vpop.eup %4756 }
 0x9fc   :  { %v3314_v36 = vmul.f32 0.5, %v3311_v45  ;;  %v3312_v3 = vadd.f32 1.0, %v4757_v16  ;;  %v4759_v33 = vpop.eup %4758  ;;  %v8025_v45 = vld [vmem:[#allocation4 + $0x378] sm:$0xff]  ;;  %v8028_v16 = vld [vmem:[#allocation4 + $0x360] sm:$0xff] }
 0x9fd   :  { %v4761_v15 = vpop.eup %4760 }
 0x9fe   :  { %v3315_v62 = vmul.f32 0.5, %v3312_v3  ;;  %v3319_v50 = vmul.f32 %v4759_v33, %v3314_v36  ;;  %v3313_v32 = vadd.f32 1.0, %v4761_v15  ;;  %v8031_v36 = vld [vmem:[#allocation4 + $0x370] sm:$0xff]  ;;  %v8034_v3 = vld [vmem:[#allocation4 + $0x328] sm:$0xff]  ;;  %v8040_v33 = vld [vmem:[#allocation4 + $0x320] sm:$0xff] }
 0x9ff   :  { %v8049_v15 = vld [vmem:[#allocation4 + $0x2f8] sm:$0xff] }
 0xa00   :  { %v3318_v12 = vmul.f32 %v3315_v62, %v7495_v39  ;;  %v3316_v63 = vmul.f32 0.5, %v3313_v32  ;;  %v8007_v39 = vld [vmem:[#allocation4 + $0x3f0] sm:$0xff]  ;;  %v8037_v62 = vld [vmem:[#allocation4 + $0x338] sm:$0xff]  ;;  %9958 = vst [vmem:[#allocation41_spill] sm:$0xff] %v8049_v15  ;;  %v8052_v32 = vld [vmem:[#allocation4 + $0x2e0] sm:$0xff] }
 0xa01   :  { %9959 = vst [vmem:[#allocation111_spill] sm:$0xff] %v8052_v32 }
 0xa02   :  { %v7996_v55 = vadd.f32 %v3319_v50, %v3318_v12  ;;  %v8043_v12 = vld [vmem:[#allocation4 + $0x330] sm:$0xff]  ;;  %v8046_v50 = vld [vmem:[#allocation4 + $0x2e8] sm:$0xff] }
 0xa03   :  { %9957 = vst [vmem:[#allocation35_spill] sm:$0xff] %v8046_v50 }
 0xa04   :  { %4762 = vtanh.f32 %v7996_v55 }
 0xa11   :  { %v4763_v4 = vpop.eup %4762 }
 0xa12   :  { %v3322_v42 = vmul.f32 %v4763_v4, %v3316_v63  ;;  %v8055_v63 = vld [vmem:[#allocation4 + $0x2f0] sm:$0xff]  ;;  %v8058_v4 = vld [vmem:[#allocation4 + $0x2a8] sm:$0xff] }
 0xa13   :  { %9960 = vst [vmem:[#allocation112_spill] sm:$0xff] %v8055_v63  ;;  %9961 = vst [vmem:[#allocation113_spill] sm:$0xff] %v8058_v4 }
 0xa14   :  { %v8000_v18 = vadd.f32 %v3322_v42, %v7776_v10  ;;  %v8016_v10 = vld [vmem:[#allocation4 + $0x3a0] sm:$0xff]  ;;  %v8061_v42 = vld [vmem:[#allocation4 + $0x2b8] sm:$0xff] }
 0xa15   :  { %9962 = vst [vmem:[#allocation114_spill] sm:$0xff] %v8061_v42 }
 0xa16   :  { %3389 = vmatmul.mubr.f32.vlgmr.msra.gmra.mxu0 %v8000_v18  ;;  %3460 = vmatmul.mubr.f32.vlgmr.msra.gmra.mxu1 %v8000_v18 }
 0xa17   :  { %3467 = vmatpush1.msra.mxu0 %v8004_v53  ;;  %3538 = vmatpush1.msra.mxu1 %v8007_v39 }
 0xa18   :  { %3468 = vmatprep.subr.mxu0 %v8010_v30  ;;  %3539 = vmatprep.subr.mxu1 %v8013_v59 }
 0xa19   :  { %3469 = vmatpush1.msra.mxu0 %v8016_v10  ;;  %3540 = vmatpush1.msra.mxu1 %v8019_v37 }
 0xa1a   :  { %3470 = vmatprep.subr.mxu0 %v8022_v51  ;;  %3541 = vmatprep.subr.mxu1 %v8025_v45 }
 0xa1b   :  { %3471 = vmatpush1.msra.mxu0 %v8028_v16  ;;  %3542 = vmatpush1.msra.mxu1 %v8031_v36 }
 0xa1c   :  { %3472 = vmatprep.subr.mxu0 %v8034_v3  ;;  %3543 = vmatprep.subr.mxu1 %v8037_v62 }
 0xa1d   :  { %3473 = vmatpush1.msra.mxu0 %v8040_v33  ;;  %3544 = vmatpush1.msra.mxu1 %v8043_v12 }
 0xa1e   :  { %3474 = vmatprep.subr.mxu0 %v8046_v50  ;;  %3545 = vmatprep.subr.mxu1 %v8049_v15  ;;  %v8064_v50 = vld [vmem:[#allocation4 + $0x2a0] sm:$0xff]  ;;  %v8067_v15 = vld [vmem:[#allocation4 + $0x2b0] sm:$0xff] }
 0xa1f   :  { %3475 = vmatpush1.msra.mxu0 %v8052_v32  ;;  %3546 = vmatpush1.msra.mxu1 %v8055_v63  ;;  %9963 = vst [vmem:[#allocation115_spill] sm:$0xff] %v8064_v50  ;;  %9964 = vst [vmem:[#allocation116_spill] sm:$0xff] %v8067_v15  ;;  %v8070_v32 = vld [vmem:[#allocation4 + $0x268] sm:$0xff]  ;;  %v8073_v63 = vld [vmem:[#allocation4 + $0x278] sm:$0xff] }
 0xa20   :  { %3476 = vmatprep.subr.mxu0 %v8058_v4  ;;  %3547 = vmatprep.subr.mxu1 %v8061_v42  ;;  %9965 = vst [vmem:[#allocation117_spill] sm:$0xff] %v8070_v32  ;;  %9966 = vst [vmem:[#allocation118_spill] sm:$0xff] %v8073_v63  ;;  %v8076_v4 = vld [vmem:[#allocation4 + $0x260] sm:$0xff]  ;;  %v8079_v42 = vld [vmem:[#allocation4 + $0x270] sm:$0xff] }
 0xa21   :  { %3477 = vmatpush1.msra.mxu0 %v8064_v50  ;;  %3548 = vmatpush1.msra.mxu1 %v8067_v15  ;;  %9967 = vst [vmem:[#allocation119_spill] sm:$0xff] %v8076_v4  ;;  %9968 = vst [vmem:[#allocation120_spill] sm:$0xff] %v8079_v42  ;;  %v8082_v50 = vld [vmem:[#allocation4 + $0x228] sm:$0xff]  ;;  %v8085_v15 = vld [vmem:[#allocation4 + $0x238] sm:$0xff] }
 0xa22   :  { %3478 = vmatprep.subr.mxu0 %v8070_v32  ;;  %3549 = vmatprep.subr.mxu1 %v8073_v63  ;;  %9969 = vst [vmem:[#allocation121_spill] sm:$0xff] %v8082_v50  ;;  %9970 = vst [vmem:[#allocation122_spill] sm:$0xff] %v8085_v15  ;;  %v8088_v32 = vld [vmem:[#allocation4 + $0x220] sm:$0xff]  ;;  %v8091_v63 = vld [vmem:[#allocation4 + $0x230] sm:$0xff] }
 0xa23   :  { %3479 = vmatpush1.msra.mxu0 %v8076_v4  ;;  %3550 = vmatpush1.msra.mxu1 %v8079_v42  ;;  %9971 = vst [vmem:[#allocation123_spill] sm:$0xff] %v8088_v32  ;;  %9972 = vst [vmem:[#allocation124_spill] sm:$0xff] %v8091_v63  ;;  %v8094_v4 = vld [vmem:[#allocation4 + $0x1e8] sm:$0xff]  ;;  %v8097_v42 = vld [vmem:[#allocation4 + $0x1f8] sm:$0xff] }
 0xa24   :  { %3480 = vmatprep.subr.mxu0 %v8082_v50  ;;  %3551 = vmatprep.subr.mxu1 %v8085_v15  ;;  %9973 = vst [vmem:[#allocation125_spill] sm:$0xff] %v8094_v4  ;;  %9974 = vst [vmem:[#allocation126_spill] sm:$0xff] %v8097_v42  ;;  %v8100_v50 = vld [vmem:[#allocation4 + $0x1e0] sm:$0xff]  ;;  %v8103_v15 = vld [vmem:[#allocation4 + $0x1f0] sm:$0xff] }
 0xa25   :  { %3481 = vmatpush1.msra.mxu0 %v8088_v32  ;;  %3552 = vmatpush1.msra.mxu1 %v8091_v63  ;;  %9975 = vst [vmem:[#allocation127_spill] sm:$0xff] %v8100_v50  ;;  %9976 = vst [vmem:[#allocation128_spill] sm:$0xff] %v8103_v15  ;;  %v8106_v32 = vld [vmem:[#allocation4 + $0x1a8] sm:$0xff]  ;;  %v8109_v63 = vld [vmem:[#allocation4 + $0x1b8] sm:$0xff] }
 0xa26   :  { %3482 = vmatprep.subr.mxu0 %v8094_v4  ;;  %3553 = vmatprep.subr.mxu1 %v8097_v42  ;;  %9977 = vst [vmem:[#allocation129_spill] sm:$0xff] %v8106_v32  ;;  %9978 = vst [vmem:[#allocation130_spill] sm:$0xff] %v8109_v63  ;;  %v8112_v4 = vld [vmem:[#allocation4 + $0x1a0] sm:$0xff]  ;;  %v8115_v42 = vld [vmem:[#allocation4 + $0x1b0] sm:$0xff] }
 0xa27   :  { %3483 = vmatpush1.msra.mxu0 %v8100_v50  ;;  %3554 = vmatpush1.msra.mxu1 %v8103_v15  ;;  %9979 = vst [vmem:[#allocation131_spill] sm:$0xff] %v8112_v4  ;;  %9980 = vst [vmem:[#allocation132_spill] sm:$0xff] %v8115_v42  ;;  %v8118_v50 = vld [vmem:[#allocation4 + $0x168] sm:$0xff]  ;;  %v8121_v15 = vld [vmem:[#allocation4 + $0x178] sm:$0xff] }
 0xa28   :  { %3484 = vmatprep.subr.mxu0 %v8106_v32  ;;  %3555 = vmatprep.subr.mxu1 %v8109_v63  ;;  %9981 = vst [vmem:[#allocation133_spill] sm:$0xff] %v8118_v50  ;;  %9982 = vst [vmem:[#allocation134_spill] sm:$0xff] %v8121_v15  ;;  %v8124_v32 = vld [vmem:[#allocation4 + $0x160] sm:$0xff]  ;;  %v8127_v63 = vld [vmem:[#allocation4 + $0x170] sm:$0xff] }
 0xa29   :  { %3485 = vmatpush1.msra.mxu0 %v8112_v4  ;;  %3556 = vmatpush1.msra.mxu1 %v8115_v42  ;;  %9983 = vst [vmem:[#allocation135_spill] sm:$0xff] %v8124_v32  ;;  %9984 = vst [vmem:[#allocation136_spill] sm:$0xff] %v8127_v63  ;;  %v8130_v4 = vld [vmem:[#allocation4 + $0x128] sm:$0xff]  ;;  %v8133_v42 = vld [vmem:[#allocation4 + $0x138] sm:$0xff] }
 0xa2a   :  { %3486 = vmatprep.subr.mxu0 %v8118_v50  ;;  %3557 = vmatprep.subr.mxu1 %v8121_v15  ;;  %9985 = vst [vmem:[#allocation137_spill] sm:$0xff] %v8130_v4  ;;  %9986 = vst [vmem:[#allocation138_spill] sm:$0xff] %v8133_v42  ;;  %v8136_v50 = vld [vmem:[#allocation4 + $0x120] sm:$0xff]  ;;  %v8139_v15 = vld [vmem:[#allocation4 + $0x130] sm:$0xff] }
 0xa2b   :  { %3487 = vmatpush1.msra.mxu0 %v8124_v32  ;;  %3558 = vmatpush1.msra.mxu1 %v8127_v63  ;;  %9987 = vst [vmem:[#allocation139_spill] sm:$0xff] %v8136_v50  ;;  %9988 = vst [vmem:[#allocation140_spill] sm:$0xff] %v8139_v15  ;;  %v8142_v32 = vld [vmem:[#allocation4 + $0xe8] sm:$0xff]  ;;  %v8145_v63 = vld [vmem:[#allocation4 + $0xf8] sm:$0xff] }
 0xa2c   :  { %3488 = vmatprep.subr.mxu0 %v8130_v4  ;;  %3559 = vmatprep.subr.mxu1 %v8133_v42  ;;  %9989 = vst [vmem:[#allocation141_spill] sm:$0xff] %v8142_v32  ;;  %9990 = vst [vmem:[#allocation142_spill] sm:$0xff] %v8145_v63  ;;  %v8148_v4 = vld [vmem:[#allocation4 + $0xe0] sm:$0xff]  ;;  %v8151_v42 = vld [vmem:[#allocation4 + $0xf0] sm:$0xff] }
 0xa2d   :  { %3489 = vmatpush1.msra.mxu0 %v8136_v50  ;;  %3560 = vmatpush1.msra.mxu1 %v8139_v15  ;;  %9991 = vst [vmem:[#allocation143_spill] sm:$0xff] %v8148_v4  ;;  %9992 = vst [vmem:[#allocation144_spill] sm:$0xff] %v8151_v42  ;;  %v8154_v50 = vld [vmem:[#allocation4 + $0xa8] sm:$0xff]  ;;  %v8157_v15 = vld [vmem:[#allocation4 + $0xb8] sm:$0xff] }
 0xa2e   :  { %3490 = vmatprep.subr.mxu0 %v8142_v32  ;;  %3561 = vmatprep.subr.mxu1 %v8145_v63  ;;  %9993 = vst [vmem:[#allocation145_spill] sm:$0xff] %v8154_v50  ;;  %9994 = vst [vmem:[#allocation146_spill] sm:$0xff] %v8157_v15  ;;  %v8160_v32 = vld [vmem:[#allocation4 + $0xa0] sm:$0xff]  ;;  %v8163_v63 = vld [vmem:[#allocation4 + $0xb0] sm:$0xff] }
 0xa2f   :  { %3491 = vmatpush1.msra.mxu0 %v8148_v4  ;;  %3562 = vmatpush1.msra.mxu1 %v8151_v42  ;;  %9995 = vst [vmem:[#allocation147_spill] sm:$0xff] %v8160_v32  ;;  %9996 = vst [vmem:[#allocation148_spill] sm:$0xff] %v8163_v63  ;;  %v8166_v4 = vld [vmem:[#allocation4 + $0x68] sm:$0xff]  ;;  %v8169_v42 = vld [vmem:[#allocation4 + $0x78] sm:$0xff] }
 0xa30   :  { %3492 = vmatprep.subr.mxu0 %v8154_v50  ;;  %3563 = vmatprep.subr.mxu1 %v8157_v15  ;;  %9997 = vst [vmem:[#allocation149_spill] sm:$0xff] %v8166_v4  ;;  %9998 = vst [vmem:[#allocation150_spill] sm:$0xff] %v8169_v42  ;;  %v8172_v50 = vld [vmem:[#allocation4 + $0x60] sm:$0xff]  ;;  %v8175_v15 = vld [vmem:[#allocation4 + $0x70] sm:$0xff] }
 0xa31   :  { %3493 = vmatpush1.msra.mxu0 %v8160_v32  ;;  %3564 = vmatpush1.msra.mxu1 %v8163_v63  ;;  %v8178_v32 = vld [vmem:[#allocation4 + $0x28] sm:$0xff]  ;;  %v8181_v63 = vld [vmem:[#allocation4 + $0x38] sm:$0xff] }
 0xa32   :  { %3494 = vmatprep.subr.mxu0 %v8166_v4  ;;  %3565 = vmatprep.subr.mxu1 %v8169_v42  ;;  %v8184_v4 = vld [vmem:[#allocation4 + $0x20] sm:$0xff]  ;;  %v8188_v42 = vld [vmem:[#allocation4 + $0x30] sm:$0xff] }
 0xa33   :  { %3495 = vmatpush1.msra.mxu0 %v8172_v50  ;;  %3566 = vmatpush1.msra.mxu1 %v8175_v15 }
 0xa34   :  { %3496 = vmatprep.subr.mxu0 %v8178_v32  ;;  %3567 = vmatprep.subr.mxu1 %v8181_v63 }
 0xa35   :  { %3497 = vmatpush1.msra.mxu0 %v8184_v4  ;;  %3530 = vmatprep.mubr.f32.mxu0 %v9237_v7 }
 0xa36   :  { %3568 = vmatpush1.msra.mxu1 %v8188_v42  ;;  %3601 = vmatprep.mubr.f32.mxu1 %v9237_v7 }
 0xa37   :  { %3531 = vmatmul.mubr.f32.vlgmr.msra.gmra.mxu0 %v8000_v18  ;;  %3602 = vmatmul.mubr.f32.vlgmr.msra.gmra.mxu1 %v8000_v18  ;;  %v10029_v18 = vld [vmem:[#allocation13_spill] sm:$0xff] }
 0xa38   :  { %3634 = vmatprep.subr.mxu0 %v7570_v20  ;;  %3705 = vmatprep.subr.mxu1 %v7572_v40  ;;  %v9999_v20 = vld [vmem:[#allocation88_spill] sm:$0xff]  ;;  %v10000_v40 = vld [vmem:[#allocation89_spill] sm:$0xff] }
 0xa39   :  { %3635 = vmatpush1.msra.mxu0 %v7576_v14  ;;  %3706 = vmatpush1.msra.mxu1 %v7578_v29  ;;  %v10001_v14 = vld [vmem:[#allocation90_spill] sm:$0xff]  ;;  %v10002_v29 = vld [vmem:[#allocation96_spill] sm:$0xff] }
 0xa3a   :  { %3636 = vmatprep.subr.mxu0 %v7582_v31  ;;  %3707 = vmatprep.subr.mxu1 %v7584_v61  ;;  %v10003_v31 = vld [vmem:[#allocation27_spill] sm:$0xff]  ;;  %v10004_v61 = vld [vmem:[#allocation28_spill] sm:$0xff] }
 0xa3b   :  { %3637 = vmatpush1.msra.mxu0 %v7588_v0  ;;  %3708 = vmatpush1.msra.mxu1 %v7590_v41  ;;  %v10005_v0 = vld [vmem:[#allocation29_spill] sm:$0xff]  ;;  %v10006_v41 = vld [vmem:[#allocation30_spill] sm:$0xff] }
 0xa3c   :  { %3638 = vmatprep.subr.mxu0 %v7594_v25  ;;  %3709 = vmatprep.subr.mxu1 %v7596_v5  ;;  %v10007_v25 = vld [vmem:[#allocation31_spill] sm:$0xff]  ;;  %v10008_v5 = vld [vmem:[#allocation14_spill] sm:$0xff] }
 0xa3d   :  { %3639 = vmatpush1.msra.mxu0 %v7600_v52  ;;  %3710 = vmatpush1.msra.mxu1 %v7602_v60  ;;  %v10009_v52 = vld [vmem:[#allocation50_spill] sm:$0xff]  ;;  %v10010_v60 = vld [vmem:[#allocation51_spill] sm:$0xff] }
 0xa3e   :  { %3640 = vmatprep.subr.mxu0 %v7606_v54  ;;  %3711 = vmatprep.subr.mxu1 %v7608_v27  ;;  %v10011_v54 = vld [vmem:[#allocation52_spill] sm:$0xff]  ;;  %v10012_v27 = vld [vmem:[#allocation53_spill] sm:$0xff] }
 0xa3f   :  { %3641 = vmatpush1.msra.mxu0 %v7612_v43  ;;  %3712 = vmatpush1.msra.mxu1 %v7614_v13  ;;  %v10013_v43 = vld [vmem:[#allocation54_spill] sm:$0xff]  ;;  %v10014_v13 = vld [vmem:[#allocation55_spill] sm:$0xff] }
 0xa40   :  { %3642 = vmatprep.subr.mxu0 %v7618_v1  ;;  %3713 = vmatprep.subr.mxu1 %v7620_v48  ;;  %v10015_v1 = vld [vmem:[#allocation56_spill] sm:$0xff]  ;;  %v10016_v48 = vld [vmem:[#allocation57_spill] sm:$0xff] }
 0xa41   :  { %3643 = vmatpush1.msra.mxu0 %v7624_v34  ;;  %3714 = vmatpush1.msra.mxu1 %v7626_v56  ;;  %v10017_v34 = vld [vmem:[#allocation58_spill] sm:$0xff]  ;;  %v10018_v56 = vld [vmem:[#allocation59_spill] sm:$0xff] }
 0xa42   :  { %3644 = vmatprep.subr.mxu0 %v7630_v17  ;;  %3715 = vmatprep.subr.mxu1 %v7632_v8  ;;  %v10019_v17 = vld [vmem:[#allocation60_spill] sm:$0xff]  ;;  %v10020_v8 = vld [vmem:[#allocation61_spill] sm:$0xff] }
 0xa43   :  { %3645 = vmatpush1.msra.mxu0 %v7636_v58  ;;  %3716 = vmatpush1.msra.mxu1 %v7638_v6  ;;  %v10021_v58 = vld [vmem:[#allocation62_spill] sm:$0xff]  ;;  %v10022_v6 = vld [vmem:[#allocation63_spill] sm:$0xff] }
 0xa44   :  { %3646 = vmatprep.subr.mxu0 %v7642_v57  ;;  %3717 = vmatprep.subr.mxu1 %v7644_v28  ;;  %v10023_v57 = vld [vmem:[#allocation64_spill] sm:$0xff]  ;;  %v10024_v28 = vld [vmem:[#allocation18_spill] sm:$0xff] }
 0xa45   :  { %3647 = vmatpush1.msra.mxu0 %v7648_v11  ;;  %3718 = vmatpush1.msra.mxu1 %v7650_v2  ;;  %v10025_v11 = vld [vmem:[#allocation73_spill] sm:$0xff] }
 0xa46   :  { %3648 = vmatprep.subr.mxu0 %v7654_v19  ;;  %3719 = vmatprep.subr.mxu1 %v7656_v49  ;;  %v10026_v49 = vld [vmem:[#allocation10_spill] sm:$0xff] }
 0xa47   :  { %3649 = vmatpush1.msra.mxu0 %v7658_v47  ;;  %3720 = vmatpush1.msra.mxu1 %v7662_v9 }
 0xa48   :  { %3650 = vmatprep.subr.mxu0 %v7664_v38  ;;  %3721 = vmatprep.subr.mxu1 %v7666_v35  ;;  %v10027_v35 = vld [vmem:[#allocation11_spill] sm:$0xff] }
 0xa49   :  { %3651 = vmatpush1.msra.mxu0 %v7670_v46  ;;  %3722 = vmatpush1.msra.mxu1 %v7672_v44 }
 0xa4a   :  { %3652 = vmatprep.subr.mxu0 %v7678_v22  ;;  %3723 = vmatprep.subr.mxu1 %v7680_v21  ;;  %v10028_v21 = vld [vmem:[#allocation12_spill] sm:$0xff] }
 0xa4b   :  { %3653 = vmatpush1.msra.mxu0 %v7684_v23  ;;  %3724 = vmatpush1.msra.mxu1 %v9999_v20 }
 0xa4c   :  { %3654 = vmatprep.subr.mxu0 %v10000_v40  ;;  %3725 = vmatprep.subr.mxu1 %v10001_v14 }
 0xa4d   :  { %3655 = vmatpush1.msra.mxu0 %v10002_v29  ;;  %3726 = vmatpush1.msra.mxu1 %v10003_v31 }
 0xa4e   :  { %3656 = vmatprep.subr.mxu0 %v10004_v61  ;;  %3727 = vmatprep.subr.mxu1 %v10005_v0 }
 0xa4f   :  { %3657 = vmatpush1.msra.mxu0 %v10006_v41  ;;  %3728 = vmatpush1.msra.mxu1 %v10007_v25 }
 0xa50   :  { %3658 = vmatprep.subr.mxu0 %v10008_v5  ;;  %3729 = vmatprep.subr.mxu1 %v10009_v52  ;;  %v10030_v5 = vld [vmem:[#allocation74_spill] sm:$0xff] }
 0xa51   :  { %3659 = vmatpush1.msra.mxu0 %v10010_v60  ;;  %3730 = vmatpush1.msra.mxu1 %v10011_v54 }
 0xa52   :  { %3660 = vmatprep.subr.mxu0 %v10012_v27  ;;  %3731 = vmatprep.subr.mxu1 %v10013_v43 }
 0xa53   :  { %3661 = vmatpush1.msra.mxu0 %v10014_v13  ;;  %3732 = vmatpush1.msra.mxu1 %v10015_v1 }
 0xa54   :  { %3662 = vmatprep.subr.mxu0 %v10016_v48  ;;  %3733 = vmatprep.subr.mxu1 %v10017_v34  ;;  %v8277_v34 = vld [vmem:[%s8504_s7] ss:$0 sm:$0xff] }
 0xa55   :  { %3663 = vmatpush1.msra.mxu0 %v10018_v56  ;;  %3734 = vmatpush1.msra.mxu1 %v10019_v17  ;;  %v10031_v17 = vld [vmem:[#allocation75_spill] sm:$0xff] }
 0xa56   :  { %3664 = vmatprep.subr.mxu0 %v10020_v8  ;;  %3735 = vmatprep.subr.mxu1 %v10021_v58  ;;  %v10032_v8 = vld [vmem:[#allocation76_spill] sm:$0xff]  ;;  %v10033_v58 = vld [vmem:[#allocation77_spill] sm:$0xff] }
 0xa57   :  { %3665 = vmatpush1.msra.mxu0 %v10022_v6  ;;  %3698 = vmatprep.mubr.f32.mxu0 %v9237_v7  ;;  %v10034_v6 = vld [vmem:[#allocation79_spill] sm:$0xff] }
 0xa58   :  { %3736 = vmatpush1.msra.mxu1 %v10023_v57  ;;  %3769 = vmatprep.mubr.f32.mxu1 %v9237_v7  ;;  %v10035_v57 = vld [vmem:[#allocation81_spill] sm:$0xff] }
 0xa59   :  { %3799 = vmatprep.subr.mxu0 %v10024_v28  ;;  %3870 = vmatprep.subr.mxu1 %v10025_v11  ;;  %v10036_v28 = vld [vmem:[#allocation91_spill] sm:$0xff]  ;;  %v10037_v11 = vld [vmem:[#allocation92_spill] sm:$0xff] }
 0xad6   :  { %v3390_v2 = vpop.f32.mrf.mxu0  ;;  %v3461_v19 = vpop.f32.mrf.mxu1 }
 0xad7   :  { %v3608_v47 = vadd.f32 %v3390_v2, %v10026_v49  ;;  %v3610_v20 = vadd.f32 %v3461_v19, %v10029_v18  ;;  %v10038_v2 = vld [vmem:[#allocation36_spill] sm:$0xff]  ;;  %v10039_v19 = vld [vmem:[#allocation37_spill] sm:$0xff] }
 0xad8   :  { %v3392_v9 = vpop.f32.mrf.mxu0  ;;  %v3463_v44 = vpop.f32.mrf.mxu1 }
 0xad9   :  { %v3612_v38 = vmul.f32 0.5, %v3608_v47  ;;  %v3609_v46 = vadd.f32 %v3392_v9, %v10027_v35  ;;  %v3611_v23 = vadd.f32 %v3463_v44, %v10028_v21  ;;  %v3614_v40 = vmul.f32 0.5, %v3610_v20  ;;  %v10040_v47 = vld [vmem:[#allocation39_spill] sm:$0xff]  ;;  %v10041_v9 = vld [vmem:[#allocation93_spill] sm:$0xff] }
 0xada   :  { %v10044_v44 = vld [vmem:[#allocation15_spill] sm:$0xff] }
 0xadb   :  { %4764 = vtanh.f32 %v3612_v38  ;;  %v3613_v22 = vmul.f32 0.5, %v3609_v46  ;;  %v10042_v38 = vld [vmem:[#allocation94_spill] sm:$0xff]  ;;  %v10043_v46 = vld [vmem:[#allocation95_spill] sm:$0xff] }
 0xadc   :  { %v10047_v20 = vld [vmem:[#allocation43_spill] sm:$0xff] }
 0xadd   :  { %4766 = vtanh.f32 %v3613_v22  ;;  %v10045_v22 = vld [vmem:[#allocation16_spill] sm:$0xff] }
 0xade   :  { %4768 = vtanh.f32 %v3611_v23  ;;  %v10046_v23 = vld [vmem:[#allocation42_spill] sm:$0xff] }
 0xadf   :  { %4770 = vtanh.f32 %v3614_v40  ;;  %v10048_v40 = vld [vmem:[#allocation44_spill] sm:$0xff] }
 0xae8   :  { %v4765_v14 = vpop.eup %4764 }
 0xae9   :  { %v3618_v29 = vadd.f32 1.0, %v4765_v14  ;;  %v10049_v14 = vld [vmem:[#allocation45_spill] sm:$0xff] }
 0xaea   :  { %v4767_v31 = vpop.eup %4766 }
 0xaeb   :  { %v3621_v61 = vmul.f32 0.5, %v3618_v29  ;;  %v3619_v0 = vadd.f32 1.0, %v4767_v31  ;;  %v4769_v25 = vpop.eup %4768  ;;  %v10050_v29 = vld [vmem:[#allocation46_spill] sm:$0xff]  ;;  %v10051_v31 = vld [vmem:[#allocation47_spill] sm:$0xff] }
 0xaec   :  { %v4771_v27 = vpop.eup %4770 }
 0xaed   :  { %v3622_v41 = vmul.f32 0.5, %v3619_v0  ;;  %v3626_v60 = vmul.f32 %v4769_v25, %v3621_v61  ;;  %v3620_v43 = vadd.f32 1.0, %v4771_v27  ;;  %v10052_v61 = vld [vmem:[#allocation48_spill] sm:$0xff]  ;;  %v10053_v0 = vld [vmem:[#allocation49_spill] sm:$0xff] }
 0xaee   :  { %v10055_v25 = vld [vmem:[#allocation80_spill] sm:$0xff]  ;;  %v10059_v27 = vld [vmem:[#allocation97_spill] sm:$0xff] }
 0xaef   :  { %v3625_v52 = vmul.f32 %v3622_v41, %v10030_v5  ;;  %v3623_v13 = vmul.f32 0.5, %v3620_v43  ;;  %v10054_v41 = vld [vmem:[#allocation78_spill] sm:$0xff]  ;;  %v10056_v5 = vld [vmem:[#allocation17_spill] sm:$0xff] }
 0xaf0   :  { %v10060_v43 = vld [vmem:[#allocation98_spill] sm:$0xff] }
 0xaf1   :  { %v8267_v54 = vadd.f32 %v3626_v60, %v3625_v52  ;;  %v10057_v52 = vld [vmem:[#allocation40_spill] sm:$0xff]  ;;  %v10058_v60 = vld [vmem:[#allocation38_spill] sm:$0xff] }
 0xaf3   :  { %4772 = vtanh.f32 %v8267_v54 }
 0xb00   :  { %v4773_v1 = vpop.eup %4772 }
 0xb01   :  { %v8270_v48 = vmul.f32 %v4773_v1, %v3623_v13  ;;  %v10061_v13 = vld [vmem:[#allocation19_spill] sm:$0xff]  ;;  %v10062_v1 = vld [vmem:[#allocation20_spill] sm:$0xff] }
 0xb03   :  { %3699 = vmatmul.mubr.f32.vlgmr.msra.gmra.mxu0 %v8270_v48  ;;  %3770 = vmatmul.mubr.f32.vlgmr.msra.gmra.mxu1 %v8270_v48  ;;  %v4452_v56 = vmul.f32 %v8277_v34, %v8270_v48 }
 0xb04   :  { %3800 = vmatpush1.msra.mxu0 %v10031_v17  ;;  %3871 = vmatpush1.msra.mxu1 %v10032_v8  ;;  %v10064_v17 = vld [vmem:[#allocation22_spill] sm:$0xff]  ;;  %v10065_v8 = vld [vmem:[#allocation23_spill] sm:$0xff] }
 0xb05   :  { %4471 = vadd.xlane.f32.xlu0 %v4452_v56  ;;  %3801 = vmatprep.subr.mxu0 %v10033_v58  ;;  %v10063_v56 = vld [vmem:[#allocation21_spill] sm:$0xff]  ;;  %v10066_v58 = vld [vmem:[#allocation24_spill] sm:$0xff] }
 0xb06   :  { %3872 = vmatprep.subr.mxu1 %v10034_v6  ;;  %3802 = vmatpush1.msra.mxu0 %v10035_v57  ;;  %v10067_v6 = vld [vmem:[#allocation25_spill] sm:$0xff]  ;;  %v10068_v57 = vld [vmem:[#allocation26_spill] sm:$0xff] }
 0xb07   :  { %3873 = vmatpush1.msra.mxu1 %v10036_v28  ;;  %3803 = vmatprep.subr.mxu0 %v10037_v11  ;;  %v10069_v28 = vld [vmem:[#allocation65_spill] sm:$0xff] }
 0xb08   :  { %3874 = vmatprep.subr.mxu1 %v10038_v2  ;;  %3804 = vmatpush1.msra.mxu0 %v10039_v19  ;;  %v4583_v11 = vld [vmem:[#allocation3] ss:$0 sm:$0xff]  ;;  %v10070_v2 = vld [vmem:[#allocation66_spill] sm:$0xff]  ;;  %v10071_v19 = vld [vmem:[#allocation67_spill] sm:$0xff] }
 0xb09   :  { %3875 = vmatpush1.msra.mxu1 %v10040_v47  ;;  %3805 = vmatprep.subr.mxu0 %v10041_v9  ;;  %v10072_v47 = vld [vmem:[#allocation68_spill] sm:$0xff]  ;;  %v10073_v9 = vld [vmem:[#allocation69_spill] sm:$0xff] }
 0xb0a   :  { %3876 = vmatprep.subr.mxu1 %v10042_v38  ;;  %3806 = vmatpush1.msra.mxu0 %v10043_v46  ;;  %v10074_v38 = vld [vmem:[#allocation70_spill] sm:$0xff]  ;;  %v10075_v46 = vld [vmem:[#allocation71_spill] sm:$0xff] }
 0xb0b   :  { %3877 = vmatpush1.msra.mxu1 %v10044_v44  ;;  %3807 = vmatprep.subr.mxu0 %v10045_v22  ;;  %v10076_v44 = vld [vmem:[#allocation72_spill] sm:$0xff]  ;;  %v10077_v22 = vld [vmem:[#allocation82_spill] sm:$0xff] }
 0xb0c   :  { %3878 = vmatprep.subr.mxu1 %v10046_v23  ;;  %3808 = vmatpush1.msra.mxu0 %v10047_v20  ;;  %v10078_v23 = vld [vmem:[#allocation83_spill] sm:$0xff]  ;;  %v10079_v20 = vld [vmem:[#allocation84_spill] sm:$0xff] }
 0xb0d   :  { %3879 = vmatpush1.msra.mxu1 %v10048_v40  ;;  %3809 = vmatprep.subr.mxu0 %v10049_v14  ;;  %v10080_v40 = vld [vmem:[#allocation85_spill] sm:$0xff]  ;;  %v10081_v14 = vld [vmem:[#allocation86_spill] sm:$0xff] }
 0xb0e   :  { %3880 = vmatprep.subr.mxu1 %v10050_v29  ;;  %3810 = vmatpush1.msra.mxu0 %v10051_v31  ;;  %v10082_v29 = vld [vmem:[#allocation87_spill] sm:$0xff] }
 0xb0f   :  { %3881 = vmatpush1.msra.mxu1 %v10052_v61  ;;  %3811 = vmatprep.subr.mxu0 %v10053_v0  ;;  %v10083_v31 = vld [vmem:[#allocation99_spill] sm:$0xff]  ;;  %v10084_v61 = vld [vmem:[#allocation100_spill] sm:$0xff]  ;;  %v10085_v0 = vld [vmem:[#allocation101_spill] sm:$0xff] }
 0xb10   :  { %3882 = vmatprep.subr.mxu1 %v10054_v41  ;;  %3812 = vmatpush1.msra.mxu0 %v10055_v25  ;;  %v10086_v41 = vld [vmem:[#allocation102_spill] sm:$0xff]  ;;  %v10087_v25 = vld [vmem:[#allocation103_spill] sm:$0xff] }
 0xb11   :  { %3883 = vmatpush1.msra.mxu1 %v10056_v5  ;;  %3813 = vmatprep.subr.mxu0 %v10057_v52  ;;  %v10088_v5 = vld [vmem:[#allocation104_spill] sm:$0xff]  ;;  %v10089_v52 = vld [vmem:[#allocation105_spill] sm:$0xff] }
 0xb12   :  { %3884 = vmatprep.subr.mxu1 %v10058_v60  ;;  %3814 = vmatpush1.msra.mxu0 %v10059_v27  ;;  %v10090_v60 = vld [vmem:[#allocation106_spill] sm:$0xff]  ;;  %v10091_v27 = vld [vmem:[#allocation107_spill] sm:$0xff] }
 0xb13   :  { %3885 = vmatpush1.msra.mxu1 %v10060_v43  ;;  %3815 = vmatprep.subr.mxu0 %v10061_v13  ;;  %v10092_v43 = vld [vmem:[#allocation108_spill] sm:$0xff]  ;;  %v10093_v13 = vld [vmem:[#allocation109_spill] sm:$0xff] }
 0xb14   :  { %3886 = vmatprep.subr.mxu1 %v10062_v1  ;;  %3816 = vmatpush1.msra.mxu0 %v10063_v56  ;;  %v10094_v1 = vld [vmem:[#allocation110_spill] sm:$0xff]  ;;  %v4456_v56 = vpop.xlane.xlu0 %4455 }
 0xb15   :  { %3887 = vmatpush1.msra.mxu1 %v10064_v17  ;;  %3817 = vmatprep.subr.mxu0 %v10065_v8 }
 0xb16   :  { %3888 = vmatprep.subr.mxu1 %v10066_v58  ;;  %3818 = vmatpush1.msra.mxu0 %v10067_v6 }
 0xb17   :  { %3889 = vmatpush1.msra.mxu1 %v10068_v57  ;;  %3819 = vmatprep.subr.mxu0 %v10069_v28  ;;  %v10095_v57 = vlaneseq }
 0xb18   :  { %3890 = vmatprep.subr.mxu1 %v10070_v2  ;;  %3820 = vmatpush1.msra.mxu0 %v10071_v19  ;;  %v4460_v17 = vpop.xlane.xlu0 %4459 }
 0xb19   :  { %3891 = vmatpush1.msra.mxu1 %v10072_v47  ;;  %3821 = vmatprep.subr.mxu0 %v10073_v9  ;;  %v4509_v28 = vand.u32 127, %v10095_v57  ;;  %v10096_v47 = vld [vmem:[#allocation32_spill] sm:$0xff]  ;;  %v3603_v57 = vpop.f32.mrf.mxu1 }
 0xb1a   :  { %3892 = vmatprep.subr.mxu1 %v10074_v38  ;;  %3822 = vmatpush1.msra.mxu0 %v10075_v46 }
 0xb1b   :  { %4483 = vperm.xlu0 %4592, %v4583_v11   ;;  %3893 = vmatpush1.msra.mxu1 %v10076_v44  ;;  %v4458_v11 = vpop.xlane.xlu1 %4457  ;;  %v8351_v9 = vsub.s32 %v4509_v28, %v10096_v47 }
 0xb1c   :  { %3823 = vmatprep.subr.mxu0 %v10077_v22  ;;  %3894 = vmatprep.subr.mxu1 %v10078_v23  ;;  %v4462_v8 = vpop.xlane.xlu0 %4461 }
 0xb1d   :  { %3824 = vmatpush1.msra.mxu0 %v10079_v20  ;;  %3895 = vmatpush1.msra.mxu1 %v10080_v40 }
 0xb1e   :  { %3825 = vmatprep.subr.mxu0 %v10081_v14  ;;  %3896 = vmatprep.subr.mxu1 %v10082_v29 }
 0xb1f   :  { %3826 = vmatpush1.msra.mxu0 %v10083_v31  ;;  %3897 = vmatpush1.msra.mxu1 %v10084_v61  ;;  %v4464_v19 = vpop.xlane.xlu1 %4463 }
 0xb20   :  { %3827 = vmatprep.subr.mxu0 %v10085_v0  ;;  %3898 = vmatprep.subr.mxu1 %v10086_v41  ;;  %v4466_v58 = vpop.xlane.xlu0 %4465 }
 0xb21   :  { %3828 = vmatpush1.msra.mxu0 %v10087_v25  ;;  %3899 = vmatpush1.msra.mxu1 %v10088_v5 }
 0xb22   :  { %3829 = vmatprep.subr.mxu0 %v10089_v52  ;;  %3900 = vmatprep.subr.mxu1 %v10090_v60 }
 0xb23   :  { %3830 = vmatpush1.msra.mxu0 %v10091_v27  ;;  %3901 = vmatpush1.msra.mxu1 %v10092_v43  ;;  %v4468_v40 = vpop.xlane.xlu1 %4467 }
 0xb24   :  { %3863 = vmatprep.mubr.f32.mxu0 %v9237_v7  ;;  %3934 = vmatprep.mubr.f32.mxu1 %v9237_v7  ;;  %v4470_v6 = vpop.xlane.xlu0 %4469 }
 0xb25   :  { %3941 = vmatprep.subr.mxu0 %v10093_v13  ;;  %4012 = vmatprep.subr.mxu1 %v10094_v1 }
 0xb8e   :  { %v8348_v2 = vpop.xlane.xlu0 %4471 }
 0xb96   :  { %v8353_v38 = vpop.permute.xlu0 %4483 }
 0xb97   :  { %v4486_v46 = vadd.f32 %v8353_v38, %v4456_v56  ;;  %v4487_v44 = vadd.f32 %v8353_v38, %v4458_v11  ;;  %v4488_v22 = vadd.f32 %v8353_v38, %v4460_v17  ;;  %v4489_v23 = vadd.f32 %v8353_v38, %v4462_v8  ;;  %v3605_v11 = vpop.f32.mrf.mxu1 }
 0xb98   :  { %v4490_v20 = vadd.f32 %v8353_v38, %v4464_v19  ;;  %v4491_v31 = vadd.f32 %v8353_v38, %v4466_v58  ;;  %v4492_v61 = vadd.f32 %v8353_v38, %v4468_v40  ;;  %v4493_v25 = vadd.f32 %v8353_v38, %v4470_v6  ;;  %v3532_v6 = vpop.f32.mrf.mxu0  ;;  %v10097_v19 = vld [vmem:[#allocation33_spill] sm:$0xff] }
 0xb99   :  { %v4513_v14 = vrot.slane %v4486_v46, %v8351_v9  ;;  %v4517_v29 = vrot.slane %v4487_v44, %v8351_v9  ;;  %v4521_v0 = vrot.slane %v4488_v22, %v8351_v9  ;;  %v4525_v5 = vrot.slane %v4489_v23, %v8351_v9  ;;  %v10098_v22 = vld [vmem:[#allocation34_spill] sm:$0xff] }
 0xb9a   :  { %v4529_v52 = vrot.slane %v4490_v20, %v8351_v9  ;;  %v4533_v27 = vrot.slane %v4491_v31, %v8351_v9  ;;  %v4537_v13 = vrot.slane %v4492_v61, %v8351_v9  ;;  %v4541_v56 = vrot.slane %v4493_v25, %v8351_v9  ;;  %v3534_v28 = vpop.f32.mrf.mxu0 }
 0xb9b   :  { %v4555_v41 = vsel %vm4554_vm0, %v4517_v29, %v4513_v14  ;;  %v3630_v47 = vadd.f32 %v3532_v6, %v10097_v19  ;;  %v3631_v23 = vadd.f32 %v3534_v28, %v10098_v22  ;;  %v3633_v61 = vadd.f32 %v3605_v11, %v7988_v26 }
 0xb9c   :  { %v4557_v60 = vsel %vm4556_vm1, %v4521_v0, %v4555_v41  ;;  %v3632_v25 = vadd.f32 %v3603_v57, %v7992_v24 }
 0xb9d   :  { %v4559_v43 = vsel %vm4558_vm2, %v4525_v5, %v4557_v60 }
 0xb9e   :  { %v4561_v1 = vsel %vm4560_vm3, %v4529_v52, %v4559_v43 }
 0xb9f   :  { %v4563_v17 = vsel %vm4562_vm4, %v4533_v27, %v4561_v1 }
 0xba0   :  { %v4565_v8 = vsel %vm4564_vm5, %v4537_v13, %v4563_v17 }
 0xba1   :  { %v4567_v58 = vsel %vm4566_vm6, %v4541_v56, %v4565_v8 }
 0xba2   :  { %4573 = vst.msk [vmem:[%s8506_s9] sm:$0xff] %vm4572_vm7, %v4567_v58 }
 0xbc3   :  { %v3700_v46 = vpop.f32.mrf.mxu0  ;;  %v3771_v44 = vpop.f32.mrf.mxu1 }
 0xbc4   :  { %v3776_v20 = vadd.f32 %v3700_v46, %v3630_v47  ;;  %v3778_v5 = vadd.f32 %v3771_v44, %v3632_v25  ;;  %v10124_v25 = vld [vmem:[#allocation134_spill] sm:$0xff] }
 0xbc5   :  { %v3702_v40 = vpop.f32.mrf.mxu0  ;;  %v3773_v31 = vpop.f32.mrf.mxu1 }
 0xbc6   :  { %v3780_v14 = vmul.f32 0.5, %v3776_v20  ;;  %v3777_v29 = vadd.f32 %v3702_v40, %v3631_v23  ;;  %v3779_v41 = vadd.f32 %v3773_v31, %v3633_v61  ;;  %v3782_v52 = vmul.f32 0.5, %v3778_v5  ;;  %v10115_v23 = vld [vmem:[#allocation125_spill] sm:$0xff]  ;;  %v10116_v20 = vld [vmem:[#allocation126_spill] sm:$0xff]  ;;  %v10117_v40 = vld [vmem:[#allocation127_spill] sm:$0xff] }
 0xbc7   :  { %v10120_v31 = vld [vmem:[#allocation130_spill] sm:$0xff]  ;;  %v10121_v61 = vld [vmem:[#allocation131_spill] sm:$0xff] }
 0xbc8   :  { %4774 = vtanh.f32 %v3780_v14  ;;  %v3781_v0 = vmul.f32 0.5, %v3777_v29  ;;  %v10118_v14 = vld [vmem:[#allocation128_spill] sm:$0xff]  ;;  %v10119_v29 = vld [vmem:[#allocation129_spill] sm:$0xff]  ;;  %v10125_v5 = vld [vmem:[#allocation135_spill] sm:$0xff] }
 0xbca   :  { %4776 = vtanh.f32 %v3781_v0  ;;  %v10122_v0 = vld [vmem:[#allocation132_spill] sm:$0xff] }
 0xbcb   :  { %4778 = vtanh.f32 %v3779_v41  ;;  %v10123_v41 = vld [vmem:[#allocation133_spill] sm:$0xff] }
 0xbcc   :  { %4780 = vtanh.f32 %v3782_v52  ;;  %v10126_v52 = vld [vmem:[#allocation136_spill] sm:$0xff] }
 0xbd5   :  { %v4775_v60 = vpop.eup %4774 }
 0xbd6   :  { %v3786_v27 = vadd.f32 1.0, %v4775_v60  ;;  %v10127_v60 = vld [vmem:[#allocation137_spill] sm:$0xff] }
 0xbd7   :  { %v4777_v43 = vpop.eup %4776 }
 0xbd8   :  { %v3789_v13 = vmul.f32 0.5, %v3786_v27  ;;  %v3787_v1 = vadd.f32 1.0, %v4777_v43  ;;  %v4779_v17 = vpop.eup %4778  ;;  %v10128_v27 = vld [vmem:[#allocation138_spill] sm:$0xff]  ;;  %v10129_v43 = vld [vmem:[#allocation139_spill] sm:$0xff] }
 0xbd9   :  { %v4781_v28 = vpop.eup %4780 }
 0xbda   :  { %v3790_v56 = vmul.f32 0.5, %v3787_v1  ;;  %v3794_v58 = vmul.f32 %v4779_v17, %v3789_v13  ;;  %v3788_v57 = vadd.f32 1.0, %v4781_v28  ;;  %v10130_v13 = vld [vmem:[#allocation140_spill] sm:$0xff]  ;;  %v10131_v1 = vld [vmem:[#allocation141_spill] sm:$0xff]  ;;  %v10133_v17 = vld [vmem:[#allocation143_spill] sm:$0xff] }
 0xbdb   :  { %v10136_v28 = vld [vmem:[#allocation146_spill] sm:$0xff] }
 0xbdc   :  { %v3793_v8 = vmul.f32 %v3790_v56, %v7996_v55  ;;  %v3791_v11 = vmul.f32 0.5, %v3788_v57  ;;  %v10099_v55 = vld [vmem:[#allocation35_spill] sm:$0xff]  ;;  %v10132_v56 = vld [vmem:[#allocation142_spill] sm:$0xff] }
 0xbdd   :  { %v10137_v57 = vld [vmem:[#allocation147_spill] sm:$0xff] }
 0xbde   :  { %v8381_v6 = vadd.f32 %v3794_v58, %v3793_v8  ;;  %v10134_v8 = vld [vmem:[#allocation144_spill] sm:$0xff]  ;;  %v10135_v58 = vld [vmem:[#allocation145_spill] sm:$0xff] }
 0xbe0   :  { %4782 = vtanh.f32 %v8381_v6 }
 0xbed   :  { %v4783_v47 = vpop.eup %4782 }
 0xbee   :  { %v3797_v46 = vmul.f32 %v4783_v47, %v3791_v11  ;;  %v10138_v11 = vld [vmem:[#allocation148_spill] sm:$0xff]  ;;  %v10139_v47 = vld [vmem:[#allocation149_spill] sm:$0xff] }
 0xbf0   :  { %v8385_v44 = vadd.f32 %v3797_v46, %v8270_v48  ;;  %v10114_v48 = vld [vmem:[#allocation124_spill] sm:$0xff]  ;;  %v10140_v46 = vld [vmem:[#allocation150_spill] sm:$0xff] }
 0xbf2   :  { %3864 = vmatmul.mubr.f32.vlgmr.msra.gmra.mxu0 %v8385_v44  ;;  %3935 = vmatmul.mubr.f32.vlgmr.msra.gmra.mxu1 %v8385_v44 }
 0xbf3   :  { %3942 = vmatpush1.msra.mxu0 %v8004_v53  ;;  %4013 = vmatpush1.msra.mxu1 %v8007_v39  ;;  %v10100_v53 = vld [vmem:[#allocation41_spill] sm:$0xff]  ;;  %v10101_v39 = vld [vmem:[#allocation111_spill] sm:$0xff] }
 0xbf4   :  { %3943 = vmatprep.subr.mxu0 %v8010_v30  ;;  %4014 = vmatprep.subr.mxu1 %v8013_v59  ;;  %v10102_v30 = vld [vmem:[#allocation112_spill] sm:$0xff]  ;;  %v10103_v59 = vld [vmem:[#allocation113_spill] sm:$0xff] }
 0xbf5   :  { %3944 = vmatpush1.msra.mxu0 %v8016_v10  ;;  %4015 = vmatpush1.msra.mxu1 %v8019_v37  ;;  %v10104_v10 = vld [vmem:[#allocation114_spill] sm:$0xff]  ;;  %v10105_v37 = vld [vmem:[#allocation115_spill] sm:$0xff] }
 0xbf6   :  { %3945 = vmatprep.subr.mxu0 %v8022_v51  ;;  %4016 = vmatprep.subr.mxu1 %v8025_v45  ;;  %v10106_v51 = vld [vmem:[#allocation116_spill] sm:$0xff]  ;;  %v10107_v45 = vld [vmem:[#allocation117_spill] sm:$0xff] }
 0xbf7   :  { %3946 = vmatpush1.msra.mxu0 %v8028_v16  ;;  %4017 = vmatpush1.msra.mxu1 %v8031_v36  ;;  %v10108_v16 = vld [vmem:[#allocation118_spill] sm:$0xff]  ;;  %v10109_v36 = vld [vmem:[#allocation119_spill] sm:$0xff] }
 0xbf8   :  { %3947 = vmatprep.subr.mxu0 %v8034_v3  ;;  %4018 = vmatprep.subr.mxu1 %v8037_v62  ;;  %v10110_v3 = vld [vmem:[#allocation120_spill] sm:$0xff]  ;;  %v10111_v62 = vld [vmem:[#allocation121_spill] sm:$0xff] }
 0xbf9   :  { %3948 = vmatpush1.msra.mxu0 %v8040_v33  ;;  %4019 = vmatpush1.msra.mxu1 %v8043_v12  ;;  %v10112_v33 = vld [vmem:[#allocation122_spill] sm:$0xff]  ;;  %v10113_v12 = vld [vmem:[#allocation123_spill] sm:$0xff] }
 0xbfa   :  { %3949 = vmatprep.subr.mxu0 %v10099_v55  ;;  %4020 = vmatprep.subr.mxu1 %v10100_v53  ;;  %v5201_v55 = vld [vmem:[#allocation6 + $0x1e8] sm:$0xff]  ;;  %v5207_v53 = vld [vmem:[#allocation6 + $0x1c0] sm:$0xff] }
 0xbfb   :  { %3950 = vmatpush1.msra.mxu0 %v10101_v39  ;;  %4021 = vmatpush1.msra.mxu1 %v10102_v30  ;;  %v5209_v39 = vld [vmem:[#allocation6 + $0x1a8] sm:$0xff]  ;;  %v5210_v30 = vld [vmem:[#allocation6 + $0x1b8] sm:$0xff] }
 0xbfc   :  { %3951 = vmatprep.subr.mxu0 %v10103_v59  ;;  %4022 = vmatprep.subr.mxu1 %v10104_v10  ;;  %v5212_v59 = vld [vmem:[#allocation6 + $0x1b0] sm:$0xff]  ;;  %v5213_v10 = vld [vmem:[#allocation6 + $0x188] sm:$0xff] }
 0xbfd   :  { %3952 = vmatpush1.msra.mxu0 %v10105_v37  ;;  %4023 = vmatpush1.msra.mxu1 %v10106_v51  ;;  %v5214_v37 = vld [vmem:[#allocation6 + $0x198] sm:$0xff]  ;;  %v5215_v51 = vld [vmem:[#allocation6 + $0x180] sm:$0xff] }
 0xbfe   :  { %3953 = vmatprep.subr.mxu0 %v10107_v45  ;;  %4024 = vmatprep.subr.mxu1 %v10108_v16  ;;  %v5216_v45 = vld [vmem:[#allocation6 + $0x190] sm:$0xff]  ;;  %v5217_v16 = vld [vmem:[#allocation6 + $0x168] sm:$0xff] }
 0xbff   :  { %3954 = vmatpush1.msra.mxu0 %v10109_v36  ;;  %4025 = vmatpush1.msra.mxu1 %v10110_v3  ;;  %v5218_v36 = vld [vmem:[#allocation6 + $0x178] sm:$0xff]  ;;  %v5219_v3 = vld [vmem:[#allocation6 + $0x160] sm:$0xff] }
 0xc00   :  { %3955 = vmatprep.subr.mxu0 %v10111_v62  ;;  %4026 = vmatprep.subr.mxu1 %v10112_v33  ;;  %v5220_v62 = vld [vmem:[#allocation6 + $0x170] sm:$0xff]  ;;  %v5221_v33 = vld [vmem:[#allocation6 + $0x148] sm:$0xff] }
 0xc01   :  { %3956 = vmatpush1.msra.mxu0 %v10113_v12  ;;  %4027 = vmatpush1.msra.mxu1 %v10114_v48  ;;  %v5222_v12 = vld [vmem:[#allocation6 + $0x158] sm:$0xff]  ;;  %v5223_v48 = vld [vmem:[#allocation6 + $0x140] sm:$0xff] }
 0xc02   :  { %3957 = vmatprep.subr.mxu0 %v10115_v23  ;;  %4028 = vmatprep.subr.mxu1 %v10116_v20  ;;  %v5224_v23 = vld [vmem:[#allocation6 + $0x150] sm:$0xff]  ;;  %v5225_v20 = vld [vmem:[#allocation6 + $0x128] sm:$0xff] }
 0xc03   :  { %3958 = vmatpush1.msra.mxu0 %v10117_v40  ;;  %4029 = vmatpush1.msra.mxu1 %v10118_v14  ;;  %v5226_v40 = vld [vmem:[#allocation6 + $0x138] sm:$0xff]  ;;  %v5227_v14 = vld [vmem:[#allocation6 + $0x120] sm:$0xff] }
 0xc04   :  { %3959 = vmatprep.subr.mxu0 %v10119_v29  ;;  %4030 = vmatprep.subr.mxu1 %v10120_v31  ;;  %v5228_v29 = vld [vmem:[#allocation6 + $0x130] sm:$0xff]  ;;  %v5229_v31 = vld [vmem:[#allocation6 + $0x108] sm:$0xff] }
 0xc05   :  { %3960 = vmatpush1.msra.mxu0 %v10121_v61  ;;  %4031 = vmatpush1.msra.mxu1 %v10122_v0  ;;  %v5230_v61 = vld [vmem:[#allocation6 + $0x118] sm:$0xff]  ;;  %v5231_v0 = vld [vmem:[#allocation6 + $0x100] sm:$0xff] }
 0xc06   :  { %3961 = vmatprep.subr.mxu0 %v10123_v41  ;;  %4032 = vmatprep.subr.mxu1 %v10124_v25  ;;  %v5232_v41 = vld [vmem:[#allocation6 + $0x110] sm:$0xff]  ;;  %v5233_v25 = vld [vmem:[#allocation6 + $0xe8] sm:$0xff] }
 0xc07   :  { %3962 = vmatpush1.msra.mxu0 %v10125_v5  ;;  %4033 = vmatpush1.msra.mxu1 %v10126_v52  ;;  %v5234_v5 = vld [vmem:[#allocation6 + $0xf8] sm:$0xff]  ;;  %v5235_v52 = vld [vmem:[#allocation6 + $0xe0] sm:$0xff] }
 0xc08   :  { %3963 = vmatprep.subr.mxu0 %v10127_v60  ;;  %4034 = vmatprep.subr.mxu1 %v10128_v27  ;;  %v5236_v60 = vld [vmem:[#allocation6 + $0xf0] sm:$0xff]  ;;  %v5237_v27 = vld [vmem:[#allocation6 + $0xc8] sm:$0xff] }
 0xc09   :  { %3964 = vmatpush1.msra.mxu0 %v10129_v43  ;;  %4035 = vmatpush1.msra.mxu1 %v10130_v13  ;;  %v5238_v43 = vld [vmem:[#allocation6 + $0xd8] sm:$0xff]  ;;  %v5239_v13 = vld [vmem:[#allocation6 + $0xc0] sm:$0xff] }
 0xc0a   :  { %3965 = vmatprep.subr.mxu0 %v10131_v1  ;;  %4036 = vmatprep.subr.mxu1 %v10132_v56  ;;  %v5240_v1 = vld [vmem:[#allocation6 + $0xd0] sm:$0xff]  ;;  %v5241_v56 = vld [vmem:[#allocation6 + $0xa8] sm:$0xff] }
 0xc0b   :  { %3966 = vmatpush1.msra.mxu0 %v10133_v17  ;;  %4037 = vmatpush1.msra.mxu1 %v10134_v8  ;;  %v5242_v17 = vld [vmem:[#allocation6 + $0xb8] sm:$0xff]  ;;  %v5243_v8 = vld [vmem:[#allocation6 + $0xa0] sm:$0xff] }
 0xc0c   :  { %3967 = vmatprep.subr.mxu0 %v10135_v58  ;;  %4038 = vmatprep.subr.mxu1 %v10136_v28  ;;  %v5244_v58 = vld [vmem:[#allocation6 + $0xb0] sm:$0xff]  ;;  %v5245_v28 = vld [vmem:[#allocation6 + $0x88] sm:$0xff] }
 0xc0d   :  { %3968 = vmatpush1.msra.mxu0 %v10137_v57  ;;  %4039 = vmatpush1.msra.mxu1 %v10138_v11  ;;  %v5246_v57 = vld [vmem:[#allocation6 + $0x98] sm:$0xff]  ;;  %v5247_v11 = vld [vmem:[#allocation6 + $0x80] sm:$0xff] }
 0xc0e   :  { %3969 = vmatprep.subr.mxu0 %v10139_v47  ;;  %4040 = vmatprep.subr.mxu1 %v10140_v46  ;;  %v5248_v47 = vld [vmem:[#allocation6 + $0x90] sm:$0xff]  ;;  %v5249_v46 = vld [vmem:[#allocation6 + $0x68] sm:$0xff] }
 0xc0f   :  { %3970 = vmatpush1.msra.mxu0 %v8172_v50  ;;  %4041 = vmatpush1.msra.mxu1 %v8175_v15  ;;  %v5202_v50 = vld [vmem:[#allocation6 + $0x1f8] sm:$0xff]  ;;  %v5203_v15 = vld [vmem:[#allocation6 + $0x1e0] sm:$0xff] }
 0xc10   :  { %3971 = vmatprep.subr.mxu0 %v8178_v32  ;;  %4042 = vmatprep.subr.mxu1 %v8181_v63  ;;  %v5204_v32 = vld [vmem:[#allocation6 + $0x1f0] sm:$0xff]  ;;  %v5205_v63 = vld [vmem:[#allocation6 + $0x1c8] sm:$0xff] }
 0xc11   :  { %3972 = vmatpush1.msra.mxu0 %v8184_v4  ;;  %4005 = vmatprep.mubr.f32.mxu0 %v9237_v7  ;;  %v5206_v4 = vld [vmem:[#allocation6 + $0x1d8] sm:$0xff] }
 0xc12   :  { %4043 = vmatpush1.msra.mxu1 %v8188_v42  ;;  %4076 = vmatprep.mubr.f32.mxu1 %v9237_v7  ;;  %v5208_v42 = vld [vmem:[#allocation6 + $0x1d0] sm:$0xff] }
 0xc13   :  { %4006 = vmatmul.mubr.f32.vlgmr.msra.gmra.mxu0 %v8385_v44  ;;  %4077 = vmatmul.mubr.f32.vlgmr.msra.gmra.mxu1 %v8385_v44  ;;  %v5211_v44 = vld [vmem:[#allocation6 + $0x1a0] sm:$0xff] }
 0xc14   :  { %4109 = vmatprep.subr.mxu0 %v5201_v55  ;;  %4180 = vmatprep.subr.mxu1 %v5202_v50  ;;  %v5250_v55 = vld [vmem:[#allocation6 + $0x78] sm:$0xff]  ;;  %v5251_v50 = vld [vmem:[#allocation6 + $0x60] sm:$0xff] }
 0xc15   :  { %4110 = vmatpush1.msra.mxu0 %v5203_v15  ;;  %4181 = vmatpush1.msra.mxu1 %v5204_v32  ;;  %v5252_v15 = vld [vmem:[#allocation6 + $0x70] sm:$0xff]  ;;  %v5253_v32 = vld [vmem:[#allocation6 + $0x48] sm:$0xff] }
 0xc16   :  { %4111 = vmatprep.subr.mxu0 %v5205_v63  ;;  %4182 = vmatprep.subr.mxu1 %v5206_v4  ;;  %v5254_v63 = vld [vmem:[#allocation6 + $0x58] sm:$0xff]  ;;  %v5255_v4 = vld [vmem:[#allocation6 + $0x40] sm:$0xff] }
 0xc17   :  { %4112 = vmatpush1.msra.mxu0 %v5207_v53  ;;  %4183 = vmatpush1.msra.mxu1 %v5208_v42  ;;  %v5256_v53 = vld [vmem:[#allocation6 + $0x50] sm:$0xff]  ;;  %v5257_v42 = vld [vmem:[#allocation6 + $0x28] sm:$0xff] }
 0xc18   :  { %4113 = vmatprep.subr.mxu0 %v5209_v39  ;;  %4184 = vmatprep.subr.mxu1 %v5210_v30  ;;  %v5258_v39 = vld [vmem:[#allocation6 + $0x38] sm:$0xff]  ;;  %v5259_v30 = vld [vmem:[#allocation6 + $0x20] sm:$0xff] }
 0xc19   :  { %4114 = vmatpush1.msra.mxu0 %v5211_v44  ;;  %4185 = vmatpush1.msra.mxu1 %v5212_v59  ;;  %v5260_v44 = vld [vmem:[#allocation6 + $0x30] sm:$0xff]  ;;  %v5261_v59 = vld [vmem:[#allocation6 + $0x8] sm:$0xff] }
 0xc1a   :  { %4115 = vmatprep.subr.mxu0 %v5213_v10  ;;  %4186 = vmatprep.subr.mxu1 %v5214_v37  ;;  %v5262_v10 = vld [vmem:[#allocation6 + $0x18] sm:$0xff]  ;;  %v5263_v37 = vld [vmem:[#allocation6] sm:$0xff] }
 0xc1b   :  { %4116 = vmatpush1.msra.mxu0 %v5215_v51  ;;  %4187 = vmatpush1.msra.mxu1 %v5216_v45  ;;  %v5264_v51 = vld [vmem:[#allocation6 + $0x10] sm:$0xff]  ;;  %v5265_v45 = vld [vmem:[#allocation4 + $0x3c8] sm:$0xff] }
 0xc1c   :  { %4117 = vmatprep.subr.mxu0 %v5217_v16  ;;  %4188 = vmatprep.subr.mxu1 %v5218_v36  ;;  %v5266_v16 = vld [vmem:[#allocation4 + $0x3d8] sm:$0xff] }
 0xc1d   :  { %4118 = vmatpush1.msra.mxu0 %v5219_v3  ;;  %4189 = vmatpush1.msra.mxu1 %v5220_v62 }
 0xc1e   :  { %4119 = vmatprep.subr.mxu0 %v5221_v33  ;;  %4190 = vmatprep.subr.mxu1 %v5222_v12 }
 0xc1f   :  { %4120 = vmatpush1.msra.mxu0 %v5223_v48  ;;  %4191 = vmatpush1.msra.mxu1 %v5224_v23 }
 0xc20   :  { %4121 = vmatprep.subr.mxu0 %v5225_v20  ;;  %4192 = vmatprep.subr.mxu1 %v5226_v40 }
 0xc21   :  { %4122 = vmatpush1.msra.mxu0 %v5227_v14  ;;  %4193 = vmatpush1.msra.mxu1 %v5228_v29 }
 0xc22   :  { %4123 = vmatprep.subr.mxu0 %v5229_v31  ;;  %4194 = vmatprep.subr.mxu1 %v5230_v61 }
 0xc23   :  { %4124 = vmatpush1.msra.mxu0 %v5231_v0  ;;  %4195 = vmatpush1.msra.mxu1 %v5232_v41 }
 0xc24   :  { %4125 = vmatprep.subr.mxu0 %v5233_v25  ;;  %4196 = vmatprep.subr.mxu1 %v5234_v5 }
 0xc25   :  { %4126 = vmatpush1.msra.mxu0 %v5235_v52  ;;  %4197 = vmatpush1.msra.mxu1 %v5236_v60 }
 0xc26   :  { %4127 = vmatprep.subr.mxu0 %v5237_v27  ;;  %4198 = vmatprep.subr.mxu1 %v5238_v43 }
 0xc27   :  { %4128 = vmatpush1.msra.mxu0 %v5239_v13  ;;  %4199 = vmatpush1.msra.mxu1 %v5240_v1 }
 0xc28   :  { %4129 = vmatprep.subr.mxu0 %v5241_v56  ;;  %4200 = vmatprep.subr.mxu1 %v5242_v17 }
 0xc29   :  { %4130 = vmatpush1.msra.mxu0 %v5243_v8  ;;  %4201 = vmatpush1.msra.mxu1 %v5244_v58 }
 0xc2a   :  { %4131 = vmatprep.subr.mxu0 %v5245_v28  ;;  %4202 = vmatprep.subr.mxu1 %v5246_v57  ;;  %v5267_v28 = vld [vmem:[#allocation4 + $0x3c0] sm:$0xff]  ;;  %v5269_v57 = vld [vmem:[#allocation4 + $0x388] sm:$0xff] }
 0xc2b   :  { %4132 = vmatpush1.msra.mxu0 %v5247_v11  ;;  %4203 = vmatpush1.msra.mxu1 %v5248_v47  ;;  %v5270_v11 = vld [vmem:[#allocation4 + $0x398] sm:$0xff]  ;;  %v5271_v47 = vld [vmem:[#allocation4 + $0x380] sm:$0xff] }
 0xc2c   :  { %4133 = vmatprep.subr.mxu0 %v5249_v46  ;;  %4204 = vmatprep.subr.mxu1 %v5250_v55  ;;  %v5272_v46 = vld [vmem:[#allocation4 + $0x390] sm:$0xff]  ;;  %v5273_v55 = vld [vmem:[#allocation4 + $0x348] sm:$0xff] }
 0xc2d   :  { %4134 = vmatpush1.msra.mxu0 %v5251_v50  ;;  %4205 = vmatpush1.msra.mxu1 %v5252_v15  ;;  %v5274_v50 = vld [vmem:[#allocation4 + $0x358] sm:$0xff]  ;;  %v5275_v15 = vld [vmem:[#allocation4 + $0x340] sm:$0xff] }
 0xc2e   :  { %4135 = vmatprep.subr.mxu0 %v5253_v32  ;;  %4206 = vmatprep.subr.mxu1 %v5254_v63  ;;  %v5276_v32 = vld [vmem:[#allocation4 + $0x350] sm:$0xff]  ;;  %v5277_v63 = vld [vmem:[#allocation4 + $0x308] sm:$0xff] }
 0xc2f   :  { %4136 = vmatpush1.msra.mxu0 %v5255_v4  ;;  %4207 = vmatpush1.msra.mxu1 %v5256_v53  ;;  %v5278_v4 = vld [vmem:[#allocation4 + $0x318] sm:$0xff]  ;;  %v5279_v53 = vld [vmem:[#allocation4 + $0x300] sm:$0xff] }
 0xc30   :  { %4137 = vmatprep.subr.mxu0 %v5257_v42  ;;  %4208 = vmatprep.subr.mxu1 %v5258_v39  ;;  %v5280_v42 = vld [vmem:[#allocation4 + $0x310] sm:$0xff]  ;;  %v5281_v39 = vld [vmem:[#allocation4 + $0x2c8] sm:$0xff] }
 0xc31   :  { %4138 = vmatpush1.msra.mxu0 %v5259_v30  ;;  %4209 = vmatpush1.msra.mxu1 %v5260_v44  ;;  %v5282_v30 = vld [vmem:[#allocation4 + $0x2d8] sm:$0xff]  ;;  %v5283_v44 = vld [vmem:[#allocation4 + $0x2c0] sm:$0xff] }
 0xc32   :  { %4139 = vmatprep.subr.mxu0 %v5261_v59  ;;  %4210 = vmatprep.subr.mxu1 %v5262_v10  ;;  %v5284_v59 = vld [vmem:[#allocation4 + $0x2d0] sm:$0xff]  ;;  %v5285_v10 = vld [vmem:[#allocation4 + $0x288] sm:$0xff] }
 0xc33   :  { %4140 = vmatpush1.msra.mxu0 %v5263_v37  ;;  %4173 = vmatprep.mubr.f32.mxu0 %v9237_v7  ;;  %v5286_v37 = vld [vmem:[#allocation4 + $0x298] sm:$0xff] }
 0xc34   :  { %4211 = vmatpush1.msra.mxu1 %v5264_v51  ;;  %4244 = vmatprep.mubr.f32.mxu1 %v9237_v7  ;;  %v5287_v51 = vld [vmem:[#allocation4 + $0x280] sm:$0xff] }
 0xc35   :  { %4274 = vmatprep.subr.mxu0 %v5265_v45  ;;  %4345 = vmatprep.subr.mxu1 %v5266_v16  ;;  %v5288_v45 = vld [vmem:[#allocation4 + $0x290] sm:$0xff]  ;;  %v5289_v16 = vld [vmem:[#allocation4 + $0x248] sm:$0xff] }
 0xcb2   :  { %v3865_v36 = vpop.f32.mrf.mxu0  ;;  %v3936_v3 = vpop.f32.mrf.mxu1 }
 0xcb3   :  { %v4083_v62 = vadd.f32 %v3865_v36, %v10026_v49  ;;  %v4085_v14 = vadd.f32 %v3936_v3, %v10029_v18  ;;  %v5290_v36 = vld [vmem:[#allocation4 + $0x258] sm:$0xff]  ;;  %v5291_v3 = vld [vmem:[#allocation4 + $0x240] sm:$0xff] }
 0xcb4   :  { %v3867_v33 = vpop.f32.mrf.mxu0  ;;  %v3938_v23 = vpop.f32.mrf.mxu1 }
 0xcb5   :  { %v4087_v12 = vmul.f32 0.5, %v4083_v62  ;;  %v4084_v48 = vadd.f32 %v3867_v33, %v10027_v35  ;;  %v4086_v40 = vadd.f32 %v3938_v23, %v10028_v21  ;;  %v4089_v29 = vmul.f32 0.5, %v4085_v14  ;;  %v5292_v62 = vld [vmem:[#allocation4 + $0x250] sm:$0xff]  ;;  %v5293_v33 = vld [vmem:[#allocation4 + $0x208] sm:$0xff]  ;;  %v5299_v14 = vld [vmem:[#allocation4 + $0x1c0] sm:$0xff] }
 0xcb6   :  { %v5296_v23 = vld [vmem:[#allocation4 + $0x210] sm:$0xff] }
 0xcb7   :  { %4784 = vtanh.f32 %v4087_v12  ;;  %v4088_v20 = vmul.f32 0.5, %v4084_v48  ;;  %v5294_v12 = vld [vmem:[#allocation4 + $0x218] sm:$0xff]  ;;  %v5295_v48 = vld [vmem:[#allocation4 + $0x200] sm:$0xff] }
 0xcb9   :  { %4786 = vtanh.f32 %v4088_v20  ;;  %v5297_v20 = vld [vmem:[#allocation4 + $0x1c8] sm:$0xff] }
 0xcba   :  { %4788 = vtanh.f32 %v4086_v40  ;;  %v5298_v40 = vld [vmem:[#allocation4 + $0x1d8] sm:$0xff] }
 0xcbb   :  { %4790 = vtanh.f32 %v4089_v29  ;;  %v5300_v29 = vld [vmem:[#allocation4 + $0x1d0] sm:$0xff] }
 0xcc4   :  { %v4785_v31 = vpop.eup %4784 }
 0xcc5   :  { %v4093_v61 = vadd.f32 1.0, %v4785_v31  ;;  %v5301_v31 = vld [vmem:[#allocation4 + $0x188] sm:$0xff] }
 0xcc6   :  { %v4787_v0 = vpop.eup %4786 }
 0xcc7   :  { %v4096_v41 = vmul.f32 0.5, %v4093_v61  ;;  %v4094_v25 = vadd.f32 1.0, %v4787_v0  ;;  %v4789_v52 = vpop.eup %4788  ;;  %v5302_v61 = vld [vmem:[#allocation4 + $0x198] sm:$0xff]  ;;  %v5303_v0 = vld [vmem:[#allocation4 + $0x180] sm:$0xff] }
 0xcc8   :  { %v4791_v13 = vpop.eup %4790 }
 0xcc9   :  { %v4097_v5 = vmul.f32 0.5, %v4094_v25  ;;  %v4101_v27 = vmul.f32 %v4789_v52, %v4096_v41  ;;  %v4095_v1 = vadd.f32 1.0, %v4791_v13  ;;  %v5304_v41 = vld [vmem:[#allocation4 + $0x190] sm:$0xff]  ;;  %v5305_v25 = vld [vmem:[#allocation4 + $0x148] sm:$0xff]  ;;  %v5307_v52 = vld [vmem:[#allocation4 + $0x140] sm:$0xff] }
 0xcca   :  { %v5310_v13 = vld [vmem:[#allocation4 + $0x118] sm:$0xff] }
 0xccb   :  { %v4100_v60 = vmul.f32 %v4097_v5, %v8267_v54  ;;  %v4098_v56 = vmul.f32 0.5, %v4095_v1  ;;  %v5268_v54 = vld [vmem:[#allocation4 + $0x3d0] sm:$0xff]  ;;  %v5306_v5 = vld [vmem:[#allocation4 + $0x158] sm:$0xff]  ;;  %v5311_v1 = vld [vmem:[#allocation4 + $0x100] sm:$0xff] }
 0xccd   :  { %v8462_v43 = vadd.f32 %v4101_v27, %v4100_v60  ;;  %v5308_v60 = vld [vmem:[#allocation4 + $0x150] sm:$0xff]  ;;  %v5309_v27 = vld [vmem:[#allocation4 + $0x108] sm:$0xff] }
 0xccf   :  { %4792 = vtanh.f32 %v8462_v43 }
 0xcdc   :  { %v4793_v17 = vpop.eup %4792 }
 0xcdd   :  { %v8465_v8 = vmul.f32 %v4793_v17, %v4098_v56  ;;  %v5312_v56 = vld [vmem:[#allocation4 + $0x110] sm:$0xff]  ;;  %v5313_v17 = vld [vmem:[#allocation4 + $0xc8] sm:$0xff] }
 0xcdf   :  { %4174 = vmatmul.mubr.f32.vlgmr.msra.gmra.mxu0 %v8465_v8  ;;  %4245 = vmatmul.mubr.f32.vlgmr.msra.gmra.mxu1 %v8465_v8  ;;  %v4453_v58 = vmul.f32 %v8277_v34, %v8465_v8 }
 0xce0   :  { %4275 = vmatpush1.msra.mxu0 %v5267_v28  ;;  %4346 = vmatpush1.msra.mxu1 %v5268_v54  ;;  %v5315_v28 = vld [vmem:[#allocation4 + $0xc0] sm:$0xff]  ;;  %v5316_v54 = vld [vmem:[#allocation4 + $0xd0] sm:$0xff] }
 0xce1   :  { %4473 = vadd.xlane.f32.xlu1 %v4453_v58  ;;  %4276 = vmatprep.subr.mxu0 %v5269_v57  ;;  %v5314_v58 = vld [vmem:[#allocation4 + $0xd8] sm:$0xff]  ;;  %v5317_v57 = vld [vmem:[#allocation4 + $0x88] sm:$0xff] }
 0xce2   :  { %4347 = vmatprep.subr.mxu1 %v5270_v11  ;;  %4277 = vmatpush1.msra.mxu0 %v5271_v47  ;;  %v5318_v11 = vld [vmem:[#allocation4 + $0x98] sm:$0xff]  ;;  %v5319_v47 = vld [vmem:[#allocation4 + $0x80] sm:$0xff] }
 0xce3   :  { %4348 = vmatpush1.msra.mxu1 %v5272_v46  ;;  %4278 = vmatprep.subr.mxu0 %v5273_v55  ;;  %v5320_v46 = vld [vmem:[#allocation4 + $0x90] sm:$0xff]  ;;  %v5321_v55 = vld [vmem:[#allocation4 + $0x48] sm:$0xff] }
 0xce4   :  { %4349 = vmatprep.subr.mxu1 %v5274_v50  ;;  %4279 = vmatpush1.msra.mxu0 %v5275_v15  ;;  %v5322_v50 = vld [vmem:[#allocation4 + $0x58] sm:$0xff]  ;;  %v5323_v15 = vld [vmem:[#allocation4 + $0x40] sm:$0xff] }
 0xce5   :  { %4350 = vmatpush1.msra.mxu1 %v5276_v32  ;;  %4280 = vmatprep.subr.mxu0 %v5277_v63  ;;  %v5324_v32 = vld [vmem:[#allocation4 + $0x50] sm:$0xff]  ;;  %v5325_v63 = vld [vmem:[#allocation4 + $0x8] sm:$0xff] }
 0xce6   :  { %4351 = vmatprep.subr.mxu1 %v5278_v4  ;;  %4281 = vmatpush1.msra.mxu0 %v5279_v53  ;;  %v5326_v4 = vld [vmem:[#allocation4 + $0x18] sm:$0xff]  ;;  %v5327_v53 = vld [vmem:[#allocation4] sm:$0xff] }
 0xce7   :  { %4352 = vmatpush1.msra.mxu1 %v5280_v42  ;;  %4282 = vmatprep.subr.mxu0 %v5281_v39  ;;  %v5328_v42 = vld [vmem:[#allocation4 + $0x10] sm:$0xff]  ;;  %v4007_v39 = vpop.f32.mrf.mxu0 }
 0xce8   :  { %4353 = vmatprep.subr.mxu1 %v5282_v30  ;;  %4283 = vmatpush1.msra.mxu0 %v5283_v44  ;;  %v4078_v30 = vpop.f32.mrf.mxu1 }
 0xce9   :  { %4354 = vmatpush1.msra.mxu1 %v5284_v59  ;;  %4284 = vmatprep.subr.mxu0 %v5285_v10  ;;  %v4009_v44 = vpop.f32.mrf.mxu0  ;;  %v4105_v10 = vadd.f32 %v4007_v39, %v10097_v19 }
 0xcea   :  { %4355 = vmatprep.subr.mxu1 %v5286_v37  ;;  %4285 = vmatpush1.msra.mxu0 %v5287_v51  ;;  %v4080_v59 = vpop.f32.mrf.mxu1 }
 0xceb   :  { %4356 = vmatpush1.msra.mxu1 %v5288_v45  ;;  %4286 = vmatprep.subr.mxu0 %v5289_v16  ;;  %v4106_v45 = vadd.f32 %v4009_v44, %v10098_v22 }
 0xcec   :  { %4357 = vmatprep.subr.mxu1 %v5290_v36  ;;  %4287 = vmatpush1.msra.mxu0 %v5291_v3 }
 0xced   :  { %4358 = vmatpush1.msra.mxu1 %v5292_v62  ;;  %4288 = vmatprep.subr.mxu0 %v5293_v33 }
 0xcee   :  { %4359 = vmatprep.subr.mxu1 %v5294_v12  ;;  %4289 = vmatpush1.msra.mxu0 %v5295_v48  ;;  %v4108_v12 = vadd.f32 %v4080_v59, %v7988_v26 }
 0xcef   :  { %4360 = vmatpush1.msra.mxu1 %v5296_v23  ;;  %4290 = vmatprep.subr.mxu0 %v5297_v20  ;;  %v4107_v23 = vadd.f32 %v4078_v30, %v7992_v24 }
 0xcf0   :  { %4361 = vmatprep.subr.mxu1 %v5298_v40  ;;  %4291 = vmatpush1.msra.mxu0 %v5299_v14 }
 0xcf1   :  { %4362 = vmatpush1.msra.mxu1 %v5300_v29  ;;  %4292 = vmatprep.subr.mxu0 %v5301_v31 }
 0xcf2   :  { %4363 = vmatprep.subr.mxu1 %v5302_v61  ;;  %4293 = vmatpush1.msra.mxu0 %v5303_v0 }
 0xcf3   :  { %4364 = vmatpush1.msra.mxu1 %v5304_v41  ;;  %4294 = vmatprep.subr.mxu0 %v5305_v25 }
 0xcf4   :  { %4365 = vmatprep.subr.mxu1 %v5306_v5  ;;  %4295 = vmatpush1.msra.mxu0 %v5307_v52 }
 0xcf5   :  { %4366 = vmatpush1.msra.mxu1 %v5308_v60  ;;  %4296 = vmatprep.subr.mxu0 %v5309_v27 }
 0xcf6   :  { %4367 = vmatprep.subr.mxu1 %v5310_v13  ;;  %4297 = vmatpush1.msra.mxu0 %v5311_v1 }
 0xcf7   :  { %4368 = vmatpush1.msra.mxu1 %v5312_v56  ;;  %4298 = vmatprep.subr.mxu0 %v5313_v17 }
 0xcf8   :  { %4369 = vmatprep.subr.mxu1 %v5314_v58  ;;  %4299 = vmatpush1.msra.mxu0 %v5315_v28 }
 0xcf9   :  { %4370 = vmatpush1.msra.mxu1 %v5316_v54  ;;  %4300 = vmatprep.subr.mxu0 %v5317_v57 }
 0xcfa   :  { %4371 = vmatprep.subr.mxu1 %v5318_v11  ;;  %4301 = vmatpush1.msra.mxu0 %v5319_v47 }
 0xcfb   :  { %4372 = vmatpush1.msra.mxu1 %v5320_v46  ;;  %4302 = vmatprep.subr.mxu0 %v5321_v55 }
 0xcfc   :  { %4373 = vmatprep.subr.mxu1 %v5322_v50  ;;  %4303 = vmatpush1.msra.mxu0 %v5323_v15 }
 0xcfd   :  { %4374 = vmatpush1.msra.mxu1 %v5324_v32  ;;  %4304 = vmatprep.subr.mxu0 %v5325_v63 }
 0xcfe   :  { %4375 = vmatprep.subr.mxu1 %v5326_v4  ;;  %4305 = vmatpush1.msra.mxu0 %v5327_v53 }
 0xcff   :  { %4338 = vmatprep.mubr.f32.mxu0 %v9237_v7  ;;  %4376 = vmatpush1.msra.mxu1 %v5328_v42 }
 0xd00   :  { %4409 = vmatprep.mubr.f32.mxu1 %v9237_v7 }
 0xd6a   :  { %v4474_v59 = vpop.xlane.xlu1 %4473 }
 0xd9f   :  { %v4175_v37 = vpop.f32.mrf.mxu0  ;;  %v4246_v51 = vpop.f32.mrf.mxu1 }
 0xda0   :  { %v4251_v16 = vadd.f32 %v4175_v37, %v4105_v10  ;;  %v4253_v20 = vadd.f32 %v4246_v51, %v4107_v23  ;;  %v4495_v10 = vadd.f32 %v8353_v38, %v4474_v59  ;;  %v4494_v37 = vadd.f32 %v8353_v38, %v8348_v2 }
 0xda1   :  { %v4177_v36 = vpop.f32.mrf.mxu0  ;;  %v4248_v33 = vpop.f32.mrf.mxu1 }
 0xda2   :  { %v4255_v3 = vmul.f32 0.5, %v4251_v16  ;;  %v4252_v62 = vadd.f32 %v4177_v36, %v4106_v45  ;;  %v4254_v7 = vadd.f32 %v4248_v33, %v4108_v12  ;;  %v4257_v19 = vmul.f32 0.5, %v4253_v20 }
 0xda3   :  { %v4549_v51 = vrot.slane %v4495_v10, %v8351_v9  ;;  %v4545_v16 = vrot.slane %v4494_v37, %v8351_v9 }
 0xda4   :  { %4794 = vtanh.f32 %v4255_v3  ;;  %v4256_v48 = vmul.f32 0.5, %v4252_v62 }
 0xda5   :  { %v4568_v3 = vsel %vm4554_vm0, %v4549_v51, %v4545_v16 }
 0xda6   :  { %4796 = vtanh.f32 %v4256_v48 }
 0xda7   :  { %4798 = vtanh.f32 %v4254_v7 }
 0xda8   :  { %4800 = vtanh.f32 %v4257_v19 }
 0xdb1   :  { %v4795_v40 = vpop.eup %4794 }
 0xdb2   :  { %v4261_v14 = vadd.f32 1.0, %v4795_v40 }
 0xdb3   :  { %v4797_v29 = vpop.eup %4796 }
 0xdb4   :  { %v4264_v22 = vmul.f32 0.5, %v4261_v14  ;;  %v4262_v31 = vadd.f32 1.0, %v4797_v29  ;;  %v4799_v0 = vpop.eup %4798 }
 0xdb5   :  { %v4801_v5 = vpop.eup %4800 }
 0xdb6   :  { %v4265_v61 = vmul.f32 0.5, %v4262_v31  ;;  %v4269_v26 = vmul.f32 %v4799_v0, %v4264_v22  ;;  %v4263_v52 = vadd.f32 1.0, %v4801_v5 }
 0xdb8   :  { %v4268_v41 = vmul.f32 %v4265_v61, %v8381_v6  ;;  %v4266_v60 = vmul.f32 0.5, %v4263_v52 }
 0xdba   :  { %v4270_v25 = vadd.f32 %v4269_v26, %v4268_v41 }
 0xdbc   :  { %4802 = vtanh.f32 %v4270_v25 }
 0xdc9   :  { %v4803_v24 = vpop.eup %4802 }
 0xdca   :  { %v4272_v27 = vmul.f32 %v4803_v24, %v4266_v60 }
 0xdcc   :  { %v4273_v13 = vadd.f32 %v4272_v27, %v8465_v8 }
 0xdce   :  { %4339 = vmatmul.mubr.f32.vlgmr.msra.gmra.mxu0 %v4273_v13  ;;  %4410 = vmatmul.mubr.f32.vlgmr.msra.gmra.mxu1 %v4273_v13 }
 0xe8e   :  { %v4340_v1 = vpop.f32.mrf.mxu0  ;;  %v4411_v56 = vpop.f32.mrf.mxu1 }
 0xe8f   :  { %v4416_v17 = vadd.f32 %v4340_v1, %v10026_v49  ;;  %v4418_v47 = vadd.f32 %v4411_v56, %v10029_v18 }
 0xe90   :  { %v4342_v58 = vpop.f32.mrf.mxu0  ;;  %v4413_v54 = vpop.f32.mrf.mxu1 }
 0xe91   :  { %v4420_v28 = vmul.f32 0.5, %v4416_v17  ;;  %v4417_v6 = vadd.f32 %v4342_v58, %v10027_v35  ;;  %v4419_v11 = vadd.f32 %v4413_v54, %v10028_v21  ;;  %v4422_v8 = vmul.f32 0.5, %v4418_v47 }
 0xe93   :  { %4804 = vtanh.f32 %v4420_v28  ;;  %v4421_v57 = vmul.f32 0.5, %v4417_v6 }
 0xe95   :  { %4806 = vtanh.f32 %v4421_v57 }
 0xe96   :  { %4808 = vtanh.f32 %v4419_v11 }
 0xe97   :  { %4810 = vtanh.f32 %v4422_v8 }
 0xea0   :  { %v4805_v46 = vpop.eup %4804 }
 0xea1   :  { %v4426_v55 = vadd.f32 1.0, %v4805_v46 }
 0xea2   :  { %v4807_v50 = vpop.eup %4806 }
 0xea3   :  { %v4429_v15 = vmul.f32 0.5, %v4426_v55  ;;  %v4427_v49 = vadd.f32 1.0, %v4807_v50  ;;  %v4809_v63 = vpop.eup %4808 }
 0xea4   :  { %v4811_v42 = vpop.eup %4810 }
 0xea5   :  { %v4430_v32 = vmul.f32 0.5, %v4427_v49  ;;  %v4434_v4 = vmul.f32 %v4809_v63, %v4429_v15  ;;  %v4428_v39 = vadd.f32 1.0, %v4811_v42 }
 0xea7   :  { %v4433_v35 = vmul.f32 %v4430_v32, %v8462_v43  ;;  %v4431_v21 = vmul.f32 0.5, %v4428_v39 }
 0xea9   :  { %v4435_v53 = vadd.f32 %v4434_v4, %v4433_v35 }
 0xeab   :  { %4812 = vtanh.f32 %v4435_v53 }
 0xeb8   :  { %v4813_v30 = vpop.eup %4812 }
 0xeb9   :  { %v4437_v44 = vmul.f32 %v4813_v30, %v4431_v21 }
 0xebb   :  { %v4454_v18 = vmul.f32 %v8277_v34, %v4437_v44 }
 0xebd   :  { %4475 = vadd.xlane.f32.xlu1 %v4454_v18 }
 0xf46   :  { %v4476_v43 = vpop.xlane.xlu1 %4475 }
 0xf47   :  { %v4496_v45 = vadd.f32 %v8353_v38, %v4476_v43 }
 0xf49   :  { %v4553_v36 = vrot.slane %v4496_v45, %v8351_v9 }
 0xf4b   :  { %v4569_v34 = vsel %vm4556_vm1, %v4553_v36, %v4568_v3 }
 0xf4c   :  { %4575 = vst.msk [vmem:[%s8506_s9 + $0x8] sm:$0x7] %vm4574_vm8, %v4569_v34 }
 0xf4d   :  { %4580 = vsyncpa [#allocation5], 1 }
 0xf4e   :  { %4581 = vsyncpa [#allocation7], 1 }

</bundles_post_ra>
